<compile_context>
chip_gen: v5e
topology: v5e:2x2
jax: 0.10.0
libtpu: 0.0.40
codegen_flags: <defaults>
</compile_context>

<pallas_src>
import functools

import jax
import jax.numpy as jnp
from jax import lax
from jax.experimental import pallas as pl
from jax.experimental.pallas import tpu as pltpu


_TAPS = tuple((kh, kw) for kh in range(3) for kw in range(3))


def _compiler_params():
    try:
        cap = int(pltpu.get_tpu_info().vmem_capacity_bytes)
        limit = max(32 * 1024 * 1024, min(96 * 1024 * 1024, (cap * 3) // 4))
    except Exception:  # no TPU info available -> conservative (v7x-safe) cap
        limit = 32 * 1024 * 1024
    return pltpu.CompilerParams(dimension_semantics=("parallel",),
                                vmem_limit_bytes=limit)


def _pick_images_per_step(n, m_per_image):
    """Largest divisor of n (<=8) so that B * Ho * Wo reaches ~512 MXU rows."""
    target = min(n, 8, max(1, 512 // max(1, m_per_image)))
    for b in range(target, 0, -1):
        if n % b == 0:
            return b
    return 1


# ---------------------------------------------------------------------------
# Fused kernel: bn1/relu -> conv1 -> bn2/relu -> conv2 -> (+ residual)
# ---------------------------------------------------------------------------

def _block_kernel(*refs, stride, bsz, ho, wo, cin, cout, identity):
    s = stride
    nph = s * s
    phase_refs = refs[:nph]
    pos = nph
    w1_ref = refs[pos]; pos += 1                 # (9, cin, cout) bf16
    w2_ref = refs[pos]; pos += 1                 # (9, cout, cout) bf16
    ws_ref = None
    if not identity:
        ws_ref = refs[pos]; pos += 1             # (cin, cout) bf16
    s1_ref, sh1_ref, s2_ref, sh2_ref = refs[pos:pos + 4]; pos += 4
    o_ref = refs[pos]                            # (bsz, ho, wo, cout)
    xa_ref = refs[pos + 1]                       # scratch (nph, bsz, hp, wp, cin) bf16
    h2_ref = refs[pos + 2]                       # scratch (bsz, ho+2, wo+2, cout) bf16

    hp = xa_ref.shape[2]
    wp = xa_ref.shape[3]
    scale1 = s1_ref[...]                         # (1, cin) f32
    shift1 = sh1_ref[...]

    # --- Stage A: bn1 + relu applied ONCE per element (hoisted out of the tap
    #     loop), cast once to bf16, stored into an exactly-zero-ringed scratch.
    z_row = jnp.zeros((bsz, 1, wp, cin), jnp.bfloat16)
    z_col = jnp.zeros((bsz, hp, 1, cin), jnp.bfloat16)
    for p in range(nph):
        a = jnp.maximum(phase_refs[p][...] * scale1 + shift1, 0.0)
        ah, aw = a.shape[1], a.shape[2]
        xa_ref[p, :, 1:1 + ah, 1:1 + aw, :] = a.astype(jnp.bfloat16)
        xa_ref[p, :, 0:1, :, :] = z_row
        xa_ref[p, :, :, 0:1, :] = z_col
        if s == 1:                               # stride 2 never reads bottom/right ring
            xa_ref[p, :, hp - 1:hp, :, :] = z_row
            xa_ref[p, :, :, wp - 1:wp, :] = z_col

    m = bsz * ho * wo

    # --- Stage B: conv1 (3x3, stride s, pad 1) as 9 accumulated MXU dots.
    acc = None
    for t, (kh, kw) in enumerate(_TAPS):
        if s == 1:
            p, r0, c0 = 0, kh, kw
        else:
            rp, r0 = (kh + 1) % 2, (0 if kh == 0 else 1)
            cp, c0 = (kw + 1) % 2, (0 if kw == 0 else 1)
            p = rp * 2 + cp
        tap = xa_ref[p, :, r0:r0 + ho, c0:c0 + wo, :]          # (bsz, ho, wo, cin) bf16
        d = jnp.dot(tap.reshape(m, cin), w1_ref[t],
                    preferred_element_type=jnp.float32)
        acc = d if acc is None else acc + d

    # --- Stage C: bn2 + relu epilogue (f32); h2 stays on-chip, zero-ringed.
    h2 = jnp.maximum(acc * s2_ref[...] + sh2_ref[...], 0.0)    # (m, cout) f32
    h2_ref[:, 1:ho + 1, 1:wo + 1, :] = h2.reshape(bsz, ho, wo, cout).astype(jnp.bfloat16)
    z2_row = jnp.zeros((bsz, 1, wo + 2, cout), jnp.bfloat16)
    z2_col = jnp.zeros((bsz, ho + 2, 1, cout), jnp.bfloat16)
    h2_ref[:, 0:1, :, :] = z2_row
    h2_ref[:, ho + 1:ho + 2, :, :] = z2_row
    h2_ref[:, :, 0:1, :] = z2_col
    h2_ref[:, :, wo + 1:wo + 2, :] = z2_col

    # --- Stage D: conv2 (3x3, stride 1, pad 1) as 9 accumulated dots + residual.
    acc2 = None
    for t, (kh, kw) in enumerate(_TAPS):
        tap = h2_ref[:, kh:kh + ho, kw:kw + wo, :]             # (bsz, ho, wo, cout) bf16
        d = jnp.dot(tap.reshape(m, cout), w2_ref[t],
                    preferred_element_type=jnp.float32)
        acc2 = d if acc2 is None else acc2 + d

    if identity:
        res = phase_refs[0][...]                               # raw x (f32), exact add
        acc2 = acc2 + res.reshape(m, cout)
    else:
        # relu(bn1(x)) at the strided residual positions == activated phase (0,0).
        xs = xa_ref[0, :, 1:ho + 1, 1:wo + 1, :]               # bf16
        acc2 = acc2 + jnp.dot(xs.reshape(m, cin), ws_ref[...],
                              preferred_element_type=jnp.float32)

    o_ref[...] = acc2.reshape(bsz, ho, wo, cout).astype(o_ref.dtype)


# ---------------------------------------------------------------------------
# pallas_call wrapper
# ---------------------------------------------------------------------------

def _basic_block_call(phases, w1, w2, ws, scale1, shift1, scale2, shift2, *,
                      stride, bsz, ho, wo, cin, cout):
    n = phases[0].shape[0]
    nph = len(phases)
    identity = ws is None
    hp = ho + 2 if stride == 1 else ho + 1
    wp = wo + 2 if stride == 1 else wo + 1

    kernel = functools.partial(_block_kernel, stride=stride, bsz=bsz, ho=ho,
                               wo=wo, cin=cin, cout=cout, identity=identity)

    blk4 = lambda i: (i, 0, 0, 0)
    c2 = lambda i: (0, 0)
    c3 = lambda i: (0, 0, 0)

    in_specs = [pl.BlockSpec((bsz,) + p.shape[1:], blk4) for p in phases]
    args = list(phases)
    in_specs += [pl.BlockSpec(w1.shape, c3), pl.BlockSpec(w2.shape, c3)]
    args += [w1, w2]
    if not identity:
        in_specs.append(pl.BlockSpec(ws.shape, c2))
        args.append(ws)
    for vec, c in ((scale1, cin), (shift1, cin), (scale2, cout), (shift2, cout)):
        in_specs.append(pl.BlockSpec((1, c), c2))
        args.append(vec.reshape(1, c))

    return pl.pallas_call(
        kernel,
        out_shape=jax.ShapeDtypeStruct((n, ho, wo, cout), jnp.float32),
        grid=(n // bsz,),
        in_specs=in_specs,
        out_specs=pl.BlockSpec((bsz, ho, wo, cout), blk4),
        scratch_shapes=[pltpu.VMEM((nph, bsz, hp, wp, cin), jnp.bfloat16),
                        pltpu.VMEM((bsz, ho + 2, wo + 2, cout), jnp.bfloat16)],
        compiler_params=_compiler_params(),
    )(*args)


# ---------------------------------------------------------------------------
# BasicBlock module (deterministic synthetic parameters)
# ---------------------------------------------------------------------------

class BasicBlockPallas:
    def __init__(self, key, in_planes, out_planes, stride, drop_rate=0.0):
        if drop_rate != 0.0:
            # TODO(synk): dropout via pltpu.prng_seed / pltpu.prng_random_bits.
            raise NotImplementedError("drop_rate > 0 not supported")
        self.in_planes = in_planes
        self.out_planes = out_planes
        self.stride = stride
        self.is_in_equal_out = in_planes == out_planes
        ks = jax.random.split(key, 11)
        eps = 1e-5

        def bn_fold(k0, k1, k2, k3, c):
            gamma = 1.0 + 0.1 * jax.random.normal(k0, (c,), jnp.float32)
            beta = 0.1 * jax.random.normal(k1, (c,), jnp.float32)
            mean = 0.1 * jax.random.normal(k2, (c,), jnp.float32)
            var = 1.0 + 0.1 * jax.random.uniform(k3, (c,), jnp.float32)
            scale = gamma / jnp.sqrt(var + eps)
            shift = beta - mean * scale
            return scale, shift

        self.scale1, self.shift1 = bn_fold(ks[0], ks[1], ks[2], ks[3], in_planes)
        self.scale2, self.shift2 = bn_fold(ks[4], ks[5], ks[6], ks[7], out_planes)

        std1 = (2.0 / (9 * in_planes)) ** 0.5
        std2 = (2.0 / (9 * out_planes)) ** 0.5
        # conv weights stored HWIO (3, 3, Cin, Cout), f32 (reference path).
        self.w1 = std1 * jax.random.normal(ks[8], (3, 3, in_planes, out_planes),
                                           jnp.float32)
        self.w2 = std2 * jax.random.normal(ks[9], (3, 3, out_planes, out_planes),
                                           jnp.float32)
        if not self.is_in_equal_out:
            stds = (2.0 / in_planes) ** 0.5
            self.ws = stds * jax.random.normal(ks[10], (in_planes, out_planes),
                                               jnp.float32)
        else:
            self.ws = None

        # Packed bf16 weights for the MXU kernel: (9, Cin, Cout) tap-major.
        self.w1k = self.w1.reshape(9, in_planes, out_planes).astype(jnp.bfloat16)
        self.w2k = self.w2.reshape(9, out_planes, out_planes).astype(jnp.bfloat16)
        self.wsk = None if self.ws is None else self.ws.astype(jnp.bfloat16)

    def __call__(self, x_nchw):
        s = self.stride
        assert s in (1, 2), "only stride 1 / 2 supported"
        x = jnp.transpose(x_nchw, (0, 2, 3, 1)).astype(jnp.float32)   # NHWC
        n, h, w, cin = x.shape
        if s == 2:
            # TODO(synk): odd spatial dims with stride 2 need an extra pad row/col.
            assert h % 2 == 0 and w % 2 == 0
        ho = (h - 1) // s + 1
        wo = (w - 1) // s + 1
        cout = self.out_planes

        # Stride-2: split the RAW input into the 4 (row, col) parity phases so the
        # kernel only ever uses contiguous unit-stride slices; exact zero padding
        # is built inside the kernel (no padded HBM materialisation, no pad-value
        # trick).  Stride-1: the input goes in untouched.
        if s == 1:
            phases = [x]
        else:
            phases = [x[:, p::2, q::2, :] for p in range(2) for q in range(2)]

        bsz = _pick_images_per_step(n, ho * wo)
        out = _basic_block_call(
            phases, self.w1k, self.w2k, self.wsk,
            self.scale1, self.shift1, self.scale2, self.shift2,
            stride=s, bsz=bsz, ho=ho, wo=wo, cin=cin, cout=cout)
        return jnp.transpose(out, (0, 3, 1, 2))   # back to NCHW (interface only)

    # Pure-JAX reference (correctness check only).
    def reference(self, x_nchw):
        s = self.stride
        dn = ("NHWC", "HWIO", "NHWC")
        x = jnp.transpose(x_nchw, (0, 2, 3, 1)).astype(jnp.float32)
        xa = jnp.maximum(x * self.scale1 + self.shift1, 0.0)
        y1 = lax.conv_general_dilated(xa, self.w1, (s, s), ((1, 1), (1, 1)),
                                      dimension_numbers=dn)
        h2 = jnp.maximum(y1 * self.scale2 + self.shift2, 0.0)
        y2 = lax.conv_general_dilated(h2, self.w2, (1, 1), ((1, 1), (1, 1)),
                                      dimension_numbers=dn)
        if self.is_in_equal_out:
            res = x[:, ::s, ::s, :]
        else:
            wsh = self.ws.reshape(1, 1, self.in_planes, self.out_planes)
            res = lax.conv_general_dilated(xa, wsh, (s, s), ((0, 0), (0, 0)),
                                           dimension_numbers=dn)
        return jnp.transpose(res + y2, (0, 3, 1, 2))


if __name__ == "__main__":
    key = jax.random.PRNGKey(0)
    kx, kp1, kp2 = jax.random.split(key, 3)

    # Config 1: in_planes != out_planes, stride 2 (fused 1x1 conv shortcut).
    N, Cin, Cout, H, W, stride = 2, 8, 16, 16, 16, 2
    x = jax.random.normal(kx, (N, Cin, H, W), jnp.float32)
    blk = BasicBlockPallas(kp1, Cin, Cout, stride, drop_rate=0.0)
    out = jax.block_until_ready(blk(x))
    ref = blk.reference(x)
    assert out.shape == (N, Cout, H // stride, W // stride), out.shape
    assert jnp.allclose(out, ref, rtol=3e-2, atol=3e-2), \
        float(jnp.max(jnp.abs(out - ref)))

    # Config 2: in_planes == out_planes, stride 1 (identity residual path).
    blk2 = BasicBlockPallas(kp2, Cin, Cin, 1, drop_rate=0.0)
    out2 = jax.block_until_ready(blk2(x))
    ref2 = blk2.reference(x)
    assert out2.shape == (N, Cin, H, W), out2.shape
    assert jnp.allclose(out2, ref2, rtol=3e-2, atol=3e-2), \
        float(jnp.max(jnp.abs(out2 - ref2)))

    print("KERNEL_OK")
</pallas_src>

<mosaic_0001>
module attributes {stable_mosaic.version = 11 : i64} {
  func.func @_block_kernel(%arg0: i32, %arg1: memref<2x8x8x8xf32, #tpu.memory_space<vmem>>, %arg2: memref<2x8x8x8xf32, #tpu.memory_space<vmem>>, %arg3: memref<2x8x8x8xf32, #tpu.memory_space<vmem>>, %arg4: memref<2x8x8x8xf32, #tpu.memory_space<vmem>>, %arg5: memref<9x8x16xbf16, #tpu.memory_space<vmem>>, %arg6: memref<9x16x16xbf16, #tpu.memory_space<vmem>>, %arg7: memref<8x16xbf16, #tpu.memory_space<vmem>>, %arg8: memref<1x8xf32, #tpu.memory_space<vmem>>, %arg9: memref<1x8xf32, #tpu.memory_space<vmem>>, %arg10: memref<1x16xf32, #tpu.memory_space<vmem>>, %arg11: memref<1x16xf32, #tpu.memory_space<vmem>>, %arg12: memref<2x8x8x16xf32, #tpu.memory_space<vmem>>, %arg13: memref<4x2x9x9x8xbf16, #tpu.memory_space<vmem>>, %arg14: memref<2x10x10x16xbf16, #tpu.memory_space<vmem>>) attributes {dimension_semantics = [#tpu.dimension_semantics<parallel>], iteration_bounds = array<i64: 1>, scalar_prefetch = 0 : i64, scratch_operands = 2 : i64, tpu.core_type = #tpu.core_type<tc>, window_params = [{transform_indices = @transform_0, window_bounds = array<i64: 2, 8, 8, 8>}, {transform_indices = @transform_1, window_bounds = array<i64: 2, 8, 8, 8>}, {transform_indices = @transform_2, window_bounds = array<i64: 2, 8, 8, 8>}, {transform_indices = @transform_3, window_bounds = array<i64: 2, 8, 8, 8>}, {pipeline_mode = #tpu.pipeline_mode<synchronous>, transform_indices = @transform_4, window_bounds = array<i64: 9, 8, 16>}, {pipeline_mode = #tpu.pipeline_mode<synchronous>, transform_indices = @transform_5, window_bounds = array<i64: 9, 16, 16>}, {pipeline_mode = #tpu.pipeline_mode<synchronous>, transform_indices = @transform_6, window_bounds = array<i64: 8, 16>}, {pipeline_mode = #tpu.pipeline_mode<synchronous>, transform_indices = @transform_7, window_bounds = array<i64: 1, 8>}, {pipeline_mode = #tpu.pipeline_mode<synchronous>, transform_indices = @transform_8, window_bounds = array<i64: 1, 8>}, {pipeline_mode = #tpu.pipeline_mode<synchronous>, transform_indices = @transform_9, window_bounds = array<i64: 1, 16>}, {pipeline_mode = #tpu.pipeline_mode<synchronous>, transform_indices = @transform_10, window_bounds = array<i64: 1, 16>}, {transform_indices = @transform_11, window_bounds = array<i64: 2, 8, 8, 16>}]} {
    %c0 = arith.constant 0 : index
    %c0_0 = arith.constant 0 : index
    %0 = vector.load %arg8[%c0, %c0_0] : memref<1x8xf32, #tpu.memory_space<vmem>>, vector<1x8xf32>
    %c0_1 = arith.constant 0 : index
    %c0_2 = arith.constant 0 : index
    %1 = vector.load %arg9[%c0_1, %c0_2] : memref<1x8xf32, #tpu.memory_space<vmem>>, vector<1x8xf32>
    %cst = arith.constant 0.000000e+00 : bf16
    %2 = vector.broadcast %cst : bf16 to vector<2x1x9x8xbf16>
    %cst_3 = arith.constant 0.000000e+00 : bf16
    %3 = vector.broadcast %cst_3 : bf16 to vector<2x9x1x8xbf16>
    %c0_4 = arith.constant 0 : index
    %c0_5 = arith.constant 0 : index
    %c0_6 = arith.constant 0 : index
    %c0_7 = arith.constant 0 : index
    %4 = vector.load %arg1[%c0_4, %c0_5, %c0_6, %c0_7] : memref<2x8x8x8xf32, #tpu.memory_space<vmem>>, vector<2x8x8x8xf32>
    %5 = vector.shape_cast %0 : vector<1x8xf32> to vector<1x1x1x8xf32>
    %6 = vector.broadcast %5 : vector<1x1x1x8xf32> to vector<2x8x8x8xf32>
    %7 = arith.mulf %4, %6 : vector<2x8x8x8xf32>
    %8 = vector.shape_cast %1 : vector<1x8xf32> to vector<1x1x1x8xf32>
    %9 = vector.broadcast %8 : vector<1x1x1x8xf32> to vector<2x8x8x8xf32>
    %10 = arith.addf %7, %9 : vector<2x8x8x8xf32>
    %cst_8 = arith.constant 0.000000e+00 : f32
    %11 = vector.broadcast %cst_8 : f32 to vector<2x8x8x8xf32>
    %12 = arith.maximumf %10, %11 : vector<2x8x8x8xf32>
    %13 = arith.truncf %12 : vector<2x8x8x8xf32> to vector<2x8x8x8xbf16>
    %c0_9 = arith.constant 0 : index
    %c0_10 = arith.constant 0 : index
    %c1 = arith.constant 1 : index
    %c1_11 = arith.constant 1 : index
    %c0_12 = arith.constant 0 : index
    %14 = vector.load %arg13[%c0_9, %c0_10, %c1, %c1_11, %c0_12] : memref<4x2x9x9x8xbf16, #tpu.memory_space<vmem>>, vector<1x2x8x8x8xbf16>
    %15 = vector.shape_cast %14 : vector<1x2x8x8x8xbf16> to vector<2x8x8x8xbf16>
    %16 = vector.shape_cast %13 : vector<2x8x8x8xbf16> to vector<1x2x8x8x8xbf16>
    tpu.vector_store %arg13[%c0_9, %c0_10, %c1, %c1_11, %c0_12], %16 {strides = array<i32>} : memref<4x2x9x9x8xbf16, #tpu.memory_space<vmem>>, vector<1x2x8x8x8xbf16>,
    %c0_13 = arith.constant 0 : index
    %c0_14 = arith.constant 0 : index
    %c0_15 = arith.constant 0 : index
    %c0_16 = arith.constant 0 : index
    %c0_17 = arith.constant 0 : index
    %17 = vector.load %arg13[%c0_13, %c0_14, %c0_15, %c0_16, %c0_17] : memref<4x2x9x9x8xbf16, #tpu.memory_space<vmem>>, vector<1x2x1x9x8xbf16>
    %18 = vector.shape_cast %17 : vector<1x2x1x9x8xbf16> to vector<2x1x9x8xbf16>
    %19 = vector.shape_cast %2 : vector<2x1x9x8xbf16> to vector<1x2x1x9x8xbf16>
    tpu.vector_store %arg13[%c0_13, %c0_14, %c0_15, %c0_16, %c0_17], %19 {strides = array<i32>} : memref<4x2x9x9x8xbf16, #tpu.memory_space<vmem>>, vector<1x2x1x9x8xbf16>,
    %c0_18 = arith.constant 0 : index
    %c0_19 = arith.constant 0 : index
    %c0_20 = arith.constant 0 : index
    %c0_21 = arith.constant 0 : index
    %c0_22 = arith.constant 0 : index
    %20 = vector.load %arg13[%c0_18, %c0_19, %c0_20, %c0_21, %c0_22] : memref<4x2x9x9x8xbf16, #tpu.memory_space<vmem>>, vector<1x2x9x1x8xbf16>
    %21 = vector.shape_cast %20 : vector<1x2x9x1x8xbf16> to vector<2x9x1x8xbf16>
    %22 = vector.shape_cast %3 : vector<2x9x1x8xbf16> to vector<1x2x9x1x8xbf16>
    tpu.vector_store %arg13[%c0_18, %c0_19, %c0_20, %c0_21, %c0_22], %22 {strides = array<i32>} : memref<4x2x9x9x8xbf16, #tpu.memory_space<vmem>>, vector<1x2x9x1x8xbf16>,
    %c0_23 = arith.constant 0 : index
    %c0_24 = arith.constant 0 : index
    %c0_25 = arith.constant 0 : index
    %c0_26 = arith.constant 0 : index
    %23 = vector.load %arg2[%c0_23, %c0_24, %c0_25, %c0_26] : memref<2x8x8x8xf32, #tpu.memory_space<vmem>>, vector<2x8x8x8xf32>
    %24 = vector.shape_cast %0 : vector<1x8xf32> to vector<1x1x1x8xf32>
    %25 = vector.broadcast %24 : vector<1x1x1x8xf32> to vector<2x8x8x8xf32>
    %26 = arith.mulf %23, %25 : vector<2x8x8x8xf32>
    %27 = vector.shape_cast %1 : vector<1x8xf32> to vector<1x1x1x8xf32>
    %28 = vector.broadcast %27 : vector<1x1x1x8xf32> to vector<2x8x8x8xf32>
    %29 = arith.addf %26, %28 : vector<2x8x8x8xf32>
    %cst_27 = arith.constant 0.000000e+00 : f32
    %30 = vector.broadcast %cst_27 : f32 to vector<2x8x8x8xf32>
    %31 = arith.maximumf %29, %30 : vector<2x8x8x8xf32>
    %32 = arith.truncf %31 : vector<2x8x8x8xf32> to vector<2x8x8x8xbf16>
    %c1_28 = arith.constant 1 : index
    %c0_29 = arith.constant 0 : index
    %c1_30 = arith.constant 1 : index
    %c1_31 = arith.constant 1 : index
    %c0_32 = arith.constant 0 : index
    %33 = vector.load %arg13[%c1_28, %c0_29, %c1_30, %c1_31, %c0_32] : memref<4x2x9x9x8xbf16, #tpu.memory_space<vmem>>, vector<1x2x8x8x8xbf16>
    %34 = vector.shape_cast %33 : vector<1x2x8x8x8xbf16> to vector<2x8x8x8xbf16>
    %35 = vector.shape_cast %32 : vector<2x8x8x8xbf16> to vector<1x2x8x8x8xbf16>
    tpu.vector_store %arg13[%c1_28, %c0_29, %c1_30, %c1_31, %c0_32], %35 {strides = array<i32>} : memref<4x2x9x9x8xbf16, #tpu.memory_space<vmem>>, vector<1x2x8x8x8xbf16>,
    %c1_33 = arith.constant 1 : index
    %c0_34 = arith.constant 0 : index
    %c0_35 = arith.constant 0 : index
    %c0_36 = arith.constant 0 : index
    %c0_37 = arith.constant 0 : index
    %36 = vector.load %arg13[%c1_33, %c0_34, %c0_35, %c0_36, %c0_37] : memref<4x2x9x9x8xbf16, #tpu.memory_space<vmem>>, vector<1x2x1x9x8xbf16>
    %37 = vector.shape_cast %36 : vector<1x2x1x9x8xbf16> to vector<2x1x9x8xbf16>
    %38 = vector.shape_cast %2 : vector<2x1x9x8xbf16> to vector<1x2x1x9x8xbf16>
    tpu.vector_store %arg13[%c1_33, %c0_34, %c0_35, %c0_36, %c0_37], %38 {strides = array<i32>} : memref<4x2x9x9x8xbf16, #tpu.memory_space<vmem>>, vector<1x2x1x9x8xbf16>,
    %c1_38 = arith.constant 1 : index
    %c0_39 = arith.constant 0 : index
    %c0_40 = arith.constant 0 : index
    %c0_41 = arith.constant 0 : index
    %c0_42 = arith.constant 0 : index
    %39 = vector.load %arg13[%c1_38, %c0_39, %c0_40, %c0_41, %c0_42] : memref<4x2x9x9x8xbf16, #tpu.memory_space<vmem>>, vector<1x2x9x1x8xbf16>
    %40 = vector.shape_cast %39 : vector<1x2x9x1x8xbf16> to vector<2x9x1x8xbf16>
    %41 = vector.shape_cast %3 : vector<2x9x1x8xbf16> to vector<1x2x9x1x8xbf16>
    tpu.vector_store %arg13[%c1_38, %c0_39, %c0_40, %c0_41, %c0_42], %41 {strides = array<i32>} : memref<4x2x9x9x8xbf16, #tpu.memory_space<vmem>>, vector<1x2x9x1x8xbf16>,
    %c0_43 = arith.constant 0 : index
    %c0_44 = arith.constant 0 : index
    %c0_45 = arith.constant 0 : index
    %c0_46 = arith.constant 0 : index
    %42 = vector.load %arg3[%c0_43, %c0_44, %c0_45, %c0_46] : memref<2x8x8x8xf32, #tpu.memory_space<vmem>>, vector<2x8x8x8xf32>
    %43 = vector.shape_cast %0 : vector<1x8xf32> to vector<1x1x1x8xf32>
    %44 = vector.broadcast %43 : vector<1x1x1x8xf32> to vector<2x8x8x8xf32>
    %45 = arith.mulf %42, %44 : vector<2x8x8x8xf32>
    %46 = vector.shape_cast %1 : vector<1x8xf32> to vector<1x1x1x8xf32>
    %47 = vector.broadcast %46 : vector<1x1x1x8xf32> to vector<2x8x8x8xf32>
    %48 = arith.addf %45, %47 : vector<2x8x8x8xf32>
    %cst_47 = arith.constant 0.000000e+00 : f32
    %49 = vector.broadcast %cst_47 : f32 to vector<2x8x8x8xf32>
    %50 = arith.maximumf %48, %49 : vector<2x8x8x8xf32>
    %51 = arith.truncf %50 : vector<2x8x8x8xf32> to vector<2x8x8x8xbf16>
    %c2 = arith.constant 2 : index
    %c0_48 = arith.constant 0 : index
    %c1_49 = arith.constant 1 : index
    %c1_50 = arith.constant 1 : index
    %c0_51 = arith.constant 0 : index
    %52 = vector.load %arg13[%c2, %c0_48, %c1_49, %c1_50, %c0_51] : memref<4x2x9x9x8xbf16, #tpu.memory_space<vmem>>, vector<1x2x8x8x8xbf16>
    %53 = vector.shape_cast %52 : vector<1x2x8x8x8xbf16> to vector<2x8x8x8xbf16>
    %54 = vector.shape_cast %51 : vector<2x8x8x8xbf16> to vector<1x2x8x8x8xbf16>
    tpu.vector_store %arg13[%c2, %c0_48, %c1_49, %c1_50, %c0_51], %54 {strides = array<i32>} : memref<4x2x9x9x8xbf16, #tpu.memory_space<vmem>>, vector<1x2x8x8x8xbf16>,
    %c2_52 = arith.constant 2 : index
    %c0_53 = arith.constant 0 : index
    %c0_54 = arith.constant 0 : index
    %c0_55 = arith.constant 0 : index
    %c0_56 = arith.constant 0 : index
    %55 = vector.load %arg13[%c2_52, %c0_53, %c0_54, %c0_55, %c0_56] : memref<4x2x9x9x8xbf16, #tpu.memory_space<vmem>>, vector<1x2x1x9x8xbf16>
    %56 = vector.shape_cast %55 : vector<1x2x1x9x8xbf16> to vector<2x1x9x8xbf16>
    %57 = vector.shape_cast %2 : vector<2x1x9x8xbf16> to vector<1x2x1x9x8xbf16>
    tpu.vector_store %arg13[%c2_52, %c0_53, %c0_54, %c0_55, %c0_56], %57 {strides = array<i32>} : memref<4x2x9x9x8xbf16, #tpu.memory_space<vmem>>, vector<1x2x1x9x8xbf16>,
    %c2_57 = arith.constant 2 : index
    %c0_58 = arith.constant 0 : index
    %c0_59 = arith.constant 0 : index
    %c0_60 = arith.constant 0 : index
    %c0_61 = arith.constant 0 : index
    %58 = vector.load %arg13[%c2_57, %c0_58, %c0_59, %c0_60, %c0_61] : memref<4x2x9x9x8xbf16, #tpu.memory_space<vmem>>, vector<1x2x9x1x8xbf16>
    %59 = vector.shape_cast %58 : vector<1x2x9x1x8xbf16> to vector<2x9x1x8xbf16>
    %60 = vector.shape_cast %3 : vector<2x9x1x8xbf16> to vector<1x2x9x1x8xbf16>
    tpu.vector_store %arg13[%c2_57, %c0_58, %c0_59, %c0_60, %c0_61], %60 {strides = array<i32>} : memref<4x2x9x9x8xbf16, #tpu.memory_space<vmem>>, vector<1x2x9x1x8xbf16>,
    %c0_62 = arith.constant 0 : index
    %c0_63 = arith.constant 0 : index
    %c0_64 = arith.constant 0 : index
    %c0_65 = arith.constant 0 : index
    %61 = vector.load %arg4[%c0_62, %c0_63, %c0_64, %c0_65] : memref<2x8x8x8xf32, #tpu.memory_space<vmem>>, vector<2x8x8x8xf32>
    %62 = vector.shape_cast %0 : vector<1x8xf32> to vector<1x1x1x8xf32>
    %63 = vector.broadcast %62 : vector<1x1x1x8xf32> to vector<2x8x8x8xf32>
    %64 = arith.mulf %61, %63 : vector<2x8x8x8xf32>
    %65 = vector.shape_cast %1 : vector<1x8xf32> to vector<1x1x1x8xf32>
    %66 = vector.broadcast %65 : vector<1x1x1x8xf32> to vector<2x8x8x8xf32>
    %67 = arith.addf %64, %66 : vector<2x8x8x8xf32>
    %cst_66 = arith.constant 0.000000e+00 : f32
    %68 = vector.broadcast %cst_66 : f32 to vector<2x8x8x8xf32>
    %69 = arith.maximumf %67, %68 : vector<2x8x8x8xf32>
    %70 = arith.truncf %69 : vector<2x8x8x8xf32> to vector<2x8x8x8xbf16>
    %c3 = arith.constant 3 : index
    %c0_67 = arith.constant 0 : index
    %c1_68 = arith.constant 1 : index
    %c1_69 = arith.constant 1 : index
    %c0_70 = arith.constant 0 : index
    %71 = vector.load %arg13[%c3, %c0_67, %c1_68, %c1_69, %c0_70] : memref<4x2x9x9x8xbf16, #tpu.memory_space<vmem>>, vector<1x2x8x8x8xbf16>
    %72 = vector.shape_cast %71 : vector<1x2x8x8x8xbf16> to vector<2x8x8x8xbf16>
    %73 = vector.shape_cast %70 : vector<2x8x8x8xbf16> to vector<1x2x8x8x8xbf16>
    tpu.vector_store %arg13[%c3, %c0_67, %c1_68, %c1_69, %c0_70], %73 {strides = array<i32>} : memref<4x2x9x9x8xbf16, #tpu.memory_space<vmem>>, vector<1x2x8x8x8xbf16>,
    %c3_71 = arith.constant 3 : index
    %c0_72 = arith.constant 0 : index
    %c0_73 = arith.constant 0 : index
    %c0_74 = arith.constant 0 : index
    %c0_75 = arith.constant 0 : index
    %74 = vector.load %arg13[%c3_71, %c0_72, %c0_73, %c0_74, %c0_75] : memref<4x2x9x9x8xbf16, #tpu.memory_space<vmem>>, vector<1x2x1x9x8xbf16>
    %75 = vector.shape_cast %74 : vector<1x2x1x9x8xbf16> to vector<2x1x9x8xbf16>
    %76 = vector.shape_cast %2 : vector<2x1x9x8xbf16> to vector<1x2x1x9x8xbf16>
    tpu.vector_store %arg13[%c3_71, %c0_72, %c0_73, %c0_74, %c0_75], %76 {strides = array<i32>} : memref<4x2x9x9x8xbf16, #tpu.memory_space<vmem>>, vector<1x2x1x9x8xbf16>,
    %c3_76 = arith.constant 3 : index
    %c0_77 = arith.constant 0 : index
    %c0_78 = arith.constant 0 : index
    %c0_79 = arith.constant 0 : index
    %c0_80 = arith.constant 0 : index
    %77 = vector.load %arg13[%c3_76, %c0_77, %c0_78, %c0_79, %c0_80] : memref<4x2x9x9x8xbf16, #tpu.memory_space<vmem>>, vector<1x2x9x1x8xbf16>
    %78 = vector.shape_cast %77 : vector<1x2x9x1x8xbf16> to vector<2x9x1x8xbf16>
    %79 = vector.shape_cast %3 : vector<2x9x1x8xbf16> to vector<1x2x9x1x8xbf16>
    tpu.vector_store %arg13[%c3_76, %c0_77, %c0_78, %c0_79, %c0_80], %79 {strides = array<i32>} : memref<4x2x9x9x8xbf16, #tpu.memory_space<vmem>>, vector<1x2x9x1x8xbf16>,
    %c3_81 = arith.constant 3 : index
    %c0_82 = arith.constant 0 : index
    %c0_83 = arith.constant 0 : index
    %c0_84 = arith.constant 0 : index
    %c0_85 = arith.constant 0 : index
    %80 = vector.load %arg13[%c3_81, %c0_82, %c0_83, %c0_84, %c0_85] : memref<4x2x9x9x8xbf16, #tpu.memory_space<vmem>>, vector<1x2x8x8x8xbf16>
    %81 = vector.shape_cast %80 : vector<1x2x8x8x8xbf16> to vector<2x8x8x8xbf16>
    %82 = vector.shape_cast %81 : vector<2x8x8x8xbf16> to vector<128x8xbf16>
    %c0_86 = arith.constant 0 : index
    %c0_87 = arith.constant 0 : index
    %c0_88 = arith.constant 0 : index
    %83 = vector.load %arg5[%c0_86, %c0_87, %c0_88] : memref<9x8x16xbf16, #tpu.memory_space<vmem>>, vector<1x8x16xbf16>
    %84 = vector.shape_cast %83 : vector<1x8x16xbf16> to vector<8x16xbf16>
    %cst_89 = arith.constant dense<0.000000e+00> : vector<128x16xf32>
    %85 = tpu.matmul %82, %84, %cst_89 {dimension_numbers = #tpu.dot_dimension_numbers<[1], [0], [0], [1], [0, 0, 1, 1], [], []>} : vector<128x8xbf16>, vector<8x16xbf16>, vector<128x16xf32> -> vector<128x16xf32>
    %c2_90 = arith.constant 2 : index
    %c0_91 = arith.constant 0 : index
    %c0_92 = arith.constant 0 : index
    %c1_93 = arith.constant 1 : index
    %c0_94 = arith.constant 0 : index
    %86 = vector.load %arg13[%c2_90, %c0_91, %c0_92, %c1_93, %c0_94] : memref<4x2x9x9x8xbf16, #tpu.memory_space<vmem>>, vector<1x2x8x8x8xbf16>
    %87 = vector.shape_cast %86 : vector<1x2x8x8x8xbf16> to vector<2x8x8x8xbf16>
    %88 = vector.shape_cast %87 : vector<2x8x8x8xbf16> to vector<128x8xbf16>
    %c1_95 = arith.constant 1 : index
    %c0_96 = arith.constant 0 : index
    %c0_97 = arith.constant 0 : index
    %89 = vector.load %arg5[%c1_95, %c0_96, %c0_97] : memref<9x8x16xbf16, #tpu.memory_space<vmem>>, vector<1x8x16xbf16>
    %90 = vector.shape_cast %89 : vector<1x8x16xbf16> to vector<8x16xbf16>
    %cst_98 = arith.constant dense<0.000000e+00> : vector<128x16xf32>
    %91 = tpu.matmul %88, %90, %cst_98 {dimension_numbers = #tpu.dot_dimension_numbers<[1], [0], [0], [1], [0, 0, 1, 1], [], []>} : vector<128x8xbf16>, vector<8x16xbf16>, vector<128x16xf32> -> vector<128x16xf32>
    %92 = arith.addf %85, %91 : vector<128x16xf32>
    %c3_99 = arith.constant 3 : index
    %c0_100 = arith.constant 0 : index
    %c0_101 = arith.constant 0 : index
    %c1_102 = arith.constant 1 : index
    %c0_103 = arith.constant 0 : index
    %93 = vector.load %arg13[%c3_99, %c0_100, %c0_101, %c1_102, %c0_103] : memref<4x2x9x9x8xbf16, #tpu.memory_space<vmem>>, vector<1x2x8x8x8xbf16>
    %94 = vector.shape_cast %93 : vector<1x2x8x8x8xbf16> to vector<2x8x8x8xbf16>
    %95 = vector.shape_cast %94 : vector<2x8x8x8xbf16> to vector<128x8xbf16>
    %c2_104 = arith.constant 2 : index
    %c0_105 = arith.constant 0 : index
    %c0_106 = arith.constant 0 : index
    %96 = vector.load %arg5[%c2_104, %c0_105, %c0_106] : memref<9x8x16xbf16, #tpu.memory_space<vmem>>, vector<1x8x16xbf16>
    %97 = vector.shape_cast %96 : vector<1x8x16xbf16> to vector<8x16xbf16>
    %cst_107 = arith.constant dense<0.000000e+00> : vector<128x16xf32>
    %98 = tpu.matmul %95, %97, %cst_107 {dimension_numbers = #tpu.dot_dimension_numbers<[1], [0], [0], [1], [0, 0, 1, 1], [], []>} : vector<128x8xbf16>, vector<8x16xbf16>, vector<128x16xf32> -> vector<128x16xf32>
    %99 = arith.addf %92, %98 : vector<128x16xf32>
    %c1_108 = arith.constant 1 : index
    %c0_109 = arith.constant 0 : index
    %c1_110 = arith.constant 1 : index
    %c0_111 = arith.constant 0 : index
    %c0_112 = arith.constant 0 : index
    %100 = vector.load %arg13[%c1_108, %c0_109, %c1_110, %c0_111, %c0_112] : memref<4x2x9x9x8xbf16, #tpu.memory_space<vmem>>, vector<1x2x8x8x8xbf16>
    %101 = vector.shape_cast %100 : vector<1x2x8x8x8xbf16> to vector<2x8x8x8xbf16>
    %102 = vector.shape_cast %101 : vector<2x8x8x8xbf16> to vector<128x8xbf16>
    %c3_113 = arith.constant 3 : index
    %c0_114 = arith.constant 0 : index
    %c0_115 = arith.constant 0 : index
    %103 = vector.load %arg5[%c3_113, %c0_114, %c0_115] : memref<9x8x16xbf16, #tpu.memory_space<vmem>>, vector<1x8x16xbf16>
    %104 = vector.shape_cast %103 : vector<1x8x16xbf16> to vector<8x16xbf16>
    %cst_116 = arith.constant dense<0.000000e+00> : vector<128x16xf32>
    %105 = tpu.matmul %102, %104, %cst_116 {dimension_numbers = #tpu.dot_dimension_numbers<[1], [0], [0], [1], [0, 0, 1, 1], [], []>} : vector<128x8xbf16>, vector<8x16xbf16>, vector<128x16xf32> -> vector<128x16xf32>
    %106 = arith.addf %99, %105 : vector<128x16xf32>
    %c0_117 = arith.constant 0 : index
    %c0_118 = arith.constant 0 : index
    %c1_119 = arith.constant 1 : index
    %c1_120 = arith.constant 1 : index
    %c0_121 = arith.constant 0 : index
    %107 = vector.load %arg13[%c0_117, %c0_118, %c1_119, %c1_120, %c0_121] : memref<4x2x9x9x8xbf16, #tpu.memory_space<vmem>>, vector<1x2x8x8x8xbf16>
    %108 = vector.shape_cast %107 : vector<1x2x8x8x8xbf16> to vector<2x8x8x8xbf16>
    %109 = vector.shape_cast %108 : vector<2x8x8x8xbf16> to vector<128x8xbf16>
    %c4 = arith.constant 4 : index
    %c0_122 = arith.constant 0 : index
    %c0_123 = arith.constant 0 : index
    %110 = vector.load %arg5[%c4, %c0_122, %c0_123] : memref<9x8x16xbf16, #tpu.memory_space<vmem>>, vector<1x8x16xbf16>
    %111 = vector.shape_cast %110 : vector<1x8x16xbf16> to vector<8x16xbf16>
    %cst_124 = arith.constant dense<0.000000e+00> : vector<128x16xf32>
    %112 = tpu.matmul %109, %111, %cst_124 {dimension_numbers = #tpu.dot_dimension_numbers<[1], [0], [0], [1], [0, 0, 1, 1], [], []>} : vector<128x8xbf16>, vector<8x16xbf16>, vector<128x16xf32> -> vector<128x16xf32>
    %113 = arith.addf %106, %112 : vector<128x16xf32>
    %c1_125 = arith.constant 1 : index
    %c0_126 = arith.constant 0 : index
    %c1_127 = arith.constant 1 : index
    %c1_128 = arith.constant 1 : index
    %c0_129 = arith.constant 0 : index
    %114 = vector.load %arg13[%c1_125, %c0_126, %c1_127, %c1_128, %c0_129] : memref<4x2x9x9x8xbf16, #tpu.memory_space<vmem>>, vector<1x2x8x8x8xbf16>
    %115 = vector.shape_cast %114 : vector<1x2x8x8x8xbf16> to vector<2x8x8x8xbf16>
    %116 = vector.shape_cast %115 : vector<2x8x8x8xbf16> to vector<128x8xbf16>
    %c5 = arith.constant 5 : index
    %c0_130 = arith.constant 0 : index
    %c0_131 = arith.constant 0 : index
    %117 = vector.load %arg5[%c5, %c0_130, %c0_131] : memref<9x8x16xbf16, #tpu.memory_space<vmem>>, vector<1x8x16xbf16>
    %118 = vector.shape_cast %117 : vector<1x8x16xbf16> to vector<8x16xbf16>
    %cst_132 = arith.constant dense<0.000000e+00> : vector<128x16xf32>
    %119 = tpu.matmul %116, %118, %cst_132 {dimension_numbers = #tpu.dot_dimension_numbers<[1], [0], [0], [1], [0, 0, 1, 1], [], []>} : vector<128x8xbf16>, vector<8x16xbf16>, vector<128x16xf32> -> vector<128x16xf32>
    %120 = arith.addf %113, %119 : vector<128x16xf32>
    %c3_133 = arith.constant 3 : index
    %c0_134 = arith.constant 0 : index
    %c1_135 = arith.constant 1 : index
    %c0_136 = arith.constant 0 : index
    %c0_137 = arith.constant 0 : index
    %121 = vector.load %arg13[%c3_133, %c0_134, %c1_135, %c0_136, %c0_137] : memref<4x2x9x9x8xbf16, #tpu.memory_space<vmem>>, vector<1x2x8x8x8xbf16>
    %122 = vector.shape_cast %121 : vector<1x2x8x8x8xbf16> to vector<2x8x8x8xbf16>
    %123 = vector.shape_cast %122 : vector<2x8x8x8xbf16> to vector<128x8xbf16>
    %c6 = arith.constant 6 : index
    %c0_138 = arith.constant 0 : index
    %c0_139 = arith.constant 0 : index
    %124 = vector.load %arg5[%c6, %c0_138, %c0_139] : memref<9x8x16xbf16, #tpu.memory_space<vmem>>, vector<1x8x16xbf16>
    %125 = vector.shape_cast %124 : vector<1x8x16xbf16> to vector<8x16xbf16>
    %cst_140 = arith.constant dense<0.000000e+00> : vector<128x16xf32>
    %126 = tpu.matmul %123, %125, %cst_140 {dimension_numbers = #tpu.dot_dimension_numbers<[1], [0], [0], [1], [0, 0, 1, 1], [], []>} : vector<128x8xbf16>, vector<8x16xbf16>, vector<128x16xf32> -> vector<128x16xf32>
    %127 = arith.addf %120, %126 : vector<128x16xf32>
    %c2_141 = arith.constant 2 : index
    %c0_142 = arith.constant 0 : index
    %c1_143 = arith.constant 1 : index
    %c1_144 = arith.constant 1 : index
    %c0_145 = arith.constant 0 : index
    %128 = vector.load %arg13[%c2_141, %c0_142, %c1_143, %c1_144, %c0_145] : memref<4x2x9x9x8xbf16, #tpu.memory_space<vmem>>, vector<1x2x8x8x8xbf16>
    %129 = vector.shape_cast %128 : vector<1x2x8x8x8xbf16> to vector<2x8x8x8xbf16>
    %130 = vector.shape_cast %129 : vector<2x8x8x8xbf16> to vector<128x8xbf16>
    %c7 = arith.constant 7 : index
    %c0_146 = arith.constant 0 : index
    %c0_147 = arith.constant 0 : index
    %131 = vector.load %arg5[%c7, %c0_146, %c0_147] : memref<9x8x16xbf16, #tpu.memory_space<vmem>>, vector<1x8x16xbf16>
    %132 = vector.shape_cast %131 : vector<1x8x16xbf16> to vector<8x16xbf16>
    %cst_148 = arith.constant dense<0.000000e+00> : vector<128x16xf32>
    %133 = tpu.matmul %130, %132, %cst_148 {dimension_numbers = #tpu.dot_dimension_numbers<[1], [0], [0], [1], [0, 0, 1, 1], [], []>} : vector<128x8xbf16>, vector<8x16xbf16>, vector<128x16xf32> -> vector<128x16xf32>
    %134 = arith.addf %127, %133 : vector<128x16xf32>
    %c3_149 = arith.constant 3 : index
    %c0_150 = arith.constant 0 : index
    %c1_151 = arith.constant 1 : index
    %c1_152 = arith.constant 1 : index
    %c0_153 = arith.constant 0 : index
    %135 = vector.load %arg13[%c3_149, %c0_150, %c1_151, %c1_152, %c0_153] : memref<4x2x9x9x8xbf16, #tpu.memory_space<vmem>>, vector<1x2x8x8x8xbf16>
    %136 = vector.shape_cast %135 : vector<1x2x8x8x8xbf16> to vector<2x8x8x8xbf16>
    %137 = vector.shape_cast %136 : vector<2x8x8x8xbf16> to vector<128x8xbf16>
    %c8 = arith.constant 8 : index
    %c0_154 = arith.constant 0 : index
    %c0_155 = arith.constant 0 : index
    %138 = vector.load %arg5[%c8, %c0_154, %c0_155] : memref<9x8x16xbf16, #tpu.memory_space<vmem>>, vector<1x8x16xbf16>
    %139 = vector.shape_cast %138 : vector<1x8x16xbf16> to vector<8x16xbf16>
    %cst_156 = arith.constant dense<0.000000e+00> : vector<128x16xf32>
    %140 = tpu.matmul %137, %139, %cst_156 {dimension_numbers = #tpu.dot_dimension_numbers<[1], [0], [0], [1], [0, 0, 1, 1], [], []>} : vector<128x8xbf16>, vector<8x16xbf16>, vector<128x16xf32> -> vector<128x16xf32>
    %141 = arith.addf %134, %140 : vector<128x16xf32>
    %c0_157 = arith.constant 0 : index
    %c0_158 = arith.constant 0 : index
    %142 = vector.load %arg10[%c0_157, %c0_158] : memref<1x16xf32, #tpu.memory_space<vmem>>, vector<1x16xf32>
    %143 = vector.broadcast %142 : vector<1x16xf32> to vector<128x16xf32>
    %144 = arith.mulf %141, %143 : vector<128x16xf32>
    %c0_159 = arith.constant 0 : index
    %c0_160 = arith.constant 0 : index
    %145 = vector.load %arg11[%c0_159, %c0_160] : memref<1x16xf32, #tpu.memory_space<vmem>>, vector<1x16xf32>
    %146 = vector.broadcast %145 : vector<1x16xf32> to vector<128x16xf32>
    %147 = arith.addf %144, %146 : vector<128x16xf32>
    %cst_161 = arith.constant 0.000000e+00 : f32
    %148 = vector.broadcast %cst_161 : f32 to vector<128x16xf32>
    %149 = arith.maximumf %147, %148 : vector<128x16xf32>
    %150 = vector.shape_cast %149 : vector<128x16xf32> to vector<2x8x8x16xf32>
    %151 = arith.truncf %150 : vector<2x8x8x16xf32> to vector<2x8x8x16xbf16>
    %c0_162 = arith.constant 0 : index
    %c1_163 = arith.constant 1 : index
    %c1_164 = arith.constant 1 : index
    %c0_165 = arith.constant 0 : index
    %152 = vector.load %arg14[%c0_162, %c1_163, %c1_164, %c0_165] : memref<2x10x10x16xbf16, #tpu.memory_space<vmem>>, vector<2x8x8x16xbf16>
    tpu.vector_store %arg14[%c0_162, %c1_163, %c1_164, %c0_165], %151 {strides = array<i32>} : memref<2x10x10x16xbf16, #tpu.memory_space<vmem>>, vector<2x8x8x16xbf16>,
    %cst_166 = arith.constant 0.000000e+00 : bf16
    %153 = vector.broadcast %cst_166 : bf16 to vector<2x1x10x16xbf16>
    %cst_167 = arith.constant 0.000000e+00 : bf16
    %154 = vector.broadcast %cst_167 : bf16 to vector<2x10x1x16xbf16>
    %c0_168 = arith.constant 0 : index
    %c0_169 = arith.constant 0 : index
    %c0_170 = arith.constant 0 : index
    %c0_171 = arith.constant 0 : index
    %155 = vector.load %arg14[%c0_168, %c0_169, %c0_170, %c0_171] : memref<2x10x10x16xbf16, #tpu.memory_space<vmem>>, vector<2x1x10x16xbf16>
    tpu.vector_store %arg14[%c0_168, %c0_169, %c0_170, %c0_171], %153 {strides = array<i32>} : memref<2x10x10x16xbf16, #tpu.memory_space<vmem>>, vector<2x1x10x16xbf16>,
    %c0_172 = arith.constant 0 : index
    %c9 = arith.constant 9 : index
    %c0_173 = arith.constant 0 : index
    %c0_174 = arith.constant 0 : index
    %156 = vector.load %arg14[%c0_172, %c9, %c0_173, %c0_174] : memref<2x10x10x16xbf16, #tpu.memory_space<vmem>>, vector<2x1x10x16xbf16>
    tpu.vector_store %arg14[%c0_172, %c9, %c0_173, %c0_174], %153 {strides = array<i32>} : memref<2x10x10x16xbf16, #tpu.memory_space<vmem>>, vector<2x1x10x16xbf16>,
    %c0_175 = arith.constant 0 : index
    %c0_176 = arith.constant 0 : index
    %c0_177 = arith.constant 0 : index
    %c0_178 = arith.constant 0 : index
    %157 = vector.load %arg14[%c0_175, %c0_176, %c0_177, %c0_178] : memref<2x10x10x16xbf16, #tpu.memory_space<vmem>>, vector<2x10x1x16xbf16>
    tpu.vector_store %arg14[%c0_175, %c0_176, %c0_177, %c0_178], %154 {strides = array<i32>} : memref<2x10x10x16xbf16, #tpu.memory_space<vmem>>, vector<2x10x1x16xbf16>,
    %c0_179 = arith.constant 0 : index
    %c0_180 = arith.constant 0 : index
    %c9_181 = arith.constant 9 : index
    %c0_182 = arith.constant 0 : index
    %158 = vector.load %arg14[%c0_179, %c0_180, %c9_181, %c0_182] : memref<2x10x10x16xbf16, #tpu.memory_space<vmem>>, vector<2x10x1x16xbf16>
    tpu.vector_store %arg14[%c0_179, %c0_180, %c9_181, %c0_182], %154 {strides = array<i32>} : memref<2x10x10x16xbf16, #tpu.memory_space<vmem>>, vector<2x10x1x16xbf16>,
    %c0_183 = arith.constant 0 : index
    %c0_184 = arith.constant 0 : index
    %c0_185 = arith.constant 0 : index
    %c0_186 = arith.constant 0 : index
    %159 = vector.load %arg14[%c0_183, %c0_184, %c0_185, %c0_186] : memref<2x10x10x16xbf16, #tpu.memory_space<vmem>>, vector<2x8x8x16xbf16>
    %160 = vector.shape_cast %159 : vector<2x8x8x16xbf16> to vector<128x16xbf16>
    %c0_187 = arith.constant 0 : index
    %c0_188 = arith.constant 0 : index
    %c0_189 = arith.constant 0 : index
    %161 = vector.load %arg6[%c0_187, %c0_188, %c0_189] : memref<9x16x16xbf16, #tpu.memory_space<vmem>>, vector<1x16x16xbf16>
    %162 = vector.shape_cast %161 : vector<1x16x16xbf16> to vector<16x16xbf16>
    %cst_190 = arith.constant dense<0.000000e+00> : vector<128x16xf32>
    %163 = tpu.matmul %160, %162, %cst_190 {dimension_numbers = #tpu.dot_dimension_numbers<[1], [0], [0], [1], [0, 0, 1, 1], [], []>} : vector<128x16xbf16>, vector<16x16xbf16>, vector<128x16xf32> -> vector<128x16xf32>
    %c0_191 = arith.constant 0 : index
    %c0_192 = arith.constant 0 : index
    %c1_193 = arith.constant 1 : index
    %c0_194 = arith.constant 0 : index
    %164 = vector.load %arg14[%c0_191, %c0_192, %c1_193, %c0_194] : memref<2x10x10x16xbf16, #tpu.memory_space<vmem>>, vector<2x8x8x16xbf16>
    %165 = vector.shape_cast %164 : vector<2x8x8x16xbf16> to vector<128x16xbf16>
    %c1_195 = arith.constant 1 : index
    %c0_196 = arith.constant 0 : index
    %c0_197 = arith.constant 0 : index
    %166 = vector.load %arg6[%c1_195, %c0_196, %c0_197] : memref<9x16x16xbf16, #tpu.memory_space<vmem>>, vector<1x16x16xbf16>
    %167 = vector.shape_cast %166 : vector<1x16x16xbf16> to vector<16x16xbf16>
    %cst_198 = arith.constant dense<0.000000e+00> : vector<128x16xf32>
    %168 = tpu.matmul %165, %167, %cst_198 {dimension_numbers = #tpu.dot_dimension_numbers<[1], [0], [0], [1], [0, 0, 1, 1], [], []>} : vector<128x16xbf16>, vector<16x16xbf16>, vector<128x16xf32> -> vector<128x16xf32>
    %169 = arith.addf %163, %168 : vector<128x16xf32>
    %c0_199 = arith.constant 0 : index
    %c0_200 = arith.constant 0 : index
    %c2_201 = arith.constant 2 : index
    %c0_202 = arith.constant 0 : index
    %170 = vector.load %arg14[%c0_199, %c0_200, %c2_201, %c0_202] : memref<2x10x10x16xbf16, #tpu.memory_space<vmem>>, vector<2x8x8x16xbf16>
    %171 = vector.shape_cast %170 : vector<2x8x8x16xbf16> to vector<128x16xbf16>
    %c2_203 = arith.constant 2 : index
    %c0_204 = arith.constant 0 : index
    %c0_205 = arith.constant 0 : index
    %172 = vector.load %arg6[%c2_203, %c0_204, %c0_205] : memref<9x16x16xbf16, #tpu.memory_space<vmem>>, vector<1x16x16xbf16>
    %173 = vector.shape_cast %172 : vector<1x16x16xbf16> to vector<16x16xbf16>
    %cst_206 = arith.constant dense<0.000000e+00> : vector<128x16xf32>
    %174 = tpu.matmul %171, %173, %cst_206 {dimension_numbers = #tpu.dot_dimension_numbers<[1], [0], [0], [1], [0, 0, 1, 1], [], []>} : vector<128x16xbf16>, vector<16x16xbf16>, vector<128x16xf32> -> vector<128x16xf32>
    %175 = arith.addf %169, %174 : vector<128x16xf32>
    %c0_207 = arith.constant 0 : index
    %c1_208 = arith.constant 1 : index
    %c0_209 = arith.constant 0 : index
    %c0_210 = arith.constant 0 : index
    %176 = vector.load %arg14[%c0_207, %c1_208, %c0_209, %c0_210] : memref<2x10x10x16xbf16, #tpu.memory_space<vmem>>, vector<2x8x8x16xbf16>
    %177 = vector.shape_cast %176 : vector<2x8x8x16xbf16> to vector<128x16xbf16>
    %c3_211 = arith.constant 3 : index
    %c0_212 = arith.constant 0 : index
    %c0_213 = arith.constant 0 : index
    %178 = vector.load %arg6[%c3_211, %c0_212, %c0_213] : memref<9x16x16xbf16, #tpu.memory_space<vmem>>, vector<1x16x16xbf16>
    %179 = vector.shape_cast %178 : vector<1x16x16xbf16> to vector<16x16xbf16>
    %cst_214 = arith.constant dense<0.000000e+00> : vector<128x16xf32>
    %180 = tpu.matmul %177, %179, %cst_214 {dimension_numbers = #tpu.dot_dimension_numbers<[1], [0], [0], [1], [0, 0, 1, 1], [], []>} : vector<128x16xbf16>, vector<16x16xbf16>, vector<128x16xf32> -> vector<128x16xf32>
    %181 = arith.addf %175, %180 : vector<128x16xf32>
    %c0_215 = arith.constant 0 : index
    %c1_216 = arith.constant 1 : index
    %c1_217 = arith.constant 1 : index
    %c0_218 = arith.constant 0 : index
    %182 = vector.load %arg14[%c0_215, %c1_216, %c1_217, %c0_218] : memref<2x10x10x16xbf16, #tpu.memory_space<vmem>>, vector<2x8x8x16xbf16>
    %183 = vector.shape_cast %182 : vector<2x8x8x16xbf16> to vector<128x16xbf16>
    %c4_219 = arith.constant 4 : index
    %c0_220 = arith.constant 0 : index
    %c0_221 = arith.constant 0 : index
    %184 = vector.load %arg6[%c4_219, %c0_220, %c0_221] : memref<9x16x16xbf16, #tpu.memory_space<vmem>>, vector<1x16x16xbf16>
    %185 = vector.shape_cast %184 : vector<1x16x16xbf16> to vector<16x16xbf16>
    %cst_222 = arith.constant dense<0.000000e+00> : vector<128x16xf32>
    %186 = tpu.matmul %183, %185, %cst_222 {dimension_numbers = #tpu.dot_dimension_numbers<[1], [0], [0], [1], [0, 0, 1, 1], [], []>} : vector<128x16xbf16>, vector<16x16xbf16>, vector<128x16xf32> -> vector<128x16xf32>
    %187 = arith.addf %181, %186 : vector<128x16xf32>
    %c0_223 = arith.constant 0 : index
    %c1_224 = arith.constant 1 : index
    %c2_225 = arith.constant 2 : index
    %c0_226 = arith.constant 0 : index
    %188 = vector.load %arg14[%c0_223, %c1_224, %c2_225, %c0_226] : memref<2x10x10x16xbf16, #tpu.memory_space<vmem>>, vector<2x8x8x16xbf16>
    %189 = vector.shape_cast %188 : vector<2x8x8x16xbf16> to vector<128x16xbf16>
    %c5_227 = arith.constant 5 : index
    %c0_228 = arith.constant 0 : index
    %c0_229 = arith.constant 0 : index
    %190 = vector.load %arg6[%c5_227, %c0_228, %c0_229] : memref<9x16x16xbf16, #tpu.memory_space<vmem>>, vector<1x16x16xbf16>
    %191 = vector.shape_cast %190 : vector<1x16x16xbf16> to vector<16x16xbf16>
    %cst_230 = arith.constant dense<0.000000e+00> : vector<128x16xf32>
    %192 = tpu.matmul %189, %191, %cst_230 {dimension_numbers = #tpu.dot_dimension_numbers<[1], [0], [0], [1], [0, 0, 1, 1], [], []>} : vector<128x16xbf16>, vector<16x16xbf16>, vector<128x16xf32> -> vector<128x16xf32>
    %193 = arith.addf %187, %192 : vector<128x16xf32>
    %c0_231 = arith.constant 0 : index
    %c2_232 = arith.constant 2 : index
    %c0_233 = arith.constant 0 : index
    %c0_234 = arith.constant 0 : index
    %194 = vector.load %arg14[%c0_231, %c2_232, %c0_233, %c0_234] : memref<2x10x10x16xbf16, #tpu.memory_space<vmem>>, vector<2x8x8x16xbf16>
    %195 = vector.shape_cast %194 : vector<2x8x8x16xbf16> to vector<128x16xbf16>
    %c6_235 = arith.constant 6 : index
    %c0_236 = arith.constant 0 : index
    %c0_237 = arith.constant 0 : index
    %196 = vector.load %arg6[%c6_235, %c0_236, %c0_237] : memref<9x16x16xbf16, #tpu.memory_space<vmem>>, vector<1x16x16xbf16>
    %197 = vector.shape_cast %196 : vector<1x16x16xbf16> to vector<16x16xbf16>
    %cst_238 = arith.constant dense<0.000000e+00> : vector<128x16xf32>
    %198 = tpu.matmul %195, %197, %cst_238 {dimension_numbers = #tpu.dot_dimension_numbers<[1], [0], [0], [1], [0, 0, 1, 1], [], []>} : vector<128x16xbf16>, vector<16x16xbf16>, vector<128x16xf32> -> vector<128x16xf32>
    %199 = arith.addf %193, %198 : vector<128x16xf32>
    %c0_239 = arith.constant 0 : index
    %c2_240 = arith.constant 2 : index
    %c1_241 = arith.constant 1 : index
    %c0_242 = arith.constant 0 : index
    %200 = vector.load %arg14[%c0_239, %c2_240, %c1_241, %c0_242] : memref<2x10x10x16xbf16, #tpu.memory_space<vmem>>, vector<2x8x8x16xbf16>
    %201 = vector.shape_cast %200 : vector<2x8x8x16xbf16> to vector<128x16xbf16>
    %c7_243 = arith.constant 7 : index
    %c0_244 = arith.constant 0 : index
    %c0_245 = arith.constant 0 : index
    %202 = vector.load %arg6[%c7_243, %c0_244, %c0_245] : memref<9x16x16xbf16, #tpu.memory_space<vmem>>, vector<1x16x16xbf16>
    %203 = vector.shape_cast %202 : vector<1x16x16xbf16> to vector<16x16xbf16>
    %cst_246 = arith.constant dense<0.000000e+00> : vector<128x16xf32>
    %204 = tpu.matmul %201, %203, %cst_246 {dimension_numbers = #tpu.dot_dimension_numbers<[1], [0], [0], [1], [0, 0, 1, 1], [], []>} : vector<128x16xbf16>, vector<16x16xbf16>, vector<128x16xf32> -> vector<128x16xf32>
    %205 = arith.addf %199, %204 : vector<128x16xf32>
    %c0_247 = arith.constant 0 : index
    %c2_248 = arith.constant 2 : index
    %c2_249 = arith.constant 2 : index
    %c0_250 = arith.constant 0 : index
    %206 = vector.load %arg14[%c0_247, %c2_248, %c2_249, %c0_250] : memref<2x10x10x16xbf16, #tpu.memory_space<vmem>>, vector<2x8x8x16xbf16>
    %207 = vector.shape_cast %206 : vector<2x8x8x16xbf16> to vector<128x16xbf16>
    %c8_251 = arith.constant 8 : index
    %c0_252 = arith.constant 0 : index
    %c0_253 = arith.constant 0 : index
    %208 = vector.load %arg6[%c8_251, %c0_252, %c0_253] : memref<9x16x16xbf16, #tpu.memory_space<vmem>>, vector<1x16x16xbf16>
    %209 = vector.shape_cast %208 : vector<1x16x16xbf16> to vector<16x16xbf16>
    %cst_254 = arith.constant dense<0.000000e+00> : vector<128x16xf32>
    %210 = tpu.matmul %207, %209, %cst_254 {dimension_numbers = #tpu.dot_dimension_numbers<[1], [0], [0], [1], [0, 0, 1, 1], [], []>} : vector<128x16xbf16>, vector<16x16xbf16>, vector<128x16xf32> -> vector<128x16xf32>
    %211 = arith.addf %205, %210 : vector<128x16xf32>
    %c0_255 = arith.constant 0 : index
    %c0_256 = arith.constant 0 : index
    %c1_257 = arith.constant 1 : index
    %c1_258 = arith.constant 1 : index
    %c0_259 = arith.constant 0 : index
    %212 = vector.load %arg13[%c0_255, %c0_256, %c1_257, %c1_258, %c0_259] : memref<4x2x9x9x8xbf16, #tpu.memory_space<vmem>>, vector<1x2x8x8x8xbf16>
    %213 = vector.shape_cast %212 : vector<1x2x8x8x8xbf16> to vector<2x8x8x8xbf16>
    %214 = vector.shape_cast %213 : vector<2x8x8x8xbf16> to vector<128x8xbf16>
    %c0_260 = arith.constant 0 : index
    %c0_261 = arith.constant 0 : index
    %215 = vector.load %arg7[%c0_260, %c0_261] : memref<8x16xbf16, #tpu.memory_space<vmem>>, vector<8x16xbf16>
    %cst_262 = arith.constant dense<0.000000e+00> : vector<128x16xf32>
    %216 = tpu.matmul %214, %215, %cst_262 {dimension_numbers = #tpu.dot_dimension_numbers<[1], [0], [0], [1], [0, 0, 1, 1], [], []>} : vector<128x8xbf16>, vector<8x16xbf16>, vector<128x16xf32> -> vector<128x16xf32>
    %217 = arith.addf %211, %216 : vector<128x16xf32>
    %218 = vector.shape_cast %217 : vector<128x16xf32> to vector<2x8x8x16xf32>
    %c0_263 = arith.constant 0 : index
    %c0_264 = arith.constant 0 : index
    %c0_265 = arith.constant 0 : index
    %c0_266 = arith.constant 0 : index
    %219 = vector.load %arg12[%c0_263, %c0_264, %c0_265, %c0_266] : memref<2x8x8x16xf32, #tpu.memory_space<vmem>>, vector<2x8x8x16xf32>
    tpu.vector_store %arg12[%c0_263, %c0_264, %c0_265, %c0_266], %218 {strides = array<i32>} : memref<2x8x8x16xf32, #tpu.memory_space<vmem>>, vector<2x8x8x16xf32>,
    return
  }
  func.func @transform_0(%arg0: i32) -> (i32, i32, i32, i32) {
    %c0_i32 = arith.constant 0 : i32
    %c0_i32_0 = arith.constant 0 : i32
    %c0_i32_1 = arith.constant 0 : i32
    %c0_i32_2 = arith.constant 0 : i32
    return %arg0, %c0_i32, %c0_i32_0, %c0_i32_1 : i32, i32, i32, i32
  }
  func.func @transform_1(%arg0: i32) -> (i32, i32, i32, i32) {
    %c0_i32 = arith.constant 0 : i32
    %c0_i32_0 = arith.constant 0 : i32
    %c0_i32_1 = arith.constant 0 : i32
    %c0_i32_2 = arith.constant 0 : i32
    return %arg0, %c0_i32, %c0_i32_0, %c0_i32_1 : i32, i32, i32, i32
  }
  func.func @transform_2(%arg0: i32) -> (i32, i32, i32, i32) {
    %c0_i32 = arith.constant 0 : i32
    %c0_i32_0 = arith.constant 0 : i32
    %c0_i32_1 = arith.constant 0 : i32
    %c0_i32_2 = arith.constant 0 : i32
    return %arg0, %c0_i32, %c0_i32_0, %c0_i32_1 : i32, i32, i32, i32
  }
  func.func @transform_3(%arg0: i32) -> (i32, i32, i32, i32) {
    %c0_i32 = arith.constant 0 : i32
    %c0_i32_0 = arith.constant 0 : i32
    %c0_i32_1 = arith.constant 0 : i32
    %c0_i32_2 = arith.constant 0 : i32
    return %arg0, %c0_i32, %c0_i32_0, %c0_i32_1 : i32, i32, i32, i32
  }
  func.func @transform_4(%arg0: i32) -> (i32, i32, i32) {
    %c0_i32 = arith.constant 0 : i32
    %c0_i32_0 = arith.constant 0 : i32
    %c0_i32_1 = arith.constant 0 : i32
    %c0_i32_2 = arith.constant 0 : i32
    return %c0_i32, %c0_i32_0, %c0_i32_1 : i32, i32, i32
  }
  func.func @transform_5(%arg0: i32) -> (i32, i32, i32) {
    %c0_i32 = arith.constant 0 : i32
    %c0_i32_0 = arith.constant 0 : i32
    %c0_i32_1 = arith.constant 0 : i32
    %c0_i32_2 = arith.constant 0 : i32
    return %c0_i32, %c0_i32_0, %c0_i32_1 : i32, i32, i32
  }
  func.func @transform_6(%arg0: i32) -> (i32, i32) {
    %c0_i32 = arith.constant 0 : i32
    %c0_i32_0 = arith.constant 0 : i32
    %c0_i32_1 = arith.constant 0 : i32
    return %c0_i32, %c0_i32_0 : i32, i32
  }
  func.func @transform_7(%arg0: i32) -> (i32, i32) {
    %c0_i32 = arith.constant 0 : i32
    %c0_i32_0 = arith.constant 0 : i32
    %c0_i32_1 = arith.constant 0 : i32
    return %c0_i32, %c0_i32_0 : i32, i32
  }
  func.func @transform_8(%arg0: i32) -> (i32, i32) {
    %c0_i32 = arith.constant 0 : i32
    %c0_i32_0 = arith.constant 0 : i32
    %c0_i32_1 = arith.constant 0 : i32
    return %c0_i32, %c0_i32_0 : i32, i32
  }
  func.func @transform_9(%arg0: i32) -> (i32, i32) {
    %c0_i32 = arith.constant 0 : i32
    %c0_i32_0 = arith.constant 0 : i32
    %c0_i32_1 = arith.constant 0 : i32
    return %c0_i32, %c0_i32_0 : i32, i32
  }
  func.func @transform_10(%arg0: i32) -> (i32, i32) {
    %c0_i32 = arith.constant 0 : i32
    %c0_i32_0 = arith.constant 0 : i32
    %c0_i32_1 = arith.constant 0 : i32
    return %c0_i32, %c0_i32_0 : i32, i32
  }
  func.func @transform_11(%arg0: i32) -> (i32, i32, i32, i32) {
    %c0_i32 = arith.constant 0 : i32
    %c0_i32_0 = arith.constant 0 : i32
    %c0_i32_1 = arith.constant 0 : i32
    %c0_i32_2 = arith.constant 0 : i32
    return %arg0, %c0_i32, %c0_i32_0, %c0_i32_1 : i32, i32, i32, i32
  }
}

</mosaic_0001>

<bundles_post_ra>
// kernel: tpu_custom_call.1
= control target key start
LH: loop header
LB: loop body
LE: loop exit
PB: predicated region body
PF: predicated region fallthrough
CT: control target
= control target key end

     0   :  { %16 = vsyncpa [#allocation5], 0  ;;  %s10824_s0 = inlined_call_operand.hbm [shape: f32[2,8,8,8], index: 0, kind: input, shape index: {}]   ;;  %s10825_s1 = inlined_call_operand.hbm [shape: f32[2,8,8,8], index: 1, kind: input, shape index: {}]   ;;  %s10826_s2 = inlined_call_operand.hbm [shape: f32[2,8,8,8], index: 2, kind: input, shape index: {}]   ;;  %s10827_s3 = inlined_call_operand.hbm [shape: f32[2,8,8,8], index: 3, kind: input, shape index: {}]   ;;  %s10828_s4 = inlined_call_operand.hbm [shape: bf16[9,8,16], index: 4, kind: input, shape index: {}]   ;;  %s10829_s5 = inlined_call_operand.hbm [shape: bf16[9,16,16], index: 5, kind: input, shape index: {}]   ;;  %s10830_s6 = inlined_call_operand.vmem [shape: bf16[8,16], index: 6, kind: input, shape index: {}]   ;;  %s10831_s7 = inlined_call_operand.vmem [shape: f32[1,8], index: 7, kind: input, shape index: {}]   ;;  %s10832_s8 = inlined_call_operand.vmem [shape: f32[1,8], index: 8, kind: input, shape index: {}]   ;;  %s10833_s9 = inlined_call_operand.vmem [shape: f32[1,16], index: 9, kind: input, shape index: {}]   ;;  %s10834_s10 = inlined_call_operand.vmem [shape: f32[1,16], index: 10, kind: input, shape index: {}]   ;;  %s10835_s11 = inlined_call_operand.hbm [shape: f32[2,8,8,16], index: 11, kind: output, shape index: {}]  }
   0x1   :  { %17 = vsyncpa [#allocation8], 0 }
   0x2   :  { %18 = vsyncpa [#allocation11], 0 }
   0x3   :  { %19 = vsyncpa [#allocation14], 0 }
   0x4   :  { %20 = vsyncpa [#allocation6], 0  ;;  %s38_s19 = sshll.u32 %s10825_s1, 4  ;;  %s8250_s20 = smov [#allocation7]   ;;  %s39_s19 = int_to_ptr.hbm [resolvable:$true] %s38_s19 }
   0x5   :  { %s40_s21 = sshll.u32 %s8250_s20, 4  ;;  %s64_s24 = sshll.u32 %s10827_s3, 4  ;;  %s41_s21 = int_to_ptr.vmem [resolvable:$true] %s40_s21  ;;  %s65_s24 = int_to_ptr.hbm [resolvable:$true] %s64_s24 }
   0x6   :  { %s8251_s25 = smov 128   ;;  %s8252_s26 = smov 8  }
   0x7   :  { %46 = dma.hbm_to_vmem [thread:$0]  %s39_s19, 2048, %s41_s21, [#allocation8], %s8251_s25, %s8251_s25, %s8252_s26  }
   0x8   :  { %s8253_s27 = smov [#allocation10]   ;;  %s25_s1 = sshll.u32 %s10824_s0, 4  ;;  %s26_s1 = int_to_ptr.hbm [resolvable:$true] %s25_s1 }
   0x9   :  { %s66_s28 = sshll.u32 %s8253_s27, 4  ;;  %s51_s13 = sshll.u32 %s10826_s2, 4  ;;  %s67_s28 = int_to_ptr.vmem [resolvable:$true] %s66_s28  ;;  %s52_s13 = int_to_ptr.hbm [resolvable:$true] %s51_s13 }
   0xa   :  { %72 = dma.hbm_to_vmem [thread:$0]  %s65_s24, 2048, %s67_s28, [#allocation11], %s8251_s25, %s8251_s25, %s8252_s26  }
   0xb   :  { %s8254_s14 = smov [#allocation4]   ;;  %s8255_s16 = smov [#allocation9]  }
   0xc   :  { %s27_s15 = sshll.u32 %s8254_s14, 4  ;;  %s53_s0 = sshll.u32 %s8255_s16, 4  ;;  %s28_s15 = int_to_ptr.vmem [resolvable:$true] %s27_s15  ;;  %s54_s0 = int_to_ptr.vmem [resolvable:$true] %s53_s0 }
   0xd   :  { %33 = dma.hbm_to_vmem [thread:$0]  %s26_s1, 2048, %s28_s15, [#allocation5], %s8251_s25, %s8251_s25, %s8252_s26  }
   0xe   :  { %s77_s19 = sshll.u32 %s10828_s4, 4  ;;  %s8256_s2 = smov [#allocation12]   ;;  %s78_s19 = int_to_ptr.hbm [resolvable:$true] %s77_s19 }
   0xf   :  { %59 = dma.hbm_to_vmem [thread:$0]  %s52_s13, 2048, %s54_s0, [#allocation8], %s8251_s25, %s8251_s25, %s8252_s26  }
  0x10   :  { %s79_s20 = sshll.u32 %s8256_s2, 4  ;;  %s90_s23 = sshll.u32 %s10829_s5, 4  ;;  %s80_s20 = int_to_ptr.vmem [resolvable:$true] %s79_s20  ;;  %s91_s23 = int_to_ptr.hbm [resolvable:$true] %s90_s23 }
  0x11   :  { %s8257_s24 = smov 64   ;;  %s8258_s27 = smov 4  }
  0x12   :  { %85 = dma.hbm_to_vmem [thread:$0]  %s78_s19, 576, %s80_s20, [#allocation11], %s8257_s24, %s8257_s24, %s8258_s27  }
  0x13   :  { %s8259_s28 = smov [#allocation13]  }
  0x14   :  { %s92_s29 = sshll.u32 %s8259_s28, 4  ;;  %s93_s29 = int_to_ptr.vmem [resolvable:$true] %s92_s29 }
  0x15   :  { %98 = dma.hbm_to_vmem [thread:$0]  %s91_s23, 1152, %s93_s29, [#allocation14], %s8257_s24, %s8257_s24, %s8258_s27  }
  0x16   :  { %8240 = dma.done.wait [#allocation5], 2048  }
  0x17   :  { %8241 = vsyncadd [#allocation5], 4294965248 }
  0x18   :  { %8242 = dma.done.wait [#allocation8], 4096  }
  0x19   :  { %8243 = vsyncadd [#allocation8], 4294963200 }
  0x1a   :  { %8244 = dma.done.wait [#allocation11], 2624  }
  0x1b   :  { %8245 = vsyncadd [#allocation11], 4294964672 }
  0x1c   :  { %8246 = dma.done.wait [#allocation14], 1152  }
  0x1d   :  { %8247 = vsyncadd [#allocation14], 4294966144  ;;  %vm383_vm0 = vcmask 60416   ;;  %v10836_v0 = vmov 0   ;;  %vm389_vm1 = vcmask 57344   ;;  %vm2075_vm4 = vcmask 1043456  }
  0x1e   :  { %486 = vst.msk [vmem:[#allocation2] sm:$0xf] %vm383_vm0, %v10836_v0  ;;  %vm390_vm2 = vsmask.f32 256  ;;  %v487_v2 = vld [vmem:[#allocation2 + $0x4] sm:$0x1] }
  0x1f   :  { %490 = vst.msk [vmem:[#allocation2 + $0x48] sm:$0xf] %vm383_vm0, %v10836_v0  ;;  %vm8361_vm3 = vmand %vm389_vm1, %vm390_vm2  ;;  %v491_v3 = vld [vmem:[#allocation2 + $0x4c] sm:$0x1]  ;;  %v887_v4 = vld [vmem:[#allocation2 + $0x94] sm:$0x1] }
  0x20   :  { %886 = vst.msk [vmem:[#allocation2 + $0x90] sm:$0xf] %vm383_vm0, %v10836_v0  ;;  %v488_v5 = vsel %vm8361_vm3, 0, %v487_v2  ;;  %v492_v6 = vsel %vm8361_vm3, 0, %v491_v3  ;;  %v888_v7 = vsel %vm8361_vm3, 0, %v887_v4  ;;  %v948_v13 = vld [vmem:[#allocation9] sm:$0xff] }
  0x21   :  { %890 = vst.msk [vmem:[#allocation2 + $0xd8] sm:$0xf] %vm383_vm0, %v10836_v0  ;;  %v891_v8 = vld [vmem:[#allocation2 + $0xdc] sm:$0x1]  ;;  %v2025_v10 = vld [vmem:[#allocation12 + $0x4] sm:$0xf] }
  0x22   :  { %1286 = vst.msk [vmem:[#allocation2 + $0x120] sm:$0xf] %vm383_vm0, %v10836_v0  ;;  %v892_v9 = vsel %vm8361_vm3, 0, %v891_v8  ;;  %v2077_v11 = vsel %vm2075_vm4, %v2025_v10, 0  ;;  %v1764_v12 = vld [vmem:[#allocation12] sm:$0xf] }
  0x23   :  { %489 = vst [vmem:[#allocation2 + $0x4] sm:$0x1] %v488_v5  ;;  %2086 = vmatpush.bf16.msra.mxu0 %v2077_v11  ;;  %8029 = vmatpush.bf16.msra.mxu3 %v2077_v11  ;;  %v2193_v14 = vsel %vm2075_vm4, %v1764_v12, 0  ;;  %v2501_v15 = vld [vmem:[#allocation12 + $0x8] sm:$0xf]  ;;  %v959_v16 = vld [vmem:[#allocation9 + $0x58] sm:$0xff] }
  0x24   :  { %493 = vst [vmem:[#allocation2 + $0x4c] sm:$0x1] %v492_v6  ;;  %v960_v17 = vld [vmem:[#allocation9 + $0x60] sm:$0xff]  ;;  %2202 = vmatpush.bf16.msra.mxu1 %v2193_v14  ;;  %v8378_v19 = vsel %vm2075_vm4, %v2501_v15, 0  ;;  %v949_v20 = vld [vmem:[#allocation9 + $0x8] sm:$0xff]  ;;  %v950_v31 = vld [vmem:[#allocation9 + $0x10] sm:$0xff] }
  0x25   :  { %889 = vst [vmem:[#allocation2 + $0x94] sm:$0x1] %v888_v7  ;;  %v1348_v18 = vld [vmem:[#allocation10] sm:$0xff]  ;;  %2560 = vmatpush.bf16.msra.mxu2 %v8378_v19  ;;  %v961_v48 = vld [vmem:[#allocation9 + $0x68] sm:$0xff]  ;;  %vm384_vm5 = vsmask.f32 7938 }
  0x26   :  { %893 = vst [vmem:[#allocation2 + $0xdc] sm:$0x1] %v892_v9  ;;  %v8384_v21 = vld [vmem:[%s10831_s7] ss:$0 sm:$0xff]  ;;  %v521_v24 = vld [vmem:[#allocation2 + $0x48] sm:$0x1]  ;;  %vm8425_vm6 = vmand %vm383_vm0, %vm384_vm5 }
  0x27   :  { %8030 = vmatpush.bf16.msrb.mxu3 %v2193_v14  ;;  %v8389_v22 = vld [vmem:[%s10832_s8] ss:$0 sm:$0xff]  ;;  %v894_v25 = vld [vmem:[#allocation2 + $0x90] sm:$0x1]  ;;  %v522_v27 = vsel %vm8361_vm3, 0, %v521_v24  ;;  %v964_v30 = vmul.f32 %v8384_v21, %v948_v13  ;;  %v975_v33 = vmul.f32 %v8384_v21, %v959_v16  ;;  %v976_v34 = vmul.f32 %v8384_v21, %v960_v17  ;;  %s7528_s13 = sshll.u32 %s10835_s11, 4  ;;  %s7529_s13 = int_to_ptr.hbm [resolvable:$true] %s7528_s13 }
  0x28   :  { %v494_v23 = vld [vmem:[#allocation2] sm:$0x1]  ;;  %v895_v28 = vsel %vm8361_vm3, 0, %v894_v25  ;;  %v921_v29 = vld [vmem:[#allocation2 + $0xd8] sm:$0x1]  ;;  %v1364_v35 = vmul.f32 %v8384_v21, %v1348_v18  ;;  %v965_v38 = vmul.f32 %v8384_v21, %v949_v20  ;;  %v966_v43 = vmul.f32 %v8384_v21, %v950_v31  ;;  %v962_v55 = vld [vmem:[#allocation9 + $0x70] sm:$0xff] }
  0x29   :  { %v495_v26 = vsel %vm8361_vm3, 0, %v494_v23  ;;  %v922_v32 = vsel %vm8361_vm3, 0, %v921_v29  ;;  %523 = vst [vmem:[#allocation2 + $0x48] sm:$0x1] %v522_v27  ;;  %v980_v36 = vadd.f32 %v8389_v22, %v964_v30  ;;  %v1287_v37 = vld [vmem:[#allocation2 + $0x124] sm:$0x1]  ;;  %v991_v41 = vadd.f32 %v8389_v22, %v975_v33 }
  0x2a   :  { %496 = vst [vmem:[#allocation2] sm:$0x1] %v495_v26  ;;  %v1288_v39 = vsel %vm8361_vm3, 0, %v1287_v37  ;;  %v1294_v40 = vld [vmem:[#allocation2 + $0x120] sm:$0x1]  ;;  %v992_v42 = vadd.f32 %v8389_v22, %v976_v34  ;;  %v1380_v46 = vadd.f32 %v8389_v22, %v1364_v35  ;;  %v981_v47 = vadd.f32 %v8389_v22, %v965_v38 }
  0x2b   :  { %896 = vst [vmem:[#allocation2 + $0x90] sm:$0x1] %v895_v28  ;;  %v996_v44 = vmax.f32 %v980_v36, 0.0  ;;  %v1295_v45 = vsel %vm8361_vm3, 0, %v1294_v40  ;;  %v1007_v49 = vmax.f32 %v991_v41, 0.0  ;;  %v982_v54 = vadd.f32 %v8389_v22, %v966_v43 }
  0x2c   :  { %923 = vst [vmem:[#allocation2 + $0xd8] sm:$0x1] %v922_v32  ;;  %v1008_v50 = vmax.f32 %v992_v42, 0.0  ;;  %v977_v56 = vmul.f32 %v8384_v21, %v961_v48  ;;  %v1396_v59 = vmax.f32 %v1380_v46, 0.0  ;;  %v997_v60 = vmax.f32 %v981_v47, 0.0 }
  0x2d   :  { %1289 = vst [vmem:[#allocation2 + $0x124] sm:$0x1] %v1288_v39  ;;  %v1012_v51 = vpack.c.bf16 %v996_v44, %v996_v44  ;;  %v1023_v52 = vpack.c.bf16 %v1007_v49, %v1007_v49  ;;  %v1189_v4 = vld [vmem:[#allocation2 + $0x128] sm:$0xf]  ;;  %v1192_v5 = vld [vmem:[#allocation2 + $0x12c] sm:$0x1]  ;;  %v978_v7 = vmul.f32 %v8384_v21, %v962_v55 }
  0x2e   :  { %1296 = vst [vmem:[#allocation2 + $0x120] sm:$0x1] %v1295_v45  ;;  %v1024_v53 = vpack.c.bf16 %v1008_v50, %v1008_v50  ;;  %v1412_v6 = vpack.c.bf16 %v1396_v59, %v1396_v59  ;;  %vm1797_vm7 = vsmask.f32 3328  ;;  %vm1798_vm8 = vsmask.f32 7440 }
  0x2f   :  { %1290 = vst.msk [vmem:[#allocation2 + $0x168] sm:$0xf] %vm383_vm0, %v10836_v0  ;;  %v1029_v57 = vshrl.u32 %v1012_v51, 16  ;;  %v1032_v58 = vshll.u32 %v1012_v51, 16  ;;  %v1117_v61 = vshrl.u32 %v1023_v52, 16  ;;  %v1120_v62 = vshll.u32 %v1023_v52, 16  ;;  %vm8456_vm9 = vmor %vm1797_vm7, %vm1798_vm8 }
  0x30   :  { %1686 = vst.msk [vmem:[#allocation2 + $0x1b0] sm:$0xf] %vm383_vm0, %v10836_v0  ;;  %v1125_v63 = vshrl.u32 %v1024_v53, 16  ;;  %v1128_v2 = vshll.u32 %v1024_v53, 16  ;;  %v1255_v11 = vld [vmem:[#allocation2 + $0x188] sm:$0xf]  ;;  %v993_v13 = vadd.f32 %v8389_v22, %v977_v56  ;;  %v1013_v20 = vpack.c.bf16 %v997_v60, %v997_v60 }
  0x31   :  { %1690 = vst.msk [vmem:[#allocation2 + $0x1f8] sm:$0xf] %vm383_vm0, %v10836_v0  ;;  %v1031_v3 = vrot.slane %v1029_v57, 7  ;;  %v1119_v9 = vrot.slane %v1117_v61, 7  ;;  %v998_v12 = vmax.f32 %v982_v54, 0.0  ;;  %v1429_v18 = vshrl.u32 %v1412_v6, 16 }
  0x32   :  { %v1127_v10 = vrot.slane %v1125_v63, 7  ;;  %v1258_v17 = vld [vmem:[#allocation2 + $0x18c] sm:$0x1]  ;;  %v1261_v27 = vld [vmem:[#allocation2 + $0x190] sm:$0xf]  ;;  %v1432_v28 = vshll.u32 %v1412_v6, 16  ;;  %v8443_v47 = vadd.f32 %v8389_v22, %v978_v7 }
  0x33   :  { %v1034_v14 = vor.u32 %v1032_v58, %v1031_v3  ;;  %v1035_v15 = vrot.slane %v1031_v3, 4  ;;  %v1122_v24 = vor.u32 %v1120_v62, %v1119_v9  ;;  %v1123_v25 = vrot.slane %v1119_v9, 4  ;;  %v1264_v33 = vld [vmem:[#allocation2 + $0x194] sm:$0x1]  ;;  %v1589_v44 = vld [vmem:[#allocation2 + $0x1b8] sm:$0xf] }
  0x34   :  { %v1766_v16 = vld [vmem:[#allocation2 + $0x124] sm:$0x1]  ;;  %v1130_v26 = vor.u32 %v1128_v2, %v1127_v10  ;;  %v1131_v35 = vrot.slane %v1127_v10, 4  ;;  %v1431_v42 = vrot.slane %v1429_v18, 7  ;;  %v1592_v45 = vld [vmem:[#allocation2 + $0x1bc] sm:$0x1]  ;;  %v1014_v46 = vpack.c.bf16 %v998_v12, %v998_v12 }
  0x35   :  { %v1765_v23 = vld [vmem:[#allocation2 + $0x120] sm:$0xf]  ;;  %v1190_v29 = vsel %vm8425_vm6, %v1034_v14, %v1189_v4  ;;  %v1193_v30 = vsel %vm8361_vm3, %v1035_v15, %v1192_v5  ;;  %v1810_v34 = vshll.u32 %v1766_v16, 16  ;;  %v1256_v36 = vsel %vm8425_vm6, %v1122_v24, %v1255_v11  ;;  %v1687_v51 = vld [vmem:[#allocation2 + $0x1b4] sm:$0x1]  ;;  %v1349_v11 = vld [vmem:[#allocation10 + $0x8] sm:$0xff] }
  0x36   :  { %v1801_v31 = vshrl.u32 %v1765_v23, 16  ;;  %v1804_v32 = vshll.u32 %v1765_v23, 16  ;;  %1191 = vst [vmem:[#allocation2 + $0x128] sm:$0xf] %v1190_v29  ;;  %v1259_v37 = vsel %vm8361_vm3, %v1123_v25, %v1258_v17  ;;  %v1262_v41 = vsel %vm8425_vm6, %v1130_v26, %v1261_v27  ;;  %v1195_v56 = vld [vmem:[#allocation2 + $0x130] sm:$0xf] }
  0x37   :  { %v1694_v38 = vld [vmem:[#allocation2 + $0x1b0] sm:$0x1]  ;;  %1194 = vst [vmem:[#allocation2 + $0x12c] sm:$0x1] %v1193_v30  ;;  %v1265_v43 = vsel %vm8361_vm3, %v1131_v35, %v1264_v33  ;;  %v1434_v49 = vor.u32 %v1432_v28, %v1431_v42  ;;  %v1435_v50 = vrot.slane %v1431_v42, 4  ;;  %v1037_v52 = vshrl.u32 %v1013_v20, 16 }
  0x38   :  { %v1803_v39 = vrot.slane %v1801_v31, 4  ;;  %v1806_v40 = vrot.slane %v1804_v32, 5  ;;  %1257 = vst [vmem:[#allocation2 + $0x188] sm:$0xf] %v1256_v36  ;;  %v1695_v53 = vsel %vm8361_vm3, 0, %v1694_v38  ;;  %v1040_v54 = vshll.u32 %v1013_v20, 16 }
  0x39   :  { %1260 = vst [vmem:[#allocation2 + $0x18c] sm:$0x1] %v1259_v37  ;;  %v1045_v55 = vshrl.u32 %v1014_v46, 16  ;;  %v1009_v57 = vmax.f32 %v993_v13, 0.0  ;;  %v1812_v58 = vrot.slane %v1810_v34, 5  ;;  %v1590_v59 = vsel %vm8425_vm6, %v1434_v49, %v1589_v44  ;;  %v1350_v42 = vld [vmem:[#allocation10 + $0x10] sm:$0xff] }
  0x3a   :  { %v1807_v48 = vor.u32 %v1806_v40, %v1803_v39  ;;  %1263 = vst [vmem:[#allocation2 + $0x190] sm:$0xf] %v1262_v41  ;;  %v1593_v60 = vsel %vm8361_vm3, %v1435_v50, %v1592_v45  ;;  %v3025_v61 = vld [vmem:[#allocation12 + $0x10] sm:$0xf]  ;;  %v1039_v62 = vrot.slane %v1037_v52, 7  ;;  %v1688_v2 = vsel %vm8361_vm3, 0, %v1687_v51 }
  0x3b   :  { %1266 = vst [vmem:[#allocation2 + $0x194] sm:$0x1] %v1265_v43  ;;  %v3075_v3 = vsel %vm2075_vm4, %v3025_v61, 0  ;;  %v1025_v4 = vpack.c.bf16 %v1009_v57, %v1009_v57  ;;  %v1047_v9 = vrot.slane %v1045_v55, 7  ;;  %v1048_v10 = vshll.u32 %v1014_v46, 16 }
  0x3c   :  { %v1808_v63 = vrot.slane %v1807_v48, 4  ;;  %1591 = vst [vmem:[#allocation2 + $0x1b8] sm:$0xf] %v1590_v59  ;;  %3084 = vmatpush.bf16.msrb.mxu0 %v3075_v3  ;;  %v1042_v7 = vor.u32 %v1040_v54, %v1039_v62  ;;  %v1198_v14 = vld [vmem:[#allocation2 + $0x134] sm:$0x1]  ;;  %v1010_v15 = vmax.f32 %v8443_v47, 0.0  ;;  %v1365_v36 = vmul.f32 %v8384_v21, %v1349_v11 }
  0x3d   :  { %v1297_v5 = vld [vmem:[#allocation2 + $0x128] sm:$0x1]  ;;  %1696 = vst [vmem:[#allocation2 + $0x1b0] sm:$0x1] %v1695_v53  ;;  %v1043_v18 = vrot.slane %v1039_v62, 4  ;;  %v1133_v28 = vshrl.u32 %v1025_v4, 16  ;;  %v1050_v31 = vor.u32 %v1048_v10, %v1047_v9 }
  0x3e   :  { %v1298_v12 = vsel %vm8361_vm3, 0, %v1297_v5  ;;  %v1768_v13 = vld [vmem:[#allocation2 + $0x12c] sm:$0x1]  ;;  %1594 = vst [vmem:[#allocation2 + $0x1bc] sm:$0x1] %v1593_v60  ;;  %v1196_v20 = vsel %vm8425_vm6, %v1042_v7, %v1195_v56  ;;  %v1813_v23 = vsel %vm8456_vm9, %v1808_v63, %v1812_v58  ;;  %v1051_v32 = vrot.slane %v1047_v9, 4 }
  0x3f   :  { %1299 = vst [vmem:[#allocation2 + $0x128] sm:$0x1] %v1298_v12  ;;  %v1824_v16 = vshll.u32 %v1768_v13, 16  ;;  %v1333_v17 = vld [vmem:[#allocation2 + $0x188] sm:$0x1]  ;;  %v8471_v35 = vrot.slane %v1133_v28, 7  ;;  %v8474_v37 = vunpack.c.l.b16 %v1813_v23  ;;  %v1199_v40 = vsel %vm8361_vm3, %v1043_v18, %v1198_v14 }
  0x40   :  { %v1334_v24 = vsel %vm8361_vm3, 0, %v1333_v17  ;;  %v1790_v25 = vld [vmem:[#allocation2 + $0x18c] sm:$0x1]  ;;  %1689 = vst [vmem:[#allocation2 + $0x1b4] sm:$0x1] %v1688_v2  ;;  %v8478_v41 = vpack.c.bf16 %v1010_v15, %v1010_v15  ;;  %vm2050_vm10 = vcmask 64512   ;;  %v1366_v58 = vmul.f32 %v8384_v21, %v1350_v42 }
  0x41   :  { %v1201_v26 = vld [vmem:[#allocation2 + $0x138] sm:$0xf]  ;;  %v1204_v27 = vld [vmem:[#allocation2 + $0x13c] sm:$0x1]  ;;  %1335 = vst [vmem:[#allocation2 + $0x188] sm:$0x1] %v1334_v24 }
  0x42   :  { %v1336_v29 = vld [vmem:[#allocation2 + $0x190] sm:$0x1]  ;;  %v1978_v30 = vshll.u32 %v1790_v25, 16  ;;  %v1792_v34 = vld [vmem:[#allocation2 + $0x194] sm:$0x1]  ;;  %v8480_v43 = vrot.slane %v1824_v16, 5  ;;  %v1202_v51 = vsel %vm8425_vm6, %v1050_v31, %v1201_v26  ;;  %v1205_v52 = vsel %vm8361_vm3, %v1051_v32, %v1204_v27 }
  0x43   :  { %v1337_v33 = vsel %vm8361_vm3, 0, %v1336_v29  ;;  %1197 = vst [vmem:[#allocation2 + $0x130] sm:$0xf] %v1196_v20  ;;  %v1992_v38 = vshll.u32 %v1792_v34, 16  ;;  %v1697_v39 = vld [vmem:[#allocation2 + $0x1b8] sm:$0x1]  ;;  %v1381_v32 = vadd.f32 %v8389_v22, %v1365_v36 }
  0x44   :  { %1338 = vst [vmem:[#allocation2 + $0x190] sm:$0x1] %v1337_v33  ;;  %v8482_v44 = vrot.slane %v1978_v30, 5  ;;  %v1698_v45 = vsel %vm8361_vm3, 0, %v1697_v39  ;;  %v2244_v46 = vld [vmem:[#allocation2 + $0x1b0] sm:$0xf]  ;;  %v8504_v33 = vadd.f32 %v8389_v22, %v1366_v58 }
  0x45   :  { %v1136_v47 = vshll.u32 %v1025_v4, 16  ;;  %v8486_v48 = vrot.slane %v1992_v38, 5  ;;  %1699 = vst [vmem:[#allocation2 + $0x1b8] sm:$0x1] %v1698_v45  ;;  %v2247_v49 = vld [vmem:[#allocation2 + $0x1bc] sm:$0x1] }
  0x46   :  { %v2277_v50 = vshrl.u32 %v2244_v46, 16  ;;  %v1267_v53 = vld [vmem:[#allocation2 + $0x198] sm:$0xf]  ;;  %v1767_v54 = vld [vmem:[#allocation2 + $0x128] sm:$0xf]  ;;  %v2280_v55 = vshll.u32 %v2244_v46, 16 }
  0x47   :  { %v2300_v56 = vshll.u32 %v2247_v49, 16  ;;  %1200 = vst [vmem:[#allocation2 + $0x134] sm:$0x1] %v1199_v40  ;;  %v1138_v57 = vor.u32 %v1136_v47, %v8471_v35  ;;  %v1815_v59 = vshrl.u32 %v1767_v54, 16  ;;  %v1818_v60 = vshll.u32 %v1767_v54, 16  ;;  %v951_v27 = vld [vmem:[#allocation9 + $0x18] sm:$0xff] }
  0x48   :  { %v2245_v61 = vld [vmem:[#allocation2 + $0x1b4] sm:$0x1]  ;;  %v2279_v62 = vrot.slane %v2277_v50, 4  ;;  %v1139_v63 = vrot.slane %v8471_v35, 4  ;;  %v1789_v2 = vld [vmem:[#allocation2 + $0x188] sm:$0xf]  ;;  %v967_v49 = vmul.f32 %v8384_v21, %v951_v27 }
  0x49   :  { %v7554_v3 = vld [vmem:[#allocation2 + $0x1b0] sm:$0xf]  ;;  %v2282_v4 = vrot.slane %v2280_v55, 5  ;;  %v2286_v5 = vshll.u32 %v2245_v61, 16  ;;  %v8495_v7 = vrot.slane %v2300_v56, 5  ;;  %v1141_v9 = vshrl.u32 %v8478_v41, 16 }
  0x4a   :  { %v1817_v10 = vrot.slane %v1815_v59, 4  ;;  %v1820_v11 = vrot.slane %v1818_v60, 5  ;;  %v1969_v12 = vshrl.u32 %v1789_v2, 16  ;;  %v1972_v13 = vshll.u32 %v1789_v2, 16  ;;  %1203 = vst [vmem:[#allocation2 + $0x138] sm:$0xf] %v1202_v51 }
  0x4b   :  { %v1791_v14 = vld [vmem:[#allocation2 + $0x190] sm:$0xf]  ;;  %v2283_v15 = vor.u32 %v2282_v4, %v2279_v62  ;;  %v2288_v16 = vrot.slane %v2286_v5, 5  ;;  %1206 = vst [vmem:[#allocation2 + $0x13c] sm:$0x1] %v1205_v52  ;;  %v8498_v17 = vrot.slane %v1141_v9, 7  ;;  %v1268_v18 = vsel %vm8425_vm6, %v1138_v57, %v1267_v53 }
  0x4c   :  { %v1821_v20 = vor.u32 %v1820_v11, %v1817_v10  ;;  %v1971_v23 = vrot.slane %v1969_v12, 4  ;;  %v1974_v24 = vrot.slane %v1972_v13, 5  ;;  %v1983_v25 = vshrl.u32 %v1791_v14, 16  ;;  %v1300_v26 = vld [vmem:[#allocation2 + $0x130] sm:$0x1] }
  0x4d   :  { %v1986_v28 = vshll.u32 %v1791_v14, 16  ;;  %v7972_v29 = vld [vmem:[#allocation2 + $0x1b4] sm:$0xf0]  ;;  %v2284_v31 = vrot.slane %v2283_v15, 4  ;;  %1269 = vst [vmem:[#allocation2 + $0x198] sm:$0xf] %v1268_v18 }
  0x4e   :  { %v2246_v30 = vld [vmem:[#allocation2 + $0x1b8] sm:$0xf]  ;;  %v1822_v34 = vrot.slane %v1821_v20, 4  ;;  %v1975_v38 = vor.u32 %v1974_v24, %v1971_v23  ;;  %v1985_v39 = vrot.slane %v1983_v25, 4  ;;  %v7555_v40 = vor.u32 %v7972_v29, %v7554_v3  ;;  %v1770_v47 = vld [vmem:[#allocation2 + $0x134] sm:$0x1] }
  0x4f   :  { %v1988_v42 = vrot.slane %v1986_v28, 5  ;;  %v2291_v45 = vshrl.u32 %v2246_v30, 16  ;;  %v2294_v46 = vshll.u32 %v2246_v30, 16  ;;  %v2289_v36 = vsel %vm8456_vm9, %v2284_v31, %v2288_v16  ;;  %v1270_v53 = vld [vmem:[#allocation2 + $0x19c] sm:$0x1]  ;;  %v952_v18 = vld [vmem:[#allocation9 + $0x20] sm:$0xff] }
  0x50   :  { %v1827_v50 = vsel %vm8456_vm9, %v1822_v34, %v8480_v43  ;;  %v1976_v51 = vrot.slane %v1975_v38, 4  ;;  %7584 = vmatmul.msk.bf16.vlgmr.msra.gmra.mxu1 %vm2050_vm10, %v7555_v40  ;;  %v1301_v52 = vsel %vm8361_vm3, 0, %v1300_v26  ;;  %v1273_v59 = vld [vmem:[#allocation2 + $0x1a0] sm:$0xf]  ;;  %v1838_v61 = vshll.u32 %v1770_v47, 16 }
  0x51   :  { %v2027_v54 = vunpack.c.l.b16 %v1827_v50  ;;  %v1989_v55 = vor.u32 %v1988_v42, %v1985_v39  ;;  %v2293_v56 = vrot.slane %v2291_v45, 4  ;;  %v2296_v57 = vrot.slane %v2294_v46, 5  ;;  %1302 = vst [vmem:[#allocation2 + $0x130] sm:$0x1] %v1301_v52  ;;  %v1303_v58 = vld [vmem:[#allocation2 + $0x138] sm:$0x1] }
  0x52   :  { %v1981_v43 = vsel %vm8456_vm9, %v1976_v51, %v8482_v44  ;;  %v1304_v60 = vsel %vm8361_vm3, 0, %v1303_v58  ;;  %v1144_v62 = vshll.u32 %v8478_v41, 16  ;;  %v1276_v2 = vld [vmem:[#allocation2 + $0x1a4] sm:$0x1]  ;;  %v2502_v9 = vunpack.c.l.b16 %v2289_v36  ;;  %v1772_v10 = vld [vmem:[#allocation2 + $0x13c] sm:$0x1] }
  0x53   :  { %v2042_v3 = vpack.c.b16 %v2027_v54, %v8474_v37  ;;  %v1990_v4 = vrot.slane %v1989_v55, 4  ;;  %v2297_v5 = vor.u32 %v2296_v57, %v2293_v56  ;;  %1305 = vst [vmem:[#allocation2 + $0x138] sm:$0x1] %v1304_v60  ;;  %v2038_v11 = vunpack.c.l.b16 %v1981_v43  ;;  %v1595_v52 = vld [vmem:[#allocation2 + $0x1c0] sm:$0xf] }
  0x54   :  { %v8522_v12 = vrot.slane %v1838_v61, 5  ;;  %v1146_v13 = vor.u32 %v1144_v62, %v8498_v17  ;;  %v1147_v44 = vrot.slane %v8498_v17, 4  ;;  %v1271_v37 = vsel %vm8361_vm3, %v1139_v63, %v1270_v53  ;;  %v1339_v15 = vld [vmem:[#allocation2 + $0x198] sm:$0x1]  ;;  %v470_v0 = vld [vmem:[#allocation2 + $0x7c] sm:$0x1] }
  0x55   :  { %7544 = vmatmul.msk.bf16.vlgmr.msra.gmra.mxu0 %vm2050_vm10, %v2042_v3  ;;  %v1995_v41 = vsel %vm8456_vm9, %v1990_v4, %v8486_v48  ;;  %v2298_v14 = vrot.slane %v2297_v5, 4  ;;  %v1397_v16 = vmax.f32 %v1381_v32, 0.0  ;;  %v1852_v23 = vshll.u32 %v1772_v10, 16  ;;  %1272 = vst [vmem:[#allocation2 + $0x19c] sm:$0x1] %v1271_v37 }
  0x56   :  { %v2039_v20 = vunpack.c.l.b16 %v1995_v41  ;;  %v1274_v17 = vsel %vm8425_vm6, %v1146_v13, %v1273_v59  ;;  %v1277_v24 = vsel %vm8361_vm3, %v1147_v44, %v1276_v2  ;;  %v1340_v35 = vsel %vm8361_vm3, 0, %v1339_v15  ;;  %v1601_v59 = vld [vmem:[#allocation2 + $0x1c8] sm:$0xf]  ;;  %v1598_v2 = vld [vmem:[#allocation2 + $0x1c4] sm:$0x1] }
  0x57   :  { %v2303_v48 = vsel %vm8456_vm9, %v2298_v14, %v8495_v7  ;;  %1275 = vst [vmem:[#allocation2 + $0x1a0] sm:$0xf] %v1274_v17  ;;  %v1398_v63 = vmax.f32 %v8504_v33, 0.0  ;;  %v1413_v25 = vpack.c.bf16 %v1397_v16, %v1397_v16  ;;  %v968_v29 = vmul.f32 %v8384_v21, %v952_v18 }
  0x58   :  { %v2048_v26 = vpack.c.b16 %v2039_v20, %v2038_v11  ;;  %v2503_v27 = vunpack.c.l.b16 %v2303_v48  ;;  %v1769_v28 = vld [vmem:[#allocation2 + $0x130] sm:$0xf]  ;;  %1278 = vst [vmem:[#allocation2 + $0x1a4] sm:$0x1] %v1277_v24  ;;  %v983_v30 = vadd.f32 %v8389_v22, %v967_v49  ;;  %v1854_v57 = vrot.slane %v1852_v23, 5 }
  0x59   :  { %v1829_v31 = vshrl.u32 %v1769_v28, 16  ;;  %v1832_v32 = vshll.u32 %v1769_v28, 16  ;;  %1341 = vst [vmem:[#allocation2 + $0x198] sm:$0x1] %v1340_v35  ;;  %v1414_v34 = vpack.c.bf16 %v1398_v63, %v1398_v63  ;;  %v1437_v7 = vshrl.u32 %v1413_v25, 16  ;;  %v1351_v35 = vld [vmem:[#allocation10 + $0x18] sm:$0xff] }
  0x5a   :  { %7550 = vmatmul.msk.bf16.vlgmr.msra.gmra.mxu3 %vm2050_vm10, %v2048_v26  ;;  %v2518_v38 = vpack.c.b16 %v2503_v27, %v2502_v9  ;;  %v1771_v39 = vld [vmem:[#allocation2 + $0x138] sm:$0xf]  ;;  %v1440_v40 = vshll.u32 %v1413_v25, 16  ;;  %v984_v33 = vadd.f32 %v8389_v22, %v968_v29  ;;  %v999_v42 = vmax.f32 %v983_v30, 0.0  ;;  %v1604_v11 = vld [vmem:[#allocation2 + $0x1cc] sm:$0x1] }
  0x5b   :  { %v1831_v45 = vrot.slane %v1829_v31, 4  ;;  %v1834_v46 = vrot.slane %v1832_v32, 5  ;;  %v1843_v47 = vshrl.u32 %v1771_v39, 16  ;;  %v1846_v50 = vshll.u32 %v1771_v39, 16  ;;  %8031 = vmatpush.bf16.msra.mxu3 %v8378_v19  ;;  %v1352_v63 = vld [vmem:[#allocation10 + $0x20] sm:$0xff]  ;;  %v1359_v32 = vld [vmem:[#allocation10 + $0x58] sm:$0xff] }
  0x5c   :  { %7592 = vmatmul.msk.bf16.vlgmr.msra.gmra.mxu2 %vm2050_vm10, %v2518_v38  ;;  %v1439_v49 = vrot.slane %v1437_v7, 7  ;;  %v1445_v51 = vshrl.u32 %v1414_v34, 16  ;;  %v1448_v36 = vshll.u32 %v1414_v34, 16  ;;  %v1000_v53 = vmax.f32 %v984_v33, 0.0  ;;  %v1794_v58 = vld [vmem:[#allocation2 + $0x19c] sm:$0x1] }
  0x5d   :  { %v1835_v54 = vor.u32 %v1834_v46, %v1831_v45  ;;  %v1845_v55 = vrot.slane %v1843_v47, 4  ;;  %v1848_v56 = vrot.slane %v1846_v50, 5  ;;  %v2006_v60 = vshll.u32 %v1794_v58, 16  ;;  %v1207_v39 = vld [vmem:[#allocation2 + $0x140] sm:$0xf] }
  0x5e   :  { %v1342_v43 = vld [vmem:[#allocation2 + $0x1a0] sm:$0x1]  ;;  %v1442_v61 = vor.u32 %v1440_v40, %v1439_v49  ;;  %v1447_v62 = vrot.slane %v1445_v51, 7  ;;  %v1015_v3 = vpack.c.bf16 %v999_v42, %v999_v42  ;;  %v1443_v10 = vrot.slane %v1439_v49, 4  ;;  %v1210_v46 = vld [vmem:[#allocation2 + $0x144] sm:$0x1] }
  0x5f   :  { %v1836_v19 = vrot.slane %v1835_v54, 4  ;;  %v1849_v4 = vor.u32 %v1848_v56, %v1845_v55  ;;  %v1343_v5 = vsel %vm8361_vm3, 0, %v1342_v43  ;;  %v1796_v9 = vld [vmem:[#allocation2 + $0x1a4] sm:$0x1]  ;;  %v8552_v44 = vrot.slane %v2006_v60, 5 }
  0x60   :  { %1344 = vst [vmem:[#allocation2 + $0x1a0] sm:$0x1] %v1343_v5  ;;  %v1793_v13 = vld [vmem:[#allocation2 + $0x198] sm:$0xf]  ;;  %v1450_v41 = vor.u32 %v1448_v36, %v1447_v62  ;;  %v1596_v14 = vsel %vm8425_vm6, %v1442_v61, %v1595_v52  ;;  %v1016_v37 = vpack.c.bf16 %v1000_v53, %v1000_v53  ;;  %v2020_v17 = vshll.u32 %v1796_v9, 16  ;;  %v1360_v49 = vld [vmem:[#allocation10 + $0x60] sm:$0xff] }
  0x61   :  { %v1841_v15 = vsel %vm8456_vm9, %v1836_v19, %v8522_v12  ;;  %v1850_v16 = vrot.slane %v1849_v4, 4  ;;  %v1997_v18 = vshrl.u32 %v1793_v13, 16  ;;  %v2000_v20 = vshll.u32 %v1793_v13, 16  ;;  %1597 = vst [vmem:[#allocation2 + $0x1c0] sm:$0xf] %v1596_v14  ;;  %v953_v14 = vld [vmem:[#allocation9 + $0x28] sm:$0xff] }
  0x62   :  { %v2028_v23 = vunpack.c.l.b16 %v1841_v15  ;;  %v1451_v24 = vrot.slane %v1447_v62, 4  ;;  %v1602_v48 = vsel %vm8425_vm6, %v1450_v41, %v1601_v59  ;;  %v1599_v12 = vsel %vm8361_vm3, %v1443_v10, %v1598_v2  ;;  %v1213_v47 = vld [vmem:[#allocation2 + $0x148] sm:$0xf]  ;;  %v1216_v53 = vld [vmem:[#allocation2 + $0x14c] sm:$0x1] }
  0x63   :  { %v1855_v25 = vsel %vm8456_vm9, %v1850_v16, %v1854_v57  ;;  %v1999_v26 = vrot.slane %v1997_v18, 4  ;;  %v2002_v27 = vrot.slane %v2000_v20, 5  ;;  %1603 = vst [vmem:[#allocation2 + $0x1c8] sm:$0xf] %v1602_v48  ;;  %v1053_v30 = vshrl.u32 %v1015_v3, 16 }
  0x64   :  { %v2029_v28 = vunpack.c.l.b16 %v1855_v25  ;;  %1600 = vst [vmem:[#allocation2 + $0x1c4] sm:$0x1] %v1599_v12  ;;  %v1605_v29 = vsel %vm8361_vm3, %v1451_v24, %v1604_v11  ;;  %v1056_v31 = vshll.u32 %v1015_v3, 16  ;;  %v1061_v7 = vshrl.u32 %v1016_v37, 16 }
  0x65   :  { %v2003_v34 = vor.u32 %v2002_v27, %v1999_v26  ;;  %1606 = vst [vmem:[#allocation2 + $0x1cc] sm:$0x1] %v1605_v29  ;;  %v1064_v38 = vshll.u32 %v1016_v37, 16  ;;  %v1367_v40 = vmul.f32 %v8384_v21, %v1351_v35  ;;  %v2022_v42 = vrot.slane %v2020_v17, 5  ;;  %v954_v26 = vld [vmem:[#allocation9 + $0x30] sm:$0xff] }
  0x66   :  { %v2043_v33 = vpack.c.b16 %v2029_v28, %v2028_v23  ;;  %v1055_v45 = vrot.slane %v1053_v30, 7  ;;  %v1368_v50 = vmul.f32 %v8384_v21, %v1352_v63  ;;  %v1063_v52 = vrot.slane %v1061_v7, 7 }
  0x67   :  { %v1795_v51 = vld [vmem:[#allocation2 + $0x1a0] sm:$0xf]  ;;  %v2004_v36 = vrot.slane %v2003_v34, 4  ;;  %v1383_v54 = vadd.f32 %v8389_v22, %v1367_v40  ;;  %v1375_v55 = vmul.f32 %v8384_v21, %v1359_v32  ;;  %v1376_v2 = vmul.f32 %v8384_v21, %v1360_v49 }
  0x68   :  { %7545 = vmatmul.msk.bf16.gmra.mxu0 %vm2050_vm10, %v2043_v33  ;;  %v2011_v56 = vshrl.u32 %v1795_v51, 16  ;;  %v2014_v57 = vshll.u32 %v1795_v51, 16  ;;  %v1700_v58 = vld [vmem:[#allocation2 + $0x1c0] sm:$0x1]  ;;  %v1058_v59 = vor.u32 %v1056_v31, %v1055_v45  ;;  %v1059_v43 = vrot.slane %v1055_v45, 4 }
  0x69   :  { %v1701_v60 = vsel %vm8361_vm3, 0, %v1700_v58  ;;  %v1066_v61 = vor.u32 %v1064_v38, %v1063_v52  ;;  %v1067_v62 = vrot.slane %v1063_v52, 4  ;;  %v2009_v3 = vsel %vm8456_vm9, %v2004_v36, %v8552_v44  ;;  %v1607_v51 = vld [vmem:[#allocation2 + $0x1d0] sm:$0xf] }
  0x6a   :  { %v2013_v19 = vrot.slane %v2011_v56, 4  ;;  %v2016_v4 = vrot.slane %v2014_v57, 5  ;;  %1702 = vst [vmem:[#allocation2 + $0x1c0] sm:$0x1] %v1701_v60  ;;  %v1703_v5 = vld [vmem:[#allocation2 + $0x1c8] sm:$0x1]  ;;  %v1208_v9 = vsel %vm8425_vm6, %v1058_v59, %v1207_v39  ;;  %v1211_v13 = vsel %vm8361_vm3, %v1059_v43, %v1210_v46 }
  0x6b   :  { %v1704_v10 = vsel %vm8361_vm3, 0, %v1703_v5  ;;  %v2249_v11 = vld [vmem:[#allocation2 + $0x1c4] sm:$0x1]  ;;  %1209 = vst [vmem:[#allocation2 + $0x140] sm:$0xf] %v1208_v9  ;;  %v1214_v41 = vsel %vm8425_vm6, %v1066_v61, %v1213_v47  ;;  %v1217_v44 = vsel %vm8361_vm3, %v1067_v62, %v1216_v53  ;;  %v1384_v18 = vadd.f32 %v8389_v22, %v1368_v50  ;;  %v1353_v60 = vld [vmem:[#allocation10 + $0x28] sm:$0xff] }
  0x6c   :  { %v2017_v37 = vor.u32 %v2016_v4, %v2013_v19  ;;  %1705 = vst [vmem:[#allocation2 + $0x1c8] sm:$0x1] %v1704_v10  ;;  %v2251_v15 = vld [vmem:[#allocation2 + $0x1cc] sm:$0x1]  ;;  %v2314_v16 = vshll.u32 %v2249_v11, 16  ;;  %v1399_v20 = vmax.f32 %v1383_v54, 0.0  ;;  %v1391_v17 = vadd.f32 %v8389_v22, %v1375_v55 }
  0x6d   :  { %v2328_v23 = vshll.u32 %v2251_v15, 16  ;;  %1212 = vst [vmem:[#allocation2 + $0x144] sm:$0x1] %v1211_v13  ;;  %v1392_v24 = vadd.f32 %v8389_v22, %v1376_v2  ;;  %v2040_v35 = vunpack.c.l.b16 %v2009_v3  ;;  %v1400_v63 = vmax.f32 %v1384_v18, 0.0 }
  0x6e   :  { %v2018_v48 = vrot.slane %v2017_v37, 4  ;;  %1215 = vst [vmem:[#allocation2 + $0x148] sm:$0xf] %v1214_v41  ;;  %v1415_v25 = vpack.c.bf16 %v1399_v20, %v1399_v20  ;;  %v8591_v27 = vrot.slane %v2314_v16, 5  ;;  %v1407_v12 = vmax.f32 %v1391_v17, 0.0 }
  0x6f   :  { %1218 = vst [vmem:[#allocation2 + $0x14c] sm:$0x1] %v1217_v44  ;;  %v1408_v28 = vmax.f32 %v1392_v24, 0.0  ;;  %v969_v29 = vmul.f32 %v8384_v21, %v953_v14  ;;  %v8596_v31 = vrot.slane %v2328_v23, 5  ;;  %v1416_v32 = vpack.c.bf16 %v1400_v63, %v1400_v63  ;;  %v1613_v41 = vld [vmem:[#allocation2 + $0x1d8] sm:$0xf] }
  0x70   :  { %v2023_v30 = vsel %vm8456_vm9, %v2018_v48, %v2022_v42  ;;  %v1453_v34 = vshrl.u32 %v1415_v25, 16  ;;  %v1456_v40 = vshll.u32 %v1415_v25, 16  ;;  %v8598_v33 = vpack.c.bf16 %v1407_v12, %v1407_v12  ;;  %v1610_v44 = vld [vmem:[#allocation2 + $0x1d4] sm:$0x1] }
  0x71   :  { %v2041_v7 = vunpack.c.l.b16 %v2023_v30  ;;  %v7558_v38 = vld [vmem:[#allocation2 + $0x1c0] sm:$0xf]  ;;  %v970_v45 = vmul.f32 %v8384_v21, %v954_v26  ;;  %v8601_v36 = vpack.c.bf16 %v1408_v28, %v1408_v28  ;;  %v1461_v55 = vshrl.u32 %v1416_v32, 16  ;;  %v1616_v28 = vld [vmem:[#allocation2 + $0x1dc] sm:$0x1] }
  0x72   :  { %v2248_v39 = vld [vmem:[#allocation2 + $0x1c0] sm:$0xf]  ;;  %v1455_v49 = vrot.slane %v1453_v34, 7  ;;  %v8606_v56 = vadd.f32 %v8389_v22, %v969_v29  ;;  %v1464_v19 = vshll.u32 %v1416_v32, 16  ;;  %v1517_v18 = vshrl.u32 %v8598_v33, 16 }
  0x73   :  { %v2305_v46 = vshrl.u32 %v2248_v39, 16  ;;  %v2308_v47 = vshll.u32 %v2248_v39, 16  ;;  %v1306_v50 = vld [vmem:[#allocation2 + $0x140] sm:$0x1]  ;;  %v2049_v42 = vpack.c.b16 %v2041_v7, %v2040_v35  ;;  %v7973_v52 = vld [vmem:[#allocation2 + $0x1c4] sm:$0xf0]  ;;  %v8610_v4 = vadd.f32 %v8389_v22, %v970_v45 }
  0x74   :  { %v2250_v53 = vld [vmem:[#allocation2 + $0x1c8] sm:$0xf]  ;;  %v1307_v54 = vsel %vm8361_vm3, 0, %v1306_v50  ;;  %v7559_v57 = vor.u32 %v7973_v52, %v7558_v38  ;;  %v1774_v2 = vld [vmem:[#allocation2 + $0x144] sm:$0x1]  ;;  %v1458_v3 = vor.u32 %v1456_v40, %v1455_v49  ;;  %v1459_v37 = vrot.slane %v1455_v49, 4 }
  0x75   :  { %v2307_v58 = vrot.slane %v2305_v46, 4  ;;  %v2310_v59 = vrot.slane %v2308_v47, 5  ;;  %v2319_v43 = vshrl.u32 %v2250_v53, 16  ;;  %1308 = vst [vmem:[#allocation2 + $0x140] sm:$0x1] %v1307_v54  ;;  %7551 = vmatmul.msk.bf16.gmra.mxu3 %vm2050_vm10, %v2049_v42  ;;  %v2322_v61 = vshll.u32 %v2250_v53, 16 }
  0x76   :  { %v1309_v62 = vld [vmem:[#allocation2 + $0x148] sm:$0x1]  ;;  %7585 = vmatmul.msk.bf16.gmra.mxu1 %vm2050_vm10, %v7559_v57  ;;  %v1776_v11 = vld [vmem:[#allocation2 + $0x14c] sm:$0x1]  ;;  %v1866_v13 = vshll.u32 %v1774_v2, 16  ;;  %v1463_v15 = vrot.slane %v1461_v55, 7  ;;  %v1608_v16 = vsel %vm8425_vm6, %v1458_v3, %v1607_v51  ;;  %v1369_v23 = vmul.f32 %v8384_v21, %v1353_v60 }
  0x77   :  { %v2311_v5 = vor.u32 %v2310_v59, %v2307_v58  ;;  %v2321_v9 = vrot.slane %v2319_v43, 4  ;;  %v1310_v10 = vsel %vm8361_vm3, 0, %v1309_v62  ;;  %v2324_v14 = vrot.slane %v2322_v61, 5  ;;  %1609 = vst [vmem:[#allocation2 + $0x1d0] sm:$0xf] %v1608_v16  ;;  %v1354_v58 = vld [vmem:[#allocation10 + $0x30] sm:$0xff] }
  0x78   :  { %1311 = vst [vmem:[#allocation2 + $0x148] sm:$0x1] %v1310_v10  ;;  %v1520_v20 = vshll.u32 %v8598_v33, 16  ;;  %v1880_v24 = vshll.u32 %v1776_v11, 16  ;;  %v1466_v48 = vor.u32 %v1464_v19, %v1463_v15  ;;  %v1467_v35 = vrot.slane %v1463_v15, 4 }
  0x79   :  { %v2312_v22 = vrot.slane %v2311_v5, 4  ;;  %v2325_v17 = vor.u32 %v2324_v14, %v2321_v9  ;;  %v8623_v25 = vrot.slane %v1866_v13, 5  ;;  %v8625_v26 = vrot.slane %v1517_v18, 7  ;;  %v1655_v34 = vld [vmem:[#allocation2 + $0x218] sm:$0xf]  ;;  %v1361_v13 = vld [vmem:[#allocation10 + $0x68] sm:$0xff] }
  0x7a   :  { %v1525_v12 = vshrl.u32 %v8601_v36, 16  ;;  %v1614_v21 = vsel %vm8425_vm6, %v1466_v48, %v1613_v41  ;;  %v1528_v32 = vshll.u32 %v8601_v36, 16  ;;  %v1611_v7 = vsel %vm8361_vm3, %v1459_v37, %v1610_v44  ;;  %v1661_v46 = vld [vmem:[#allocation2 + $0x220] sm:$0xf] }
  0x7b   :  { %v2317_v63 = vsel %vm8456_vm9, %v2312_v22, %v8591_v27  ;;  %v2326_v29 = vrot.slane %v2325_v17, 4  ;;  %1615 = vst [vmem:[#allocation2 + $0x1d8] sm:$0xf] %v1614_v21  ;;  %v1522_v40 = vor.u32 %v1520_v20, %v8625_v26  ;;  %v1617_v47 = vsel %vm8361_vm3, %v1467_v35, %v1616_v28  ;;  %v8654_v9 = vld [vmem:[%s10831_s7] ss:$0 sm:$0xff] }
  0x7c   :  { %v1773_v30 = vld [vmem:[#allocation2 + $0x140] sm:$0xf]  ;;  %v2504_v38 = vunpack.c.l.b16 %v2317_v63  ;;  %v8637_v45 = vrot.slane %v1525_v12, 7  ;;  %1612 = vst [vmem:[#allocation2 + $0x1d4] sm:$0x1] %v1611_v7  ;;  %v1001_v50 = vmax.f32 %v8606_v56, 0.0  ;;  %v1370_v10 = vmul.f32 %v8654_v9, %v1354_v58 }
  0x7d   :  { %v1857_v27 = vshrl.u32 %v1773_v30, 16  ;;  %v1860_v39 = vshll.u32 %v1773_v30, 16  ;;  %v2331_v33 = vsel %vm8456_vm9, %v2326_v29, %v8596_v31  ;;  %v1656_v52 = vsel %vm8425_vm6, %v1522_v40, %v1655_v34  ;;  %1618 = vst [vmem:[#allocation2 + $0x1dc] sm:$0x1] %v1617_v47  ;;  %v1225_v21 = vld [vmem:[#allocation2 + $0x158] sm:$0xf] }
  0x7e   :  { %v2505_v49 = vunpack.c.l.b16 %v2331_v33  ;;  %v1882_v31 = vrot.slane %v1880_v24, 5  ;;  %v1706_v55 = vld [vmem:[#allocation2 + $0x1d0] sm:$0x1]  ;;  %v1530_v57 = vor.u32 %v1528_v32, %v8637_v45  ;;  %1657 = vst [vmem:[#allocation2 + $0x218] sm:$0xf] %v1656_v52  ;;  %v1002_v60 = vmax.f32 %v8610_v4, 0.0 }
  0x7f   :  { %v1775_v51 = vld [vmem:[#allocation2 + $0x148] sm:$0xf]  ;;  %v1859_v36 = vrot.slane %v1857_v27, 4  ;;  %v1862_v42 = vrot.slane %v1860_v39, 5  ;;  %v1707_v56 = vsel %vm8361_vm3, 0, %v1706_v55  ;;  %v1017_v3 = vpack.c.bf16 %v1001_v50, %v1001_v50  ;;  %v1362_v24 = vld [vmem:[#allocation10 + $0x70] sm:$0xff] }
  0x80   :  { %v1871_v53 = vshrl.u32 %v1775_v51, 16  ;;  %v1874_v54 = vshll.u32 %v1775_v51, 16  ;;  %v2519_v59 = vpack.c.b16 %v2505_v49, %v2504_v38  ;;  %1708 = vst [vmem:[#allocation2 + $0x1d0] sm:$0x1] %v1707_v56  ;;  %v1662_v2 = vsel %vm8425_vm6, %v1530_v57, %v1661_v46  ;;  %v8660_v4 = vld [vmem:[%s10832_s8] ss:$0 sm:$0xff] }
  0x81   :  { %v1863_v43 = vor.u32 %v1862_v42, %v1859_v36  ;;  %1663 = vst [vmem:[#allocation2 + $0x220] sm:$0xf] %v1662_v2  ;;  %v1018_v5 = vpack.c.bf16 %v1002_v60, %v1002_v60  ;;  %v1385_v11 = vadd.f32 %v8660_v4, %v1369_v23  ;;  %v1523_v14 = vrot.slane %v8625_v26, 4  ;;  %v1222_v39 = vld [vmem:[#allocation2 + $0x154] sm:$0x1] }
  0x82   :  { %v1873_v61 = vrot.slane %v1871_v53, 4  ;;  %v1876_v62 = vrot.slane %v1874_v54, 5  ;;  %7593 = vmatmul.msk.bf16.gmra.mxu2 %vm2050_vm10, %v2519_v59  ;;  %v1709_v44 = vld [vmem:[#allocation2 + $0x1d8] sm:$0x1]  ;;  %v1069_v37 = vshrl.u32 %v1017_v3, 16  ;;  %v1072_v15 = vshll.u32 %v1017_v3, 16 }
  0x83   :  { %v1864_v19 = vrot.slane %v1863_v43, 4  ;;  %v1710_v22 = vsel %vm8361_vm3, 0, %v1709_v44  ;;  %v2253_v18 = vld [vmem:[#allocation2 + $0x1d4] sm:$0x1]  ;;  %v1077_v20 = vshrl.u32 %v1018_v5, 16  ;;  %v1080_v17 = vshll.u32 %v1018_v5, 16 }
  0x84   :  { %v1877_v41 = vor.u32 %v1876_v62, %v1873_v61  ;;  %1711 = vst [vmem:[#allocation2 + $0x1d8] sm:$0x1] %v1710_v22  ;;  %v8669_v23 = vld [vmem:[#allocation2 + $0x1dc] sm:$0x1]  ;;  %v2342_v35 = vshll.u32 %v2253_v18, 16  ;;  %v1386_v63 = vadd.f32 %v8660_v4, %v1370_v10  ;;  %v1377_v12 = vmul.f32 %v8654_v9, %v1361_v13  ;;  %v956_v44 = vld [vmem:[#allocation9 + $0x40] sm:$0xff] }
  0x85   :  { %v1869_v16 = vsel %vm8456_vm9, %v1864_v19, %v8623_v25  ;;  %v1071_v29 = vrot.slane %v1069_v37, 7  ;;  %v1079_v30 = vrot.slane %v1077_v20, 7  ;;  %v1219_v25 = vld [vmem:[#allocation2 + $0x150] sm:$0xf]  ;;  %v1401_v32 = vmax.f32 %v1385_v11, 0.0 }
  0x86   :  { %v1878_v48 = vrot.slane %v1877_v41, 4  ;;  %v2030_v28 = vunpack.c.l.b16 %v1869_v16  ;;  %v1733_v7 = vld [vmem:[#allocation2 + $0x218] sm:$0x1]  ;;  %v8675_v38 = vrot.slane %v2342_v35, 5  ;;  %v2356_v27 = vshll.u32 %v8669_v23, 16 }
  0x87   :  { %v1402_v40 = vmax.f32 %v1386_v63, 0.0  ;;  %v1734_v46 = vsel %vm8361_vm3, 0, %v1733_v7  ;;  %v2252_v47 = vld [vmem:[#allocation2 + $0x1d0] sm:$0xf]  ;;  %v1074_v50 = vor.u32 %v1072_v15, %v1071_v29  ;;  %v1228_v49 = vld [vmem:[#allocation2 + $0x15c] sm:$0x1]  ;;  %v1378_v51 = vmul.f32 %v8654_v9, %v1362_v24 }
  0x88   :  { %v1883_v34 = vsel %vm8456_vm9, %v1878_v48, %v1882_v31  ;;  %1735 = vst [vmem:[#allocation2 + $0x218] sm:$0x1] %v1734_v46  ;;  %v1736_v36 = vld [vmem:[#allocation2 + $0x220] sm:$0x1]  ;;  %v2333_v42 = vshrl.u32 %v2252_v47, 16  ;;  %v2336_v52 = vshll.u32 %v2252_v47, 16  ;;  %v1082_v53 = vor.u32 %v1080_v17, %v1079_v30 }
  0x89   :  { %v2031_v33 = vunpack.c.l.b16 %v1883_v34  ;;  %v1417_v54 = vpack.c.bf16 %v1401_v32, %v1401_v32  ;;  %v7562_v55 = vld [vmem:[#allocation2 + $0x1d0] sm:$0xf]  ;;  %v1737_v57 = vsel %vm8361_vm3, 0, %v1736_v36  ;;  %v1075_v58 = vrot.slane %v1071_v29, 4  ;;  %v1356_v48 = vld [vmem:[#allocation10 + $0x40] sm:$0xff] }
  0x8a   :  { %v1083_v59 = vrot.slane %v1079_v30, 4  ;;  %1738 = vst [vmem:[#allocation2 + $0x220] sm:$0x1] %v1737_v57  ;;  %v2335_v43 = vrot.slane %v2333_v42, 4  ;;  %v2338_v56 = vrot.slane %v2336_v52, 5  ;;  %v1220_v60 = vsel %vm8425_vm6, %v1074_v50, %v1219_v25 }
  0x8b   :  { %v2044_v31 = vpack.c.b16 %v2031_v33, %v2030_v28  ;;  %v1226_v61 = vsel %vm8425_vm6, %v1082_v53, %v1225_v21  ;;  %v7974_v62 = vld [vmem:[#allocation2 + $0x1d4] sm:$0xf0]  ;;  %1221 = vst [vmem:[#allocation2 + $0x150] sm:$0xf] %v1220_v60  ;;  %v1223_v3 = vsel %vm8361_vm3, %v1075_v58, %v1222_v39  ;;  %v1418_v5 = vpack.c.bf16 %v1402_v40, %v1402_v40  ;;  %v1619_v21 = vld [vmem:[#allocation2 + $0x1e0] sm:$0xf] }
  0x8c   :  { %v2254_v2 = vld [vmem:[#allocation2 + $0x1d8] sm:$0xf]  ;;  %v1229_v19 = vsel %vm8361_vm3, %v1083_v59, %v1228_v49  ;;  %v7563_v10 = vor.u32 %v7974_v62, %v7562_v55  ;;  %v2339_v11 = vor.u32 %v2338_v56, %v2335_v43  ;;  %1224 = vst [vmem:[#allocation2 + $0x154] sm:$0x1] %v1223_v3  ;;  %v1469_v37 = vshrl.u32 %v1417_v54, 16 }
  0x8d   :  { %7546 = vmatmul.msk.bf16.gmra.mxu0 %vm2050_vm10, %v2044_v31  ;;  %v2347_v13 = vshrl.u32 %v2254_v2, 16  ;;  %v2350_v41 = vshll.u32 %v2254_v2, 16  ;;  %1227 = vst [vmem:[#allocation2 + $0x158] sm:$0xf] %v1226_v61  ;;  %v1472_v15 = vshll.u32 %v1417_v54, 16  ;;  %v1477_v16 = vshrl.u32 %v1418_v5, 16 }
  0x8e   :  { %v1480_v22 = vshll.u32 %v1418_v5, 16  ;;  %7586 = vmatmul.msk.bf16.gmra.mxu1 %vm2050_vm10, %v7563_v10  ;;  %v2340_v18 = vrot.slane %v2339_v11, 4  ;;  %1230 = vst [vmem:[#allocation2 + $0x15c] sm:$0x1] %v1229_v19  ;;  %v1393_v24 = vadd.f32 %v8660_v4, %v1377_v12  ;;  %v2358_v35 = vrot.slane %v2356_v27, 5 }
  0x8f   :  { %v2349_v20 = vrot.slane %v2347_v13, 4  ;;  %v2352_v17 = vrot.slane %v2350_v41, 5  ;;  %v7578_v23 = vld [vmem:[#allocation2 + $0x218] sm:$0xf]  ;;  %v1471_v63 = vrot.slane %v1469_v37, 7  ;;  %v1479_v28 = vrot.slane %v1477_v16, 7 }
  0x90   :  { %v1394_v29 = vadd.f32 %v8660_v4, %v1378_v51  ;;  %v2345_v30 = vsel %vm8456_vm9, %v2340_v18, %v8675_v38  ;;  %v1625_v32 = vld [vmem:[#allocation2 + $0x1e8] sm:$0xf]  ;;  %v1409_v34 = vmax.f32 %v1393_v24, 0.0  ;;  %v972_v7 = vmul.f32 %v8654_v9, %v956_v44  ;;  %v1622_v46 = vld [vmem:[#allocation2 + $0x1e4] sm:$0x1] }
  0x91   :  { %v2353_v25 = vor.u32 %v2352_v17, %v2349_v20  ;;  %v7978_v39 = vld [vmem:[#allocation2 + $0x21c] sm:$0xf0]  ;;  %v1474_v40 = vor.u32 %v1472_v15, %v1471_v63  ;;  %v1475_v12 = vrot.slane %v1471_v63, 4  ;;  %v1482_v33 = vor.u32 %v1480_v22, %v1479_v28  ;;  %v1628_v31 = vld [vmem:[#allocation2 + $0x1ec] sm:$0x1] }
  0x92   :  { %v1372_v27 = vmul.f32 %v8654_v9, %v1356_v48  ;;  %v7579_v47 = vor.u32 %v7978_v39, %v7578_v23  ;;  %v1312_v49 = vld [vmem:[#allocation2 + $0x150] sm:$0x1]  ;;  %v1483_v51 = vrot.slane %v1479_v28, 4  ;;  %v1410_v36 = vmax.f32 %v1394_v29, 0.0  ;;  %v1667_v10 = vld [vmem:[#allocation2 + $0x228] sm:$0xf] }
  0x93   :  { %v2354_v50 = vrot.slane %v2353_v25, 4  ;;  %v2506_v42 = vunpack.c.l.b16 %v2345_v30  ;;  %v1313_v38 = vsel %vm8361_vm3, 0, %v1312_v49  ;;  %v1778_v52 = vld [vmem:[#allocation2 + $0x154] sm:$0x1]  ;;  %v1620_v53 = vsel %vm8425_vm6, %v1474_v40, %v1619_v21  ;;  %v1673_v37 = vld [vmem:[#allocation2 + $0x230] sm:$0xf] }
  0x94   :  { %v1425_v54 = vpack.c.bf16 %v1409_v34, %v1409_v34  ;;  %7590 = vmatmul.msk.bf16.vlgmr.msrb.gmra.mxu3 %vm2050_vm10, %v7579_v47  ;;  %1314 = vst [vmem:[#allocation2 + $0x150] sm:$0x1] %v1313_v38  ;;  %v1315_v57 = vld [vmem:[#allocation2 + $0x158] sm:$0x1]  ;;  %v1894_v58 = vshll.u32 %v1778_v52, 16  ;;  %v1626_v59 = vsel %vm8425_vm6, %v1482_v33, %v1625_v32  ;;  %v1426_v43 = vpack.c.bf16 %v1410_v36, %v1410_v36  ;;  %v957_v63 = vld [vmem:[#allocation9 + $0x48] sm:$0xff] }
  0x95   :  { %v2359_v55 = vsel %vm8456_vm9, %v2354_v50, %v2358_v35  ;;  %v1316_v60 = vsel %vm8361_vm3, 0, %v1315_v57  ;;  %v1780_v61 = vld [vmem:[#allocation2 + $0x15c] sm:$0x1]  ;;  %1621 = vst [vmem:[#allocation2 + $0x1e0] sm:$0xf] %v1620_v53  ;;  %v1623_v2 = vsel %vm8361_vm3, %v1475_v12, %v1622_v46  ;;  %v1629_v11 = vsel %vm8361_vm3, %v1483_v51, %v1628_v31  ;;  %v958_v21 = vld [vmem:[#allocation9 + $0x50] sm:$0xff] }
  0x96   :  { %v2507_v56 = vunpack.c.l.b16 %v2359_v55  ;;  %v1533_v62 = vshrl.u32 %v1425_v54, 16  ;;  %1317 = vst [vmem:[#allocation2 + $0x158] sm:$0x1] %v1316_v60  ;;  %v1908_v3 = vshll.u32 %v1780_v61, 16  ;;  %v1536_v19 = vshll.u32 %v1425_v54, 16  ;;  %v1357_v36 = vld [vmem:[#allocation10 + $0x48] sm:$0xff] }
  0x97   :  { %v1541_v5 = vshrl.u32 %v1426_v43, 16  ;;  %1627 = vst [vmem:[#allocation2 + $0x1e8] sm:$0xf] %v1626_v59  ;;  %v1544_v44 = vshll.u32 %v1426_v43, 16  ;;  %v988_v15 = vadd.f32 %v8660_v4, %v972_v7  ;;  %v1321_v16 = vld [vmem:[#allocation2 + $0x168] sm:$0x1]  ;;  %v1388_v17 = vadd.f32 %v8660_v4, %v1372_v27 }
  0x98   :  { %v2520_v13 = vpack.c.b16 %v2507_v56, %v2506_v42  ;;  %v8715_v41 = vrot.slane %v1533_v62, 7  ;;  %v1531_v22 = vrot.slane %v8637_v45, 4  ;;  %1624 = vst [vmem:[#allocation2 + $0x1e4] sm:$0x1] %v1623_v2  ;;  %v1291_v20 = vld [vmem:[#allocation2 + $0x16c] sm:$0x1]  ;;  %v973_v51 = vmul.f32 %v8654_v9, %v957_v63 }
  0x99   :  { %v8719_v18 = vrot.slane %v1541_v5, 7  ;;  %v8723_v24 = vrot.slane %v1894_v58, 5  ;;  %1630 = vst [vmem:[#allocation2 + $0x1ec] sm:$0x1] %v1629_v11  ;;  %v1004_v23 = vmax.f32 %v988_v15, 0.0  ;;  %v1292_v35 = vsel %vm8361_vm3, 0, %v1291_v20 }
  0x9a   :  { %7594 = vmatmul.msk.bf16.gmra.mxu2 %vm2050_vm10, %v2520_v13  ;;  %v1538_v48 = vor.u32 %v1536_v19, %v8715_v41  ;;  %v8728_v28 = vrot.slane %v1908_v3, 5  ;;  %v1539_v29 = vrot.slane %v8715_v41, 4  ;;  %1293 = vst [vmem:[#allocation2 + $0x16c] sm:$0x1] %v1292_v35  ;;  %v1322_v25 = vsel %vm8361_vm3, 0, %v1321_v16  ;;  %v1358_v42 = vld [vmem:[#allocation10 + $0x50] sm:$0xff] }
  0x9b   :  { %v1546_v30 = vor.u32 %v1544_v44, %v8719_v18  ;;  %v1777_v32 = vld [vmem:[#allocation2 + $0x150] sm:$0xf]  ;;  %v1547_v34 = vrot.slane %v8719_v18, 4  ;;  %v1020_v39 = vpack.c.bf16 %v1004_v23, %v1004_v23  ;;  %1323 = vst [vmem:[#allocation2 + $0x168] sm:$0x1] %v1322_v25  ;;  %v1404_v40 = vmax.f32 %v1388_v17, 0.0 }
  0x9c   :  { %v1668_v7 = vsel %vm8425_vm6, %v1538_v48, %v1667_v10  ;;  %v1885_v12 = vshrl.u32 %v1777_v32, 16  ;;  %v1888_v33 = vshll.u32 %v1777_v32, 16  ;;  %v1712_v46 = vld [vmem:[#allocation2 + $0x1e0] sm:$0x1]  ;;  %v1237_v31 = vld [vmem:[#allocation2 + $0x170] sm:$0xf]  ;;  %v974_v60 = vmul.f32 %v8654_v9, %v958_v21 }
  0x9d   :  { %1669 = vst [vmem:[#allocation2 + $0x228] sm:$0xf] %v1668_v7  ;;  %v1674_v27 = vsel %vm8425_vm6, %v1546_v30, %v1673_v37  ;;  %v1779_v47 = vld [vmem:[#allocation2 + $0x158] sm:$0xf]  ;;  %v1713_v50 = vsel %vm8361_vm3, 0, %v1712_v46  ;;  %v1093_v49 = vshrl.u32 %v1020_v39, 16  ;;  %v8742_v56 = vpack.c.bf16 %v1404_v40, %v1404_v40 }
  0x9e   :  { %1675 = vst [vmem:[#allocation2 + $0x230] sm:$0xf] %v1674_v27  ;;  %v1887_v38 = vrot.slane %v1885_v12, 4  ;;  %v1890_v52 = vrot.slane %v1888_v33, 5  ;;  %v1899_v53 = vshrl.u32 %v1779_v47, 16  ;;  %v1902_v54 = vshll.u32 %v1779_v47, 16 }
  0x9f   :  { %1714 = vst [vmem:[#allocation2 + $0x1e0] sm:$0x1] %v1713_v50  ;;  %v1715_v55 = vld [vmem:[#allocation2 + $0x1e8] sm:$0x1]  ;;  %v2257_v57 = vld [vmem:[#allocation2 + $0x1e4] sm:$0x1]  ;;  %v1373_v20 = vmul.f32 %v8654_v9, %v1357_v36  ;;  %v1374_v17 = vmul.f32 %v8654_v9, %v1358_v42  ;;  %v8766_v27 = vadd.f32 %v8660_v4, %v973_v51  ;;  %v8772_v42 = vadd.f32 %v8660_v4, %v974_v60 }
  0xa0   :  { %v1095_v58 = vrot.slane %v1093_v49, 7  ;;  %v1096_v59 = vshll.u32 %v1020_v39, 16  ;;  %v1240_v43 = vld [vmem:[#allocation2 + $0x174] sm:$0x1]  ;;  %v1891_v61 = vor.u32 %v1890_v52, %v1887_v38  ;;  %v1901_v62 = vrot.slane %v1899_v53, 4  ;;  %v549_v18 = vld [vmem:[#allocation7 + $0x8] sm:$0xff] }
  0xa1   :  { %v1904_v2 = vrot.slane %v1902_v54, 5  ;;  %v1716_v3 = vsel %vm8361_vm3, 0, %v1715_v55  ;;  %v2259_v19 = vld [vmem:[#allocation2 + $0x1ec] sm:$0x1]  ;;  %v2370_v5 = vshll.u32 %v2257_v57, 16  ;;  %v1493_v30 = vshrl.u32 %v8742_v56, 16 }
  0xa2   :  { %1717 = vst [vmem:[#allocation2 + $0x1e8] sm:$0x1] %v1716_v3  ;;  %v2384_v10 = vshll.u32 %v2259_v19, 16  ;;  %v1098_v11 = vor.u32 %v1096_v59, %v1095_v58  ;;  %v1099_v13 = vrot.slane %v1095_v58, 4  ;;  %v1892_v44 = vrot.slane %v1891_v61, 4 }
  0xa3   :  { %v1905_v37 = vor.u32 %v1904_v2, %v1901_v62  ;;  %v1781_v15 = vld [vmem:[#allocation2 + $0x168] sm:$0xf]  ;;  %v1782_v16 = vld [vmem:[#allocation2 + $0x16c] sm:$0x1]  ;;  %v8749_v23 = vrot.slane %v2370_v5, 5  ;;  %v8775_v58 = vadd.f32 %v8660_v4, %v1373_v20  ;;  %vm4647_vm11 = vcmask 125952  }
  0xa4   :  { %v1739_v48 = vld [vmem:[#allocation2 + $0x228] sm:$0x1]  ;;  %v8751_v35 = vrot.slane %v2384_v10, 5  ;;  %v1238_v63 = vsel %vm8425_vm6, %v1098_v11, %v1237_v31  ;;  %v1897_v25 = vsel %vm8456_vm9, %v1892_v44, %v8723_v24  ;;  %v1241_v39 = vsel %vm8361_vm3, %v1099_v13, %v1240_v43  ;;  %v1721_v36 = vld [vmem:[#allocation2 + $0x1f8] sm:$0x1]  ;;  %vm9899_vm15 = vmand %vm4647_vm11, %vm384_vm5 }
  0xa5   :  { %v1906_v21 = vrot.slane %v1905_v37, 4  ;;  %v1740_v32 = vsel %vm8361_vm3, 0, %v1739_v48  ;;  %v1742_v7 = vld [vmem:[#allocation2 + $0x230] sm:$0x1]  ;;  %1239 = vst [vmem:[#allocation2 + $0x170] sm:$0xf] %v1238_v63  ;;  %v2032_v40 = vunpack.c.l.b16 %v1897_v25 }
  0xa6   :  { %v7566_v12 = vld [vmem:[#allocation2 + $0x1e0] sm:$0xf]  ;;  %1741 = vst [vmem:[#allocation2 + $0x228] sm:$0x1] %v1740_v32  ;;  %v1743_v33 = vsel %vm8361_vm3, 0, %v1742_v7  ;;  %v1913_v46 = vshrl.u32 %v1781_v15, 16 }
  0xa7   :  { %v1911_v24 = vsel %vm8456_vm9, %v1906_v21, %v8728_v28  ;;  %1744 = vst [vmem:[#allocation2 + $0x230] sm:$0x1] %v1743_v33  ;;  %v2256_v47 = vld [vmem:[#allocation2 + $0x1e0] sm:$0xf]  ;;  %v1916_v50 = vshll.u32 %v1781_v15, 16  ;;  %v1922_v49 = vshll.u32 %v1782_v16, 16  ;;  %v8778_v28 = vadd.f32 %v8660_v4, %v1374_v17 }
  0xa8   :  { %v2033_v38 = vunpack.c.l.b16 %v1911_v24  ;;  %v2361_v52 = vshrl.u32 %v2256_v47, 16  ;;  %v2364_v53 = vshll.u32 %v2256_v47, 16  ;;  %1242 = vst [vmem:[#allocation2 + $0x174] sm:$0x1] %v1241_v39  ;;  %v1915_v54 = vrot.slane %v1913_v46, 4 }
  0xa9   :  { %v7975_v31 = vld [vmem:[#allocation2 + $0x1e4] sm:$0xf0]  ;;  %v1918_v55 = vrot.slane %v1916_v50, 5  ;;  %v1924_v57 = vrot.slane %v1922_v49, 5  ;;  %v1691_v62 = vld [vmem:[#allocation2 + $0x1fc] sm:$0x1] }
  0xaa   :  { %v2258_v51 = vld [vmem:[#allocation2 + $0x1e8] sm:$0xf]  ;;  %v2045_v59 = vpack.c.b16 %v2033_v38, %v2032_v40  ;;  %v7567_v43 = vor.u32 %v7975_v31, %v7566_v12  ;;  %v2363_v61 = vrot.slane %v2361_v52, 4  ;;  %v2366_v60 = vrot.slane %v2364_v53, 5  ;;  %v1658_v2 = vld [vmem:[#allocation2 + $0x21c] sm:$0x1] }
  0xab   :  { %v2375_v3 = vshrl.u32 %v2258_v51, 16  ;;  %v2378_v19 = vshll.u32 %v2258_v51, 16  ;;  %v1919_v5 = vor.u32 %v1918_v55, %v1915_v54  ;;  %v1495_v10 = vrot.slane %v1493_v30, 7  ;;  %v1637_v11 = vld [vmem:[#allocation2 + $0x200] sm:$0xf] }
  0xac   :  { %v1664_v13 = vld [vmem:[#allocation2 + $0x224] sm:$0x1]  ;;  %7547 = vmatmul.msk.bf16.gmra.mxu0 %vm2050_vm10, %v2045_v59  ;;  %7587 = vmatmul.msk.bf16.gmra.mxu1 %vm2050_vm10, %v7567_v43  ;;  %v2367_v44 = vor.u32 %v2366_v60, %v2363_v61  ;;  %v1324_v37 = vld [vmem:[#allocation2 + $0x170] sm:$0x1]  ;;  %v1496_v15 = vshll.u32 %v8742_v56, 16  ;;  %v1722_v16 = vsel %vm8361_vm3, 0, %v1721_v36  ;;  %v1659_v56 = vsel %vm8361_vm3, %v1523_v14, %v1658_v2 }
  0xad   :  { %v1640_v20 = vld [vmem:[#allocation2 + $0x204] sm:$0x1]  ;;  %v1692_v17 = vsel %vm8361_vm3, 0, %v1691_v62  ;;  %v7582_v48 = vld [vmem:[#allocation2 + $0x228] sm:$0xf]  ;;  %v2377_v63 = vrot.slane %v2375_v3, 4  ;;  %v1665_v47 = vsel %vm8361_vm3, %v1531_v22, %v1664_v13 }
  0xae   :  { %v2380_v30 = vrot.slane %v2378_v19, 5  ;;  %v1325_v25 = vsel %vm8361_vm3, 0, %v1324_v37  ;;  %v1920_v21 = vrot.slane %v1919_v5, 4  ;;  %v7979_v32 = vld [vmem:[#allocation2 + $0x22c] sm:$0xf0]  ;;  %v2368_v7 = vrot.slane %v2367_v44, 4 }
  0xaf   :  { %1326 = vst [vmem:[#allocation2 + $0x170] sm:$0x1] %v1325_v25  ;;  %v1498_v39 = vor.u32 %v1496_v15, %v1495_v10  ;;  %v1499_v40 = vrot.slane %v1495_v10, 4  ;;  %v7583_v12 = vor.u32 %v7979_v32, %v7582_v48  ;;  %v1784_v46 = vld [vmem:[#allocation2 + $0x174] sm:$0x1]  ;;  %v136_v52 = vld [vmem:[#allocation4] sm:$0xff] }
  0xb0   :  { %v2381_v33 = vor.u32 %v2380_v30, %v2377_v63  ;;  %v1925_v24 = vsel %vm8456_vm9, %v1920_v21, %v1924_v57  ;;  %1723 = vst [vmem:[#allocation2 + $0x1f8] sm:$0x1] %v1722_v16  ;;  %v2268_v50 = vld [vmem:[#allocation2 + $0x218] sm:$0xf]  ;;  %v2373_v26 = vsel %vm8456_vm9, %v2368_v7, %v8749_v23  ;;  %v1936_v49 = vshll.u32 %v1784_v46, 16 }
  0xb1   :  { %v8802_v36 = vunpack.c.l.b16 %v1925_v24  ;;  %v1638_v14 = vsel %vm8425_vm6, %v1498_v39, %v1637_v11  ;;  %1693 = vst [vmem:[#allocation2 + $0x1fc] sm:$0x1] %v1692_v17  ;;  %v2270_v38 = vld [vmem:[#allocation2 + $0x220] sm:$0xf]  ;;  %7591 = vmatmul.msk.bf16.gmra.mxu3 %vm2050_vm10, %v7583_v12  ;;  %v2508_v53 = vunpack.c.l.b16 %v2373_v26  ;;  %v1641_v22 = vsel %vm8361_vm3, %v1499_v40, %v1640_v20  ;;  %v2635_v31 = vld [vmem:[#allocation12 + $0xc] sm:$0xf] }
  0xb2   :  { %v2382_v45 = vrot.slane %v2381_v33, 4  ;;  %1639 = vst [vmem:[#allocation2 + $0x200] sm:$0xf] %v1638_v14  ;;  %v2445_v54 = vshrl.u32 %v2268_v50, 16  ;;  %v8809_v23 = vrot.slane %v1936_v49, 5  ;;  %v2448_v51 = vshll.u32 %v2268_v50, 16 }
  0xb3   :  { %1642 = vst [vmem:[#allocation2 + $0x204] sm:$0x1] %v1641_v22  ;;  %v2459_v55 = vshrl.u32 %v2270_v38, 16  ;;  %v2462_v57 = vshll.u32 %v2270_v38, 16  ;;  %v2701_v61 = vsel %vm2075_vm4, %v2635_v31, 0  ;;  %v1005_v60 = vmax.f32 %v8766_v27, 0.0 }
  0xb4   :  { %v2387_v59 = vsel %vm8456_vm9, %v2382_v45, %v8751_v35  ;;  %1660 = vst [vmem:[#allocation2 + $0x21c] sm:$0x1] %v1659_v56  ;;  %v2447_v43 = vrot.slane %v2445_v54, 4  ;;  %v2450_v2 = vrot.slane %v2448_v51, 5  ;;  %2710 = vmatpush.bf16.msrb.mxu3 %v2701_v61  ;;  %v1006_v10 = vmax.f32 %v8772_v42, 0.0 }
  0xb5   :  { %v2509_v62 = vunpack.c.l.b16 %v2387_v59  ;;  %1666 = vst [vmem:[#allocation2 + $0x224] sm:$0x1] %v1665_v47  ;;  %v2461_v3 = vrot.slane %v2459_v55, 4  ;;  %v2464_v19 = vrot.slane %v2462_v57, 5  ;;  %v1021_v11 = vpack.c.bf16 %v1005_v60, %v1005_v60 }
  0xb6   :  { %v1783_v5 = vld [vmem:[#allocation2 + $0x170] sm:$0xf]  ;;  %v1405_v13 = vmax.f32 %v8775_v58, 0.0  ;;  %v8819_v35 = vmul.f32 %v8654_v9, %v136_v52  ;;  %v2451_v27 = vor.u32 %v2450_v2, %v2447_v43  ;;  %v1022_v30 = vpack.c.bf16 %v1006_v10, %v1006_v10  ;;  %v1243_v10 = vld [vmem:[#allocation2 + $0x178] sm:$0xf] }
  0xb7   :  { %v2521_v44 = vpack.c.b16 %v2509_v62, %v2508_v53  ;;  %v1927_v37 = vshrl.u32 %v1783_v5, 16  ;;  %v1930_v15 = vshll.u32 %v1783_v5, 16  ;;  %v2260_v16 = vld [vmem:[#allocation2 + $0x1f8] sm:$0xf]  ;;  %v2465_v63 = vor.u32 %v2464_v19, %v2461_v3 }
  0xb8   :  { %v2261_v20 = vld [vmem:[#allocation2 + $0x1fc] sm:$0x1]  ;;  %v2389_v17 = vshrl.u32 %v2260_v16, 16  ;;  %v2392_v48 = vshll.u32 %v2260_v16, 16  ;;  %v2452_v58 = vrot.slane %v2451_v27, 4  ;;  %v8824_v50 = vpack.c.bf16 %v1405_v13, %v1405_v13 }
  0xb9   :  { %7595 = vmatmul.msk.bf16.gmra.mxu2 %vm2050_vm10, %v2521_v44  ;;  %v1929_v25 = vrot.slane %v1927_v37, 4  ;;  %v1932_v42 = vrot.slane %v1930_v15, 5  ;;  %v1724_v21 = vld [vmem:[#allocation2 + $0x200] sm:$0x1]  ;;  %v2398_v32 = vshll.u32 %v2261_v20, 16  ;;  %v2466_v12 = vrot.slane %v2465_v63, 4 }
  0xba   :  { %v1725_v7 = vsel %vm8361_vm3, 0, %v1724_v21  ;;  %v2263_v39 = vld [vmem:[#allocation2 + $0x204] sm:$0x1]  ;;  %v2391_v40 = vrot.slane %v2389_v17, 4  ;;  %v2394_v56 = vrot.slane %v2392_v48, 5  ;;  %v1101_v38 = vshrl.u32 %v1021_v11, 16 }
  0xbb   :  { %v1933_v33 = vor.u32 %v1932_v42, %v1929_v25  ;;  %1726 = vst [vmem:[#allocation2 + $0x200] sm:$0x1] %v1725_v7  ;;  %v2400_v46 = vrot.slane %v2398_v32, 5  ;;  %v2412_v24 = vshll.u32 %v2263_v39, 16  ;;  %v2269_v47 = vld [vmem:[#allocation2 + $0x21c] sm:$0x1] }
  0xbc   :  { %v2395_v26 = vor.u32 %v2394_v56, %v2391_v40  ;;  %v2271_v49 = vld [vmem:[#allocation2 + $0x224] sm:$0x1]  ;;  %v2454_v14 = vshll.u32 %v2269_v47, 16  ;;  %v1104_v52 = vshll.u32 %v1021_v11, 16  ;;  %v1109_v54 = vshrl.u32 %v1022_v30, 16 }
  0xbd   :  { %v1934_v45 = vrot.slane %v1933_v33, 4  ;;  %v8826_v53 = vrot.slane %v2412_v24, 5  ;;  %v2468_v22 = vshll.u32 %v2271_v49, 16  ;;  %v1103_v55 = vrot.slane %v1101_v38, 7  ;;  %v7570_v2 = vld [vmem:[#allocation2 + $0x1f8] sm:$0xf] }
  0xbe   :  { %v2396_v31 = vrot.slane %v2395_v26, 4  ;;  %v2456_v51 = vrot.slane %v2454_v14, 5  ;;  %v1112_v57 = vshll.u32 %v1022_v30, 16  ;;  %v1111_v61 = vrot.slane %v1109_v54, 7  ;;  %v1246_v11 = vld [vmem:[#allocation2 + $0x17c] sm:$0x1] }
  0xbf   :  { %v1939_v59 = vsel %vm8456_vm9, %v1934_v45, %v8809_v23  ;;  %v2470_v43 = vrot.slane %v2468_v22, 5  ;;  %v1406_v60 = vmax.f32 %v8778_v28, 0.0  ;;  %v1106_v5 = vor.u32 %v1104_v52, %v1103_v55  ;;  %v1249_v15 = vld [vmem:[#allocation2 + $0x180] sm:$0xf]  ;;  %v1252_v28 = vld [vmem:[#allocation2 + $0x184] sm:$0x1] }
  0xc0   :  { %v2035_v62 = vunpack.c.l.b16 %v1939_v59  ;;  %v2401_v3 = vsel %vm8456_vm9, %v2396_v31, %v2400_v46  ;;  %v2457_v19 = vsel %vm8456_vm9, %v2452_v58, %v2456_v51  ;;  %v1107_v37 = vrot.slane %v1103_v55, 4  ;;  %v1670_v32 = vld [vmem:[#allocation2 + $0x22c] sm:$0x1]  ;;  %v1676_v58 = vld [vmem:[#allocation2 + $0x234] sm:$0x1] }
  0xc1   :  { %v8836_v13 = vunpack.c.l.b16 %v2401_v3  ;;  %v2471_v23 = vsel %vm8456_vm9, %v2466_v12, %v2470_v43  ;;  %v2514_v44 = vunpack.c.l.b16 %v2457_v19  ;;  %v1114_v48 = vor.u32 %v1112_v57, %v1111_v61  ;;  %v2272_v56 = vld [vmem:[#allocation2 + $0x228] sm:$0xf]  ;;  %v2274_v26 = vld [vmem:[#allocation2 + $0x230] sm:$0xf]  ;;  %v1646_v38 = vld [vmem:[#allocation2 + $0x20c] sm:$0x1] }
  0xc2   :  { %v2046_v16 = vpack.c.b16 %v2035_v62, %v8802_v36  ;;  %v7976_v27 = vld [vmem:[#allocation2 + $0x1fc] sm:$0xf0]  ;;  %v2515_v17 = vunpack.c.l.b16 %v2471_v23  ;;  %v1115_v63 = vrot.slane %v1111_v61, 4  ;;  %v1244_v21 = vsel %vm8425_vm6, %v1106_v5, %v1243_v10  ;;  %v1643_v47 = vld [vmem:[#allocation2 + $0x208] sm:$0xf] }
  0xc3   :  { %v2262_v20 = vld [vmem:[#allocation2 + $0x200] sm:$0xf]  ;;  %v7571_v30 = vor.u32 %v7976_v27, %v7570_v2  ;;  %1245 = vst [vmem:[#allocation2 + $0x178] sm:$0xf] %v1244_v21  ;;  %v1247_v36 = vsel %vm8361_vm3, %v1107_v37, %v1246_v11  ;;  %v1250_v39 = vsel %vm8425_vm6, %v1114_v48, %v1249_v15  ;;  %v1501_v40 = vshrl.u32 %v8824_v50, 16 }
  0xc4   :  { %v2403_v25 = vshrl.u32 %v2262_v20, 16  ;;  %v2406_v42 = vshll.u32 %v2262_v20, 16  ;;  %7548 = vmatmul.msk.bf16.gmra.mxu0 %vm2050_vm10, %v2046_v16  ;;  %v2524_v7 = vpack.c.b16 %v2515_v17, %v2514_v44  ;;  %1248 = vst [vmem:[#allocation2 + $0x17c] sm:$0x1] %v1247_v36  ;;  %v1253_v46 = vsel %vm8361_vm3, %v1115_v63, %v1252_v28  ;;  %v548_v43 = vld [vmem:[#allocation7] sm:$0xff]  ;;  %v137_v17 = vld [vmem:[#allocation4 + $0x8] sm:$0xff] }
  0xc5   :  { %7588 = vmatmul.msk.bf16.gmra.mxu1 %vm2050_vm10, %v7571_v30  ;;  %v1422_v24 = vpack.c.bf16 %v1406_v60, %v1406_v60  ;;  %1251 = vst [vmem:[#allocation2 + $0x180] sm:$0xf] %v1250_v39  ;;  %v1503_v49 = vrot.slane %v1501_v40, 7  ;;  %v1504_v14 = vshll.u32 %v8824_v50, 16  ;;  %v1671_v52 = vsel %vm8361_vm3, %v1539_v29, %v1670_v32  ;;  %v1649_v62 = vld [vmem:[#allocation2 + $0x210] sm:$0xf] }
  0xc6   :  { %v2405_v12 = vrot.slane %v2403_v25, 4  ;;  %v2408_v33 = vrot.slane %v2406_v42, 5  ;;  %7598 = vmatmul.msk.bf16.vlgmr.msra.gmra.mxu3 %vm2050_vm10, %v2524_v7  ;;  %v1677_v45 = vsel %vm8361_vm3, %v1547_v34, %v1676_v58  ;;  %1254 = vst [vmem:[#allocation2 + $0x184] sm:$0x1] %v1253_v46  ;;  %v2473_v51 = vshrl.u32 %v2272_v56, 16  ;;  %v138_v42 = vld [vmem:[#allocation4 + $0x10] sm:$0xff] }
  0xc7   :  { %v1509_v54 = vshrl.u32 %v1422_v24, 16  ;;  %v1512_v31 = vshll.u32 %v1422_v24, 16  ;;  %v1506_v55 = vor.u32 %v1504_v14, %v1503_v49  ;;  %v1507_v57 = vrot.slane %v1503_v49, 4  ;;  %1672 = vst [vmem:[#allocation2 + $0x22c] sm:$0x1] %v1671_v52 }
  0xc8   :  { %v2409_v22 = vor.u32 %v2408_v33, %v2405_v12  ;;  %v2476_v50 = vshll.u32 %v2272_v56, 16  ;;  %v2487_v59 = vshrl.u32 %v2274_v26, 16  ;;  %1678 = vst [vmem:[#allocation2 + $0x234] sm:$0x1] %v1677_v45  ;;  %v2475_v29 = vrot.slane %v2473_v51, 4 }
  0xc9   :  { %v1511_v61 = vrot.slane %v1509_v54, 7  ;;  %v2490_v60 = vshll.u32 %v2274_v26, 16  ;;  %v1644_v34 = vsel %vm8425_vm6, %v1506_v55, %v1643_v47  ;;  %v1647_v2 = vsel %vm8361_vm3, %v1507_v57, %v1646_v38  ;;  %v1652_v3 = vld [vmem:[#allocation2 + $0x214] sm:$0x1] }
  0xca   :  { %v2410_v41 = vrot.slane %v2409_v22, 4  ;;  %v2478_v19 = vrot.slane %v2476_v50, 5  ;;  %v2489_v5 = vrot.slane %v2487_v59, 4  ;;  %v1327_v11 = vld [vmem:[#allocation2 + $0x178] sm:$0x1]  ;;  %v564_v20 = vmul.f32 %v8654_v9, %v548_v43 }
  0xcb   :  { %v1514_v23 = vor.u32 %v1512_v31, %v1511_v61  ;;  %v1515_v44 = vrot.slane %v1511_v61, 4  ;;  %1645 = vst [vmem:[#allocation2 + $0x208] sm:$0xf] %v1644_v34  ;;  %v2492_v37 = vrot.slane %v2490_v60, 5  ;;  %v1328_v28 = vsel %vm8361_vm3, 0, %v1327_v11 }
  0xcc   :  { %v2415_v10 = vsel %vm8456_vm9, %v2410_v41, %v8826_v53  ;;  %v1786_v16 = vld [vmem:[#allocation2 + $0x17c] sm:$0x1]  ;;  %1648 = vst [vmem:[#allocation2 + $0x20c] sm:$0x1] %v1647_v2  ;;  %v2479_v27 = vor.u32 %v2478_v19, %v2475_v29  ;;  %v1330_v48 = vld [vmem:[#allocation2 + $0x180] sm:$0x1]  ;;  %v565_v36 = vmul.f32 %v8654_v9, %v549_v18  ;;  %v580_v12 = vadd.f32 %v8660_v4, %v564_v20 }
  0xcd   :  { %v2511_v15 = vunpack.c.l.b16 %v2415_v10  ;;  %1329 = vst [vmem:[#allocation2 + $0x178] sm:$0x1] %v1328_v28  ;;  %v1950_v63 = vshll.u32 %v1786_v16, 16  ;;  %v1650_v53 = vsel %vm8425_vm6, %v1514_v23, %v1649_v62  ;;  %v1653_v30 = vsel %vm8361_vm3, %v1515_v44, %v1652_v3  ;;  %v1788_v58 = vld [vmem:[#allocation2 + $0x184] sm:$0x1] }
  0xce   :  { %v2493_v25 = vor.u32 %v2492_v37, %v2489_v5  ;;  %v1331_v32 = vsel %vm8361_vm3, 0, %v1330_v48  ;;  %1651 = vst [vmem:[#allocation2 + $0x210] sm:$0xf] %v1650_v53  ;;  %v2480_v7 = vrot.slane %v2479_v27, 4  ;;  %v1964_v40 = vshll.u32 %v1788_v58, 16 }
  0xcf   :  { %v2522_v21 = vpack.c.b16 %v2511_v15, %v8836_v13  ;;  %1332 = vst [vmem:[#allocation2 + $0x180] sm:$0x1] %v1331_v32  ;;  %v8880_v39 = vrot.slane %v1950_v63, 5  ;;  %v2273_v56 = vld [vmem:[#allocation2 + $0x22c] sm:$0x1]  ;;  %v156_v33 = vmul.f32 %v8654_v9, %v137_v17  ;;  %v581_v47 = vadd.f32 %v8660_v4, %v565_v36  ;;  %v550_v17 = vld [vmem:[#allocation7 + $0x10] sm:$0xff] }
  0xd0   :  { %1654 = vst [vmem:[#allocation2 + $0x214] sm:$0x1] %v1653_v30  ;;  %v2275_v13 = vld [vmem:[#allocation2 + $0x234] sm:$0x1]  ;;  %v2482_v46 = vshll.u32 %v2273_v56, 16  ;;  %v2494_v24 = vrot.slane %v2493_v25, 4  ;;  %v174_v26 = vadd.f32 %v8660_v4, %v8819_v35  ;;  %v8892_v51 = vmul.f32 %v8654_v9, %v138_v42 }
  0xd1   :  { %7596 = vmatmul.msk.bf16.gmra.mxu2 %vm2050_vm10, %v2522_v21  ;;  %v8888_v49 = vrot.slane %v1964_v40, 5  ;;  %v2496_v14 = vshll.u32 %v2275_v13, 16  ;;  %v596_v38 = vmax.f32 %v580_v12, 0.0  ;;  %v175_v52 = vadd.f32 %v8660_v4, %v156_v33  ;;  %v789_v25 = vld [vmem:[#allocation2 + $0x98] sm:$0xf] }
  0xd2   :  { %v1727_v45 = vld [vmem:[#allocation2 + $0x208] sm:$0x1]  ;;  %v2484_v22 = vrot.slane %v2482_v46, 5  ;;  %v597_v54 = vmax.f32 %v581_v47, 0.0  ;;  %v190_v31 = vmax.f32 %v174_v26, 0.0  ;;  %vm4652_vm12 = vcmask 122880  }
  0xd3   :  { %v1728_v55 = vsel %vm8361_vm3, 0, %v1727_v45  ;;  %v2265_v57 = vld [vmem:[#allocation2 + $0x20c] sm:$0x1]  ;;  %v2498_v50 = vrot.slane %v2496_v14, 5  ;;  %v612_v59 = vpack.c.bf16 %v596_v38, %v596_v38  ;;  %v191_v35 = vmax.f32 %v175_v52, 0.0  ;;  %vm9864_vm13 = vmand %vm4652_vm12, %vm384_vm5 }
  0xd4   :  { %v1785_v43 = vld [vmem:[#allocation2 + $0x178] sm:$0xf]  ;;  %1729 = vst [vmem:[#allocation2 + $0x208] sm:$0x1] %v1728_v55  ;;  %v2426_v41 = vshll.u32 %v2265_v57, 16  ;;  %v2485_v4 = vsel %vm8456_vm9, %v2480_v7, %v2484_v22  ;;  %v613_v61 = vpack.c.bf16 %v597_v54, %v597_v54  ;;  %v8898_v29 = vpack.c.bf16 %v190_v31, %v190_v31  ;;  %vm9875_vm14 = vmand %vm4652_vm12, %vm390_vm2 }
  0xd5   :  { %v1941_v60 = vshrl.u32 %v1785_v43, 16  ;;  %v1944_v18 = vshll.u32 %v1785_v43, 16  ;;  %v1730_v9 = vld [vmem:[#allocation2 + $0x210] sm:$0x1]  ;;  %v2499_v34 = vsel %vm8456_vm9, %v2494_v24, %v2498_v50  ;;  %v2516_v62 = vunpack.c.l.b16 %v2485_v4  ;;  %v795_v12 = vld [vmem:[#allocation2 + $0xa0] sm:$0xf] }
  0xd6   :  { %v1787_v2 = vld [vmem:[#allocation2 + $0x180] sm:$0xf]  ;;  %v1731_v3 = vsel %vm8361_vm3, 0, %v1730_v9  ;;  %v8904_v19 = vrot.slane %v2426_v41, 5  ;;  %v2517_v5 = vunpack.c.l.b16 %v2499_v34  ;;  %v629_v10 = vshrl.u32 %v612_v59, 16 }
  0xd7   :  { %v1943_v11 = vrot.slane %v1941_v60, 4  ;;  %v1946_v23 = vrot.slane %v1944_v18, 5  ;;  %v1955_v44 = vshrl.u32 %v1787_v2, 16  ;;  %v1958_v37 = vshll.u32 %v1787_v2, 16  ;;  %1732 = vst [vmem:[#allocation2 + $0x210] sm:$0x1] %v1731_v3 }
  0xd8   :  { %v2267_v15 = vld [vmem:[#allocation2 + $0x214] sm:$0x1]  ;;  %v2525_v28 = vpack.c.b16 %v2517_v5, %v2516_v62  ;;  %v8906_v16 = vrot.slane %v629_v10, 7  ;;  %v632_v27 = vshll.u32 %v612_v59, 16  ;;  %v637_v20 = vshrl.u32 %v613_v61, 16 }
  0xd9   :  { %v1947_v48 = vor.u32 %v1946_v23, %v1943_v11  ;;  %v1957_v63 = vrot.slane %v1955_v44, 4  ;;  %v1960_v53 = vrot.slane %v1958_v37, 5  ;;  %v2440_v30 = vshll.u32 %v2267_v15, 16  ;;  %v8919_v33 = vld [vmem:[%s10831_s7] ss:$0 sm:$0xff] }
  0xda   :  { %7599 = vmatmul.msk.bf16.gmra.mxu3 %vm2050_vm10, %v2525_v28  ;;  %v634_v42 = vor.u32 %v632_v27, %v8906_v16  ;;  %v8910_v21 = vrot.slane %v637_v20, 7  ;;  %v640_v32 = vshll.u32 %v613_v61, 16  ;;  %v8912_v58 = vpack.c.bf16 %v191_v35, %v191_v35  ;;  %v386_v18 = vld [vmem:[#allocation2 + $0x8] sm:$0xf]  ;;  %v792_v9 = vld [vmem:[#allocation2 + $0x9c] sm:$0x1] }
  0xdb   :  { %v1948_v7 = vrot.slane %v1947_v48, 4  ;;  %v1961_v36 = vor.u32 %v1960_v53, %v1957_v63  ;;  %v2264_v40 = vld [vmem:[#allocation2 + $0x208] sm:$0xf]  ;;  %v8914_v56 = vrot.slane %v2440_v30, 5  ;;  %v8922_v13 = vmul.f32 %v8919_v33, %v550_v17  ;;  %v392_v3 = vld [vmem:[#allocation2 + $0xc] sm:$0x1] }
  0xdc   :  { %v7574_v46 = vld [vmem:[#allocation2 + $0x208] sm:$0xf]  ;;  %v2417_v24 = vshrl.u32 %v2264_v40, 16  ;;  %v2420_v47 = vshll.u32 %v2264_v40, 16  ;;  %v642_v26 = vor.u32 %v640_v32, %v8910_v21  ;;  %v790_v14 = vsel %vm8425_vm6, %v634_v42, %v789_v25  ;;  %v798_v27 = vld [vmem:[#allocation2 + $0xa4] sm:$0x1] }
  0xdd   :  { %v1953_v38 = vsel %vm8456_vm9, %v1948_v7, %v8880_v39  ;;  %v1962_v52 = vrot.slane %v1961_v36, 4  ;;  %791 = vst [vmem:[#allocation2 + $0x98] sm:$0xf] %v790_v14  ;;  %v223_v45 = vshrl.u32 %v8898_v29, 16  ;;  %v226_v22 = vshll.u32 %v8898_v29, 16  ;;  %v551_v20 = vld [vmem:[#allocation7 + $0x18] sm:$0xff] }
  0xde   :  { %v2036_v54 = vunpack.c.l.b16 %v1953_v38  ;;  %v7977_v31 = vld [vmem:[#allocation2 + $0x20c] sm:$0xf0]  ;;  %v2419_v57 = vrot.slane %v2417_v24, 4  ;;  %v2422_v50 = vrot.slane %v2420_v47, 5  ;;  %v796_v59 = vsel %vm8425_vm6, %v642_v26, %v795_v12  ;;  %v139_v17 = vld [vmem:[#allocation4 + $0x18] sm:$0xff]  ;;  %v140_v24 = vld [vmem:[#allocation4 + $0x20] sm:$0xff] }
  0xdf   :  { %v2266_v55 = vld [vmem:[#allocation2 + $0x210] sm:$0xf]  ;;  %v1967_v35 = vsel %vm8456_vm9, %v1962_v52, %v8888_v49  ;;  %v7575_v43 = vor.u32 %v7977_v31, %v7574_v46  ;;  %797 = vst [vmem:[#allocation2 + $0xa0] sm:$0xf] %v796_v59  ;;  %v225_v60 = vrot.slane %v223_v45, 7  ;;  %v231_v29 = vshrl.u32 %v8912_v58, 16 }
  0xe0   :  { %v2431_v39 = vshrl.u32 %v2266_v55, 16  ;;  %v2434_v41 = vshll.u32 %v2266_v55, 16  ;;  %v2037_v4 = vunpack.c.l.b16 %v1967_v35  ;;  %v2423_v61 = vor.u32 %v2422_v50, %v2419_v57  ;;  %v395_v30 = vld [vmem:[#allocation2 + $0x10] sm:$0xf]  ;;  %v8960_v12 = vld [vmem:[%s10832_s8] ss:$0 sm:$0xff] }
  0xe1   :  { %7589 = vmatmul.msk.bf16.gmra.mxu1 %vm2050_vm10, %v7575_v43  ;;  %v234_v2 = vshll.u32 %v8912_v58, 16  ;;  %v635_v49 = vrot.slane %v8906_v16, 4  ;;  %v228_v11 = vor.u32 %v226_v22, %v225_v60  ;;  %v229_v23 = vrot.slane %v225_v60, 4  ;;  %v398_v58 = vld [vmem:[#allocation2 + $0x14] sm:$0x1]  ;;  %v141_v45 = vld [vmem:[#allocation4 + $0x28] sm:$0xff] }
  0xe2   :  { %v2433_v34 = vrot.slane %v2431_v39, 4  ;;  %v2436_v62 = vrot.slane %v2434_v41, 5  ;;  %v2047_v5 = vpack.c.b16 %v2037_v4, %v2036_v54  ;;  %v2424_v10 = vrot.slane %v2423_v61, 4  ;;  %v3923_v38 = vld [vmem:[#allocation12 + $0x1c] sm:$0xf] }
  0xe3   :  { %v233_v37 = vrot.slane %v231_v29, 7  ;;  %v643_v15 = vrot.slane %v8910_v21, 4  ;;  %v793_v28 = vsel %vm8361_vm3, %v635_v49, %v792_v9  ;;  %v387_v63 = vsel %vm8425_vm6, %v228_v11, %v386_v18  ;;  %v3533_v31 = vld [vmem:[#allocation12 + $0x18] sm:$0xf]  ;;  %v8981_v43 = vld [vmem:[#allocation2 + $0x1bc] sm:$0xf0] }
  0xe4   :  { %v2437_v44 = vor.u32 %v2436_v62, %v2433_v34  ;;  %7549 = vmatmul.msk.bf16.gmra.mxu0 %vm2050_vm10, %v2047_v5  ;;  %v2429_v16 = vsel %vm8456_vm9, %v2424_v10, %v8904_v19  ;;  %v897_v48 = vld [vmem:[#allocation2 + $0x98] sm:$0x1]  ;;  %v393_v53 = vsel %vm8361_vm3, %v229_v23, %v392_v3  ;;  %794 = vst [vmem:[#allocation2 + $0x9c] sm:$0x1] %v793_v28  ;;  %v3973_v54 = vsel %vm2075_vm4, %v3923_v38, 0 }
  0xe5   :  { %v2512_v42 = vunpack.c.l.b16 %v2429_v16  ;;  %v898_v21 = vsel %vm8361_vm3, 0, %v897_v48  ;;  %v236_v32 = vor.u32 %v234_v2, %v233_v37  ;;  %388 = vst [vmem:[#allocation2 + $0x8] sm:$0xf] %v387_v63  ;;  %v237_v19 = vrot.slane %v233_v37, 4  ;;  %3982 = vmatpush.bf16.msra.mxu3 %v3973_v54  ;;  %v8977_v57 = vld [vmem:[#allocation2 + $0x1b8] sm:$0xf] }
  0xe6   :  { %v2438_v25 = vrot.slane %v2437_v44, 4  ;;  %899 = vst [vmem:[#allocation2 + $0x98] sm:$0x1] %v898_v21  ;;  %v900_v7 = vld [vmem:[#allocation2 + $0xa0] sm:$0x1]  ;;  %v799_v36 = vsel %vm8361_vm3, %v643_v15, %v798_v27  ;;  %v567_v40 = vmul.f32 %v8919_v33, %v551_v20  ;;  %v582_v46 = vadd.f32 %v8960_v12, %v8922_v13 }
  0xe7   :  { %v901_v26 = vsel %vm8361_vm3, 0, %v900_v7  ;;  %394 = vst [vmem:[#allocation2 + $0xc] sm:$0x1] %v393_v53  ;;  %v396_v14 = vsel %vm8425_vm6, %v236_v32, %v395_v30  ;;  %v158_v52 = vmul.f32 %v8919_v33, %v139_v17  ;;  %v399_v13 = vsel %vm8361_vm3, %v237_v19, %v398_v58  ;;  %v3399_v39 = vld [vmem:[#allocation12 + $0x14] sm:$0xf]  ;;  %v552_v32 = vld [vmem:[#allocation7 + $0x20] sm:$0xff] }
  0xe8   :  { %v2443_v47 = vsel %vm8456_vm9, %v2438_v25, %v8914_v56  ;;  %902 = vst [vmem:[#allocation2 + $0xa0] sm:$0x1] %v901_v26  ;;  %v583_v56 = vadd.f32 %v8960_v12, %v567_v40  ;;  %v3599_v55 = vsel %vm2075_vm4, %v3533_v31, 0  ;;  %v598_v50 = vmax.f32 %v582_v46, 0.0  ;;  %v4297_v60 = vld [vmem:[#allocation12 + $0x20] sm:$0xf] }
  0xe9   :  { %v2513_v22 = vunpack.c.l.b16 %v2443_v47  ;;  %397 = vst [vmem:[#allocation2 + $0x10] sm:$0xf] %v396_v14  ;;  %v176_v59 = vadd.f32 %v8960_v12, %v8892_v51  ;;  %3608 = vmatpush.bf16.msrb.mxu2 %v3599_v55  ;;  %v159_v41 = vmul.f32 %v8919_v33, %v140_v24  ;;  %v160_v4 = vmul.f32 %v8919_v33, %v141_v45  ;;  %v801_v55 = vld [vmem:[#allocation2 + $0xa8] sm:$0xf] }
  0xea   :  { %400 = vst [vmem:[#allocation2 + $0x14] sm:$0x1] %v399_v13  ;;  %v3449_v61 = vsel %vm2075_vm4, %v3399_v39, 0  ;;  %v599_v29 = vmax.f32 %v583_v56, 0.0  ;;  %v4347_v51 = vsel %vm2075_vm4, %v4297_v60, 0  ;;  %v8989_v34 = vadd.f32 %v8960_v12, %v158_v52 }
  0xeb   :  { %v2523_v35 = vpack.c.b16 %v2513_v22, %v2512_v42  ;;  %800 = vst [vmem:[#allocation2 + $0xa4] sm:$0x1] %v799_v36  ;;  %3458 = vmatpush.bf16.msrb.mxu1 %v3449_v61  ;;  %v3143_v9 = vld [vmem:[#allocation2 + $0x9c] sm:$0x1]  ;;  %v192_v62 = vmax.f32 %v176_v59, 0.0  ;;  %v7659_v49 = vor.u32 %v8981_v43, %v8977_v57  ;;  %4356 = vmatpush.bf16.msra.mxu0 %v4347_v51  ;;  %vm5411_vm0 = vcmask 1042432  }
  0xec   :  { %v497_v18 = vld [vmem:[#allocation2 + $0x8] sm:$0x1]  ;;  %v3184_v10 = vshll.u32 %v3143_v9, 16  ;;  %v614_v11 = vpack.c.bf16 %v598_v50, %v598_v50  ;;  %v8996_v15 = vadd.f32 %v8960_v12, %v159_v41  ;;  %v8999_v28 = vadd.f32 %v8960_v12, %v160_v4  ;;  %v410_v57 = vld [vmem:[#allocation2 + $0x24] sm:$0x1] }
  0xed   :  { %7597 = vmatmul.msk.bf16.gmra.mxu2 %vm2050_vm10, %v2523_v35  ;;  %v7602_v2 = vld [vmem:[#allocation2 + $0x98] sm:$0xf]  ;;  %v498_v3 = vsel %vm8361_vm3, 0, %v497_v18  ;;  %v615_v48 = vpack.c.bf16 %v599_v29, %v599_v29  ;;  %v9001_v63 = vpack.c.bf16 %v192_v62, %v192_v62  ;;  %v9009_v14 = vmul.f32 %v8919_v33, %v552_v32  ;;  %v807_v62 = vld [vmem:[#allocation2 + $0xb0] sm:$0xf] }
  0xee   :  { %v3142_v5 = vld [vmem:[#allocation2 + $0x98] sm:$0xf]  ;;  %499 = vst [vmem:[#allocation2 + $0x8] sm:$0x1] %v498_v3  ;;  %v2769_v23 = vld [vmem:[#allocation2 + $0xc] sm:$0x1] }
  0xef   :  { %v3175_v44 = vshrl.u32 %v3142_v5, 16  ;;  %v3178_v37 = vshll.u32 %v3142_v5, 16  ;;  %v7980_v27 = vld [vmem:[#allocation2 + $0x9c] sm:$0xf0]  ;;  %v2810_v20 = vshll.u32 %v2769_v23, 16  ;;  %v3186_v16 = vrot.slane %v3184_v10, 5 }
  0xf0   :  { %v3144_v17 = vld [vmem:[#allocation2 + $0xa0] sm:$0xf]  ;;  %v7603_v53 = vor.u32 %v7980_v27, %v7602_v2  ;;  %v500_v30 = vld [vmem:[#allocation2 + $0x10] sm:$0x1]  ;;  %v645_v40 = vshrl.u32 %v614_v11, 16  ;;  %v648_v22 = vshll.u32 %v614_v11, 16 }
  0xf1   :  { %v3177_v25 = vrot.slane %v3175_v44, 4  ;;  %v3180_v42 = vrot.slane %v3178_v37, 5  ;;  %v3189_v21 = vshrl.u32 %v3144_v17, 16  ;;  %v501_v58 = vsel %vm8361_vm3, 0, %v500_v30  ;;  %v2771_v7 = vld [vmem:[#allocation2 + $0x14] sm:$0x1] }
  0xf2   :  { %v9005_v19 = vrot.slane %v2810_v20, 5  ;;  %v3192_v36 = vshll.u32 %v3144_v17, 16  ;;  %7632 = vmatmul.msk.bf16.vlgmr.msrb.gmra.mxu3 %vm2050_vm10, %v7603_v53  ;;  %502 = vst [vmem:[#allocation2 + $0x10] sm:$0x1] %v501_v58  ;;  %v2824_v46 = vshll.u32 %v2771_v7, 16  ;;  %v647_v45 = vrot.slane %v645_v40, 7 }
  0xf3   :  { %v3145_v24 = vld [vmem:[#allocation2 + $0xa4] sm:$0x1]  ;;  %v3181_v47 = vor.u32 %v3180_v42, %v3177_v25  ;;  %v3191_v26 = vrot.slane %v3189_v21, 4  ;;  %v653_v31 = vshrl.u32 %v615_v48, 16  ;;  %v656_v56 = vshll.u32 %v615_v48, 16 }
  0xf4   :  { %v3194_v38 = vrot.slane %v3192_v36, 5  ;;  %v3198_v52 = vshll.u32 %v3145_v24, 16  ;;  %v9011_v13 = vrot.slane %v2824_v46, 5  ;;  %v650_v39 = vor.u32 %v648_v22, %v647_v45  ;;  %v401_v30 = vld [vmem:[#allocation2 + $0x18] sm:$0xf] }
  0xf5   :  { %v3182_v54 = vrot.slane %v3181_v47, 4  ;;  %v2768_v50 = vld [vmem:[#allocation2 + $0x8] sm:$0xf]  ;;  %v651_v41 = vrot.slane %v647_v45, 4  ;;  %v655_v29 = vrot.slane %v653_v31, 7  ;;  %v193_v2 = vmax.f32 %v8989_v34, 0.0 }
  0xf6   :  { %v3195_v59 = vor.u32 %v3194_v38, %v3191_v26  ;;  %v3200_v35 = vrot.slane %v3198_v52, 5  ;;  %v2801_v4 = vshrl.u32 %v2768_v50, 16  ;;  %v2804_v61 = vshll.u32 %v2768_v50, 16  ;;  %v804_v34 = vld [vmem:[#allocation2 + $0xac] sm:$0x1] }
  0xf7   :  { %v3187_v60 = vsel %vm8456_vm9, %v3182_v54, %v3186_v16  ;;  %v802_v9 = vsel %vm8425_vm6, %v650_v39, %v801_v55  ;;  %v658_v10 = vor.u32 %v656_v56, %v655_v29  ;;  %v659_v11 = vrot.slane %v655_v29, 4  ;;  %v810_v58 = vld [vmem:[#allocation2 + $0xb4] sm:$0x1]  ;;  %v407_v46 = vld [vmem:[#allocation2 + $0x20] sm:$0xf]  ;;  %v553_v45 = vld [vmem:[#allocation7 + $0x28] sm:$0xff]  ;;  %v2088_v29 = vpop.f32.mrf.mxu0 }
  0xf8   :  { %v3196_v18 = vrot.slane %v3195_v59, 4  ;;  %v3400_v51 = vunpack.c.l.b16 %v3187_v60  ;;  %v2803_v3 = vrot.slane %v2801_v4, 4  ;;  %v2806_v5 = vrot.slane %v2804_v61, 5  ;;  %803 = vst [vmem:[#allocation2 + $0xa8] sm:$0xf] %v802_v9  ;;  %v554_v4 = vld [vmem:[#allocation7 + $0x30] sm:$0xff] }
  0xf9   :  { %v2770_v23 = vld [vmem:[#allocation2 + $0x10] sm:$0xf]  ;;  %v209_v37 = vpack.c.bf16 %v193_v2, %v193_v2  ;;  %v239_v27 = vshrl.u32 %v9001_v63, 16  ;;  %v242_v20 = vshll.u32 %v9001_v63, 16  ;;  %v808_v25 = vsel %vm8425_vm6, %v658_v10, %v807_v62  ;;  %v404_v38 = vld [vmem:[#allocation2 + $0x1c] sm:$0x1] }
  0xfa   :  { %v3201_v44 = vsel %vm8456_vm9, %v3196_v18, %v3200_v35  ;;  %v2807_v17 = vor.u32 %v2806_v5, %v2803_v3  ;;  %v2815_v16 = vshrl.u32 %v2770_v23, 16  ;;  %v2818_v48 = vshll.u32 %v2770_v23, 16  ;;  %809 = vst [vmem:[#allocation2 + $0xb0] sm:$0xf] %v808_v25  ;;  %v9048_v60 = vld [vmem:[#allocation2 + $0x1c8] sm:$0xf]  ;;  %v2204_v18 = vpop.f32.mrf.mxu1 }
  0xfb   :  { %v3401_v53 = vunpack.c.l.b16 %v3201_v44  ;;  %v241_v42 = vrot.slane %v239_v27, 7  ;;  %v247_v21 = vshrl.u32 %v209_v37, 16  ;;  %v250_v32 = vshll.u32 %v209_v37, 16  ;;  %v9055_v2 = vld [vmem:[#allocation2 + $0x1cc] sm:$0xf0]  ;;  %v555_v10 = vld [vmem:[#allocation7 + $0x38] sm:$0xff] }
  0xfc   :  { %v2808_v7 = vrot.slane %v2807_v17, 4  ;;  %v2817_v36 = vrot.slane %v2815_v16, 4  ;;  %v2820_v40 = vrot.slane %v2818_v48, 5  ;;  %v805_v52 = vsel %vm8361_vm3, %v651_v41, %v804_v34 }
  0xfd   :  { %7688 = vmatmul.msk.bf16.vlgmr.msrb.gmra.mxu2 %vm2050_vm10, %v7659_v49  ;;  %v3416_v63 = vpack.c.b16 %v3401_v53, %v3400_v51  ;;  %v244_v24 = vor.u32 %v242_v20, %v241_v42  ;;  %v245_v47 = vrot.slane %v241_v42, 4  ;;  %v249_v26 = vrot.slane %v247_v21, 7  ;;  %806 = vst [vmem:[#allocation2 + $0xac] sm:$0x1] %v805_v52 }
  0xfe   :  { %v2813_v22 = vsel %vm8456_vm9, %v2808_v7, %v9005_v19  ;;  %v2821_v54 = vor.u32 %v2820_v40, %v2817_v36  ;;  %v811_v43 = vsel %vm8361_vm3, %v659_v11, %v810_v58  ;;  %v194_v49 = vmax.f32 %v8996_v15, 0.0  ;;  %v142_v58 = vld [vmem:[#allocation4 + $0x30] sm:$0xff] }
  0xff   :  { %7648 = vmatmul.msk.bf16.vlgmr.msrb.gmra.mxu1 %vm2050_vm10, %v3416_v63  ;;  %v3026_v31 = vunpack.c.l.b16 %v2813_v22  ;;  %v903_v56 = vld [vmem:[#allocation2 + $0xa8] sm:$0x1]  ;;  %v252_v55 = vor.u32 %v250_v32, %v249_v26  ;;  %v253_v50 = vrot.slane %v249_v26, 4  ;;  %v402_v59 = vsel %vm8425_vm6, %v244_v24, %v401_v30  ;;  %812 = vst [vmem:[#allocation2 + $0xb4] sm:$0x1] %v811_v43 }
 0x100   :  { %v2822_v35 = vrot.slane %v2821_v54, 4  ;;  %v904_v19 = vsel %vm8361_vm3, 0, %v903_v56  ;;  %403 = vst [vmem:[#allocation2 + $0x18] sm:$0xf] %v402_v59  ;;  %v405_v39 = vsel %vm8361_vm3, %v245_v47, %v404_v38  ;;  %v569_v41 = vmul.f32 %v8919_v33, %v553_v45  ;;  %v413_v24 = vld [vmem:[#allocation2 + $0x28] sm:$0xf] }
 0x101   :  { %905 = vst [vmem:[#allocation2 + $0xa8] sm:$0x1] %v904_v19  ;;  %v408_v15 = vsel %vm8425_vm6, %v252_v55, %v407_v46  ;;  %v411_v61 = vsel %vm8361_vm3, %v253_v50, %v410_v57  ;;  %v584_v51 = vadd.f32 %v8960_v12, %v9009_v14  ;;  %v210_v9 = vpack.c.bf16 %v194_v49, %v194_v49  ;;  %v906_v23 = vld [vmem:[#allocation2 + $0xb0] sm:$0x1]  ;;  %v813_v49 = vld [vmem:[#allocation2 + $0xb8] sm:$0xf] }
 0x102   :  { %v2827_v62 = vsel %vm8456_vm9, %v2822_v35, %v9011_v13  ;;  %406 = vst [vmem:[#allocation2 + $0x1c] sm:$0x1] %v405_v39  ;;  %v9057_v3 = vadd.f32 %v2204_v18, %v2088_v29  ;;  %v585_v5 = vadd.f32 %v8960_v12, %v569_v41  ;;  %v195_v37 = vmax.f32 %v8999_v28, 0.0  ;;  %v143_v39 = vld [vmem:[#allocation4 + $0x38] sm:$0xff] }
 0x103   :  { %v3027_v11 = vunpack.c.l.b16 %v2827_v62  ;;  %409 = vst [vmem:[#allocation2 + $0x20] sm:$0xf] %v408_v15  ;;  %v600_v44 = vmax.f32 %v584_v51, 0.0  ;;  %v570_v14 = vmul.f32 %v8919_v33, %v554_v4  ;;  %v907_v27 = vsel %vm8361_vm3, 0, %v906_v23  ;;  %v819_v62 = vld [vmem:[#allocation2 + $0xc0] sm:$0xf] }
 0x104   :  { %412 = vst [vmem:[#allocation2 + $0x24] sm:$0x1] %v411_v61  ;;  %v601_v13 = vmax.f32 %v585_v5, 0.0  ;;  %v255_v20 = vshrl.u32 %v210_v9, 16  ;;  %v258_v17 = vshll.u32 %v210_v9, 16  ;;  %v9064_v30 = vpack.c.bf16 %v195_v37, %v195_v37 }
 0x105   :  { %v3042_v16 = vpack.c.b16 %v3027_v11, %v3026_v31  ;;  %908 = vst [vmem:[#allocation2 + $0xb0] sm:$0x1] %v907_v27  ;;  %v3147_v48 = vld [vmem:[#allocation2 + $0xac] sm:$0x1]  ;;  %v616_v53 = vpack.c.bf16 %v600_v44, %v600_v44  ;;  %v571_v34 = vmul.f32 %v8919_v33, %v555_v10  ;;  %v7663_v28 = vor.u32 %v9055_v2, %v9048_v60 }
 0x106   :  { %v3149_v25 = vld [vmem:[#allocation2 + $0xb4] sm:$0x1]  ;;  %v3212_v42 = vshll.u32 %v3147_v48, 16  ;;  %v617_v21 = vpack.c.bf16 %v601_v13, %v601_v13  ;;  %v9069_v32 = vrot.slane %v255_v20, 7  ;;  %v263_v46 = vshrl.u32 %v9064_v30, 16 }
 0x107   :  { %7640 = vmatmul.msk.bf16.vlgmr.msrb.gmra.mxu0 %vm2050_vm10, %v3042_v16  ;;  %v503_v7 = vld [vmem:[#allocation2 + $0x18] sm:$0x1]  ;;  %v3226_v36 = vshll.u32 %v3149_v25, 16  ;;  %v661_v40 = vshrl.u32 %v616_v53, 16  ;;  %v664_v63 = vshll.u32 %v616_v53, 16  ;;  %v9079_v22 = vadd.f32 %v8960_v12, %v570_v14 }
 0x108   :  { %v7606_v47 = vld [vmem:[#allocation2 + $0xa8] sm:$0xf]  ;;  %v504_v26 = vsel %vm8361_vm3, 0, %v503_v7  ;;  %v9075_v52 = vrot.slane %v3212_v42, 5  ;;  %v260_v45 = vor.u32 %v258_v17, %v9069_v32  ;;  %v9082_v31 = vadd.f32 %v8960_v12, %v571_v34  ;;  %v416_v20 = vld [vmem:[#allocation2 + $0x2c] sm:$0x1] }
 0x109   :  { %v3146_v38 = vld [vmem:[#allocation2 + $0xa8] sm:$0xf]  ;;  %505 = vst [vmem:[#allocation2 + $0x18] sm:$0x1] %v504_v26  ;;  %v2773_v54 = vld [vmem:[#allocation2 + $0x1c] sm:$0x1]  ;;  %v9085_v56 = vmul.f32 %v8919_v33, %v142_v58  ;;  %v162_v34 = vmul.f32 %v8919_v33, %v143_v39 }
 0x10a   :  { %v3203_v57 = vshrl.u32 %v3146_v38, 16  ;;  %v3206_v43 = vshll.u32 %v3146_v38, 16  ;;  %v506_v55 = vld [vmem:[#allocation2 + $0x20] sm:$0x1]  ;;  %v2838_v50 = vshll.u32 %v2773_v54, 16  ;;  %v9087_v59 = vrot.slane %v3226_v36, 5 }
 0x10b   :  { %v663_v35 = vrot.slane %v661_v40, 7  ;;  %v669_v19 = vshrl.u32 %v617_v21, 16  ;;  %v507_v41 = vsel %vm8361_vm3, 0, %v506_v55  ;;  %v2775_v4 = vld [vmem:[#allocation2 + $0x24] sm:$0x1]  ;;  %v672_v60 = vshll.u32 %v617_v21, 16 }
 0x10c   :  { %v3205_v15 = vrot.slane %v3203_v57, 4  ;;  %v3208_v61 = vrot.slane %v3206_v43, 5  ;;  %v7981_v29 = vld [vmem:[#allocation2 + $0xac] sm:$0xf0]  ;;  %508 = vst [vmem:[#allocation2 + $0x20] sm:$0x1] %v507_v41  ;;  %v414_v2 = vsel %vm8425_vm6, %v260_v45, %v413_v24  ;;  %v2562_v43 = vpop.f32.mrf.mxu2  ;;  %v9119_v41 = vpop.f32.mrf.mxu0 }
 0x10d   :  { %v9091_v18 = vrot.slane %v2838_v50, 5  ;;  %v2852_v51 = vshll.u32 %v2775_v4, 16  ;;  %7689 = vmatmul.msk.bf16.gmra.mxu2 %vm2050_vm10, %v7663_v28  ;;  %v666_v9 = vor.u32 %v664_v63, %v663_v35  ;;  %v7607_v5 = vor.u32 %v7981_v29, %v7606_v47  ;;  %v3148_v10 = vld [vmem:[#allocation2 + $0xb0] sm:$0xf]  ;;  %415 = vst [vmem:[#allocation2 + $0x28] sm:$0xf] %v414_v2  ;;  %v9121_v4 = vpop.f32.mrf.mxu1 }
 0x10e   :  { %v3209_v11 = vor.u32 %v3208_v61, %v3205_v15  ;;  %v667_v23 = vrot.slane %v663_v35, 4  ;;  %v9096_v44 = vrot.slane %v669_v19, 7  ;;  %v3217_v14 = vshrl.u32 %v3148_v10, 16  ;;  %v816_v53 = vld [vmem:[#allocation2 + $0xbc] sm:$0x1] }
 0x10f   :  { %v9098_v37 = vrot.slane %v2852_v51, 5  ;;  %v3220_v27 = vshll.u32 %v3148_v10, 16  ;;  %v814_v13 = vsel %vm8425_vm6, %v666_v9, %v813_v49  ;;  %7633 = vmatmul.msk.bf16.gmra.mxu3 %vm2050_vm10, %v7607_v5  ;;  %v261_v48 = vrot.slane %v9069_v32, 4  ;;  %v419_v24 = vld [vmem:[#allocation2 + $0x30] sm:$0xf] }
 0x110   :  { %v3210_v17 = vrot.slane %v3209_v11, 4  ;;  %v674_v16 = vor.u32 %v672_v60, %v9096_v44  ;;  %815 = vst [vmem:[#allocation2 + $0xb8] sm:$0xf] %v814_v13  ;;  %v2772_v28 = vld [vmem:[#allocation2 + $0x18] sm:$0xf]  ;;  %v3219_v25 = vrot.slane %v3217_v14, 4  ;;  %v817_v55 = vsel %vm8361_vm3, %v667_v23, %v816_v53 }
 0x111   :  { %v3222_v42 = vrot.slane %v3220_v27, 5  ;;  %v265_v21 = vrot.slane %v263_v46, 7  ;;  %v266_v58 = vshll.u32 %v9064_v30, 16  ;;  %v2829_v7 = vshrl.u32 %v2772_v28, 16  ;;  %v422_v45 = vld [vmem:[#allocation2 + $0x34] sm:$0x1] }
 0x112   :  { %v2832_v36 = vshll.u32 %v2772_v28, 16  ;;  %v675_v40 = vrot.slane %v9096_v44, 4  ;;  %v820_v63 = vsel %vm8425_vm6, %v674_v16, %v819_v62  ;;  %v3215_v32 = vsel %vm8456_vm9, %v3210_v17, %v9075_v52  ;;  %v7666_v49 = vld [vmem:[#allocation2 + $0x1d8] sm:$0xf]  ;;  %v822_v50 = vld [vmem:[#allocation2 + $0xc4] sm:$0x1] }
 0x113   :  { %v3223_v47 = vor.u32 %v3222_v42, %v3219_v25  ;;  %821 = vst [vmem:[#allocation2 + $0xc0] sm:$0xf] %v820_v63  ;;  %v268_v26 = vor.u32 %v266_v58, %v265_v21  ;;  %v269_v38 = vrot.slane %v265_v21, 4  ;;  %v2774_v46 = vld [vmem:[#allocation2 + $0x20] sm:$0xf]  ;;  %v2831_v54 = vrot.slane %v2829_v7, 4 }
 0x114   :  { %v2834_v30 = vrot.slane %v2832_v36, 5  ;;  %v417_v57 = vsel %vm8361_vm3, %v261_v48, %v416_v20  ;;  %v2843_v35 = vshrl.u32 %v2774_v46, 16  ;;  %v2846_v19 = vshll.u32 %v2774_v46, 16  ;;  %v509_v29 = vld [vmem:[#allocation2 + $0x28] sm:$0x1]  ;;  %v1355_v17 = vld [vmem:[#allocation10 + $0x38] sm:$0xff]  ;;  %v2093_v63 = vpop.f32.mrf.mxu0 }
 0x115   :  { %v3224_v52 = vrot.slane %v3223_v47, 4  ;;  %418 = vst [vmem:[#allocation2 + $0x2c] sm:$0x1] %v417_v57  ;;  %v420_v39 = vsel %vm8425_vm6, %v268_v26, %v419_v24  ;;  %v3402_v61 = vunpack.c.l.b16 %v3215_v32  ;;  %v423_v60 = vsel %vm8361_vm3, %v269_v38, %v422_v45  ;;  %v7990_v9 = vld [vmem:[#allocation2 + $0x1dc] sm:$0xf0]  ;;  %v2209_v24 = vpop.f32.mrf.mxu1 }
 0x116   :  { %v2835_v15 = vor.u32 %v2834_v30, %v2831_v54  ;;  %421 = vst [vmem:[#allocation2 + $0x30] sm:$0xf] %v420_v39  ;;  %v9126_v51 = vadd.f32 %v2562_v43, %v9057_v3  ;;  %v2845_v62 = vrot.slane %v2843_v35, 4  ;;  %v2848_v2 = vrot.slane %v2846_v19, 5  ;;  %v144_v30 = vld [vmem:[#allocation4 + $0x40] sm:$0xff] }
 0x117   :  { %v3229_v5 = vsel %vm8456_vm9, %v3224_v52, %v9087_v59  ;;  %v909_v10 = vld [vmem:[#allocation2 + $0xb8] sm:$0x1]  ;;  %424 = vst [vmem:[#allocation2 + $0x34] sm:$0x1] %v423_v60  ;;  %v7667_v11 = vor.u32 %v7990_v9, %v7666_v49  ;;  %v510_v27 = vsel %vm8361_vm3, 0, %v509_v29  ;;  %v823_v13 = vsel %vm8361_vm3, %v675_v40, %v822_v50 }
 0x118   :  { %v2836_v23 = vrot.slane %v2835_v15, 4  ;;  %v3403_v44 = vunpack.c.l.b16 %v3229_v5  ;;  %v910_v14 = vsel %vm8361_vm3, 0, %v909_v10  ;;  %818 = vst [vmem:[#allocation2 + $0xbc] sm:$0x1] %v817_v55  ;;  %v2849_v3 = vor.u32 %v2848_v2, %v2845_v62 }
 0x119   :  { %911 = vst [vmem:[#allocation2 + $0xb8] sm:$0x1] %v910_v14  ;;  %v602_v20 = vmax.f32 %v9079_v22, 0.0  ;;  %v603_v59 = vmax.f32 %v9082_v31, 0.0  ;;  %v180_v28 = vadd.f32 %v8960_v12, %v9085_v56  ;;  %v181_v25 = vadd.f32 %v8960_v12, %v162_v34 }
 0x11a   :  { %v2841_v16 = vsel %vm8456_vm9, %v2836_v23, %v9091_v18  ;;  %v3417_v48 = vpack.c.b16 %v3403_v44, %v3402_v61  ;;  %v912_v53 = vld [vmem:[#allocation2 + $0xc0] sm:$0x1]  ;;  %511 = vst [vmem:[#allocation2 + $0x28] sm:$0x1] %v510_v27  ;;  %v2850_v42 = vrot.slane %v2849_v3, 4  ;;  %v1371_v36 = vmul.f32 %v8919_v33, %v1355_v17  ;;  %v9172_v27 = vpop.f32.mrf.mxu3 }
 0x11b   :  { %v913_v21 = vsel %vm8361_vm3, 0, %v912_v53  ;;  %824 = vst [vmem:[#allocation2 + $0xc4] sm:$0x1] %v823_v13  ;;  %v618_v22 = vpack.c.bf16 %v602_v20, %v602_v20  ;;  %v3028_v31 = vunpack.c.l.b16 %v2841_v16  ;;  %v196_v18 = vmax.f32 %v180_v28, 0.0  ;;  %v556_v44 = vld [vmem:[#allocation7 + $0x40] sm:$0xff] }
 0x11c   :  { %7649 = vmatmul.msk.bf16.gmra.mxu1 %vm2050_vm10, %v3417_v48  ;;  %914 = vst [vmem:[#allocation2 + $0xc0] sm:$0x1] %v913_v21  ;;  %v2777_v58 = vld [vmem:[#allocation2 + $0x2c] sm:$0x1]  ;;  %v197_v7 = vmax.f32 %v181_v25, 0.0  ;;  %v2855_v56 = vsel %vm8456_vm9, %v2850_v42, %v9098_v37  ;;  %v619_v32 = vpack.c.bf16 %v603_v59, %v603_v59  ;;  %v9155_v46 = vadd.f32 %v2209_v24, %v2093_v63 }
 0x11d   :  { %v512_v34 = vld [vmem:[#allocation2 + $0x30] sm:$0x1]  ;;  %v2866_v40 = vshll.u32 %v2777_v58, 16  ;;  %7690 = vmatmul.msk.bf16.gmra.mxu2 %vm2050_vm10, %v7667_v11  ;;  %v677_v47 = vshrl.u32 %v618_v22, 16  ;;  %v3029_v26 = vunpack.c.l.b16 %v2855_v56  ;;  %v680_v54 = vshll.u32 %v618_v22, 16 }
 0x11e   :  { %v513_v38 = vsel %vm8361_vm3, 0, %v512_v34  ;;  %v2779_v45 = vld [vmem:[#allocation2 + $0x34] sm:$0x1]  ;;  %v9159_v49 = vpack.c.bf16 %v196_v18, %v196_v18  ;;  %v9161_v55 = vpack.c.bf16 %v197_v7, %v197_v7  ;;  %v9166_v15 = vadd.f32 %v8960_v12, %v1371_v36 }
 0x11f   :  { %514 = vst [vmem:[#allocation2 + $0x30] sm:$0x1] %v513_v38  ;;  %v9157_v57 = vrot.slane %v2866_v40, 5  ;;  %v2880_v37 = vshll.u32 %v2779_v45, 16  ;;  %v3151_v43 = vld [vmem:[#allocation2 + $0xbc] sm:$0x1]  ;;  %v3043_v50 = vpack.c.b16 %v3029_v26, %v3028_v31  ;;  %v9175_v59 = vmul.f32 %v8919_v33, %v556_v44 }
 0x120   :  { %v7610_v35 = vld [vmem:[#allocation2 + $0xb8] sm:$0xf]  ;;  %v3240_v52 = vshll.u32 %v3151_v43, 16  ;;  %v9163_v39 = vrot.slane %v677_v47, 7  ;;  %v685_v62 = vshrl.u32 %v619_v32, 16  ;;  %v9178_v17 = vmul.f32 %v8919_v33, %v144_v30 }
 0x121   :  { %v3150_v19 = vld [vmem:[#allocation2 + $0xb8] sm:$0xf]  ;;  %v2776_v61 = vld [vmem:[#allocation2 + $0x28] sm:$0xf]  ;;  %v9168_v60 = vrot.slane %v2880_v37, 5  ;;  %7641 = vmatmul.msk.bf16.gmra.mxu0 %vm2050_vm10, %v3043_v50  ;;  %v688_v56 = vshll.u32 %v619_v32, 16 }
 0x122   :  { %v3231_v29 = vshrl.u32 %v3150_v19, 16  ;;  %v3234_v9 = vshll.u32 %v3150_v19, 16  ;;  %v2857_v2 = vshrl.u32 %v2776_v61, 16  ;;  %v2860_v5 = vshll.u32 %v2776_v61, 16  ;;  %v3153_v10 = vld [vmem:[#allocation2 + $0xc4] sm:$0x1]  ;;  %v9187_v19 = vpop.f32.mrf.mxu2 }
 0x123   :  { %v3242_v11 = vrot.slane %v3240_v52, 5  ;;  %v682_v23 = vor.u32 %v680_v54, %v9163_v39  ;;  %v7982_v14 = vld [vmem:[#allocation2 + $0xbc] sm:$0xf0]  ;;  %v3254_v21 = vshll.u32 %v3153_v10, 16  ;;  %v683_v22 = vrot.slane %v9163_v39, 4  ;;  %v557_v61 = vld [vmem:[#allocation7 + $0x48] sm:$0xff] }
 0x124   :  { %v3152_v3 = vld [vmem:[#allocation2 + $0xc0] sm:$0xf]  ;;  %v3233_v13 = vrot.slane %v3231_v29, 4  ;;  %v3236_v20 = vrot.slane %v3234_v9, 5  ;;  %v7611_v16 = vor.u32 %v7982_v14, %v7610_v35  ;;  %v2859_v48 = vrot.slane %v2857_v2, 4 }
 0x125   :  { %v2862_v53 = vrot.slane %v2860_v5, 5  ;;  %v3245_v28 = vshrl.u32 %v3152_v3, 16  ;;  %v3248_v42 = vshll.u32 %v3152_v3, 16  ;;  %v825_v31 = vld [vmem:[#allocation2 + $0xc8] sm:$0xf]  ;;  %v687_v36 = vrot.slane %v685_v62, 7  ;;  %v9200_v3 = vpop.f32.mrf.mxu3 }
 0x126   :  { %v3237_v25 = vor.u32 %v3236_v20, %v3233_v13  ;;  %7634 = vmatmul.msk.bf16.gmra.mxu3 %vm2050_vm10, %v7611_v16  ;;  %v2778_v58 = vld [vmem:[#allocation2 + $0x30] sm:$0xf]  ;;  %v3256_v38 = vrot.slane %v3254_v21, 5  ;;  %v826_v52 = vsel %vm8425_vm6, %v682_v23, %v825_v31  ;;  %v271_v2 = vshrl.u32 %v9159_v49, 16  ;;  %v828_v5 = vld [vmem:[#allocation2 + $0xcc] sm:$0x1] }
 0x127   :  { %v2863_v18 = vor.u32 %v2862_v53, %v2859_v48  ;;  %v3247_v7 = vrot.slane %v3245_v28, 4  ;;  %v2871_v34 = vshrl.u32 %v2778_v58, 16  ;;  %v2874_v40 = vshll.u32 %v2778_v58, 16  ;;  %v831_v47 = vld [vmem:[#allocation2 + $0xd0] sm:$0xf]  ;;  %10844 = vst [vmem:[#allocation21_spill] sm:$0xff] %v9200_v3 }
 0x128   :  { %v3238_v63 = vrot.slane %v3237_v25, 4  ;;  %v3250_v24 = vrot.slane %v3248_v42, 5  ;;  %v690_v45 = vor.u32 %v688_v56, %v687_v36  ;;  %v691_v54 = vrot.slane %v687_v36, 4  ;;  %827 = vst [vmem:[#allocation2 + $0xc8] sm:$0xf] %v826_v52 }
 0x129   :  { %v2864_v26 = vrot.slane %v2863_v18, 4  ;;  %v2873_v30 = vrot.slane %v2871_v34, 4  ;;  %v2876_v37 = vrot.slane %v2874_v40, 5  ;;  %v279_v10 = vshrl.u32 %v9161_v55, 16  ;;  %v425_v20 = vld [vmem:[#allocation2 + $0x38] sm:$0xf] }
 0x12a   :  { %v3243_v43 = vsel %vm8456_vm9, %v3238_v63, %v3242_v11  ;;  %v3251_v50 = vor.u32 %v3250_v24, %v3247_v7  ;;  %v832_v39 = vsel %vm8425_vm6, %v690_v45, %v831_v47  ;;  %v282_v11 = vshll.u32 %v9161_v55, 16  ;;  %v834_v48 = vld [vmem:[#allocation2 + $0xd4] sm:$0x1]  ;;  %v428_v28 = vld [vmem:[#allocation2 + $0x3c] sm:$0x1] }
 0x12b   :  { %v2869_v35 = vsel %vm8456_vm9, %v2864_v26, %v9157_v57  ;;  %v3404_v32 = vunpack.c.l.b16 %v3243_v43  ;;  %v2877_v29 = vor.u32 %v2876_v37, %v2873_v30  ;;  %833 = vst [vmem:[#allocation2 + $0xd0] sm:$0xf] %v832_v39  ;;  %v274_v57 = vshll.u32 %v9159_v49, 16  ;;  %v431_v31 = vld [vmem:[#allocation2 + $0x40] sm:$0xf] }
 0x12c   :  { %v3030_v9 = vunpack.c.l.b16 %v2869_v35  ;;  %v3252_v62 = vrot.slane %v3251_v50, 4  ;;  %v1403_v23 = vmax.f32 %v9166_v15, 0.0  ;;  %v273_v13 = vrot.slane %v271_v2, 7  ;;  %v434_v40 = vld [vmem:[#allocation2 + $0x44] sm:$0x1]  ;;  %v2567_v35 = vpop.f32.mrf.mxu2 }
 0x12d   :  { %v2878_v44 = vrot.slane %v2877_v29, 4  ;;  %v829_v16 = vsel %vm8361_vm3, %v683_v22, %v828_v5  ;;  %v281_v49 = vrot.slane %v279_v10, 7  ;;  %v835_v55 = vsel %vm8361_vm3, %v691_v54, %v834_v48  ;;  %v9232_v52 = vld [vmem:[%s10831_s7] ss:$0 sm:$0xff]  ;;  %v9240_v29 = vpop.f32.mrf.mxu0 }
 0x12e   :  { %v3257_v14 = vsel %vm8456_vm9, %v3252_v62, %v3256_v38  ;;  %v1419_v25 = vpack.c.bf16 %v1403_v23, %v1403_v23  ;;  %830 = vst [vmem:[#allocation2 + $0xcc] sm:$0x1] %v829_v16  ;;  %v276_v42 = vor.u32 %v274_v57, %v273_v13  ;;  %v277_v21 = vrot.slane %v273_v13, 4  ;;  %v558_v13 = vld [vmem:[#allocation7 + $0x50] sm:$0xff] }
 0x12f   :  { %v3405_v53 = vunpack.c.l.b16 %v3257_v14  ;;  %v2883_v15 = vsel %vm8456_vm9, %v2878_v44, %v9168_v60  ;;  %836 = vst [vmem:[#allocation2 + $0xd4] sm:$0x1] %v835_v55  ;;  %v573_v58 = vmul.f32 %v8919_v33, %v557_v61  ;;  %v284_v7 = vor.u32 %v282_v11, %v281_v49  ;;  %v145_v60 = vld [vmem:[#allocation4 + $0x48] sm:$0xff] }
 0x130   :  { %v3031_v22 = vunpack.c.l.b16 %v2883_v15  ;;  %v285_v36 = vrot.slane %v281_v49, 4  ;;  %v426_v56 = vsel %vm8425_vm6, %v276_v42, %v425_v20  ;;  %v429_v34 = vsel %vm8361_vm3, %v277_v21, %v428_v28  ;;  %v915_v26 = vld [vmem:[#allocation2 + $0xc8] sm:$0x1]  ;;  %v559_v15 = vld [vmem:[#allocation7 + $0x58] sm:$0xff] }
 0x131   :  { %v3418_v18 = vpack.c.b16 %v3405_v53, %v3404_v32  ;;  %v1485_v63 = vshrl.u32 %v1419_v25, 16  ;;  %v1488_v24 = vshll.u32 %v1419_v25, 16  ;;  %427 = vst [vmem:[#allocation2 + $0x38] sm:$0xf] %v426_v56  ;;  %v432_v33 = vsel %vm8425_vm6, %v284_v7, %v431_v31  ;;  %v1631_v32 = vld [vmem:[#allocation2 + $0x1f0] sm:$0xf] }
 0x132   :  { %v3044_v47 = vpack.c.b16 %v3031_v22, %v3030_v9  ;;  %v916_v38 = vsel %vm8361_vm3, 0, %v915_v26  ;;  %v918_v45 = vld [vmem:[#allocation2 + $0xd0] sm:$0x1]  ;;  %430 = vst [vmem:[#allocation2 + $0x3c] sm:$0x1] %v429_v34  ;;  %v588_v30 = vadd.f32 %v8960_v12, %v9175_v59  ;;  %v589_v37 = vadd.f32 %v8960_v12, %v573_v58  ;;  %v9242_v9 = vpop.f32.mrf.mxu1  ;;  %v147_v21 = vld [vmem:[#allocation4 + $0x58] sm:$0xff] }
 0x133   :  { %7650 = vmatmul.msk.bf16.gmra.mxu1 %vm2050_vm10, %v3418_v18  ;;  %v9219_v54 = vrot.slane %v1485_v63, 7  ;;  %917 = vst [vmem:[#allocation2 + $0xc8] sm:$0x1] %v916_v38  ;;  %v919_v43 = vsel %vm8361_vm3, 0, %v918_v45  ;;  %v435_v50 = vsel %vm8361_vm3, %v285_v36, %v434_v40  ;;  %v164_v59 = vmul.f32 %v9232_v52, %v145_v60  ;;  %v146_v53 = vld [vmem:[#allocation4 + $0x50] sm:$0xff] }
 0x134   :  { %7642 = vmatmul.msk.bf16.gmra.mxu0 %vm2050_vm10, %v3044_v47  ;;  %v182_v39 = vadd.f32 %v8960_v12, %v9178_v17  ;;  %920 = vst [vmem:[#allocation2 + $0xd0] sm:$0x1] %v919_v43  ;;  %v9238_v61 = vadd.f32 %v2567_v35, %v9155_v46  ;;  %v604_v5 = vmax.f32 %v588_v30, 0.0  ;;  %v605_v11 = vmax.f32 %v589_v37, 0.0  ;;  %v9246_v17 = vpop.f32.mrf.mxu3  ;;  %v837_v43 = vld [vmem:[#allocation2 + $0xe0] sm:$0xf] }
 0x135   :  { %v1490_v62 = vor.u32 %v1488_v24, %v9219_v54  ;;  %v3155_v2 = vld [vmem:[#allocation2 + $0xcc] sm:$0x1]  ;;  %433 = vst [vmem:[#allocation2 + $0x40] sm:$0xf] %v432_v33  ;;  %v183_v23 = vadd.f32 %v8960_v12, %v164_v59  ;;  %v574_v42 = vmul.f32 %v9232_v52, %v558_v13  ;;  %v9266_v26 = vmul.f32 %v9232_v52, %v559_v15 }
 0x136   :  { %v3157_v57 = vld [vmem:[#allocation2 + $0xd4] sm:$0x1]  ;;  %v3268_v10 = vshll.u32 %v3155_v2, 16  ;;  %436 = vst [vmem:[#allocation2 + $0x44] sm:$0x1] %v435_v50  ;;  %v620_v14 = vpack.c.bf16 %v604_v5, %v604_v5  ;;  %v9250_v20 = vpack.c.bf16 %v605_v11, %v605_v11  ;;  %v198_v16 = vmax.f32 %v182_v39, 0.0 }
 0x137   :  { %v1632_v46 = vsel %vm8425_vm6, %v1490_v62, %v1631_v32  ;;  %v3282_v44 = vshll.u32 %v3157_v57, 16  ;;  %v199_v48 = vmax.f32 %v183_v23, 0.0  ;;  %v9269_v33 = vmul.f32 %v9232_v52, %v146_v53  ;;  %v2098_v62 = vpop.f32.mrf.mxu0  ;;  %v9292_v53 = vpop.f32.mrf.mxu2 }
 0x138   :  { %1633 = vst [vmem:[#allocation2 + $0x1f0] sm:$0xf] %v1632_v46  ;;  %v515_v49 = vld [vmem:[#allocation2 + $0x38] sm:$0x1]  ;;  %v9252_v28 = vrot.slane %v3268_v10, 5  ;;  %v693_v55 = vshrl.u32 %v620_v14, 16  ;;  %v214_v60 = vpack.c.bf16 %v198_v16, %v198_v16  ;;  %v9272_v50 = vadd.f32 %v8960_v12, %v574_v42 }
 0x139   :  { %v9254_v25 = vrot.slane %v3282_v44, 5  ;;  %v516_v31 = vsel %vm8361_vm3, 0, %v515_v49  ;;  %v2781_v58 = vld [vmem:[#allocation2 + $0x3c] sm:$0x1]  ;;  %v696_v22 = vshll.u32 %v620_v14, 16  ;;  %v701_v18 = vshrl.u32 %v9250_v20, 16 }
 0x13a   :  { %v704_v7 = vshll.u32 %v9250_v20, 16  ;;  %v7614_v36 = vld [vmem:[#allocation2 + $0xc8] sm:$0xf]  ;;  %517 = vst [vmem:[#allocation2 + $0x38] sm:$0x1] %v516_v31  ;;  %v2894_v56 = vshll.u32 %v2781_v58, 16  ;;  %v9263_v47 = vpack.c.bf16 %v199_v48, %v199_v48  ;;  %v2214_v2 = vpop.f32.mrf.mxu1  ;;  %v9279_v5 = vmul.f32 %v9232_v52, %v147_v21 }
 0x13b   :  { %v9261_v34 = vrot.slane %v693_v55, 7  ;;  %v7983_v40 = vld [vmem:[#allocation2 + $0xcc] sm:$0xf0]  ;;  %v3154_v63 = vld [vmem:[#allocation2 + $0xc8] sm:$0xf]  ;;  %v9284_v11 = vadd.f32 %v2214_v2, %v2098_v62  ;;  %v9295_v55 = vrot.slane %v701_v18, 7 }
 0x13c   :  { %v3156_v24 = vld [vmem:[#allocation2 + $0xd0] sm:$0xf]  ;;  %v7615_v38 = vor.u32 %v7983_v40, %v7614_v36  ;;  %v518_v45 = vld [vmem:[#allocation2 + $0x40] sm:$0x1]  ;;  %v3259_v30 = vshrl.u32 %v3154_v63, 16  ;;  %v3262_v37 = vshll.u32 %v3154_v63, 16  ;;  %v9290_v48 = vpop.f32.mrf.mxu3 }
 0x13d   :  { %v519_v35 = vsel %vm8361_vm3, 0, %v518_v45  ;;  %v9276_v32 = vld [vmem:[#allocation2 + $0x44] sm:$0x1]  ;;  %v3273_v59 = vshrl.u32 %v3156_v24, 16  ;;  %v3276_v39 = vshll.u32 %v3156_v24, 16  ;;  %v9282_v57 = vrot.slane %v2894_v56, 5 }
 0x13e   :  { %7635 = vmatmul.msk.bf16.gmra.mxu3 %vm2050_vm10, %v7615_v38  ;;  %520 = vst [vmem:[#allocation2 + $0x40] sm:$0x1] %v519_v35  ;;  %v3261_v12 = vrot.slane %v3259_v30, 4  ;;  %v698_v23 = vor.u32 %v696_v22, %v9261_v34  ;;  %v3264_v44 = vrot.slane %v3262_v37, 5  ;;  %v843_v20 = vld [vmem:[#allocation2 + $0xe8] sm:$0xf]  ;;  %v706_v40 = vor.u32 %v704_v7, %v9295_v55 }
 0x13f   :  { %v1718_v10 = vld [vmem:[#allocation2 + $0x1f0] sm:$0x1]  ;;  %v3275_v14 = vrot.slane %v3273_v59, 4  ;;  %v3278_v13 = vrot.slane %v3276_v39, 5  ;;  %v2908_v16 = vshll.u32 %v9276_v32, 16  ;;  %10845 = vst [vmem:[#allocation22_spill] sm:$0xff] %v9290_v48 }
 0x140   :  { %v1719_v46 = vsel %vm8361_vm3, 0, %v1718_v10  ;;  %v699_v49 = vrot.slane %v9261_v34, 4  ;;  %v838_v15 = vsel %vm8425_vm6, %v698_v23, %v837_v43  ;;  %v3265_v21 = vor.u32 %v3264_v44, %v3261_v12  ;;  %v437_v24 = vld [vmem:[#allocation2 + $0x50] sm:$0xf]  ;;  %v7670_v38 = vld [vmem:[#allocation2 + $0x1e8] sm:$0xf] }
 0x141   :  { %1720 = vst [vmem:[#allocation2 + $0x1f0] sm:$0x1] %v1719_v46  ;;  %v2780_v42 = vld [vmem:[#allocation2 + $0x38] sm:$0xf]  ;;  %v3279_v31 = vor.u32 %v3278_v13, %v3275_v14  ;;  %v287_v58 = vshrl.u32 %v214_v60, 16  ;;  %v290_v22 = vshll.u32 %v214_v60, 16  ;;  %v844_v32 = vsel %vm8425_vm6, %v706_v40, %v843_v20 }
 0x142   :  { %839 = vst [vmem:[#allocation2 + $0xe0] sm:$0xf] %v838_v15  ;;  %v2885_v36 = vshrl.u32 %v2780_v42, 16  ;;  %v2888_v56 = vshll.u32 %v2780_v42, 16  ;;  %v707_v63 = vrot.slane %v9295_v55, 4  ;;  %v3266_v45 = vrot.slane %v3265_v21, 4 }
 0x143   :  { %v3280_v18 = vrot.slane %v3279_v31, 4  ;;  %v289_v30 = vrot.slane %v287_v58, 7  ;;  %v295_v37 = vshrl.u32 %v9263_v47, 16  ;;  %v298_v60 = vshll.u32 %v9263_v47, 16  ;;  %v440_v59 = vld [vmem:[#allocation2 + $0x54] sm:$0x1] }
 0x144   :  { %v2887_v43 = vrot.slane %v2885_v36, 4  ;;  %v2890_v35 = vrot.slane %v2888_v56, 5  ;;  %v3271_v7 = vsel %vm8456_vm9, %v3266_v45, %v9252_v28  ;;  %845 = vst [vmem:[#allocation2 + $0xe8] sm:$0xf] %v844_v32  ;;  %v443_v14 = vld [vmem:[#allocation2 + $0x58] sm:$0xf] }
 0x145   :  { %v2782_v39 = vld [vmem:[#allocation2 + $0x40] sm:$0xf]  ;;  %v3285_v62 = vsel %vm8456_vm9, %v3280_v18, %v9254_v25  ;;  %v292_v2 = vor.u32 %v290_v22, %v289_v30  ;;  %v293_v10 = vrot.slane %v289_v30, 4  ;;  %v3406_v44 = vunpack.c.l.b16 %v3271_v7  ;;  %v446_v42 = vld [vmem:[#allocation2 + $0x5c] sm:$0x1]  ;;  %v9338_v7 = vpop.f32.mrf.mxu1 }
 0x146   :  { %v2891_v12 = vor.u32 %v2890_v35, %v2887_v43  ;;  %v2899_v23 = vshrl.u32 %v2782_v39, 16  ;;  %v2902_v46 = vshll.u32 %v2782_v39, 16  ;;  %v3407_v47 = vunpack.c.l.b16 %v3285_v62  ;;  %v840_v18 = vld [vmem:[#allocation2 + $0xe4] sm:$0x1]  ;;  %v2234_v43 = vpop.f32.mrf.mxu3  ;;  %v846_v35 = vld [vmem:[#allocation2 + $0xec] sm:$0x1]  ;;  %v9336_v39 = vpop.f32.mrf.mxu0 }
 0x147   :  { %v297_v20 = vrot.slane %v295_v37, 7  ;;  %v438_v15 = vsel %vm8425_vm6, %v292_v2, %v437_v24  ;;  %v441_v28 = vsel %vm8361_vm3, %v293_v10, %v440_v59  ;;  %v2910_v37 = vrot.slane %v2908_v16, 5  ;;  %v9324_v32 = vld [vmem:[%s10832_s8] ss:$0 sm:$0xff] }
 0x148   :  { %v7991_v13 = vld [vmem:[#allocation2 + $0x1ec] sm:$0xf0]  ;;  %v2892_v21 = vrot.slane %v2891_v12, 4  ;;  %v2901_v25 = vrot.slane %v2899_v23, 4  ;;  %v2904_v31 = vrot.slane %v2902_v46, 5  ;;  %v3419_v36 = vpack.c.b16 %v3407_v47, %v3406_v44 }
 0x149   :  { %v7671_v58 = vor.u32 %v7991_v13, %v7670_v38  ;;  %v924_v22 = vld [vmem:[#allocation2 + $0xe0] sm:$0x1]  ;;  %v300_v40 = vor.u32 %v298_v60, %v297_v20  ;;  %v301_v45 = vrot.slane %v297_v20, 4  ;;  %439 = vst [vmem:[#allocation2 + $0x50] sm:$0xf] %v438_v15  ;;  %v2572_v38 = vpop.f32.mrf.mxu2  ;;  %v184_v60 = vadd.f32 %v9324_v32, %v9269_v33  ;;  %v149_v20 = vld [vmem:[#allocation4 + $0x68] sm:$0xff] }
 0x14a   :  { %v925_v56 = vsel %vm8361_vm3, 0, %v924_v22  ;;  %v2897_v24 = vsel %vm8456_vm9, %v2892_v21, %v9282_v57  ;;  %v2905_v30 = vor.u32 %v2904_v31, %v2901_v25  ;;  %7651 = vmatmul.msk.bf16.gmra.mxu1 %vm2050_vm10, %v3419_v36  ;;  %442 = vst [vmem:[#allocation2 + $0x54] sm:$0x1] %v441_v28  ;;  %v9334_v59 = vadd.f32 %v2234_v43, %v9172_v27  ;;  %v9340_v62 = vld [vmem:[#allocation2 + $0x200] sm:$0xf] }
 0x14b   :  { %7691 = vmatmul.msk.bf16.gmra.mxu2 %vm2050_vm10, %v7671_v58  ;;  %926 = vst [vmem:[#allocation2 + $0xe0] sm:$0x1] %v925_v56  ;;  %v444_v57 = vsel %vm8425_vm6, %v300_v40, %v443_v14  ;;  %v447_v16 = vsel %vm8361_vm3, %v301_v45, %v446_v42  ;;  %v3032_v33 = vunpack.c.l.b16 %v2897_v24  ;;  %v927_v10 = vld [vmem:[#allocation2 + $0xe8] sm:$0x1]  ;;  %v9343_v12 = vadd.f32 %v2572_v38, %v9284_v11  ;;  %v148_v27 = vld [vmem:[#allocation4 + $0x60] sm:$0xff] }
 0x14c   :  { %v2906_v2 = vrot.slane %v2905_v30, 4  ;;  %445 = vst [vmem:[#allocation2 + $0x58] sm:$0xf] %v444_v57  ;;  %v841_v23 = vsel %vm8361_vm3, %v699_v49, %v840_v18  ;;  %v928_v46 = vsel %vm8361_vm3, 0, %v927_v10  ;;  %v9351_v44 = vld [vmem:[#allocation2 + $0x204] sm:$0xf0]  ;;  %v847_v14 = vsel %vm8361_vm3, %v707_v63, %v846_v35 }
 0x14d   :  { %448 = vst [vmem:[#allocation2 + $0x5c] sm:$0x1] %v447_v16  ;;  %v591_v11 = vadd.f32 %v9324_v32, %v9266_v26  ;;  %v606_v34 = vmax.f32 %v9272_v50, 0.0  ;;  %v185_v13 = vadd.f32 %v9324_v32, %v9279_v5  ;;  %v200_v47 = vmax.f32 %v184_v60, 0.0  ;;  %v560_v50 = vld [vmem:[#allocation7 + $0x60] sm:$0xff]  ;;  %v2219_v38 = vpop.f32.mrf.mxu1 }
 0x14e   :  { %v2911_v49 = vsel %vm8456_vm9, %v2906_v2, %v2910_v37  ;;  %929 = vst [vmem:[#allocation2 + $0xe8] sm:$0x1] %v928_v46  ;;  %v7675_v63 = vor.u32 %v9351_v44, %v9340_v62  ;;  %v9367_v21 = vmul.f32 %v9232_v52, %v148_v27  ;;  %v9372_v22 = vmul.f32 %v9232_v52, %v149_v20  ;;  %v2103_v43 = vpop.f32.mrf.mxu0 }
 0x14f   :  { %v3033_v15 = vunpack.c.l.b16 %v2911_v49  ;;  %842 = vst [vmem:[#allocation2 + $0xe4] sm:$0x1] %v841_v23  ;;  %v607_v55 = vmax.f32 %v591_v11, 0.0  ;;  %v622_v28 = vpack.c.bf16 %v606_v34, %v606_v34  ;;  %v201_v26 = vmax.f32 %v185_v13, 0.0  ;;  %v561_v23 = vld [vmem:[#allocation7 + $0x68] sm:$0xff] }
 0x150   :  { %v524_v42 = vld [vmem:[#allocation2 + $0x50] sm:$0x1]  ;;  %848 = vst [vmem:[#allocation2 + $0xec] sm:$0x1] %v847_v14  ;;  %v9374_v45 = vpack.c.bf16 %v200_v47, %v200_v47  ;;  %v576_v18 = vmul.f32 %v9232_v52, %v560_v50  ;;  %v9384_v10 = vadd.f32 %v2219_v38, %v2103_v43  ;;  %v9389_v14 = vmul.f32 %v9232_v52, %v561_v23 }
 0x151   :  { %v3045_v25 = vpack.c.b16 %v3033_v15, %v3032_v33  ;;  %v525_v5 = vsel %vm8361_vm3, 0, %v524_v42  ;;  %v709_v58 = vshrl.u32 %v622_v28, 16  ;;  %v2785_v36 = vld [vmem:[#allocation2 + $0x54] sm:$0x1]  ;;  %v623_v35 = vpack.c.bf16 %v607_v55, %v607_v55 }
 0x152   :  { %v3158_v31 = vld [vmem:[#allocation2 + $0xe0] sm:$0xf]  ;;  %526 = vst [vmem:[#allocation2 + $0x50] sm:$0x1] %v525_v5  ;;  %v2922_v37 = vshll.u32 %v2785_v36, 16  ;;  %v9380_v57 = vpack.c.bf16 %v201_v26, %v201_v26  ;;  %v9392_v11 = vadd.f32 %v9324_v32, %v576_v18  ;;  %v712_v20 = vshll.u32 %v622_v28, 16 }
 0x153   :  { %v3287_v56 = vshrl.u32 %v3158_v31, 16  ;;  %v3290_v40 = vshll.u32 %v3158_v31, 16  ;;  %7643 = vmatmul.msk.bf16.gmra.mxu0 %vm2050_vm10, %v3045_v25  ;;  %v7618_v24 = vld [vmem:[#allocation2 + $0xe0] sm:$0xf]  ;;  %v527_v30 = vld [vmem:[#allocation2 + $0x58] sm:$0x1] }
 0x154   :  { %v9378_v60 = vrot.slane %v709_v58, 7  ;;  %v528_v16 = vsel %vm8361_vm3, 0, %v527_v30  ;;  %v2787_v62 = vld [vmem:[#allocation2 + $0x5c] sm:$0x1]  ;;  %v9386_v46 = vrot.slane %v2922_v37, 5  ;;  %v717_v36 = vshrl.u32 %v623_v35, 16 }
 0x155   :  { %v3289_v2 = vrot.slane %v3287_v56, 4  ;;  %v3292_v33 = vrot.slane %v3290_v40, 5  ;;  %v7984_v27 = vld [vmem:[#allocation2 + $0xe4] sm:$0xf0]  ;;  %529 = vst [vmem:[#allocation2 + $0x58] sm:$0x1] %v528_v16  ;;  %v9400_v16 = vpop.f32.mrf.mxu3 }
 0x156   :  { %v2936_v44 = vshll.u32 %v2787_v62, 16  ;;  %v7619_v34 = vor.u32 %v7984_v27, %v7618_v24  ;;  %v3159_v49 = vld [vmem:[#allocation2 + $0xe4] sm:$0x1]  ;;  %v3160_v13 = vld [vmem:[#allocation2 + $0xe8] sm:$0xf]  ;;  %v715_v15 = vrot.slane %v9378_v60, 4  ;;  %v714_v58 = vor.u32 %v712_v20, %v9378_v60  ;;  %v9402_v62 = vpop.f32.mrf.mxu2 }
 0x157   :  { %v3293_v47 = vor.u32 %v3292_v33, %v3289_v2  ;;  %v3161_v42 = vld [vmem:[#allocation2 + $0xec] sm:$0x1]  ;;  %v3296_v26 = vshll.u32 %v3159_v49, 16  ;;  %v3301_v50 = vshrl.u32 %v3160_v13, 16  ;;  %v3304_v25 = vshll.u32 %v3160_v13, 16  ;;  %10846 = vst [vmem:[#allocation23_spill] sm:$0xff] %v9400_v16 }
 0x158   :  { %v9395_v55 = vrot.slane %v2936_v44, 5  ;;  %7636 = vmatmul.msk.bf16.gmra.mxu3 %vm2050_vm10, %v7619_v34  ;;  %v3310_v31 = vshll.u32 %v3161_v42, 16  ;;  %v849_v56 = vld [vmem:[#allocation2 + $0xf0] sm:$0xf]  ;;  %v720_v30 = vshll.u32 %v623_v35, 16  ;;  %v9404_v2 = vrot.slane %v717_v36, 7 }
 0x159   :  { %v3294_v5 = vrot.slane %v3293_v47, 4  ;;  %v2784_v40 = vld [vmem:[#allocation2 + $0x50] sm:$0xf]  ;;  %v3298_v18 = vrot.slane %v3296_v26, 5  ;;  %v3303_v24 = vrot.slane %v3301_v50, 4  ;;  %v3306_v28 = vrot.slane %v3304_v25, 5 }
 0x15a   :  { %v2913_v37 = vshrl.u32 %v2784_v40, 16  ;;  %v2916_v43 = vshll.u32 %v2784_v40, 16  ;;  %v3312_v38 = vrot.slane %v3310_v31, 5  ;;  %v850_v23 = vsel %vm8425_vm6, %v714_v58, %v849_v56  ;;  %v855_v27 = vld [vmem:[#allocation2 + $0xf8] sm:$0xf] }
 0x15b   :  { %7692 = vmatmul.msk.bf16.gmra.mxu2 %vm2050_vm10, %v7675_v63  ;;  %v3299_v60 = vsel %vm8456_vm9, %v3294_v5, %v3298_v18  ;;  %v3307_v33 = vor.u32 %v3306_v28, %v3303_v24  ;;  %v303_v35 = vshrl.u32 %v9374_v45, 16  ;;  %v722_v13 = vor.u32 %v720_v30, %v9404_v2  ;;  %851 = vst [vmem:[#allocation2 + $0xf0] sm:$0xf] %v850_v23  ;;  %v449_v50 = vld [vmem:[#allocation2 + $0x60] sm:$0xf] }
 0x15c   :  { %v2786_v44 = vld [vmem:[#allocation2 + $0x58] sm:$0xf]  ;;  %v2915_v34 = vrot.slane %v2913_v37, 4  ;;  %v2918_v63 = vrot.slane %v2916_v43, 5  ;;  %v3408_v49 = vunpack.c.l.b16 %v3299_v60  ;;  %v723_v26 = vrot.slane %v9404_v2, 4 }
 0x15d   :  { %v2927_v47 = vshrl.u32 %v2786_v44, 16  ;;  %v2930_v20 = vshll.u32 %v2786_v44, 16  ;;  %v3308_v42 = vrot.slane %v3307_v33, 4  ;;  %v856_v5 = vsel %vm8425_vm6, %v722_v13, %v855_v27  ;;  %v452_v36 = vld [vmem:[#allocation2 + $0x64] sm:$0x1] }
 0x15e   :  { %v2919_v25 = vor.u32 %v2918_v63, %v2915_v34  ;;  %v305_v31 = vrot.slane %v303_v35, 7  ;;  %v306_v58 = vshll.u32 %v9374_v45, 16  ;;  %v852_v56 = vld [vmem:[#allocation2 + $0xf4] sm:$0x1]  ;;  %857 = vst [vmem:[#allocation2 + $0xf8] sm:$0xf] %v856_v5 }
 0x15f   :  { %v2929_v40 = vrot.slane %v2927_v47, 4  ;;  %v2932_v18 = vrot.slane %v2930_v20, 5  ;;  %v3313_v24 = vsel %vm8456_vm9, %v3308_v42, %v3312_v38  ;;  %v311_v28 = vshrl.u32 %v9380_v57, 16  ;;  %v455_v27 = vld [vmem:[#allocation2 + $0x68] sm:$0xf] }
 0x160   :  { %v2920_v30 = vrot.slane %v2919_v25, 4  ;;  %v3409_v37 = vunpack.c.l.b16 %v3313_v24  ;;  %v308_v43 = vor.u32 %v306_v58, %v305_v31  ;;  %v309_v2 = vrot.slane %v305_v31, 4  ;;  %v458_v63 = vld [vmem:[#allocation2 + $0x6c] sm:$0x1]  ;;  %v858_v13 = vld [vmem:[#allocation2 + $0xfc] sm:$0x1]  ;;  %v9449_v24 = vpop.f32.mrf.mxu1 }
 0x161   :  { %v2933_v60 = vor.u32 %v2932_v18, %v2929_v40  ;;  %v313_v33 = vrot.slane %v311_v28, 7  ;;  %v314_v23 = vshll.u32 %v9380_v57, 16  ;;  %v853_v45 = vsel %vm8361_vm3, %v715_v15, %v852_v56  ;;  %v7678_v5 = vld [vmem:[#allocation2 + $0x210] sm:$0xf]  ;;  %v9447_v18 = vpop.f32.mrf.mxu0  ;;  %10847 = vst [vmem:[#allocation24_spill] sm:$0xff] %v9449_v24 }
 0x162   :  { %v2925_v35 = vsel %vm8456_vm9, %v2920_v30, %v9386_v46  ;;  %v3420_v38 = vpack.c.b16 %v3409_v37, %v3408_v49  ;;  %v450_v44 = vsel %vm8425_vm6, %v308_v43, %v449_v50  ;;  %v453_v34 = vsel %vm8361_vm3, %v309_v2, %v452_v36  ;;  %854 = vst [vmem:[#allocation2 + $0xf4] sm:$0x1] %v853_v45  ;;  %v930_v57 = vld [vmem:[#allocation2 + $0xf0] sm:$0x1]  ;;  %v2239_v49 = vpop.f32.mrf.mxu3  ;;  %v2577_v50 = vpop.f32.mrf.mxu2  ;;  %v151_v45 = vld [vmem:[#allocation4 + $0x78] sm:$0xff] }
 0x163   :  { %v2934_v47 = vrot.slane %v2933_v60, 4  ;;  %v316_v20 = vor.u32 %v314_v23, %v313_v33  ;;  %v317_v42 = vrot.slane %v313_v33, 4  ;;  %451 = vst [vmem:[#allocation2 + $0x60] sm:$0xf] %v450_v44  ;;  %v186_v15 = vadd.f32 %v9324_v32, %v9367_v21  ;;  %v150_v43 = vld [vmem:[#allocation4 + $0x70] sm:$0xff] }
 0x164   :  { %v3034_v25 = vunpack.c.l.b16 %v2925_v35  ;;  %7652 = vmatmul.msk.bf16.gmra.mxu1 %vm2050_vm10, %v3420_v38  ;;  %v931_v46 = vsel %vm8361_vm3, 0, %v930_v57  ;;  %454 = vst [vmem:[#allocation2 + $0x64] sm:$0x1] %v453_v34  ;;  %v593_v31 = vadd.f32 %v9324_v32, %v9389_v14  ;;  %v608_v58 = vmax.f32 %v9392_v11, 0.0  ;;  %v7993_v14 = vld [vmem:[#allocation2 + $0x214] sm:$0xf0] }
 0x165   :  { %v2939_v36 = vsel %vm8456_vm9, %v2934_v47, %v9395_v55  ;;  %932 = vst [vmem:[#allocation2 + $0xf0] sm:$0x1] %v931_v46  ;;  %v456_v21 = vsel %vm8425_vm6, %v316_v20, %v455_v27  ;;  %v459_v56 = vsel %vm8361_vm3, %v317_v42, %v458_v63  ;;  %v9445_v40 = vadd.f32 %v2239_v49, %v9246_v17  ;;  %v933_v28 = vld [vmem:[#allocation2 + $0xf8] sm:$0x1]  ;;  %v3677_v16 = vld [vmem:[#allocation2 + $0x154] sm:$0x1] }
 0x166   :  { %v3035_v11 = vunpack.c.l.b16 %v2939_v36  ;;  %457 = vst [vmem:[#allocation2 + $0x68] sm:$0xf] %v456_v21  ;;  %v9452_v55 = vadd.f32 %v2577_v50, %v9384_v10  ;;  %v7679_v30 = vor.u32 %v7993_v14, %v7678_v5  ;;  %v859_v37 = vsel %vm8361_vm3, %v723_v26, %v858_v13  ;;  %v861_v13 = vld [vmem:[#allocation2 + $0x100] sm:$0xf] }
 0x167   :  { %v934_v17 = vsel %vm8361_vm3, 0, %v933_v28  ;;  %460 = vst [vmem:[#allocation2 + $0x6c] sm:$0x1] %v459_v56  ;;  %v609_v2 = vmax.f32 %v593_v31, 0.0  ;;  %v624_v60 = vpack.c.bf16 %v608_v58, %v608_v58  ;;  %v187_v33 = vadd.f32 %v9324_v32, %v9372_v22  ;;  %v562_v56 = vld [vmem:[#allocation7 + $0x70] sm:$0xff] }
 0x168   :  { %v3046_v23 = vpack.c.b16 %v3035_v11, %v3034_v25  ;;  %935 = vst [vmem:[#allocation2 + $0xf8] sm:$0x1] %v934_v17  ;;  %v202_v27 = vmax.f32 %v186_v15, 0.0  ;;  %v169_v26 = vmul.f32 %v9232_v52, %v150_v43  ;;  %v9470_v50 = vmul.f32 %v9232_v52, %v151_v45 }
 0x169   :  { %860 = vst [vmem:[#allocation2 + $0xfc] sm:$0x1] %v859_v37  ;;  %v3163_v10 = vld [vmem:[#allocation2 + $0xf4] sm:$0x1]  ;;  %v625_v35 = vpack.c.bf16 %v609_v2, %v609_v2  ;;  %v725_v38 = vshrl.u32 %v624_v60, 16  ;;  %v728_v44 = vshll.u32 %v624_v60, 16  ;;  %v2108_v17 = vpop.f32.mrf.mxu0  ;;  %v2224_v2 = vpop.f32.mrf.mxu1 }
 0x16a   :  { %7644 = vmatmul.msk.bf16.gmra.mxu0 %vm2050_vm10, %v3046_v23  ;;  %v530_v34 = vld [vmem:[#allocation2 + $0x60] sm:$0x1]  ;;  %v3324_v63 = vshll.u32 %v3163_v10, 16  ;;  %v203_v47 = vmax.f32 %v187_v33, 0.0  ;;  %v9474_v21 = vpack.c.bf16 %v202_v27, %v202_v27  ;;  %v9477_v14 = vadd.f32 %v9324_v32, %v169_v26  ;;  %v867_v10 = vld [vmem:[#allocation2 + $0x108] sm:$0xf] }
 0x16b   :  { %7693 = vmatmul.msk.bf16.gmra.mxu2 %vm2050_vm10, %v7679_v30  ;;  %v531_v22 = vsel %vm8361_vm3, 0, %v530_v34  ;;  %v2789_v57 = vld [vmem:[#allocation2 + $0x64] sm:$0x1]  ;;  %v9465_v20 = vrot.slane %v725_v38, 7  ;;  %v733_v42 = vshrl.u32 %v625_v35, 16  ;;  %v736_v15 = vshll.u32 %v625_v35, 16 }
 0x16c   :  { %v7622_v25 = vld [vmem:[#allocation2 + $0xf0] sm:$0xf]  ;;  %532 = vst [vmem:[#allocation2 + $0x60] sm:$0x1] %v531_v22  ;;  %v2950_v46 = vshll.u32 %v2789_v57, 16  ;;  %v9467_v49 = vrot.slane %v3324_v63, 5  ;;  %v9486_v23 = vadd.f32 %v2224_v2, %v2108_v17  ;;  %v219_v63 = vpack.c.bf16 %v203_v47, %v203_v47 }
 0x16d   :  { %v533_v5 = vld [vmem:[#allocation2 + $0x68] sm:$0x1]  ;;  %v3162_v31 = vld [vmem:[#allocation2 + $0xf0] sm:$0xf]  ;;  %v730_v58 = vor.u32 %v728_v44, %v9465_v20  ;;  %v731_v36 = vrot.slane %v9465_v20, 4  ;;  %v9488_v27 = vrot.slane %v733_v42, 7 }
 0x16e   :  { %v534_v11 = vsel %vm8361_vm3, 0, %v533_v5  ;;  %v9481_v28 = vld [vmem:[#allocation2 + $0x6c] sm:$0x1]  ;;  %v9483_v30 = vrot.slane %v2950_v46, 5  ;;  %v3315_v37 = vshrl.u32 %v3162_v31, 16  ;;  %v3318_v43 = vshll.u32 %v3162_v31, 16 }
 0x16f   :  { %v7985_v60 = vld [vmem:[#allocation2 + $0xf4] sm:$0xf0]  ;;  %535 = vst [vmem:[#allocation2 + $0x68] sm:$0x1] %v534_v11  ;;  %v862_v45 = vsel %vm8425_vm6, %v730_v58, %v861_v13  ;;  %v9493_v46 = vmul.f32 %v9232_v52, %v562_v56  ;;  %v738_v5 = vor.u32 %v736_v15, %v9488_v27  ;;  %v739_v13 = vrot.slane %v9488_v27, 4 }
 0x170   :  { %v7623_v35 = vor.u32 %v7985_v60, %v7622_v25  ;;  %v3164_v38 = vld [vmem:[#allocation2 + $0xf8] sm:$0xf]  ;;  %v3165_v44 = vld [vmem:[#allocation2 + $0xfc] sm:$0x1]  ;;  %v3317_v26 = vrot.slane %v3315_v37, 4  ;;  %v3320_v34 = vrot.slane %v3318_v43, 5  ;;  %v9499_v37 = vpop.f32.mrf.mxu3  ;;  %v9501_v43 = vpop.f32.mrf.mxu2 }
 0x171   :  { %v3329_v22 = vshrl.u32 %v3164_v38, 16  ;;  %v3332_v57 = vshll.u32 %v3164_v38, 16  ;;  %v3338_v20 = vshll.u32 %v3165_v44, 16  ;;  %863 = vst [vmem:[#allocation2 + $0x100] sm:$0xf] %v862_v45  ;;  %v319_v25 = vshrl.u32 %v9474_v21, 16 }
 0x172   :  { %7637 = vmatmul.msk.bf16.gmra.mxu3 %vm2050_vm10, %v7623_v35  ;;  %v3321_v42 = vor.u32 %v3320_v34, %v3317_v26  ;;  %10848 = vst [vmem:[#allocation25_spill] sm:$0xff] %v9499_v37  ;;  %v322_v56 = vshll.u32 %v9474_v21, 16  ;;  %v868_v15 = vsel %vm8425_vm6, %v738_v5, %v867_v10  ;;  %v864_v45 = vld [vmem:[#allocation2 + $0x104] sm:$0x1]  ;;  %v327_v38 = vshrl.u32 %v219_v63, 16 }
 0x173   :  { %v2788_v31 = vld [vmem:[#allocation2 + $0x60] sm:$0xf]  ;;  %v3331_v58 = vrot.slane %v3329_v22, 4  ;;  %v3334_v11 = vrot.slane %v3332_v57, 5  ;;  %v3340_v47 = vrot.slane %v3338_v20, 5  ;;  %10849 = vst [vmem:[#allocation26_spill] sm:$0xff] %v9501_v43 }
 0x174   :  { %v2941_v17 = vshrl.u32 %v2788_v31, 16  ;;  %v2944_v2 = vshll.u32 %v2788_v31, 16  ;;  %v3322_v60 = vrot.slane %v3321_v42, 4  ;;  %869 = vst [vmem:[#allocation2 + $0x108] sm:$0xf] %v868_v15  ;;  %v321_v35 = vrot.slane %v319_v25, 7 }
 0x175   :  { %v3335_v27 = vor.u32 %v3334_v11, %v3331_v58  ;;  %v330_v44 = vshll.u32 %v219_v63, 16  ;;  %v461_v21 = vld [vmem:[#allocation2 + $0x70] sm:$0xf]  ;;  %v464_v20 = vld [vmem:[#allocation2 + $0x74] sm:$0x1]  ;;  %v865_v42 = vsel %vm8361_vm3, %v731_v36, %v864_v45  ;;  %v3778_v3 = vshll.u32 %v3677_v16, 16 }
 0x176   :  { %v2790_v26 = vld [vmem:[#allocation2 + $0x68] sm:$0xf]  ;;  %v2943_v34 = vrot.slane %v2941_v17, 4  ;;  %v2946_v22 = vrot.slane %v2944_v2, 5  ;;  %v3327_v57 = vsel %vm8456_vm9, %v3322_v60, %v9467_v49  ;;  %v467_v11 = vld [vmem:[#allocation2 + $0x78] sm:$0xf]  ;;  %v324_v15 = vor.u32 %v322_v56, %v321_v35 }
 0x177   :  { %v2955_v31 = vshrl.u32 %v2790_v26, 16  ;;  %v2958_v10 = vshll.u32 %v2790_v26, 16  ;;  %v3336_v5 = vrot.slane %v3335_v27, 4  ;;  %v3410_v58 = vunpack.c.l.b16 %v3327_v57  ;;  %866 = vst [vmem:[#allocation2 + $0x104] sm:$0x1] %v865_v42 }
 0x178   :  { %v2947_v25 = vor.u32 %v2946_v22, %v2943_v34  ;;  %v936_v63 = vld [vmem:[#allocation2 + $0x100] sm:$0x1]  ;;  %v325_v17 = vrot.slane %v321_v35, 4  ;;  %v329_v2 = vrot.slane %v327_v38, 7  ;;  %v870_v60 = vld [vmem:[#allocation2 + $0x10c] sm:$0x1]  ;;  %v462_v38 = vsel %vm8425_vm6, %v324_v15, %v461_v21  ;;  %v9542_v15 = vpop.f32.mrf.mxu1 }
 0x179   :  { %v2957_v33 = vrot.slane %v2955_v31, 4  ;;  %v2960_v37 = vrot.slane %v2958_v10, 5  ;;  %v3341_v49 = vsel %vm8456_vm9, %v3336_v5, %v3340_v47  ;;  %v937_v36 = vsel %vm8361_vm3, 0, %v936_v63  ;;  %v563_v34 = vld [vmem:[#allocation7 + $0x78] sm:$0xff]  ;;  %463 = vst [vmem:[#allocation2 + $0x70] sm:$0xf] %v462_v38  ;;  %v2592_v5 = vpop.f32.mrf.mxu3  ;;  %v9540_v63 = vpop.f32.mrf.mxu0 }
 0x17a   :  { %v2948_v45 = vrot.slane %v2947_v25, 4  ;;  %v3411_v27 = vunpack.c.l.b16 %v3341_v49  ;;  %938 = vst [vmem:[#allocation2 + $0x100] sm:$0x1] %v937_v36  ;;  %v332_v26 = vor.u32 %v330_v44, %v329_v2  ;;  %v333_v57 = vrot.slane %v329_v2, 4 }
 0x17b   :  { %v2961_v22 = vor.u32 %v2960_v37, %v2957_v33  ;;  %v10850_v56 = vshll.u32 %v9481_v28, 16  ;;  %v465_v47 = vsel %vm8361_vm3, %v325_v17, %v464_v20  ;;  %v939_v10 = vld [vmem:[#allocation2 + $0x108] sm:$0x1]  ;;  %v871_v28 = vsel %vm8361_vm3, %v739_v13, %v870_v60  ;;  %v2582_v20 = vpop.f32.mrf.mxu2  ;;  %10851 = vst [vmem:[#allocation27_spill] sm:$0xff] %v9540_v63 }
 0x17c   :  { %v2953_v42 = vsel %vm8456_vm9, %v2948_v45, %v9483_v30  ;;  %v3421_v31 = vpack.c.b16 %v3411_v27, %v3410_v58  ;;  %v468_v44 = vsel %vm8425_vm6, %v332_v26, %v467_v11  ;;  %v940_v37 = vsel %vm8361_vm3, 0, %v939_v10  ;;  %466 = vst [vmem:[#allocation2 + $0x74] sm:$0x1] %v465_v47  ;;  %v7682_v30 = vld [vmem:[#allocation2 + $0x220] sm:$0xf]  ;;  %v1363_v26 = vld [vmem:[#allocation10 + $0x78] sm:$0xff] }
 0x17d   :  { %v2966_v35 = vrot.slane %v10850_v56, 5  ;;  %v2962_v33 = vrot.slane %v2961_v22, 4  ;;  %v471_v21 = vsel %vm8361_vm3, %v333_v57, %v470_v0  ;;  %v579_v58 = vmul.f32 %v9232_v52, %v563_v34  ;;  %941 = vst [vmem:[#allocation2 + $0x108] sm:$0x1] %v940_v37  ;;  %v7994_v0 = vld [vmem:[#allocation2 + $0x224] sm:$0xf0] }
 0x17e   :  { %v3036_v25 = vunpack.c.l.b16 %v2953_v42  ;;  %7653 = vmatmul.msk.bf16.gmra.mxu1 %vm2050_vm10, %v3421_v31  ;;  %v9535_v11 = vadd.f32 %v2582_v20, %v9486_v23  ;;  %v9538_v13 = vadd.f32 %v2592_v5, %v9334_v59  ;;  %10852 = vst [vmem:[#allocation28_spill] sm:$0xff] %v9542_v15  ;;  %v3167_v17 = vld [vmem:[#allocation2 + $0x104] sm:$0x1]  ;;  %v594_v2 = vadd.f32 %v9324_v32, %v9493_v46 }
 0x17f   :  { %v2967_v49 = vsel %vm8456_vm9, %v2962_v33, %v2966_v35  ;;  %469 = vst [vmem:[#allocation2 + $0x78] sm:$0xf] %v468_v44  ;;  %v7683_v36 = vor.u32 %v7994_v0, %v7682_v30  ;;  %v3352_v60 = vshll.u32 %v3167_v17, 16  ;;  %v595_v59 = vadd.f32 %v9324_v32, %v579_v58 }
 0x180   :  { %v3037_v23 = vunpack.c.l.b16 %v2967_v49  ;;  %472 = vst [vmem:[#allocation2 + $0x7c] sm:$0x1] %v471_v21  ;;  %v610_v45 = vmax.f32 %v594_v2, 0.0  ;;  %v189_v27 = vadd.f32 %v9324_v32, %v9470_v50  ;;  %v204_v56 = vmax.f32 %v9477_v14, 0.0  ;;  %v536_v38 = vld [vmem:[#allocation2 + $0x70] sm:$0x1] }
 0x181   :  { %7694 = vmatmul.msk.bf16.gmra.mxu2 %vm2050_vm10, %v7683_v36  ;;  %872 = vst [vmem:[#allocation2 + $0x10c] sm:$0x1] %v871_v28  ;;  %v3166_v57 = vld [vmem:[#allocation2 + $0x100] sm:$0xf]  ;;  %v3354_v47 = vrot.slane %v3352_v60, 5  ;;  %v611_v42 = vmax.f32 %v595_v59, 0.0  ;;  %v1379_v10 = vmul.f32 %v9232_v52, %v1363_v26  ;;  %v2113_v60 = vpop.f32.mrf.mxu0 }
 0x182   :  { %v3047_v46 = vpack.c.b16 %v3037_v23, %v3036_v25  ;;  %v3343_v34 = vshrl.u32 %v3166_v57, 16  ;;  %v3346_v22 = vshll.u32 %v3166_v57, 16  ;;  %v7626_v35 = vld [vmem:[#allocation2 + $0x100] sm:$0xf]  ;;  %v626_v31 = vpack.c.bf16 %v610_v45, %v610_v45  ;;  %v2229_v23 = vpop.f32.mrf.mxu1 }
 0x183   :  { %v537_v50 = vsel %vm8361_vm3, 0, %v536_v38  ;;  %v2793_v44 = vld [vmem:[#allocation2 + $0x74] sm:$0x1]  ;;  %v205_v37 = vmax.f32 %v189_v27, 0.0  ;;  %v627_v0 = vpack.c.bf16 %v611_v42, %v611_v42  ;;  %v220_v17 = vpack.c.bf16 %v204_v56, %v204_v56 }
 0x184   :  { %7645 = vmatmul.msk.bf16.gmra.mxu0 %vm2050_vm10, %v3047_v46  ;;  %v3345_v28 = vrot.slane %v3343_v34, 4  ;;  %v3348_v33 = vrot.slane %v3346_v22, 5  ;;  %v7986_v21 = vld [vmem:[#allocation2 + $0x104] sm:$0xf0]  ;;  %538 = vst [vmem:[#allocation2 + $0x70] sm:$0x1] %v537_v50  ;;  %v9562_v59 = vadd.f32 %v9324_v32, %v1379_v10  ;;  %v9567_v57 = vadd.f32 %v2229_v23, %v2113_v60 }
 0x185   :  { %v2978_v20 = vshll.u32 %v2793_v44, 16  ;;  %v741_v14 = vshrl.u32 %v626_v31, 16  ;;  %v7627_v5 = vor.u32 %v7986_v21, %v7626_v35  ;;  %v3168_v58 = vld [vmem:[#allocation2 + $0x108] sm:$0xf]  ;;  %v9569_v46 = vpack.c.bf16 %v205_v37, %v205_v37  ;;  %v873_v21 = vld [vmem:[#allocation2 + $0x110] sm:$0xf] }
 0x186   :  { %v539_v30 = vld [vmem:[#allocation2 + $0x78] sm:$0x1]  ;;  %v3349_v25 = vor.u32 %v3348_v33, %v3345_v28  ;;  %v3357_v49 = vshrl.u32 %v3168_v58, 16  ;;  %v3360_v36 = vshll.u32 %v3168_v58, 16  ;;  %v744_v42 = vshll.u32 %v626_v31, 16 }
 0x187   :  { %v540_v52 = vsel %vm8361_vm3, 0, %v539_v30  ;;  %v9559_v2 = vld [vmem:[#allocation2 + $0x7c] sm:$0x1]  ;;  %7638 = vmatmul.msk.bf16.gmra.mxu3 %vm2050_vm10, %v7627_v5  ;;  %v9565_v45 = vrot.slane %v2978_v20, 5  ;;  %v743_v35 = vrot.slane %v741_v14, 7  ;;  %v749_v10 = vshrl.u32 %v627_v0, 16 }
 0x188   :  { %541 = vst [vmem:[#allocation2 + $0x78] sm:$0x1] %v540_v52  ;;  %v3169_v27 = vld [vmem:[#allocation2 + $0x10c] sm:$0x1]  ;;  %v3350_v26 = vrot.slane %v3349_v25, 4  ;;  %v3359_v34 = vrot.slane %v3357_v49, 4  ;;  %v9574_v49 = vpop.f32.mrf.mxu2 }
 0x189   :  { %v3362_v22 = vrot.slane %v3360_v36, 5  ;;  %v3366_v56 = vshll.u32 %v3169_v27, 16  ;;  %v2992_v38 = vshll.u32 %v9559_v2, 16  ;;  %v747_v33 = vrot.slane %v743_v35, 4  ;;  %10853 = vst [vmem:[#allocation29_spill] sm:$0xff] %v9574_v49  ;;  %v9576_v2 = vpop.f32.mrf.mxu3 }
 0x18a   :  { %v3355_v32 = vsel %vm8456_vm9, %v3350_v26, %v3354_v47  ;;  %v746_v5 = vor.u32 %v744_v42, %v743_v35  ;;  %v751_v37 = vrot.slane %v749_v10, 7  ;;  %v752_v30 = vshll.u32 %v627_v0, 16  ;;  %10854 = vst [vmem:[#allocation30_spill] sm:$0xff] %v9576_v2  ;;  %v879_v47 = vld [vmem:[#allocation2 + $0x118] sm:$0xf] }
 0x18b   :  { %v3363_v50 = vor.u32 %v3362_v22, %v3359_v34  ;;  %v3368_v44 = vrot.slane %v3366_v56, 5  ;;  %v3412_v28 = vunpack.c.l.b16 %v3355_v32  ;;  %v2792_v20 = vld [vmem:[#allocation2 + $0x70] sm:$0xf]  ;;  %v335_v58 = vshrl.u32 %v220_v17, 16  ;;  %v473_v26 = vld [vmem:[#allocation2 + $0x80] sm:$0xf] }
 0x18c   :  { %v2969_v25 = vshrl.u32 %v2792_v20, 16  ;;  %v2972_v52 = vshll.u32 %v2792_v20, 16  ;;  %v338_v31 = vshll.u32 %v220_v17, 16  ;;  %v754_v36 = vor.u32 %v752_v30, %v751_v37  ;;  %v876_v34 = vld [vmem:[#allocation2 + $0x114] sm:$0x1] }
 0x18d   :  { %v3364_v14 = vrot.slane %v3363_v50, 4  ;;  %v755_v60 = vrot.slane %v751_v37, 4  ;;  %v874_v23 = vsel %vm8425_vm6, %v746_v5, %v873_v21  ;;  %v337_v27 = vrot.slane %v335_v58, 7  ;;  %v476_v21 = vld [vmem:[#allocation2 + $0x84] sm:$0x1] }
 0x18e   :  { %v2971_v0 = vrot.slane %v2969_v25, 4  ;;  %v2974_v56 = vrot.slane %v2972_v52, 5  ;;  %875 = vst [vmem:[#allocation2 + $0x110] sm:$0xf] %v874_v23  ;;  %v877_v32 = vsel %vm8361_vm3, %v747_v33, %v876_v34  ;;  %v880_v50 = vsel %vm8425_vm6, %v754_v36, %v879_v47  ;;  %v882_v58 = vld [vmem:[#allocation2 + $0x11c] sm:$0x1] }
 0x18f   :  { %v2794_v22 = vld [vmem:[#allocation2 + $0x78] sm:$0xf]  ;;  %v3369_v35 = vsel %vm8456_vm9, %v3364_v14, %v3368_v44  ;;  %878 = vst [vmem:[#allocation2 + $0x114] sm:$0x1] %v877_v32  ;;  %v340_v5 = vor.u32 %v338_v31, %v337_v27  ;;  %v341_v37 = vrot.slane %v337_v27, 4  ;;  %v343_v30 = vshrl.u32 %v9569_v46, 16 }
 0x190   :  { %v2983_v42 = vshrl.u32 %v2794_v22, 16  ;;  %v2986_v17 = vshll.u32 %v2794_v22, 16  ;;  %v3413_v10 = vunpack.c.l.b16 %v3369_v35  ;;  %v2975_v20 = vor.u32 %v2974_v56, %v2971_v0  ;;  %881 = vst [vmem:[#allocation2 + $0x118] sm:$0xf] %v880_v50  ;;  %v479_v36 = vld [vmem:[#allocation2 + $0x88] sm:$0xf] }
 0x191   :  { %v346_v33 = vshll.u32 %v9569_v46, 16  ;;  %v345_v23 = vrot.slane %v343_v30, 7  ;;  %v474_v34 = vsel %vm8425_vm6, %v340_v5, %v473_v26  ;;  %v477_v47 = vsel %vm8361_vm3, %v341_v37, %v476_v21  ;;  %v482_v27 = vld [vmem:[#allocation2 + $0x8c] sm:$0x1]  ;;  %v2597_v50 = vpop.f32.mrf.mxu3  ;;  %v9613_v30 = vpop.f32.mrf.mxu0 }
 0x192   :  { %v2985_v44 = vrot.slane %v2983_v42, 4  ;;  %v2988_v25 = vrot.slane %v2986_v17, 5  ;;  %v3422_v52 = vpack.c.b16 %v3413_v10, %v3412_v28  ;;  %v2976_v14 = vrot.slane %v2975_v20, 4  ;;  %475 = vst [vmem:[#allocation2 + $0x80] sm:$0xf] %v474_v34  ;;  %v2587_v10 = vpop.f32.mrf.mxu2 }
 0x193   :  { %v2994_v31 = vrot.slane %v2992_v38, 5  ;;  %v1411_v0 = vmax.f32 %v9562_v59, 0.0  ;;  %v883_v46 = vsel %vm8361_vm3, %v755_v60, %v882_v58  ;;  %v348_v26 = vor.u32 %v346_v33, %v345_v23  ;;  %478 = vst [vmem:[#allocation2 + $0x84] sm:$0x1] %v477_v47  ;;  %v1679_v47 = vld [vmem:[#allocation2 + $0x238] sm:$0xf] }
 0x194   :  { %v2989_v22 = vor.u32 %v2988_v25, %v2985_v44  ;;  %7654 = vmatmul.msk.bf16.gmra.mxu1 %vm2050_vm10, %v3422_v52  ;;  %v2981_v28 = vsel %vm8456_vm9, %v2976_v14, %v9565_v45  ;;  %v349_v56 = vrot.slane %v345_v23, 4  ;;  %884 = vst [vmem:[#allocation2 + $0x11c] sm:$0x1] %v883_v46  ;;  %v9608_v5 = vadd.f32 %v2587_v10, %v9567_v57  ;;  %v3666_v23 = vld [vmem:[#allocation2 + $0x128] sm:$0xf] }
 0x195   :  { %v942_v32 = vld [vmem:[#allocation2 + $0x110] sm:$0x1]  ;;  %v1427_v42 = vpack.c.bf16 %v1411_v0, %v1411_v0  ;;  %v3038_v38 = vunpack.c.l.b16 %v2981_v28  ;;  %v480_v59 = vsel %vm8425_vm6, %v348_v26, %v479_v36  ;;  %v9611_v37 = vadd.f32 %v2597_v50, %v9445_v40  ;;  %10855 = vst [vmem:[#allocation31_spill] sm:$0xff] %v9613_v30 }
 0x196   :  { %v2990_v35 = vrot.slane %v2989_v22, 4  ;;  %v943_v17 = vsel %vm8361_vm3, 0, %v942_v32  ;;  %v483_v60 = vsel %vm8361_vm3, %v349_v56, %v482_v27  ;;  %v3171_v45 = vld [vmem:[#allocation2 + $0x114] sm:$0x1]  ;;  %481 = vst [vmem:[#allocation2 + $0x88] sm:$0xf] %v480_v59 }
 0x197   :  { %944 = vst [vmem:[#allocation2 + $0x110] sm:$0x1] %v943_v17  ;;  %v945_v20 = vld [vmem:[#allocation2 + $0x118] sm:$0x1]  ;;  %v1549_v58 = vshrl.u32 %v1427_v42, 16  ;;  %v1552_v52 = vshll.u32 %v1427_v42, 16 }
 0x198   :  { %v2995_v21 = vsel %vm8456_vm9, %v2990_v35, %v2994_v31  ;;  %v946_v25 = vsel %vm8361_vm3, 0, %v945_v20  ;;  %v3380_v14 = vshll.u32 %v3171_v45, 16  ;;  %484 = vst [vmem:[#allocation2 + $0x8c] sm:$0x1] %v483_v60  ;;  %v3667_v31 = vld [vmem:[#allocation2 + $0x12c] sm:$0x1] }
 0x199   :  { %v3039_v44 = vunpack.c.l.b16 %v2995_v21  ;;  %947 = vst [vmem:[#allocation2 + $0x118] sm:$0x1] %v946_v25  ;;  %v9617_v33 = vrot.slane %v1549_v58, 7  ;;  %v542_v57 = vld [vmem:[#allocation2 + $0x80] sm:$0x1]  ;;  %v3699_v46 = vshrl.u32 %v3666_v23, 16  ;;  %v9627_v42 = vpop.f32.mrf.mxu3  ;;  %v9631_v45 = vpop.f32.mrf.mxu0 }
 0x19a   :  { %v543_v40 = vsel %vm8361_vm3, 0, %v542_v57  ;;  %v2797_v36 = vld [vmem:[#allocation2 + $0x84] sm:$0x1]  ;;  %v9625_v26 = vrot.slane %v3380_v14, 5  ;;  %v3702_v35 = vshll.u32 %v3666_v23, 16  ;;  %10856 = vst [vmem:[#allocation32_spill] sm:$0xff] %v9627_v42 }
 0x19b   :  { %v3048_v34 = vpack.c.b16 %v3039_v44, %v3038_v38  ;;  %v1554_v22 = vor.u32 %v1552_v52, %v9617_v33  ;;  %544 = vst [vmem:[#allocation2 + $0x80] sm:$0x1] %v543_v40  ;;  %v3006_v27 = vshll.u32 %v2797_v36, 16  ;;  %v3173_v0 = vld [vmem:[#allocation2 + $0x11c] sm:$0x1]  ;;  %v3701_v17 = vrot.slane %v3699_v46, 4 }
 0x19c   :  { %v3394_v56 = vshll.u32 %v3173_v0, 16  ;;  %v3668_v38 = vld [vmem:[#allocation2 + $0x130] sm:$0xf]  ;;  %v3708_v59 = vshll.u32 %v3667_v31, 16  ;;  %v3704_v21 = vrot.slane %v3702_v35, 5  ;;  %vm5412_vm1 = vcmask 1046532  }
 0x19d   :  { %7646 = vmatmul.msk.bf16.gmra.mxu0 %vm2050_vm10, %v3048_v34  ;;  %v1680_v28 = vsel %vm8425_vm6, %v1554_v22, %v1679_v47  ;;  %v545_v60 = vld [vmem:[#allocation2 + $0x88] sm:$0x1]  ;;  %v9629_v10 = vrot.slane %v3006_v27, 5  ;;  %v4054_v30 = vld [vmem:[#allocation2 + $0x1f0] sm:$0xf]  ;;  %vm5170_vm2 = vcmask 130048  }
 0x19e   :  { %v7630_v32 = vld [vmem:[#allocation2 + $0x110] sm:$0xf]  ;;  %1681 = vst [vmem:[#allocation2 + $0x238] sm:$0xf] %v1680_v28  ;;  %v546_v58 = vsel %vm8361_vm3, 0, %v545_v60  ;;  %v3705_v57 = vor.u32 %v3704_v21, %v3701_v17  ;;  %v3396_v36 = vrot.slane %v3394_v56, 5 }
 0x19f   :  { %v3170_v50 = vld [vmem:[#allocation2 + $0x110] sm:$0xf]  ;;  %547 = vst [vmem:[#allocation2 + $0x88] sm:$0x1] %v546_v58  ;;  %v2799_v14 = vld [vmem:[#allocation2 + $0x8c] sm:$0x1] }
 0x1a0   :  { %v7987_v20 = vld [vmem:[#allocation2 + $0x114] sm:$0xf0]  ;;  %v3371_v25 = vshrl.u32 %v3170_v50, 16  ;;  %v3374_v23 = vshll.u32 %v3170_v50, 16  ;;  %v3710_v22 = vrot.slane %v3708_v59, 5  ;;  %v3706_v46 = vrot.slane %v3705_v57, 4 }
 0x1a1   :  { %v3172_v44 = vld [vmem:[#allocation2 + $0x118] sm:$0xf]  ;;  %v7631_v52 = vor.u32 %v7987_v20, %v7630_v32  ;;  %v3713_v28 = vshrl.u32 %v3668_v38, 16  ;;  %v3020_v42 = vshll.u32 %v2799_v14, 16  ;;  %v3669_v20 = vld [vmem:[#allocation2 + $0x134] sm:$0x1] }
 0x1a2   :  { %v3385_v34 = vshrl.u32 %v3172_v44, 16  ;;  %v3373_v47 = vrot.slane %v3371_v25, 4  ;;  %v3388_v40 = vshll.u32 %v3172_v44, 16  ;;  %v2796_v31 = vld [vmem:[#allocation2 + $0x80] sm:$0xf]  ;;  %v3376_v27 = vrot.slane %v3374_v23, 5 }
 0x1a3   :  { %7639 = vmatmul.msk.bf16.gmra.mxu3 %vm2050_vm10, %v7631_v52  ;;  %v2997_v35 = vshrl.u32 %v2796_v31, 16  ;;  %v3000_v60 = vshll.u32 %v2796_v31, 16  ;;  %v3715_v48 = vrot.slane %v3713_v28, 4  ;;  %v3716_v17 = vshll.u32 %v3668_v38, 16  ;;  %v4040_v21 = vld [vmem:[#allocation2 + $0x1b8] sm:$0xf]  ;;  %v2712_v52 = vpop.f32.mrf.mxu3 }
 0x1a4   :  { %v3387_v0 = vrot.slane %v3385_v34, 4  ;;  %v3390_v32 = vrot.slane %v3388_v40, 5  ;;  %v3377_v50 = vor.u32 %v3376_v27, %v3373_v47  ;;  %v3711_v34 = vsel %vm8456_vm9, %v3706_v46, %v3710_v22  ;;  %v9640_v40 = vpop.f32.mrf.mxu0 }
 0x1a5   :  { %v1745_v58 = vld [vmem:[#allocation2 + $0x238] sm:$0x1]  ;;  %v2999_v44 = vrot.slane %v2997_v35, 4  ;;  %v3002_v56 = vrot.slane %v3000_v60, 5  ;;  %v3718_v14 = vrot.slane %v3716_v17, 5  ;;  %v3722_v57 = vshll.u32 %v3669_v20, 16 }
 0x1a6   :  { %v1746_v59 = vsel %vm8361_vm3, 0, %v1745_v58  ;;  %v3391_v25 = vor.u32 %v3390_v32, %v3387_v0  ;;  %v3378_v23 = vrot.slane %v3377_v50, 4  ;;  %v2798_v47 = vld [vmem:[#allocation2 + $0x88] sm:$0xf]  ;;  %v4073_v27 = vshrl.u32 %v4040_v21, 16 }
 0x1a7   :  { %1747 = vst [vmem:[#allocation2 + $0x238] sm:$0x1] %v1746_v59  ;;  %v3003_v31 = vor.u32 %v3002_v56, %v2999_v44  ;;  %v4076_v28 = vshll.u32 %v4040_v21, 16  ;;  %v3011_v35 = vshrl.u32 %v2798_v47, 16  ;;  %v3014_v60 = vshll.u32 %v2798_v47, 16 }
 0x1a8   :  { %v3392_v38 = vrot.slane %v3391_v25, 4  ;;  %v3383_v0 = vsel %vm8456_vm9, %v3378_v23, %v9625_v26  ;;  %v3719_v32 = vor.u32 %v3718_v14, %v3715_v48  ;;  %v3724_v20 = vrot.slane %v3722_v57, 5  ;;  %v4042_v56 = vld [vmem:[#allocation2 + $0x1c0] sm:$0xf]  ;;  %v7686_v47 = vld [vmem:[#allocation2 + $0x230] sm:$0xf] }
 0x1a9   :  { %v3004_v58 = vrot.slane %v3003_v31, 4  ;;  %v3414_v46 = vunpack.c.l.b16 %v3383_v0  ;;  %v3013_v50 = vrot.slane %v3011_v35, 4  ;;  %v3016_v17 = vrot.slane %v3014_v60, 5 }
 0x1aa   :  { %v3397_v22 = vsel %vm8456_vm9, %v3392_v38, %v3396_v36  ;;  %v3720_v44 = vrot.slane %v3719_v32, 4  ;;  %v3022_v25 = vrot.slane %v3020_v42, 5  ;;  %v3924_v2 = vunpack.c.l.b16 %v3711_v34  ;;  %v4041_v38 = vld [vmem:[#allocation2 + $0x1bc] sm:$0x1]  ;;  %v4043_v42 = vld [vmem:[#allocation2 + $0x1c4] sm:$0x1] }
 0x1ab   :  { %v3415_v59 = vunpack.c.l.b16 %v3397_v22  ;;  %v3009_v21 = vsel %vm8456_vm9, %v3004_v58, %v9629_v10  ;;  %v4075_v26 = vrot.slane %v4073_v27, 4  ;;  %v3017_v48 = vor.u32 %v3016_v17, %v3013_v50  ;;  %v9652_v60 = vpop.f32.mrf.mxu3  ;;  %v3670_v27 = vld [vmem:[#allocation2 + $0x138] sm:$0xf] }
 0x1ac   :  { %v3725_v36 = vsel %vm8456_vm9, %v3720_v44, %v3724_v20  ;;  %v4078_v14 = vrot.slane %v4076_v28, 5  ;;  %v4087_v35 = vshrl.u32 %v4042_v56, 16  ;;  %v4090_v10 = vshll.u32 %v4042_v56, 16  ;;  %v9655_v34 = vpop.f32.mrf.mxu0  ;;  %v3671_v44 = vld [vmem:[#allocation2 + $0x13c] sm:$0x1] }
 0x1ad   :  { %v3423_v23 = vpack.c.b16 %v3415_v59, %v3414_v46  ;;  %v3925_v31 = vunpack.c.l.b16 %v3725_v36  ;;  %v3018_v0 = vrot.slane %v3017_v48, 4  ;;  %v3040_v58 = vunpack.c.l.b16 %v3009_v21 }
 0x1ae   :  { %v7995_v57 = vld [vmem:[#allocation2 + $0x234] sm:$0xf0]  ;;  %v4089_v46 = vrot.slane %v4087_v35, 4  ;;  %v2752_v28 = vadd.f32 %v2712_v52, %v9126_v51  ;;  %v4079_v50 = vor.u32 %v4078_v14, %v4075_v26  ;;  %v4082_v17 = vshll.u32 %v4041_v38, 16  ;;  %v3673_v51 = vld [vmem:[#allocation2 + $0x144] sm:$0x1] }
 0x1af   :  { %v7687_v32 = vor.u32 %v7995_v57, %v7686_v47  ;;  %7655 = vmatmul.msk.bf16.gmra.mxu1 %vm2050_vm10, %v3423_v23  ;;  %v3940_v22 = vpack.c.b16 %v3925_v31, %v3924_v2  ;;  %v3023_v20 = vsel %vm8456_vm9, %v3018_v0, %v3022_v25  ;;  %v4092_v59 = vrot.slane %v4090_v10, 5  ;;  %v3672_v23 = vld [vmem:[#allocation2 + $0x140] sm:$0xf]  ;;  %v4044_v31 = vld [vmem:[#allocation2 + $0x1c8] sm:$0xf] }
 0x1b0   :  { %v3041_v47 = vunpack.c.l.b16 %v3023_v20  ;;  %v4096_v48 = vshll.u32 %v4043_v42, 16  ;;  %v9662_v56 = vadd.f32 %v9631_v45, %v2752_v28  ;;  %v3727_v21 = vshrl.u32 %v3670_v27, 16  ;;  %v4046_v10 = vld [vmem:[#allocation2 + $0x1d0] sm:$0xf] }
 0x1b1   :  { %7695 = vmatmul.msk.bf16.gmra.mxu2 %vm2050_vm10, %v7687_v32  ;;  %v4093_v2 = vor.u32 %v4092_v59, %v4089_v46  ;;  %v3730_v52 = vshll.u32 %v3670_v27, 16  ;;  %v3736_v57 = vshll.u32 %v3671_v44, 16  ;;  %v4080_v26 = vrot.slane %v4079_v50, 4 }
 0x1b2   :  { %v3049_v36 = vpack.c.b16 %v3041_v47, %v3040_v58  ;;  %v3729_v25 = vrot.slane %v3727_v21, 4  ;;  %v4084_v14 = vrot.slane %v4082_v17, 5  ;;  %v3741_v35 = vshrl.u32 %v3672_v23, 16 }
 0x1b3   :  { %7696 = vmatmul.msk.bf16.vlgmr.msra.gmra.mxu3 %vm2050_vm10, %v3940_v22  ;;  %v3732_v38 = vrot.slane %v3730_v52, 5  ;;  %v4094_v0 = vrot.slane %v4093_v2, 4  ;;  %v4098_v45 = vrot.slane %v4096_v48, 5  ;;  %v3744_v32 = vshll.u32 %v3672_v23, 16  ;;  %v2717_v28 = vpop.f32.mrf.mxu3  ;;  %v3674_v23 = vld [vmem:[#allocation2 + $0x148] sm:$0xf] }
 0x1b4   :  { %7647 = vmatmul.msk.bf16.gmra.mxu0 %vm2050_vm10, %v3049_v36  ;;  %v3750_v42 = vshll.u32 %v3673_v51, 16  ;;  %v3738_v46 = vrot.slane %v3736_v57, 5  ;;  %v3743_v20 = vrot.slane %v3741_v35, 4  ;;  %v4101_v27 = vshrl.u32 %v4044_v31, 16  ;;  %v9666_v58 = vpop.f32.mrf.mxu0  ;;  %v4045_v36 = vld [vmem:[#allocation2 + $0x1cc] sm:$0x1] }
 0x1b5   :  { %v3733_v22 = vor.u32 %v3732_v38, %v3729_v25  ;;  %v3746_v59 = vrot.slane %v3744_v32, 5  ;;  %v4104_v44 = vshll.u32 %v4044_v31, 16  ;;  %v4085_v50 = vsel %vm8456_vm9, %v4080_v26, %v4084_v14 }
 0x1b6   :  { %v4115_v47 = vshrl.u32 %v4046_v10, 16  ;;  %v3752_v2 = vrot.slane %v3750_v42, 5  ;;  %v4118_v48 = vshll.u32 %v4046_v10, 16  ;;  %v4099_v51 = vsel %vm8456_vm9, %v4094_v0, %v4098_v45  ;;  %v4047_v0 = vld [vmem:[#allocation2 + $0x1d4] sm:$0x1] }
 0x1b7   :  { %v3734_v17 = vrot.slane %v3733_v22, 4  ;;  %v3747_v21 = vor.u32 %v3746_v59, %v3743_v20  ;;  %v4103_v25 = vrot.slane %v4101_v27, 4  ;;  %v4106_v57 = vrot.slane %v4104_v44, 5  ;;  %v3675_v22 = vld [vmem:[#allocation2 + $0x14c] sm:$0x1] }
 0x1b8   :  { %v4298_v38 = vunpack.c.l.b16 %v4085_v50  ;;  %v4117_v35 = vrot.slane %v4115_v47, 4  ;;  %v4120_v26 = vrot.slane %v4118_v48, 5  ;;  %v2754_v14 = vadd.f32 %v2717_v28, %v9238_v61 }
 0x1b9   :  { %v3739_v52 = vsel %vm8456_vm9, %v3734_v17, %v3738_v46  ;;  %v3748_v31 = vrot.slane %v3747_v21, 4  ;;  %v3755_v42 = vshrl.u32 %v3674_v23, 16  ;;  %v4299_v10 = vunpack.c.l.b16 %v4099_v51  ;;  %v3676_v17 = vld [vmem:[#allocation2 + $0x150] sm:$0xf] }
 0x1ba   :  { %v3926_v32 = vunpack.c.l.b16 %v3739_v52  ;;  %v4110_v45 = vshll.u32 %v4045_v36, 16  ;;  %v3758_v46 = vshll.u32 %v3674_v23, 16  ;;  %v4107_v44 = vor.u32 %v4106_v57, %v4103_v25 }
 0x1bb   :  { %v3753_v20 = vsel %vm8456_vm9, %v3748_v31, %v3752_v2  ;;  %v9677_v59 = vpop.f32.mrf.mxu3  ;;  %v9680_v50 = vadd.f32 %v9655_v34, %v2754_v14  ;;  %v3757_v47 = vrot.slane %v3755_v42, 4  ;;  %v3764_v61 = vshll.u32 %v3675_v22, 16 }
 0x1bc   :  { %v3927_v27 = vunpack.c.l.b16 %v3753_v20  ;;  %v3760_v21 = vrot.slane %v3758_v46, 5  ;;  %v4121_v48 = vor.u32 %v4120_v26, %v4117_v35  ;;  %v4124_v51 = vshll.u32 %v4047_v0, 16  ;;  %v3096_v52 = vpop.f32.mrf.mxu0  ;;  %v4050_v0 = vld [vmem:[#allocation2 + $0x1e0] sm:$0xf] }
 0x1bd   :  { %v4314_v2 = vpack.c.b16 %v4299_v10, %v4298_v38  ;;  %v3769_v36 = vshrl.u32 %v3676_v17, 16  ;;  %v4108_v23 = vrot.slane %v4107_v44, 4  ;;  %v4112_v20 = vrot.slane %v4110_v45, 5  ;;  %v4048_v10 = vld [vmem:[#allocation2 + $0x1d8] sm:$0xf] }
 0x1be   :  { %v3941_v28 = vpack.c.b16 %v3927_v27, %v3926_v32  ;;  %v3761_v31 = vor.u32 %v3760_v21, %v3757_v47  ;;  %v3772_v25 = vshll.u32 %v3676_v17, 16  ;;  %v3766_v34 = vrot.slane %v3764_v61, 5  ;;  %v955_v32 = vld [vmem:[#allocation9 + $0x38] sm:$0xff]  ;;  %v9694_v47 = vld [vmem:[%s10831_s7] ss:$0 sm:$0xff] }
 0x1bf   :  { %v3771_v14 = vrot.slane %v3769_v36, 4  ;;  %v4122_v42 = vrot.slane %v4121_v48, 4  ;;  %v4126_v46 = vrot.slane %v4124_v51, 5  ;;  %v3780_v38 = vrot.slane %v3778_v3, 5 }
 0x1c0   :  { %v3762_v57 = vrot.slane %v3761_v31, 4  ;;  %v3774_v22 = vrot.slane %v3772_v25, 5  ;;  %v4113_v27 = vsel %vm8456_vm9, %v4108_v23, %v4112_v20  ;;  %v971_v3 = vmul.f32 %v9694_v47, %v955_v32 }
 0x1c1   :  { %v4127_v16 = vsel %vm8456_vm9, %v4122_v42, %v4126_v46  ;;  %v4129_v21 = vshrl.u32 %v4048_v10, 16  ;;  %v4132_v61 = vshll.u32 %v4048_v10, 16  ;;  %v4146_v48 = vshll.u32 %v4050_v0, 16  ;;  %v1634_v42 = vld [vmem:[#allocation2 + $0x1f4] sm:$0x1] }
 0x1c2   :  { %v3775_v26 = vor.u32 %v3774_v22, %v3771_v14  ;;  %v3767_v45 = vsel %vm8456_vm9, %v3762_v57, %v3766_v34  ;;  %v1491_v20 = vrot.slane %v9219_v54, 4  ;;  %v4300_v57 = vunpack.c.l.b16 %v4113_v27  ;;  %v4049_v46 = vld [vmem:[#allocation2 + $0x1dc] sm:$0x1]  ;;  %v4051_v10 = vld [vmem:[#allocation2 + $0x1e4] sm:$0x1] }
 0x1c3   :  { %7697 = vmatmul.msk.bf16.gmra.mxu3 %vm2050_vm10, %v3941_v28  ;;  %v2722_v35 = vpop.f32.mrf.mxu3  ;;  %v4143_v28 = vshrl.u32 %v4050_v0, 16  ;;  %v4301_v34 = vunpack.c.l.b16 %v4127_v16  ;;  %v4131_v22 = vrot.slane %v4129_v21, 4 }
 0x1c4   :  { %7704 = vmatmul.msk.bf16.vlgmr.msra.gmra.mxu0 %vm2050_vm10, %v4314_v2  ;;  %v3776_v44 = vrot.slane %v3775_v26, 4  ;;  %v2756_v17 = vadd.f32 %v2722_v35, %v9343_v12  ;;  %v3928_v2 = vunpack.c.l.b16 %v3767_v45  ;;  %v9699_v31 = vpop.f32.mrf.mxu0  ;;  %v9706_v12 = vld [vmem:[%s10832_s8] ss:$0 sm:$0xff]  ;;  %v4134_v35 = vrot.slane %v4132_v61, 5  ;;  %v4052_v61 = vld [vmem:[#allocation2 + $0x1e8] sm:$0xf] }
 0x1c5   :  { %v987_v23 = vadd.f32 %v9706_v12, %v971_v3  ;;  %v4145_v32 = vrot.slane %v4143_v28, 4  ;;  %v1635_v45 = vsel %vm8361_vm3, %v1491_v20, %v1634_v42  ;;  %v4315_v27 = vpack.c.b16 %v4301_v34, %v4300_v57  ;;  %v1231_v28 = vld [vmem:[#allocation2 + $0x160] sm:$0xf]  ;;  %v8004_v34 = vld [vmem:[#allocation13] sm:$0xff] }
 0x1c6   :  { %v3781_v51 = vsel %vm8456_vm9, %v3776_v44, %v3780_v38  ;;  %v9701_v36 = vadd.f32 %v3096_v52, %v2756_v17  ;;  %v4148_v52 = vrot.slane %v4146_v48, 5  ;;  %v4138_v44 = vshll.u32 %v4049_v46, 16  ;;  %1636 = vst [vmem:[#allocation2 + $0x1f4] sm:$0x1] %v1635_v45  ;;  %v1234_v48 = vld [vmem:[#allocation2 + $0x164] sm:$0x1]  ;;  %5321 = vmatpush.bf16.msra.mxu2 %v8004_v34 }
 0x1c7   :  { %v3929_v25 = vunpack.c.l.b16 %v3781_v51  ;;  %v1003_v14 = vmax.f32 %v987_v23, 0.0  ;;  %v4135_v16 = vor.u32 %v4134_v35, %v4131_v22  ;;  %v4152_v51 = vshll.u32 %v4051_v10, 16  ;;  %v8005_v35 = vld [vmem:[#allocation13 + $0x8] sm:$0xff] }
 0x1c8   :  { %v4149_v3 = vor.u32 %v4148_v52, %v4145_v32  ;;  %v4157_v57 = vshrl.u32 %v4052_v61, 16  ;;  %v4160_v10 = vshll.u32 %v4052_v61, 16  ;;  %v4171_v45 = vshrl.u32 %v4054_v30, 16  ;;  %5202 = vmatpush.bf16.msra.mxu1 %v8005_v35  ;;  %v4053_v61 = vld [vmem:[#allocation2 + $0x1ec] sm:$0x1] }
 0x1c9   :  { %v3942_v38 = vpack.c.b16 %v3929_v25, %v3928_v2  ;;  %v1019_v0 = vpack.c.bf16 %v1003_v14, %v1003_v14  ;;  %v4140_v2 = vrot.slane %v4138_v44, 5  ;;  %v4136_v20 = vrot.slane %v4135_v16, 4  ;;  %v3679_v35 = vld [vmem:[#allocation2 + $0x15c] sm:$0x1] }
 0x1ca   :  { %v4150_v42 = vrot.slane %v4149_v3, 4  ;;  %v4154_v46 = vrot.slane %v4152_v51, 5  ;;  %v4174_v44 = vshll.u32 %v4054_v30, 16  ;;  %v4159_v51 = vrot.slane %v4157_v57, 4 }
 0x1cb   :  { %v9710_v26 = vpop.f32.mrf.mxu3  ;;  %v1085_v54 = vshrl.u32 %v1019_v0, 16  ;;  %v1088_v17 = vshll.u32 %v1019_v0, 16  ;;  %v4141_v16 = vsel %vm8456_vm9, %v4136_v20, %v4140_v2 }
 0x1cc   :  { %v4155_v3 = vsel %vm8456_vm9, %v4150_v42, %v4154_v46  ;;  %v4302_v30 = vunpack.c.l.b16 %v4141_v16  ;;  %v3684_v16 = vld [vmem:[#allocation2 + $0x178] sm:$0xf] }
 0x1cd   :  { %v1087_v21 = vrot.slane %v1085_v54, 7 }
 0x1cf   :  { %v1090_v25 = vor.u32 %v1088_v17, %v1087_v21  ;;  %v1091_v14 = vrot.slane %v1087_v21, 4  ;;  %v4162_v21 = vrot.slane %v4160_v10, 5  ;;  %v3792_v10 = vshll.u32 %v3679_v35, 16 }
 0x1d0   :  { %v3101_v23 = vpop.f32.mrf.mxu0  ;;  %v3828_v35 = vshll.u32 %v3684_v16, 16 }
 0x1d1   :  { %v1232_v32 = vsel %vm8425_vm6, %v1090_v25, %v1231_v28  ;;  %v1235_v52 = vsel %vm8361_vm3, %v1091_v14, %v1234_v48  ;;  %v4176_v28 = vrot.slane %v4174_v44, 5  ;;  %v4055_v48 = vld [vmem:[#allocation2 + $0x1f4] sm:$0x1]  ;;  %v4303_v25 = vunpack.c.l.b16 %v4155_v3  ;;  %v4056_v3 = vld [vmem:[#allocation2 + $0x200] sm:$0xf] }
 0x1d2   :  { %1233 = vst [vmem:[#allocation2 + $0x160] sm:$0xf] %v1232_v32  ;;  %v4163_v32 = vor.u32 %v4162_v21, %v4159_v51  ;;  %v4180_v46 = vshll.u32 %v4055_v48, 16 }
 0x1d3   :  { %7698 = vmatmul.msk.bf16.gmra.mxu3 %vm2050_vm10, %v3942_v38  ;;  %v2727_v22 = vpop.f32.mrf.mxu3  ;;  %v3678_v38 = vld [vmem:[#allocation2 + $0x158] sm:$0xf]  ;;  %1236 = vst [vmem:[#allocation2 + $0x164] sm:$0x1] %v1235_v52  ;;  %v4166_v52 = vshll.u32 %v4053_v61, 16  ;;  %v4316_v57 = vpack.c.b16 %v4303_v25, %v4302_v30  ;;  %v3794_v61 = vrot.slane %v3792_v10, 5 }
 0x1d4   :  { %7705 = vmatmul.msk.bf16.gmra.mxu0 %vm2050_vm10, %v4315_v27  ;;  %v2758_v0 = vadd.f32 %v2727_v22, %v9452_v55  ;;  %v3783_v17 = vshrl.u32 %v3678_v38, 16  ;;  %v3786_v27 = vshll.u32 %v3678_v38, 16  ;;  %v4173_v55 = vrot.slane %v4171_v45, 4  ;;  %v4058_v25 = vld [vmem:[#allocation2 + $0x208] sm:$0xf] }
 0x1d5   :  { %v4168_v45 = vrot.slane %v4166_v52, 5  ;;  %v3825_v30 = vshrl.u32 %v3684_v16, 16 }
 0x1d6   :  { %v9721_v54 = vadd.f32 %v3101_v23, %v2758_v0  ;;  %v3785_v14 = vrot.slane %v3783_v17, 4  ;;  %v3788_v34 = vrot.slane %v3786_v27, 5  ;;  %v4177_v42 = vor.u32 %v4176_v28, %v4173_v55  ;;  %v3682_v27 = vld [vmem:[#allocation2 + $0x170] sm:$0xf] }
 0x1d7   :  { %v4164_v0 = vrot.slane %v4163_v32, 4  ;;  %v4182_v17 = vrot.slane %v4180_v46, 5  ;;  %v3811_v28 = vshrl.u32 %v3682_v27, 16  ;;  %v3814_v48 = vshll.u32 %v3682_v27, 16 }
 0x1d8   :  { %10857 = vst [vmem:[#allocation33_spill] sm:$0xff] %v9721_v54  ;;  %v9729_v2 = vpop.f32.mrf.mxu0  ;;  %v3789_v38 = vor.u32 %v3788_v34, %v3785_v14  ;;  %v4178_v44 = vrot.slane %v4177_v42, 4  ;;  %v4185_v32 = vshrl.u32 %v4056_v3, 16  ;;  %v3685_v54 = vld [vmem:[#allocation2 + $0x17c] sm:$0x1] }
 0x1d9   :  { %v1318_v22 = vld [vmem:[#allocation2 + $0x160] sm:$0x1]  ;;  %10859 = vst [vmem:[#allocation35_spill] sm:$0xff] %v9729_v2  ;;  %v4169_v55 = vsel %vm8456_vm9, %v4164_v0, %v4168_v45  ;;  %v4199_v0 = vshrl.u32 %v4058_v25, 16  ;;  %v4202_v45 = vshll.u32 %v4058_v25, 16 }
 0x1da   :  { %v1319_v20 = vsel %vm8361_vm3, 0, %v1318_v22  ;;  %v3681_v51 = vld [vmem:[#allocation2 + $0x164] sm:$0x1]  ;;  %v3790_v21 = vrot.slane %v3789_v38, 4  ;;  %v4183_v22 = vsel %vm8456_vm9, %v4178_v44, %v4182_v17  ;;  %v4188_v38 = vshll.u32 %v4056_v3, 16 }
 0x1db   :  { %v9727_v23 = vpop.f32.mrf.mxu3  ;;  %1320 = vst [vmem:[#allocation2 + $0x160] sm:$0x1] %v1319_v20  ;;  %v3806_v46 = vshll.u32 %v3681_v51, 16  ;;  %v3683_v44 = vld [vmem:[#allocation2 + $0x174] sm:$0x1]  ;;  %v3813_v17 = vrot.slane %v3811_v28, 4  ;;  %v4305_v16 = vunpack.c.l.b16 %v4183_v22 }
 0x1dc   :  { %10858 = vst [vmem:[#allocation34_spill] sm:$0xff] %v9727_v23  ;;  %v3795_v10 = vsel %vm8456_vm9, %v3790_v21, %v3794_v61  ;;  %v4304_v23 = vunpack.c.l.b16 %v4169_v55  ;;  %v4057_v3 = vld [vmem:[#allocation2 + $0x204] sm:$0x1]  ;;  %v4187_v63 = vrot.slane %v4185_v32, 4  ;;  %v4190_v43 = vrot.slane %v4188_v38, 5 }
 0x1dd   :  { %v3808_v15 = vrot.slane %v3806_v46, 5  ;;  %v4059_v21 = vld [vmem:[#allocation2 + $0x20c] sm:$0x1]  ;;  %v4201_v61 = vrot.slane %v4199_v0, 4  ;;  %v4204_v25 = vrot.slane %v4202_v45, 5 }
 0x1de   :  { %v3686_v55 = vld [vmem:[#allocation2 + $0x180] sm:$0xf]  ;;  %v4317_v28 = vpack.c.b16 %v4305_v16, %v4304_v23 }
 0x1df   :  { %v4205_v46 = vor.u32 %v4204_v25, %v4201_v61  ;;  %v3839_v38 = vshrl.u32 %v3686_v55, 16  ;;  %v3842_v0 = vshll.u32 %v3686_v55, 16  ;;  %v4062_v61 = vld [vmem:[#allocation2 + $0x218] sm:$0xf] }
 0x1e1   :  { %v3844_v16 = vrot.slane %v3842_v0, 5 }
 0x1e2   :  { %v3680_v34 = vld [vmem:[#allocation2 + $0x160] sm:$0xf] }
 0x1e3   :  { %v2732_v14 = vpop.f32.mrf.mxu3  ;;  %v3797_v20 = vshrl.u32 %v3680_v34, 16  ;;  %v3800_v42 = vshll.u32 %v3680_v34, 16  ;;  %v3830_v34 = vrot.slane %v3828_v35, 5  ;;  %v4208_v35 = vshll.u32 %v4059_v21, 16  ;;  %v4060_v21 = vld [vmem:[#allocation2 + $0x210] sm:$0xf] }
 0x1e4   :  { %7706 = vmatmul.msk.bf16.gmra.mxu0 %vm2050_vm10, %v4316_v57  ;;  %v2760_v52 = vadd.f32 %v2732_v14, %v9535_v11  ;;  %v3816_v11 = vrot.slane %v3814_v48, 5  ;;  %v3827_v14 = vrot.slane %v3825_v30, 4  ;;  %v4194_v48 = vshll.u32 %v4057_v3, 16 }
 0x1e5   :  { %v3799_v49 = vrot.slane %v3797_v20, 4  ;;  %v3802_v2 = vrot.slane %v3800_v42, 5  ;;  %v3820_v20 = vshll.u32 %v3683_v44, 16  ;;  %v4191_v30 = vor.u32 %v4190_v43, %v4187_v63 }
 0x1e6   :  { %v3817_v22 = vor.u32 %v3816_v11, %v3813_v17  ;;  %v4196_v23 = vrot.slane %v4194_v48, 5  ;;  %v3688_v17 = vld [vmem:[#allocation2 + $0x188] sm:$0xf]  ;;  %v3841_v63 = vrot.slane %v3839_v38, 4  ;;  %v3687_v11 = vld [vmem:[#allocation2 + $0x184] sm:$0x1] }
 0x1e7   :  { %v3106_v57 = vpop.f32.mrf.mxu0  ;;  %v3803_v51 = vor.u32 %v3802_v2, %v3799_v49  ;;  %v3831_v2 = vor.u32 %v3830_v34, %v3827_v14  ;;  %v4192_v24 = vrot.slane %v4191_v30, 4  ;;  %v963_v34 = vld [vmem:[#allocation9 + $0x78] sm:$0xff]  ;;  %v3853_v3 = vshrl.u32 %v3688_v17, 16 }
 0x1e8   :  { %v9741_v27 = vadd.f32 %v3106_v57, %v2760_v52  ;;  %v3930_v57 = vunpack.c.l.b16 %v3795_v10  ;;  %v3822_v10 = vrot.slane %v3820_v20, 5  ;;  %v979_v48 = vmul.f32 %v9694_v47, %v963_v34 }
 0x1e9   :  { %v3804_v52 = vrot.slane %v3803_v51, 4  ;;  %v3818_v51 = vrot.slane %v3817_v22, 4  ;;  %v4197_v20 = vsel %vm8456_vm9, %v4192_v24, %v4196_v23  ;;  %v3848_v22 = vshll.u32 %v3687_v11, 16 }
 0x1ea   :  { %10860 = vst [vmem:[#allocation36_spill] sm:$0xff] %v9741_v27  ;;  %v3834_v27 = vshll.u32 %v3685_v54, 16  ;;  %v4210_v54 = vrot.slane %v4208_v35, 5  ;;  %v4227_v30 = vshrl.u32 %v4062_v61, 16  ;;  %v3855_v35 = vrot.slane %v3853_v3, 4 }
 0x1eb   :  { %v9743_v42 = vpop.f32.mrf.mxu3  ;;  %v3809_v49 = vsel %vm8456_vm9, %v3804_v52, %v3808_v15  ;;  %v4206_v15 = vrot.slane %v4205_v46, 4  ;;  %v3823_v52 = vsel %vm8456_vm9, %v3818_v51, %v3822_v10  ;;  %v4306_v0 = vunpack.c.l.b16 %v4197_v20  ;;  %v4061_v51 = vld [vmem:[#allocation2 + $0x214] sm:$0x1] }
 0x1ec   :  { %10861 = vst [vmem:[#allocation37_spill] sm:$0xff] %v9743_v42  ;;  %v3931_v32 = vunpack.c.l.b16 %v3809_v49  ;;  %v3836_v44 = vrot.slane %v3834_v27, 5  ;;  %v3832_v42 = vrot.slane %v3831_v2, 4  ;;  %v3856_v27 = vshll.u32 %v3688_v17, 16 }
 0x1ed   :  { %v4211_v55 = vsel %vm8456_vm9, %v4206_v15, %v4210_v54  ;;  %v4213_v49 = vshrl.u32 %v4060_v21, 16  ;;  %v4216_v2 = vshll.u32 %v4060_v21, 16  ;;  %v3932_v46 = vunpack.c.l.b16 %v3823_v52 }
 0x1ee   :  { %v3943_v45 = vpack.c.b16 %v3931_v32, %v3930_v57  ;;  %v3837_v57 = vsel %vm8456_vm9, %v3832_v42, %v3836_v44  ;;  %v3858_v32 = vrot.slane %v3856_v27, 5  ;;  %v3689_v42 = vld [vmem:[#allocation2 + $0x18c] sm:$0x1]  ;;  %v3850_v24 = vrot.slane %v3848_v22, 5 }
 0x1ef   :  { %v9749_v43 = vpop.f32.mrf.mxu0  ;;  %v3933_v38 = vunpack.c.l.b16 %v3837_v57  ;;  %v995_v44 = vadd.f32 %v9706_v12, %v979_v48  ;;  %v4215_v23 = vrot.slane %v4213_v49, 4  ;;  %v4218_v17 = vrot.slane %v4216_v2, 5  ;;  %v3690_v2 = vld [vmem:[#allocation2 + $0x190] sm:$0xf] }
 0x1f0   :  { %7699 = vmatmul.msk.bf16.gmra.mxu3 %vm2050_vm10, %v3943_v45  ;;  %v4307_v45 = vunpack.c.l.b16 %v4211_v55  ;;  %v4229_v15 = vrot.slane %v4227_v30, 4  ;;  %v1555_v54 = vrot.slane %v9617_v33, 4  ;;  %v3862_v11 = vshll.u32 %v3689_v42, 16  ;;  %v4066_v42 = vld [vmem:[#allocation2 + $0x228] sm:$0xf] }
 0x1f1   :  { %v3944_v27 = vpack.c.b16 %v3933_v38, %v3932_v46  ;;  %v1011_v52 = vmax.f32 %v995_v44, 0.0  ;;  %v4219_v57 = vor.u32 %v4218_v17, %v4215_v23  ;;  %v3870_v44 = vshll.u32 %v3690_v2, 16  ;;  %v1279_v23 = vld [vmem:[#allocation2 + $0x1a8] sm:$0xf] }
 0x1f2   :  { %v4318_v21 = vpack.c.b16 %v4307_v45, %v4306_v0  ;;  %v3864_v22 = vrot.slane %v3862_v11, 5  ;;  %v4258_v11 = vshll.u32 %v4066_v42, 16 }
 0x1f3   :  { %v1027_v48 = vpack.c.bf16 %v1011_v52, %v1011_v52  ;;  %v4220_v46 = vrot.slane %v4219_v57, 4 }
 0x1f4   :  { %7707 = vmatmul.msk.bf16.gmra.mxu0 %vm2050_vm10, %v4317_v28  ;;  %v3845_v28 = vor.u32 %v3844_v16, %v3841_v63  ;;  %v3859_v16 = vor.u32 %v3858_v32, %v3855_v35  ;;  %v4064_v35 = vld [vmem:[#allocation2 + $0x220] sm:$0xf] }
 0x1f5   :  { %v2737_v14 = vpop.f32.mrf.mxu3  ;;  %v1149_v32 = vshrl.u32 %v1027_v48, 16  ;;  %v1152_v45 = vshll.u32 %v1027_v48, 16 }
 0x1f6   :  { %v2762_v25 = vadd.f32 %v2737_v14, %v9608_v5  ;;  %v4230_v5 = vshll.u32 %v4062_v61, 16  ;;  %v3846_v10 = vrot.slane %v3845_v28, 4  ;;  %v4063_v14 = vld [vmem:[#allocation2 + $0x21c] sm:$0x1]  ;;  %v4222_v61 = vshll.u32 %v4061_v51, 16 }
 0x1f7   :  { %v4236_v55 = vshll.u32 %v4063_v14, 16  ;;  %v1682_v28 = vld [vmem:[#allocation2 + $0x23c] sm:$0x1]  ;;  %v3860_v33 = vrot.slane %v3859_v16, 4  ;;  %v1151_v51 = vrot.slane %v1149_v32, 7  ;;  %v4255_v16 = vshrl.u32 %v4066_v42, 16 }
 0x1f8   :  { %v4232_v47 = vrot.slane %v4230_v5, 5  ;;  %v3851_v12 = vsel %vm8456_vm9, %v3846_v10, %v3850_v24  ;;  %v1683_v49 = vsel %vm8361_vm3, %v1555_v54, %v1682_v28  ;;  %v4224_v30 = vrot.slane %v4222_v61, 5  ;;  %v3692_v5 = vld [vmem:[#allocation2 + $0x198] sm:$0xf]  ;;  %v4067_v42 = vld [vmem:[#allocation2 + $0x22c] sm:$0x1] }
 0x1f9   :  { %1684 = vst [vmem:[#allocation2 + $0x23c] sm:$0x1] %v1683_v49  ;;  %v4238_v0 = vrot.slane %v4236_v55, 5  ;;  %v3865_v10 = vsel %vm8456_vm9, %v3860_v33, %v3864_v22  ;;  %v3867_v24 = vshrl.u32 %v3690_v2, 16  ;;  %v3881_v17 = vshrl.u32 %v3692_v5, 16 }
 0x1fa   :  { %v4233_v20 = vor.u32 %v4232_v47, %v4229_v15  ;;  %v3884_v15 = vshll.u32 %v3692_v5, 16  ;;  %v4241_v47 = vshrl.u32 %v4064_v35, 16  ;;  %v4244_v54 = vshll.u32 %v4064_v35, 16  ;;  %v3693_v55 = vld [vmem:[#allocation2 + $0x19c] sm:$0x1] }
 0x1fb   :  { %v3935_v61 = vunpack.c.l.b16 %v3865_v10  ;;  %v4225_v52 = vsel %vm8456_vm9, %v4220_v46, %v4224_v30  ;;  %v3869_v28 = vrot.slane %v3867_v24, 4  ;;  %v3872_v33 = vrot.slane %v3870_v44, 5  ;;  %v4065_v46 = vld [vmem:[#allocation2 + $0x224] sm:$0x1] }
 0x1fc   :  { %v4234_v38 = vrot.slane %v4233_v20, 4  ;;  %v3691_v20 = vld [vmem:[#allocation2 + $0x194] sm:$0x1]  ;;  %v3883_v49 = vrot.slane %v3881_v17, 4  ;;  %v3886_v2 = vrot.slane %v3884_v15, 5  ;;  %v4243_v5 = vrot.slane %v4241_v47, 4 }
 0x1fd   :  { %v9763_v34 = vpop.f32.mrf.mxu3  ;;  %v4246_v35 = vrot.slane %v4244_v54, 5  ;;  %v4308_v30 = vunpack.c.l.b16 %v4225_v52  ;;  %v3876_v8 = vshll.u32 %v3691_v20, 16  ;;  %v3890_v10 = vshll.u32 %v3693_v55, 16 }
 0x1fe   :  { %v3887_v24 = vor.u32 %v3886_v2, %v3883_v49  ;;  %v4264_v54 = vshll.u32 %v4067_v42, 16 }
 0x1ff   :  { %v4247_v44 = vor.u32 %v4246_v35, %v4243_v5  ;;  %v9801_v5 = vpop.f32.mrf.mxu2 }
 0x200   :  { %7700 = vmatmul.msk.bf16.gmra.mxu3 %vm2050_vm10, %v3944_v27  ;;  %v1154_v27 = vor.u32 %v1152_v45, %v1151_v51  ;;  %v3873_v45 = vor.u32 %v3872_v33, %v3869_v28  ;;  %v4266_v55 = vrot.slane %v4264_v54, 5  ;;  %v4070_v33 = vld [vmem:[#allocation2 + $0x238] sm:$0xf] }
 0x201   :  { %v3111_v63 = vpop.f32.mrf.mxu0  ;;  %v4286_v42 = vshll.u32 %v4070_v33, 16 }
 0x202   :  { %v9765_v3 = vadd.f32 %v3111_v63, %v2762_v25  ;;  %v9773_v25 = vunpack.c.l.b16 %v3851_v12  ;;  %v1282_v63 = vld [vmem:[#allocation2 + $0x1ac] sm:$0x1]  ;;  %v4239_v12 = vsel %vm8456_vm9, %v4234_v38, %v4238_v0  ;;  %v1280_v22 = vsel %vm8425_vm6, %v1154_v27, %v1279_v23  ;;  %v9788_v23 = vpop.f32.mrf.mxu1 }
 0x203   :  { %1281 = vst [vmem:[#allocation2 + $0x1a8] sm:$0xf] %v1280_v22  ;;  %v4309_v32 = vunpack.c.l.b16 %v4239_v12  ;;  %v4257_v38 = vrot.slane %v4255_v16, 4  ;;  %v3878_v16 = vrot.slane %v3876_v8, 5  ;;  %v3888_v27 = vrot.slane %v3887_v24, 4 }
 0x204   :  { %7708 = vmatmul.msk.bf16.gmra.mxu0 %vm2050_vm10, %v4318_v21  ;;  %v1155_v21 = vrot.slane %v1151_v51, 4  ;;  %v4250_v51 = vshll.u32 %v4065_v46, 16  ;;  %v3945_v17 = vpack.c.b16 %v3935_v61, %v9773_v25  ;;  %v3694_v25 = vld [vmem:[#allocation2 + $0x1a0] sm:$0xf]  ;;  %v4068_v61 = vld [vmem:[#allocation2 + $0x230] sm:$0xf] }
 0x205   :  { %v4319_v15 = vpack.c.b16 %v4309_v32, %v4308_v30  ;;  %v3895_v49 = vshrl.u32 %v3694_v25, 16  ;;  %v3898_v2 = vshll.u32 %v3694_v25, 16  ;;  %v4269_v46 = vshrl.u32 %v4068_v61, 16 }
 0x206   :  { %v1283_v48 = vsel %vm8361_vm3, %v1155_v21, %v1282_v63  ;;  %v3874_v63 = vrot.slane %v3873_v45, 4  ;;  %v4248_v21 = vrot.slane %v4247_v44, 4  ;;  %v4252_v52 = vrot.slane %v4250_v51, 5 }
 0x207   :  { %1284 = vst [vmem:[#allocation2 + $0x1ac] sm:$0x1] %v1283_v48 }
 0x208   :  { %v3879_v28 = vsel %vm8456_vm9, %v3874_v63, %v3878_v16  ;;  %v4253_v1 = vsel %vm8456_vm9, %v4248_v21, %v4252_v52  ;;  %v4271_v16 = vrot.slane %v4269_v46, 4  ;;  %v4288_v21 = vrot.slane %v4286_v42, 5 }
 0x209   :  { %v9786_v0 = vpop.f32.mrf.mxu0  ;;  %v3936_v45 = vunpack.c.l.b16 %v3879_v28  ;;  %v4310_v24 = vunpack.c.l.b16 %v4253_v1  ;;  %v3610_v28 = vpop.f32.mrf.mxu2 }
 0x20a   :  { %v2742_v14 = vpop.f32.mrf.mxu3  ;;  %v9803_v35 = vpop.f32.mrf.mxu1 }
 0x20b   :  { %v2764_v57 = vadd.f32 %v2742_v14, %v9538_v13  ;;  %v4260_v13 = vrot.slane %v4258_v11, 5  ;;  %v3892_v11 = vrot.slane %v3890_v10, 5  ;;  %v1345_v14 = vld [vmem:[#allocation2 + $0x1a8] sm:$0x1] }
 0x20c   :  { %v1346_v12 = vsel %vm8361_vm3, 0, %v1345_v14  ;;  %v4071_v14 = vld [vmem:[#allocation2 + $0x23c] sm:$0x1]  ;;  %vm9938_vm3 = vmor %vm5411_vm0, %vm5412_vm1 }
 0x20d   :  { %v4261_v47 = vor.u32 %v4260_v13, %v4257_v38  ;;  %1347 = vst [vmem:[#allocation2 + $0x1a8] sm:$0x1] %v1346_v12  ;;  %v3893_v48 = vsel %vm8456_vm9, %v3888_v27, %v3892_v11  ;;  %v4272_v38 = vshll.u32 %v4068_v61, 16  ;;  %v4283_v13 = vshrl.u32 %v4070_v33, 16 }
 0x20e   :  { %v3937_v8 = vunpack.c.l.b16 %v3893_v48  ;;  %v3697_v52 = vld [vmem:[#allocation2 + $0x1ac] sm:$0x1]  ;;  %v4292_v1 = vshll.u32 %v4071_v14, 16 }
 0x20f   :  { %v4262_v20 = vrot.slane %v4261_v47, 4  ;;  %v3695_v47 = vld [vmem:[#allocation2 + $0x1a4] sm:$0x1]  ;;  %v4274_v11 = vrot.slane %v4272_v38, 5  ;;  %v4285_v27 = vrot.slane %v4283_v13, 4 }
 0x210   :  { %7701 = vmatmul.msk.bf16.gmra.mxu3 %vm2050_vm10, %v3945_v17  ;;  %v3897_v17 = vrot.slane %v3895_v49, 4  ;;  %v3904_v61 = vshll.u32 %v3695_v47, 16 }
 0x211   :  { %v4267_v30 = vsel %vm8456_vm9, %v4262_v20, %v4266_v55  ;;  %v3946_v55 = vpack.c.b16 %v3937_v8, %v3936_v45  ;;  %v4294_v45 = vrot.slane %v4292_v1, 5 }
 0x212   :  { %v9809_v10 = vpop.f32.mrf.mxu3  ;;  %v4311_v44 = vunpack.c.l.b16 %v4267_v30  ;;  %v4289_v30 = vor.u32 %v4288_v21, %v4285_v27  ;;  %v3462_v46 = vpop.f32.mrf.mxu1  ;;  %v3906_v38 = vrot.slane %v3904_v61, 5  ;;  %v10862_v61 = vmov 0  }
 0x213   :  { %4748 = vst.msk [vmem:[#allocation3] sm:$0xf] %vm4647_vm11, %v10862_v61 }
 0x214   :  { %7709 = vmatmul.msk.bf16.gmra.mxu0 %vm2050_vm10, %v4319_v15  ;;  %v3696_v51 = vld [vmem:[#allocation2 + $0x1a8] sm:$0xf]  ;;  %v3900_v15 = vrot.slane %v3898_v2, 5  ;;  %v4320_v25 = vpack.c.b16 %v4311_v44, %v4310_v24  ;;  %v3918_v2 = vshll.u32 %v3697_v52, 16  ;;  %4751 = vst.msk [vmem:[#allocation3 + $0x50] sm:$0xf] %vm4647_vm11, %v10862_v61 }
 0x215   :  { %v3909_v54 = vshrl.u32 %v3696_v51, 16  ;;  %v3912_v63 = vshll.u32 %v3696_v51, 16  ;;  %4754 = vst.msk [vmem:[#allocation3 + $0x48] sm:$0xf] %vm4647_vm11, %v10862_v61 }
 0x216   :  { %v3901_v33 = vor.u32 %v3900_v15, %v3897_v17  ;;  %v3920_v44 = vrot.slane %v3918_v2, 5  ;;  %v4290_v17 = vrot.slane %v4289_v30, 4  ;;  %4750 = vst.msk [vmem:[#allocation3 + $0x4] sm:$0x1] %vm4652_vm12, %v10862_v61 }
 0x217   :  { %v3911_v12 = vrot.slane %v3909_v54, 4  ;;  %v3914_v20 = vrot.slane %v3912_v63, 5  ;;  %4752 = vst.msk [vmem:[#allocation3 + $0x54] sm:$0x1] %vm4652_vm12, %v10862_v61 }
 0x218   :  { %v3902_v13 = vrot.slane %v3901_v33, 4  ;;  %4755 = vst.msk [vmem:[#allocation3 + $0x4c] sm:$0x1] %vm4652_vm12, %v10862_v61 }
 0x219   :  { %v3915_v49 = vor.u32 %v3914_v20, %v3911_v12  ;;  %4756 = vst.msk [vmem:[#allocation3 + $0x98] sm:$0xf] %vm4647_vm11, %v10862_v61 }
 0x21a   :  { %v3116_v22 = vpop.f32.mrf.mxu0  ;;  %v3907_v54 = vsel %vm8456_vm9, %v3902_v13, %v3906_v38  ;;  %v3465_v14 = vpop.f32.mrf.mxu1  ;;  %4757 = vst.msk [vmem:[#allocation3 + $0x9c] sm:$0x1] %vm4652_vm12, %v10862_v61 }
 0x21b   :  { %v9807_v32 = vadd.f32 %v3116_v22, %v2764_v57  ;;  %v4069_v57 = vld [vmem:[#allocation2 + $0x234] sm:$0x1]  ;;  %v4275_v22 = vor.u32 %v4274_v11, %v4271_v16  ;;  %v3916_v24 = vrot.slane %v3915_v49, 4  ;;  %v4295_v11 = vsel %vm8456_vm9, %v4290_v17, %v4294_v45 }
 0x21c   :  { %v4278_v48 = vshll.u32 %v4069_v57, 16  ;;  %v3612_v57 = vpop.f32.mrf.mxu2  ;;  %v3938_v27 = vunpack.c.l.b16 %v3907_v54  ;;  %v2212_v54 = vadd.f32 %v9242_v9, %v9240_v29 }
 0x21d   :  { %v4276_v42 = vrot.slane %v4275_v22, 4  ;;  %v3921_v63 = vsel %vm8456_vm9, %v3916_v24, %v3920_v44  ;;  %v2207_v22 = vadd.f32 %v9121_v4, %v9119_v41  ;;  %v3500_v41 = vadd.f32 %v9803_v35, %v9662_v56  ;;  %v9860_v56 = vld [vmem:[%s10833_s9] ss:$0 sm:$0xff]  ;;  %v4819_v44 = vld [vmem:[#allocation3 + $0x4] sm:$0x1] }
 0x21e   :  { %v4280_v51 = vrot.slane %v4278_v48, 5  ;;  %v3939_v21 = vunpack.c.l.b16 %v3921_v63  ;;  %v4758_v24 = vld [vmem:[#allocation3] sm:$0x1] }
 0x21f   :  { %v2603_v49 = vadd.f32 %v9187_v19, %v2207_v22  ;;  %v3650_v38 = vadd.f32 %v3610_v28, %v3500_v41  ;;  %v4759_v17 = vsel %vm9875_vm14, 0, %v4758_v24  ;;  %v8015_v24 = vld [vmem:[#allocation13 + $0x18] sm:$0xff] }
 0x220   :  { %7702 = vmatmul.msk.bf16.gmra.mxu3 %vm2050_vm10, %v3946_v55  ;;  %v4281_v16 = vsel %vm8456_vm9, %v4276_v42, %v4280_v51  ;;  %v3947_v20 = vpack.c.b16 %v3939_v21, %v3938_v27  ;;  %4760 = vst [vmem:[#allocation3] sm:$0x1] %v4759_v17  ;;  %v2605_v27 = vadd.f32 %v9292_v53, %v2212_v54 }
 0x221   :  { %v4312_v52 = vunpack.c.l.b16 %v4281_v16  ;;  %v2753_v4 = vadd.f32 %v9652_v60, %v2603_v49  ;;  %5696 = vmatpush.bf16.msrb.mxu0 %v8015_v24 }
 0x222   :  { %v9814_v47 = vpop.f32.mrf.mxu0  ;;  %v3467_v2 = vpop.f32.mrf.mxu1 }
 0x223   :  { %v3127_v19 = vadd.f32 %v9640_v40, %v2753_v4  ;;  %v9871_v40 = vld [vmem:[%s10834_s10] ss:$0 sm:$0xff] }
 0x224   :  { %7710 = vmatmul.msk.bf16.gmra.mxu0 %vm2050_vm10, %v4320_v25  ;;  %v3615_v48 = vpop.f32.mrf.mxu2 }
 0x225   :  { %v3501_v45 = vadd.f32 %v3462_v46, %v3127_v19 }
 0x226   :  { %v2747_v8 = vpop.f32.mrf.mxu3 }
 0x227   :  { %v2766_v15 = vadd.f32 %v2747_v8, %v9611_v37  ;;  %v4313_v37 = vunpack.c.l.b16 %v4295_v11  ;;  %v3651_v63 = vadd.f32 %v3612_v57, %v3501_v45 }
 0x229   :  { %v4321_v55 = vpack.c.b16 %v4313_v37, %v4312_v52  ;;  %v3502_v37 = vadd.f32 %v3465_v14, %v9680_v50 }
 0x22a   :  { %v9855_v8 = vpop.f32.mrf.mxu1 }
 0x22b   :  { %v3652_v22 = vadd.f32 %v3615_v48, %v3502_v37  ;;  %v4654_v48 = vld [vmem:[#allocation3 + $0xc] sm:$0x1] }
 0x22c   :  { %v3617_v42 = vpop.f32.mrf.mxu2 }
 0x22e   :  { %v9824_v12 = vpop.f32.mrf.mxu3 }
 0x230   :  { %7703 = vmatmul.msk.bf16.gmra.mxu3 %vm2050_vm10, %v3947_v20  ;;  %v2755_v20 = vadd.f32 %v9677_v59, %v2605_v27 }
 0x231   :  { %v3121_v25 = vpop.f32.mrf.mxu0 }
 0x232   :  { %v9828_v33 = vadd.f32 %v3121_v25, %v2766_v15  ;;  %v4820_v15 = vsel %vm9864_vm13, 0, %v4819_v44  ;;  %v9892_v29 = vpop.f32.mrf.mxu1 }
 0x233   :  { %4821 = vst [vmem:[#allocation3 + $0x4] sm:$0x1] %v4820_v15 }
 0x234   :  { %7711 = vmatmul.msk.bf16.gmra.mxu0 %vm2050_vm10, %v4321_v55  ;;  %v9890_v55 = vpop.f32.mrf.mxu2 }
 0x236   :  { %v3984_v1 = vpop.f32.mrf.mxu3 }
 0x237   :  { %v4024_v51 = vadd.f32 %v3984_v1, %v3650_v38  ;;  %v3129_v1 = vadd.f32 %v9666_v58, %v2755_v20  ;;  %v8006_v38 = vld [vmem:[#allocation13 + $0x10] sm:$0xff] }
 0x238   :  { %5542 = vmatpush.bf16.msrb.mxu3 %v8006_v38 }
 0x239   :  { %v9852_v30 = vpop.f32.mrf.mxu0 }
 0x23c   :  { %v9903_v44 = vpop.f32.mrf.mxu2 }
 0x23e   :  { %v3986_v13 = vpop.f32.mrf.mxu3 }
 0x23f   :  { %v4025_v52 = vadd.f32 %v3986_v13, %v3651_v63  ;;  %v4649_v13 = vld [vmem:[#allocation3 + $0x8] sm:$0xf] }
 0x241   :  { %v4358_v35 = vpop.f32.mrf.mxu0 }
 0x242   :  { %v4398_v28 = vadd.f32 %v4358_v35, %v4024_v51  ;;  %v3503_v51 = vadd.f32 %v3467_v2, %v3129_v1  ;;  %v4660_v1 = vld [vmem:[#allocation3 + $0x14] sm:$0x1] }
 0x244   :  { %v4418_v16 = vmul.f32 %v9860_v56, %v4398_v28  ;;  %v3653_v2 = vadd.f32 %v3617_v42, %v3503_v51  ;;  %v9927_v51 = vpop.f32.mrf.mxu2 }
 0x246   :  { %v3989_v11 = vpop.f32.mrf.mxu3  ;;  %v4438_v21 = vadd.f32 %v9871_v40, %v4418_v16  ;;  %v2217_v16 = vadd.f32 %v9338_v7, %v9336_v39  ;;  %v4879_v39 = vld [vmem:[#allocation3] sm:$0xf]  ;;  %v3504_v7 = vadd.f32 %v9855_v8, %v9701_v36 }
 0x247   :  { %v4026_v14 = vadd.f32 %v3989_v11, %v3652_v22  ;;  %v9911_v11 = vpop.f32.mrf.mxu1  ;;  %v4917_v8 = vshll.u32 %v4879_v39, 16 }
 0x248   :  { %v4454_v25 = vmax.f32 %v4438_v21, 0.0 }
 0x249   :  { %v4360_v61 = vpop.f32.mrf.mxu0 }
 0x24a   :  { %v4470_v9 = vpack.c.bf16 %v4454_v25, %v4454_v25  ;;  %v4399_v57 = vadd.f32 %v4360_v61, %v4025_v52  ;;  %v2607_v52 = vadd.f32 %v9402_v62, %v2217_v16 }
 0x24c   :  { %v4487_v49 = vshrl.u32 %v4470_v9, 16  ;;  %v4419_v53 = vmul.f32 %v9860_v56, %v4399_v57  ;;  %v4490_v4 = vshll.u32 %v4470_v9, 16  ;;  %v2757_v9 = vadd.f32 %v9710_v26, %v2607_v52  ;;  %v4657_v57 = vld [vmem:[#allocation3 + $0x10] sm:$0xf] }
 0x24d   :  { %v4919_v52 = vrot.slane %v4917_v8, 5 }
 0x24e   :  { %v4489_v41 = vrot.slane %v4487_v49, 7  ;;  %v4439_v50 = vadd.f32 %v9871_v40, %v4419_v53  ;;  %v3991_v59 = vpop.f32.mrf.mxu3  ;;  %v3131_v26 = vadd.f32 %v9699_v31, %v2757_v9 }
 0x24f   :  { %v4027_v61 = vadd.f32 %v3991_v59, %v3653_v2  ;;  %v4914_v59 = vshrl.u32 %v4879_v39, 16  ;;  %v9932_v24 = vpop.f32.mrf.mxu1  ;;  %v4666_v2 = vld [vmem:[#allocation3 + $0x1c] sm:$0x1] }
 0x250   :  { %v4492_v58 = vor.u32 %v4490_v4, %v4489_v41  ;;  %v4493_v45 = vrot.slane %v4489_v41, 4  ;;  %v4455_v35 = vmax.f32 %v4439_v50, 0.0  ;;  %v3505_v16 = vadd.f32 %v9892_v29, %v3131_v26 }
 0x251   :  { %v4363_v28 = vpop.f32.mrf.mxu0 }
 0x252   :  { %v4650_v17 = vsel %vm9899_vm15, %v4492_v58, %v4649_v13  ;;  %v4655_v15 = vsel %vm9875_vm14, %v4493_v45, %v4654_v48  ;;  %v4471_v54 = vpack.c.bf16 %v4455_v35, %v4455_v35  ;;  %v4400_v63 = vadd.f32 %v4363_v28, %v4026_v14  ;;  %v5363_v35 = vld [vmem:[#allocation3] sm:$0xe]  ;;  %v4897_v28 = vld [vmem:[#allocation3 + $0x4] sm:$0x1] }
 0x253   :  { %4651 = vst [vmem:[#allocation3 + $0x8] sm:$0xf] %v4650_v17  ;;  %v3654_v48 = vadd.f32 %v9890_v55, %v3504_v7  ;;  %v4663_v55 = vld [vmem:[#allocation3 + $0x18] sm:$0xf] }
 0x254   :  { %4656 = vst [vmem:[#allocation3 + $0xc] sm:$0x1] %v4655_v15  ;;  %v4495_v27 = vshrl.u32 %v4471_v54, 16  ;;  %v4420_v21 = vmul.f32 %v9860_v56, %v4400_v63  ;;  %v4498_v20 = vshll.u32 %v4471_v54, 16 }
 0x256   :  { %v4497_v37 = vrot.slane %v4495_v27, 7  ;;  %v4440_v25 = vadd.f32 %v9871_v40, %v4420_v21  ;;  %v3994_v53 = vpop.f32.mrf.mxu3  ;;  %v7768_v27 = vrot.slane %v5363_v35, 9  ;;  %v4916_v21 = vrot.slane %v4914_v59, 4 }
 0x257   :  { %v4028_v63 = vadd.f32 %v3994_v53, %v3654_v48 }
 0x258   :  { %v4500_v42 = vor.u32 %v4498_v20, %v4497_v37  ;;  %v4501_v22 = vrot.slane %v4497_v37, 4  ;;  %v4456_v49 = vmax.f32 %v4440_v25, 0.0 }
 0x259   :  { %v4365_v41 = vpop.f32.mrf.mxu0 }
 0x25a   :  { %v4761_v4 = vld [vmem:[#allocation3 + $0x8] sm:$0x1]  ;;  %v4658_v62 = vsel %vm9899_vm15, %v4500_v42, %v4657_v57  ;;  %v4472_v50 = vpack.c.bf16 %v4456_v49, %v4456_v49  ;;  %v4401_v14 = vadd.f32 %v4365_v41, %v4027_v61  ;;  %v4661_v36 = vsel %vm9875_vm14, %v4501_v22, %v4660_v1  ;;  %v7726_v57 = vld [vmem:[#allocation3] sm:$0xf]  ;;  %v5364_v53 = vld [vmem:[#allocation3 + $0x8] sm:$0xe] }
 0x25b   :  { %v4762_v38 = vsel %vm9875_vm14, 0, %v4761_v4  ;;  %v4822_v13 = vld [vmem:[#allocation3 + $0xc] sm:$0x1]  ;;  %4659 = vst [vmem:[#allocation3 + $0x10] sm:$0xf] %v4658_v62  ;;  %v5416_v61 = vrot.slane %v4897_v28, 5  ;;  %v3655_v41 = vadd.f32 %v9903_v44, %v3505_v16 }
 0x25c   :  { %4763 = vst [vmem:[#allocation3 + $0x8] sm:$0x1] %v4762_v38  ;;  %v4823_v58 = vsel %vm9864_vm13, 0, %v4822_v13  ;;  %v4503_v45 = vshrl.u32 %v4472_v50, 16  ;;  %v4421_v31 = vmul.f32 %v9860_v56, %v4401_v14  ;;  %v4506_v15 = vshll.u32 %v4472_v50, 16 }
 0x25d   :  { %4824 = vst [vmem:[#allocation3 + $0xc] sm:$0x1] %v4823_v58  ;;  %v4920_v50 = vor.u32 %v4919_v52, %v4916_v21  ;;  %v4923_v14 = vshll.u32 %v4897_v28, 16  ;;  %v4669_v44 = vld [vmem:[#allocation3 + $0x20] sm:$0xf]  ;;  %v7769_v58 = vrot.slane %v5364_v53, 9  ;;  %v9963_v52 = vpop.f32.mrf.mxu1 }
 0x25e   :  { %4662 = vst [vmem:[#allocation3 + $0x14] sm:$0x1] %v4661_v36  ;;  %v4505_v17 = vrot.slane %v4503_v45, 7  ;;  %v4441_v54 = vadd.f32 %v9871_v40, %v4421_v31  ;;  %v3996_v49 = vpop.f32.mrf.mxu3  ;;  %v5417_v36 = vsel %vm9938_vm3, %v7768_v27, %v5416_v61  ;;  %v9955_v31 = vpop.f32.mrf.mxu2 }
 0x25f   :  { %v4029_v48 = vadd.f32 %v3996_v49, %v3655_v41  ;;  %v5481_v16 = vunpack.c.l.b16 %v5417_v36  ;;  %v4921_v27 = vrot.slane %v4920_v50, 4  ;;  %v4925_v21 = vrot.slane %v4923_v14, 5  ;;  %v10871_v41 = vld [vmem:[#allocation24_spill] sm:$0xff] }
 0x260   :  { %v4508_v37 = vor.u32 %v4506_v15, %v4505_v17  ;;  %v4509_v20 = vrot.slane %v4505_v17, 4  ;;  %v4457_v25 = vmax.f32 %v4441_v54, 0.0  ;;  %v4672_v15 = vld [vmem:[#allocation3 + $0x24] sm:$0x1]  ;;  %v8017_v54 = vld [vmem:[#allocation13 + $0x28] sm:$0xff] }
 0x261   :  { %v4368_v9 = vpop.f32.mrf.mxu0  ;;  %6308 = vmatpush.bf16.msrb.mxu2 %v8017_v54 }
 0x262   :  { %v4764_v7 = vld [vmem:[#allocation3 + $0x10] sm:$0x1]  ;;  %v4664_v29 = vsel %vm9899_vm15, %v4508_v37, %v4663_v55  ;;  %v4667_v42 = vsel %vm9875_vm14, %v4509_v20, %v4666_v2  ;;  %v4473_v22 = vpack.c.bf16 %v4457_v25, %v4457_v25  ;;  %v4402_v1 = vadd.f32 %v4368_v9, %v4028_v63 }
 0x263   :  { %v4765_v4 = vsel %vm9875_vm14, 0, %v4764_v7  ;;  %4665 = vst [vmem:[#allocation3 + $0x18] sm:$0xf] %v4664_v29  ;;  %v7996_v62 = vld [vmem:[#allocation3 + $0x4] sm:$0xf0] }
 0x264   :  { %4766 = vst [vmem:[#allocation3 + $0x10] sm:$0x1] %v4765_v4  ;;  %v4511_v59 = vshrl.u32 %v4473_v22, 16  ;;  %v4422_v26 = vmul.f32 %v9860_v56, %v4402_v1  ;;  %v7727_v38 = vor.u32 %v7996_v62, %v7726_v57  ;;  %v9950_v13 = vld [vmem:[#allocation3 + $0xc] sm:$0x1]  ;;  %v4514_v17 = vshll.u32 %v4473_v22, 16 }
 0x265   :  { %v4825_v8 = vld [vmem:[#allocation3 + $0x14] sm:$0x1]  ;;  %4668 = vst [vmem:[#allocation3 + $0x1c] sm:$0x1] %v4667_v42  ;;  %v5420_v45 = vrot.slane %v9950_v13, 5  ;;  %v2222_v4 = vadd.f32 %v10871_v41, %v9447_v18 }
 0x266   :  { %v4826_v35 = vsel %vm9864_vm13, 0, %v4825_v8  ;;  %v4513_v28 = vrot.slane %v4511_v59, 7  ;;  %v4442_v55 = vadd.f32 %v9871_v40, %v4422_v26  ;;  %7760 = vmatmul.msk.bf16.vlgmr.msra.gmra.mxu2 %vm5170_vm2, %v7727_v38  ;;  %v4880_v2 = vld [vmem:[#allocation3 + $0x8] sm:$0xf] }
 0x267   :  { %4827 = vst [vmem:[#allocation3 + $0x14] sm:$0x1] %v4826_v35  ;;  %v5421_v63 = vsel %vm9938_vm3, %v7769_v58, %v5420_v45  ;;  %v4928_v57 = vshrl.u32 %v4880_v2, 16  ;;  %v4931_v7 = vshll.u32 %v4880_v2, 16  ;;  %v7798_v53 = vld [vmem:[#allocation3 + $0x8] sm:$0xf] }
 0x268   :  { %v4516_v37 = vor.u32 %v4514_v17, %v4513_v28  ;;  %v4517_v20 = vrot.slane %v4513_v28, 4  ;;  %v4458_v25 = vmax.f32 %v4442_v55, 0.0  ;;  %v5482_v61 = vunpack.c.l.b16 %v5421_v63  ;;  %v10872_v58 = vld [vmem:[#allocation26_spill] sm:$0xff]  ;;  %v4675_v35 = vld [vmem:[#allocation3 + $0x28] sm:$0xf] }
 0x269   :  { %v4370_v9 = vpop.f32.mrf.mxu0  ;;  %v4930_v59 = vrot.slane %v4928_v57, 4  ;;  %v2609_v45 = vadd.f32 %v10872_v58, %v2222_v4  ;;  %v4933_v28 = vrot.slane %v4931_v7, 5  ;;  %v4937_v17 = vshll.u32 %v9950_v13, 16  ;;  %v10874_v55 = vld [vmem:[#allocation28_spill] sm:$0xff] }
 0x26a   :  { %v4767_v29 = vld [vmem:[#allocation3 + $0x18] sm:$0x1]  ;;  %v4670_v42 = vsel %vm9899_vm15, %v4516_v37, %v4669_v44  ;;  %v4673_v22 = vsel %vm9875_vm14, %v4517_v20, %v4672_v15  ;;  %v4474_v1 = vpack.c.bf16 %v4458_v25, %v4458_v25  ;;  %v4403_v49 = vadd.f32 %v4370_v9, %v4029_v48  ;;  %v5365_v48 = vld [vmem:[#allocation3 + $0x10] sm:$0xe]  ;;  %v10873_v15 = vld [vmem:[#allocation27_spill] sm:$0xff] }
 0x26b   :  { %v4768_v62 = vsel %vm9875_vm14, 0, %v4767_v29  ;;  %4671 = vst [vmem:[#allocation3 + $0x20] sm:$0xf] %v4670_v42  ;;  %v5497_v50 = vpack.c.b16 %v5482_v61, %v5481_v16  ;;  %v8007_v14 = vld [vmem:[#allocation3 + $0xc] sm:$0xf0]  ;;  %v4926_v44 = vsel %vm8456_vm9, %v4921_v27, %v4925_v21  ;;  %v2227_v54 = vadd.f32 %v10874_v55, %v10873_v15  ;;  %v10876_v20 = vld [vmem:[#allocation34_spill] sm:$0xff]  ;;  %v9990_v29 = vpop.f32.mrf.mxu2 }
 0x26c   :  { %4769 = vst [vmem:[#allocation3 + $0x18] sm:$0x1] %v4768_v62  ;;  %v4828_v26 = vld [vmem:[#allocation3 + $0x1c] sm:$0x1]  ;;  %v4519_v38 = vshrl.u32 %v4474_v1, 16  ;;  %v4423_v36 = vmul.f32 %v9860_v56, %v4403_v49  ;;  %v7799_v8 = vor.u32 %v8007_v14, %v7798_v53  ;;  %v4522_v16 = vshll.u32 %v4474_v1, 16 }
 0x26d   :  { %v4829_v18 = vsel %vm9864_vm13, 0, %v4828_v26  ;;  %4674 = vst [vmem:[#allocation3 + $0x24] sm:$0x1] %v4673_v22  ;;  %7788 = vmatmul.msk.bf16.vlgmr.msrb.gmra.mxu3 %vm5170_vm2, %v5497_v50  ;;  %v10875_v21 = vld [vmem:[#allocation33_spill] sm:$0xff]  ;;  %v2759_v25 = vadd.f32 %v10876_v20, %v2609_v45  ;;  %v4934_v9 = vor.u32 %v4933_v28, %v4930_v59  ;;  %v5140_v13 = vunpack.c.l.b16 %v4926_v44  ;;  %v5366_v57 = vld [vmem:[#allocation3 + $0x18] sm:$0xe] }
 0x26e   :  { %4830 = vst [vmem:[#allocation3 + $0x1c] sm:$0x1] %v4829_v18  ;;  %v4521_v63 = vrot.slane %v4519_v38, 7  ;;  %v4443_v2 = vadd.f32 %v9871_v40, %v4423_v36  ;;  %7832 = vmatmul.msk.bf16.vlgmr.msrb.gmra.mxu0 %vm5170_vm2, %v7799_v8  ;;  %v9985_v27 = vld [vmem:[#allocation3 + $0x14] sm:$0x1]  ;;  %v3506_v37 = vadd.f32 %v9911_v11, %v10875_v21  ;;  %v4939_v4 = vrot.slane %v4937_v17, 5  ;;  %v9993_v11 = vpop.f32.mrf.mxu1 }
 0x26f   :  { %v4678_v61 = vld [vmem:[#allocation3 + $0x2c] sm:$0x1]  ;;  %v4881_v7 = vld [vmem:[#allocation3 + $0x10] sm:$0xf]  ;;  %v4935_v41 = vrot.slane %v4934_v9, 4  ;;  %v7770_v62 = vrot.slane %v5365_v48, 9 }
 0x270   :  { %v4524_v42 = vor.u32 %v4522_v16, %v4521_v63  ;;  %v4525_v22 = vrot.slane %v4521_v63, 4  ;;  %v4459_v1 = vmax.f32 %v4443_v2, 0.0  ;;  %v4942_v49 = vshrl.u32 %v4881_v7, 16  ;;  %v7730_v36 = vld [vmem:[#allocation3 + $0x10] sm:$0xf]  ;;  %v10877_v44 = vld [vmem:[#allocation35_spill] sm:$0xff] }
 0x271   :  { %v4373_v53 = vpop.f32.mrf.mxu0  ;;  %v5424_v50 = vrot.slane %v9985_v27, 5  ;;  %v7771_v8 = vrot.slane %v5366_v57, 9  ;;  %v3133_v58 = vadd.f32 %v10877_v44, %v2759_v25  ;;  %v4940_v48 = vsel %vm8456_vm9, %v4935_v41, %v4939_v4  ;;  %v10878_v16 = vld [vmem:[#allocation29_spill] sm:$0xff] }
 0x272   :  { %v4770_v14 = vld [vmem:[#allocation3 + $0x20] sm:$0x1]  ;;  %v4676_v59 = vsel %vm9899_vm15, %v4524_v42, %v4675_v35  ;;  %v4679_v26 = vsel %vm9875_vm14, %v4525_v22, %v4678_v61  ;;  %v4475_v38 = vpack.c.bf16 %v4459_v1, %v4459_v1  ;;  %v4945_v28 = vshll.u32 %v4881_v7, 16  ;;  %v4681_v25 = vld [vmem:[#allocation3 + $0x30] sm:$0xf]  ;;  %v8016_v61 = vld [vmem:[#allocation13 + $0x20] sm:$0xff] }
 0x273   :  { %v4771_v45 = vsel %vm9875_vm14, 0, %v4770_v14  ;;  %4677 = vst [vmem:[#allocation3 + $0x28] sm:$0xf] %v4676_v59  ;;  %v7997_v18 = vld [vmem:[#allocation3 + $0x14] sm:$0xf0]  ;;  %v5141_v15 = vunpack.c.l.b16 %v4940_v48  ;;  %v4944_v63 = vrot.slane %v4942_v49, 4  ;;  %v2611_v2 = vadd.f32 %v10878_v16, %v2227_v54  ;;  %v3999_v41 = vpop.f32.mrf.mxu3  ;;  %6074 = vmatpush.bf16.msrb.mxu1 %v8016_v61 }
 0x274   :  { %4772 = vst [vmem:[#allocation3 + $0x20] sm:$0x1] %v4771_v45  ;;  %v4831_v17 = vld [vmem:[#allocation3 + $0x24] sm:$0x1]  ;;  %v4527_v35 = vshrl.u32 %v4475_v38, 16  ;;  %v7731_v55 = vor.u32 %v7997_v18, %v7730_v36  ;;  %v3656_v21 = vadd.f32 %v9927_v51, %v3506_v37  ;;  %v5425_v57 = vsel %vm9938_vm3, %v7770_v62, %v5424_v50  ;;  %v10879_v37 = vld [vmem:[#allocation37_spill] sm:$0xff]  ;;  %v10020_v45 = vpop.f32.mrf.mxu2 }
 0x275   :  { %v4832_v20 = vsel %vm9864_vm13, 0, %v4831_v17  ;;  %4680 = vst [vmem:[#allocation3 + $0x2c] sm:$0x1] %v4679_v26  ;;  %v10008_v9 = vld [vmem:[#allocation3 + $0x1c] sm:$0x1]  ;;  %v4530_v42 = vshll.u32 %v4475_v38, 16  ;;  %v5156_v22 = vpack.c.b16 %v5141_v15, %v5140_v13  ;;  %v3507_v51 = vadd.f32 %v9932_v24, %v3133_v58 }
 0x276   :  { %4833 = vst [vmem:[#allocation3 + $0x24] sm:$0x1] %v4832_v20  ;;  %v4529_v7 = vrot.slane %v4527_v35, 7  ;;  %7761 = vmatmul.msk.bf16.gmra.mxu2 %vm5170_vm2, %v7731_v55  ;;  %v5428_v54 = vrot.slane %v10008_v9, 5  ;;  %v2761_v1 = vadd.f32 %v10879_v37, %v2611_v2  ;;  %v4684_v49 = vld [vmem:[#allocation3 + $0x34] sm:$0x1]  ;;  %v4030_v26 = vadd.f32 %v3999_v41, %v3656_v21  ;;  %v10031_v20 = vpop.f32.mrf.mxu1 }
 0x277   :  { %v4882_v4 = vld [vmem:[#allocation3 + $0x18] sm:$0xf]  ;;  %v4947_v14 = vrot.slane %v4945_v28, 5  ;;  %v4951_v59 = vshll.u32 %v9985_v27, 16  ;;  %7716 = vmatmul.msk.bf16.vlgmr.msra.gmra.mxu1 %vm5170_vm2, %v5156_v22  ;;  %v5483_v36 = vunpack.c.l.b16 %v5425_v57  ;;  %v10880_v15 = vld [vmem:[#allocation36_spill] sm:$0xff]  ;;  %v10883_v41 = vld [vmem:[#allocation23_spill] sm:$0xff] }
 0x278   :  { %v4532_v62 = vor.u32 %v4530_v42, %v4529_v7  ;;  %v4533_v50 = vrot.slane %v4529_v7, 4  ;;  %v5429_v13 = vsel %vm9938_vm3, %v7771_v8, %v5428_v54  ;;  %v4956_v58 = vshrl.u32 %v4882_v4, 16  ;;  %v7802_v17 = vld [vmem:[#allocation3 + $0x18] sm:$0xf]  ;;  %v10881_v7 = vld [vmem:[#allocation31_spill] sm:$0xff] }
 0x279   :  { %v4375_v38 = vpop.f32.mrf.mxu0  ;;  %v5484_v24 = vunpack.c.l.b16 %v5429_v13  ;;  %v4948_v44 = vor.u32 %v4947_v14, %v4944_v63  ;;  %v4404_v28 = vadd.f32 %v4373_v53, %v4030_v26  ;;  %v4959_v35 = vshll.u32 %v4882_v4, 16 }
 0x27a   :  { %v4773_v48 = vld [vmem:[#allocation3 + $0x28] sm:$0x1]  ;;  %v4682_v18 = vsel %vm9899_vm15, %v4532_v62, %v4681_v25  ;;  %v4685_v27 = vsel %vm9875_vm14, %v4533_v50, %v4684_v49  ;;  %v3508_v8 = vadd.f32 %v9963_v52, %v10880_v15  ;;  %v3135_v21 = vadd.f32 %v9749_v43, %v2761_v1  ;;  %v10882_v49 = vld [vmem:[#allocation21_spill] sm:$0xff] }
 0x27b   :  { %v4774_v55 = vsel %vm9875_vm14, 0, %v4773_v48  ;;  %4683 = vst [vmem:[#allocation3 + $0x30] sm:$0xf] %v4682_v18  ;;  %v5498_v63 = vpack.c.b16 %v5484_v24, %v5483_v36  ;;  %v8008_v16 = vld [vmem:[#allocation3 + $0x1c] sm:$0xf0]  ;;  %v4949_v2 = vrot.slane %v4948_v44, 4  ;;  %v4424_v53 = vmul.f32 %v9860_v56, %v4404_v28 }
 0x27c   :  { %4775 = vst [vmem:[#allocation3 + $0x28] sm:$0x1] %v4774_v55  ;;  %v4834_v25 = vld [vmem:[#allocation3 + $0x2c] sm:$0x1]  ;;  %v7803_v61 = vor.u32 %v8008_v16, %v7802_v17  ;;  %v4953_v57 = vrot.slane %v4951_v59, 5  ;;  %v2232_v52 = vadd.f32 %v9788_v23, %v10881_v7  ;;  %v4958_v22 = vrot.slane %v4956_v58, 4  ;;  %v4001_v59 = vpop.f32.mrf.mxu3 }
 0x27d   :  { %v4835_v42 = vsel %vm9864_vm13, 0, %v4834_v25  ;;  %4686 = vst [vmem:[#allocation3 + $0x34] sm:$0x1] %v4685_v27  ;;  %7789 = vmatmul.msk.bf16.gmra.mxu3 %vm5170_vm2, %v5498_v63  ;;  %v4965_v43 = vshll.u32 %v10008_v9, 16  ;;  %v3657_v54 = vadd.f32 %v9955_v31, %v3507_v51  ;;  %v4444_v37 = vadd.f32 %v9871_v40, %v4424_v53  ;;  %v10053_v31 = vld [vmem:[#allocation3 + $0x24] sm:$0x1] }
 0x27e   :  { %4836 = vst [vmem:[#allocation3 + $0x2c] sm:$0x1] %v4835_v42  ;;  %7833 = vmatmul.msk.bf16.gmra.mxu0 %vm5170_vm2, %v7803_v61  ;;  %v4954_v1 = vsel %vm8456_vm9, %v4949_v2, %v4953_v57  ;;  %v4961_v23 = vrot.slane %v4959_v35, 5  ;;  %v10047_v4 = vadd.f32 %v10883_v41, %v10882_v49  ;;  %v10050_v14 = vadd.f32 %v9801_v5, %v2232_v52  ;;  %v4883_v51 = vld [vmem:[#allocation3 + $0x20] sm:$0xf]  ;;  %v10061_v2 = vpop.f32.mrf.mxu2 }
 0x27f   :  { %v3658_v9 = vadd.f32 %v9990_v29, %v3508_v8  ;;  %v10056_v62 = vadd.f32 %v9993_v11, %v3135_v21  ;;  %v4460_v50 = vmax.f32 %v4444_v37, 0.0  ;;  %v4031_v26 = vadd.f32 %v4001_v59, %v3657_v54  ;;  %v5367_v36 = vld [vmem:[#allocation3 + $0x20] sm:$0xe]  ;;  %v5368_v24 = vld [vmem:[#allocation3 + $0x28] sm:$0xe] }
 0x280   :  { %v4962_v13 = vor.u32 %v4961_v23, %v4958_v22  ;;  %v4967_v58 = vrot.slane %v4965_v43, 5  ;;  %v5142_v48 = vunpack.c.l.b16 %v4954_v1  ;;  %v4970_v18 = vshrl.u32 %v4883_v51, 16  ;;  %v7734_v35 = vld [vmem:[#allocation3 + $0x20] sm:$0xf]  ;;  %v4687_v7 = vld [vmem:[#allocation3 + $0x38] sm:$0xf]  ;;  %v10069_v43 = vpop.f32.mrf.mxu1 }
 0x281   :  { %v4378_v44 = vpop.f32.mrf.mxu0  ;;  %v4973_v5 = vshll.u32 %v4883_v51, 16  ;;  %v4476_v28 = vpack.c.bf16 %v4460_v50, %v4460_v50  ;;  %v4405_v29 = vadd.f32 %v4375_v38, %v4031_v26  ;;  %v5432_v15 = vrot.slane %v10053_v31, 5  ;;  %v4690_v41 = vld [vmem:[#allocation3 + $0x3c] sm:$0x1] }
 0x282   :  { %v4776_v27 = vld [vmem:[#allocation3 + $0x30] sm:$0x1]  ;;  %v4963_v17 = vrot.slane %v4962_v13, 4  ;;  %v7772_v55 = vrot.slane %v5367_v36, 9  ;;  %v7773_v63 = vrot.slane %v5368_v24, 9  ;;  %v4972_v16 = vrot.slane %v4970_v18, 4 }
 0x283   :  { %v4777_v11 = vsel %vm9875_vm14, 0, %v4776_v27  ;;  %v7998_v8 = vld [vmem:[#allocation3 + $0x24] sm:$0xf0]  ;;  %v4535_v25 = vshrl.u32 %v4476_v28, 16  ;;  %v4425_v53 = vmul.f32 %v9860_v56, %v4405_v29  ;;  %v4979_v61 = vshll.u32 %v10053_v31, 16 }
 0x284   :  { %4778 = vst [vmem:[#allocation3 + $0x30] sm:$0x1] %v4777_v11  ;;  %v4837_v21 = vld [vmem:[#allocation3 + $0x34] sm:$0x1]  ;;  %v4968_v38 = vsel %vm8456_vm9, %v4963_v17, %v4967_v58  ;;  %v7735_v42 = vor.u32 %v7998_v8, %v7734_v35  ;;  %v4975_v22 = vrot.slane %v4973_v5, 5  ;;  %v4538_v37 = vshll.u32 %v4476_v28, 16  ;;  %v4004_v59 = vpop.f32.mrf.mxu3 }
 0x285   :  { %v4838_v57 = vsel %vm9864_vm13, 0, %v4837_v21  ;;  %v5143_v52 = vunpack.c.l.b16 %v4968_v38  ;;  %v4537_v54 = vrot.slane %v4535_v25, 7  ;;  %v4445_v1 = vadd.f32 %v9871_v40, %v4425_v53  ;;  %v4902_v23 = vld [vmem:[#allocation3 + $0x2c] sm:$0x1]  ;;  %v4884_v50 = vld [vmem:[#allocation3 + $0x28] sm:$0xf] }
 0x286   :  { %4839 = vst [vmem:[#allocation3 + $0x34] sm:$0x1] %v4838_v57  ;;  %v5433_v49 = vsel %vm9938_vm3, %v7772_v55, %v5432_v15  ;;  %7762 = vmatmul.msk.bf16.gmra.mxu2 %vm5170_vm2, %v7735_v42  ;;  %v5436_v51 = vrot.slane %v4902_v23, 5  ;;  %v4976_v26 = vor.u32 %v4975_v22, %v4972_v16  ;;  %v4993_v13 = vshll.u32 %v4902_v23, 16  ;;  %v7806_v8 = vld [vmem:[#allocation3 + $0x28] sm:$0xf]  ;;  %v10087_v22 = vpop.f32.mrf.mxu2 }
 0x287   :  { %v5157_v31 = vpack.c.b16 %v5143_v52, %v5142_v48  ;;  %v4540_v36 = vor.u32 %v4538_v37, %v4537_v54  ;;  %v4541_v24 = vrot.slane %v4537_v54, 4  ;;  %v4461_v58 = vmax.f32 %v4445_v1, 0.0 }
 0x288   :  { %v4032_v18 = vadd.f32 %v4004_v59, %v3658_v9  ;;  %v5437_v27 = vsel %vm9938_vm3, %v7773_v63, %v5436_v51  ;;  %v4977_v28 = vrot.slane %v4976_v26, 4  ;;  %v4984_v29 = vshrl.u32 %v4884_v50, 16  ;;  %v10096_v59 = vpop.f32.mrf.mxu1 }
 0x289   :  { %v4380_v5 = vpop.f32.mrf.mxu0  ;;  %7717 = vmatmul.msk.bf16.gmra.mxu1 %vm5170_vm2, %v5157_v31  ;;  %v4987_v17 = vshll.u32 %v4884_v50, 16  ;;  %v4688_v48 = vsel %vm9899_vm15, %v4540_v36, %v4687_v7  ;;  %v4691_v35 = vsel %vm9875_vm14, %v4541_v24, %v4690_v41  ;;  %v4477_v15 = vpack.c.bf16 %v4461_v58, %v4461_v58  ;;  %v4696_v50 = vld [vmem:[#allocation3 + $0x44] sm:$0x1] }
 0x28a   :  { %v4406_v11 = vadd.f32 %v4378_v44, %v4032_v18  ;;  %4689 = vst [vmem:[#allocation3 + $0x38] sm:$0xf] %v4688_v48  ;;  %v5485_v9 = vunpack.c.l.b16 %v5433_v49  ;;  %v5486_v55 = vunpack.c.l.b16 %v5437_v27  ;;  %v4986_v21 = vrot.slane %v4984_v29, 4 }
 0x28b   :  { %v8009_v16 = vld [vmem:[#allocation3 + $0x2c] sm:$0xf0]  ;;  %v4989_v25 = vrot.slane %v4987_v17, 5  ;;  %4692 = vst [vmem:[#allocation3 + $0x3c] sm:$0x1] %v4691_v35  ;;  %v4543_v63 = vshrl.u32 %v4477_v15, 16  ;;  %v3659_v7 = vadd.f32 %v10020_v45, %v10056_v62  ;;  %v2763_v52 = vadd.f32 %v9763_v34, %v10050_v14 }
 0x28c   :  { %v4426_v53 = vmul.f32 %v9860_v56, %v4406_v11  ;;  %v7807_v38 = vor.u32 %v8009_v16, %v7806_v8  ;;  %v4981_v57 = vrot.slane %v4979_v61, 5  ;;  %v5499_v44 = vpack.c.b16 %v5486_v55, %v5485_v9  ;;  %v10884_v61 = vld [vmem:[#allocation30_spill] sm:$0xff]  ;;  %v4693_v45 = vld [vmem:[#allocation3 + $0x40] sm:$0xf]  ;;  %v4006_v62 = vpop.f32.mrf.mxu3  ;;  %v4885_v41 = vld [vmem:[#allocation3 + $0x30] sm:$0xf] }
 0x28d   :  { %v4990_v42 = vor.u32 %v4989_v25, %v4986_v21  ;;  %v4545_v54 = vrot.slane %v4543_v63, 7  ;;  %v4546_v37 = vshll.u32 %v4477_v15, 16  ;;  %v2615_v49 = vadd.f32 %v10884_v61, %v10047_v4  ;;  %v4849_v15 = vld [vmem:[#allocation3 + $0x54] sm:$0x1]  ;;  %v10886_v55 = vld [vmem:[#allocation25_spill] sm:$0xff] }
 0x28e   :  { %v4446_v1 = vadd.f32 %v9871_v40, %v4426_v53  ;;  %7834 = vmatmul.msk.bf16.gmra.mxu0 %vm5170_vm2, %v7807_v38  ;;  %v4982_v23 = vsel %vm8456_vm9, %v4977_v28, %v4981_v57  ;;  %7790 = vmatmul.msk.bf16.gmra.mxu3 %vm5170_vm2, %v5499_v44  ;;  %v4995_v14 = vrot.slane %v4993_v13, 5  ;;  %v4033_v36 = vadd.f32 %v4006_v62, %v3659_v7  ;;  %v4788_v28 = vld [vmem:[#allocation3 + $0x50] sm:$0x1]  ;;  %v10885_v9 = vld [vmem:[#allocation22_spill] sm:$0xff] }
 0x28f   :  { %v4991_v34 = vrot.slane %v4990_v42, 4  ;;  %v4548_v31 = vor.u32 %v4546_v37, %v4545_v54  ;;  %v4549_v51 = vrot.slane %v4545_v54, 4  ;;  %v3510_v24 = vadd.f32 %v10031_v20, %v9765_v3  ;;  %v10114_v63 = vld [vmem:[#allocation3 + $0x34] sm:$0x1]  ;;  %v4699_v7 = vld [vmem:[#allocation3 + $0x58] sm:$0xf] }
 0x290   :  { %v4462_v26 = vmax.f32 %v4446_v1, 0.0  ;;  %v3137_v58 = vadd.f32 %v9786_v0, %v2763_v52  ;;  %v5144_v27 = vunpack.c.l.b16 %v4982_v23  ;;  %v4407_v48 = vadd.f32 %v4380_v5, %v4033_v36  ;;  %v4702_v52 = vld [vmem:[#allocation3 + $0x5c] sm:$0x1]  ;;  %v5369_v42 = vld [vmem:[#allocation3 + $0x30] sm:$0xe] }
 0x291   :  { %v4383_v4 = vpop.f32.mrf.mxu0  ;;  %v4996_v18 = vsel %vm8456_vm9, %v4991_v34, %v4995_v14  ;;  %v4779_v13 = vld [vmem:[#allocation3 + $0x38] sm:$0x1]  ;;  %v4694_v29 = vsel %vm9899_vm15, %v4548_v31, %v4693_v45  ;;  %v4998_v35 = vshrl.u32 %v4885_v41, 16  ;;  %v4697_v0 = vsel %vm9875_vm14, %v4549_v51, %v4696_v50  ;;  %v10887_v31 = vld [vmem:[#allocation32_spill] sm:$0xff]  ;;  %v5370_v36 = vld [vmem:[#allocation3 + $0x38] sm:$0xe] }
 0x292   :  { %v4478_v17 = vpack.c.bf16 %v4462_v26, %v4462_v26  ;;  %v4780_v11 = vsel %vm9875_vm14, 0, %v4779_v13  ;;  %v4840_v3 = vld [vmem:[#allocation3 + $0x3c] sm:$0x1]  ;;  %4695 = vst [vmem:[#allocation3 + $0x40] sm:$0xf] %v4694_v29  ;;  %v5145_v20 = vunpack.c.l.b16 %v4996_v18  ;;  %v5001_v8 = vshll.u32 %v4885_v41, 16 }
 0x293   :  { %v2242_v16 = vadd.f32 %v10886_v55, %v10885_v9  ;;  %4781 = vst [vmem:[#allocation3 + $0x38] sm:$0x1] %v4780_v11  ;;  %v4841_v21 = vsel %vm9864_vm13, 0, %v4840_v3  ;;  %v4427_v25 = vmul.f32 %v9860_v56, %v4407_v48  ;;  %v3660_v53 = vadd.f32 %v10061_v2, %v3510_v24  ;;  %v10136_v48 = vld [vmem:[#allocation3 + $0x50] sm:$0xe] }
 0x294   :  { %v4551_v5 = vshrl.u32 %v4478_v17, 16  ;;  %v3511_v38 = vadd.f32 %v10069_v43, %v3137_v58  ;;  %v2765_v57 = vadd.f32 %v9809_v10, %v2615_v49  ;;  %4842 = vst [vmem:[#allocation3 + $0x3c] sm:$0x1] %v4841_v21  ;;  %v5158_v44 = vpack.c.b16 %v5145_v20, %v5144_v27  ;;  %v4009_v61 = vpop.f32.mrf.mxu3  ;;  %v10125_v49 = vpop.f32.mrf.mxu2  ;;  %v4705_v21 = vld [vmem:[#allocation3 + $0x60] sm:$0xf] }
 0x295   :  { %4698 = vst [vmem:[#allocation3 + $0x44] sm:$0x1] %v4697_v0  ;;  %v4554_v37 = vshll.u32 %v4478_v17, 16  ;;  %v4447_v1 = vadd.f32 %v9871_v40, %v4427_v25  ;;  %v4789_v23 = vsel %vm9875_vm14, 0, %v4788_v28  ;;  %v5440_v2 = vrot.slane %v10114_v63, 5  ;;  %v3492_v58 = vpop.f32.mrf.mxu1 }
 0x296   :  { %v4553_v54 = vrot.slane %v4551_v5, 7  ;;  %v5000_v45 = vrot.slane %v4998_v35, 4  ;;  %v5003_v43 = vrot.slane %v5001_v8, 5  ;;  %4790 = vst [vmem:[#allocation3 + $0x50] sm:$0x1] %v4789_v23  ;;  %v4850_v10 = vsel %vm9864_vm13, 0, %v4849_v15 }
 0x297   :  { %v4463_v14 = vmax.f32 %v4447_v1, 0.0  ;;  %v4034_v41 = vadd.f32 %v4009_v61, %v3660_v53  ;;  %4851 = vst [vmem:[#allocation3 + $0x54] sm:$0x1] %v4850_v10  ;;  %v10128_v51 = vadd.f32 %v10887_v31, %v2242_v16  ;;  %v3139_v50 = vadd.f32 %v9814_v47, %v2765_v57  ;;  %v7738_v17 = vld [vmem:[#allocation3 + $0x30] sm:$0xf] }
 0x298   :  { %v4556_v62 = vor.u32 %v4554_v37, %v4553_v54  ;;  %v4557_v34 = vrot.slane %v4553_v54, 4  ;;  %v7774_v24 = vrot.slane %v5369_v42, 9  ;;  %v3661_v47 = vadd.f32 %v10087_v22, %v3511_v38  ;;  %v4708_v57 = vld [vmem:[#allocation3 + $0x64] sm:$0x1] }
 0x299   :  { %v4385_v26 = vpop.f32.mrf.mxu0  ;;  %7718 = vmatmul.msk.bf16.gmra.mxu1 %vm5170_vm2, %v5158_v44  ;;  %v4782_v18 = vld [vmem:[#allocation3 + $0x40] sm:$0x1]  ;;  %v4479_v13 = vpack.c.bf16 %v4463_v14, %v4463_v14  ;;  %v4408_v29 = vadd.f32 %v4383_v4, %v4034_v41  ;;  %v5004_v3 = vor.u32 %v5003_v43, %v5000_v45  ;;  %v7775_v9 = vrot.slane %v5370_v36, 9 }
 0x29a   :  { %v4700_v27 = vsel %vm9899_vm15, %v4556_v62, %v4699_v7  ;;  %v4703_v28 = vsel %vm9875_vm14, %v4557_v34, %v4702_v52  ;;  %v4783_v35 = vsel %vm9875_vm14, 0, %v4782_v18  ;;  %v7999_v15 = vld [vmem:[#allocation3 + $0x34] sm:$0xf0]  ;;  %v5441_v11 = vsel %vm9938_vm3, %v7774_v24, %v5440_v2 }
 0x29b   :  { %4701 = vst [vmem:[#allocation3 + $0x58] sm:$0xf] %v4700_v27  ;;  %v4559_v0 = vshrl.u32 %v4479_v13, 16  ;;  %v4428_v20 = vmul.f32 %v9860_v56, %v4408_v29  ;;  %v7739_v8 = vor.u32 %v7999_v15, %v7738_v17  ;;  %v10144_v4 = vld [vmem:[#allocation3 + $0x3c] sm:$0x1]  ;;  %v3512_v22 = vadd.f32 %v10096_v59, %v9807_v32 }
 0x29c   :  { %4784 = vst [vmem:[#allocation3 + $0x40] sm:$0x1] %v4783_v35  ;;  %v3513_v55 = vadd.f32 %v3492_v58, %v3139_v50  ;;  %v4843_v16 = vld [vmem:[#allocation3 + $0x44] sm:$0x1]  ;;  %v5444_v5 = vrot.slane %v10144_v4, 5  ;;  %v5007_v25 = vshll.u32 %v10114_v63, 16  ;;  %v4011_v32 = vpop.f32.mrf.mxu3  ;;  %v5487_v52 = vunpack.c.l.b16 %v5441_v11  ;;  %v3642_v43 = vpop.f32.mrf.mxu2 }
 0x29d   :  { %4704 = vst [vmem:[#allocation3 + $0x5c] sm:$0x1] %v4703_v28  ;;  %v4844_v53 = vsel %vm9864_vm13, 0, %v4843_v16  ;;  %v4561_v38 = vrot.slane %v4559_v0, 7  ;;  %v4562_v56 = vshll.u32 %v4479_v13, 16  ;;  %v4448_v7 = vadd.f32 %v9871_v40, %v4428_v20  ;;  %7763 = vmatmul.msk.bf16.gmra.mxu2 %vm5170_vm2, %v7739_v8 }
 0x29e   :  { %4845 = vst [vmem:[#allocation3 + $0x44] sm:$0x1] %v4844_v53  ;;  %v5445_v59 = vsel %vm9938_vm3, %v7775_v9, %v5444_v5  ;;  %v4886_v44 = vld [vmem:[#allocation3 + $0x38] sm:$0xf]  ;;  %v10156_v42 = vrot.slane %v5004_v3, 4  ;;  %v7776_v63 = vrot.slane %v10136_v48, 9  ;;  %v4035_v23 = vadd.f32 %v4011_v32, %v3661_v47 }
 0x29f   :  { %v4564_v54 = vor.u32 %v4562_v56, %v4561_v38  ;;  %v4565_v37 = vrot.slane %v4561_v38, 4  ;;  %v4464_v1 = vmax.f32 %v4448_v7, 0.0  ;;  %v5488_v61 = vunpack.c.l.b16 %v5445_v59  ;;  %v7810_v31 = vld [vmem:[#allocation3 + $0x38] sm:$0xf]  ;;  %v4887_v50 = vld [vmem:[#allocation3 + $0x50] sm:$0xf] }
 0x2a0   :  { %v5012_v2 = vshrl.u32 %v4886_v44, 16  ;;  %v5015_v40 = vshll.u32 %v4886_v44, 16  ;;  %v5021_v45 = vshll.u32 %v10144_v4, 16  ;;  %v4409_v41 = vadd.f32 %v4385_v26, %v4035_v23  ;;  %v10170_v17 = vld [vmem:[%s10833_s9] ss:$0 sm:$0xff]  ;;  %v3495_v44 = vpop.f32.mrf.mxu1 }
 0x2a1   :  { %v4706_v62 = vsel %vm9899_vm15, %v4564_v54, %v4705_v21  ;;  %v4709_v34 = vsel %vm9875_vm14, %v4565_v37, %v4708_v57  ;;  %v4480_v14 = vpack.c.bf16 %v4464_v1, %v4464_v1  ;;  %v3662_v36 = vadd.f32 %v10125_v49, %v3512_v22  ;;  %v4388_v58 = vpop.f32.mrf.mxu0  ;;  %v10182_v0 = vld [vmem:[#allocation3 + $0x54] sm:$0x1]  ;;  %v10187_v4 = vld [vmem:[%s10834_s10] ss:$0 sm:$0xff]  ;;  %v4711_v9 = vld [vmem:[#allocation3 + $0x68] sm:$0xf] }
 0x2a2   :  { %v4791_v10 = vld [vmem:[#allocation3 + $0x58] sm:$0x1]  ;;  %4707 = vst [vmem:[#allocation3 + $0x60] sm:$0xf] %v4706_v62  ;;  %v5500_v18 = vpack.c.b16 %v5488_v61, %v5487_v52  ;;  %v5014_v28 = vrot.slane %v5012_v2, 4  ;;  %v4429_v26 = vmul.f32 %v10170_v17, %v4409_v41  ;;  %v5009_v49 = vrot.slane %v5007_v25, 5 }
 0x2a3   :  { %v4792_v24 = vsel %vm9875_vm14, 0, %v4791_v10  ;;  %v8010_v27 = vld [vmem:[#allocation3 + $0x3c] sm:$0xf0]  ;;  %v4567_v29 = vshrl.u32 %v4480_v14, 16  ;;  %v10173_v35 = vadd.f32 %v3642_v43, %v3513_v55  ;;  %v10177_v15 = vadd.f32 %v9824_v12, %v10128_v51  ;;  %4710 = vst [vmem:[#allocation3 + $0x64] sm:$0x1] %v4709_v34 }
 0x2a4   :  { %4793 = vst [vmem:[#allocation3 + $0x58] sm:$0x1] %v4792_v24  ;;  %v4852_v13 = vld [vmem:[#allocation3 + $0x5c] sm:$0x1]  ;;  %v7811_v47 = vor.u32 %v8010_v27, %v7810_v31  ;;  %7791 = vmatmul.msk.bf16.gmra.mxu3 %vm5170_vm2, %v5500_v18  ;;  %v5017_v3 = vrot.slane %v5015_v40, 5  ;;  %v4570_v8 = vshll.u32 %v4480_v14, 16  ;;  %v4449_v12 = vadd.f32 %v10187_v4, %v4429_v26  ;;  %v4014_v55 = vpop.f32.mrf.mxu3 }
 0x2a5   :  { %v4853_v11 = vsel %vm9864_vm13, 0, %v4852_v13  ;;  %v4569_v20 = vrot.slane %v4567_v29, 7  ;;  %v5026_v51 = vshrl.u32 %v4887_v50, 16  ;;  %v4714_v22 = vld [vmem:[#allocation3 + $0x6c] sm:$0x1]  ;;  %v5010_v16 = vsel %vm8456_vm9, %v10156_v42, %v5009_v49 }
 0x2a6   :  { %4854 = vst [vmem:[#allocation3 + $0x5c] sm:$0x1] %v4853_v11  ;;  %7835 = vmatmul.msk.bf16.gmra.mxu0 %vm5170_vm2, %v7811_v47  ;;  %v5018_v21 = vor.u32 %v5017_v3, %v5014_v28  ;;  %v5023_v5 = vrot.slane %v5021_v45, 5  ;;  %v5029_v25 = vshll.u32 %v4887_v50, 16  ;;  %v4465_v56 = vmax.f32 %v4449_v12, 0.0 }
 0x2a7   :  { %v4572_v53 = vor.u32 %v4570_v8, %v4569_v20  ;;  %v4573_v38 = vrot.slane %v4569_v20, 4  ;;  %v4036_v57 = vadd.f32 %v4014_v55, %v3662_v36  ;;  %v5448_v32 = vrot.slane %v10182_v0, 5  ;;  %v7742_v61 = vld [vmem:[#allocation3 + $0x50] sm:$0xf]  ;;  %v5372_v2 = vld [vmem:[#allocation3 + $0x58] sm:$0xe] }
 0x2a8   :  { %v5019_v7 = vrot.slane %v5018_v21, 4  ;;  %v5028_v59 = vrot.slane %v5026_v51, 4  ;;  %v5031_v52 = vrot.slane %v5029_v25, 5  ;;  %v4481_v1 = vpack.c.bf16 %v4465_v56, %v4465_v56  ;;  %v4720_v26 = vld [vmem:[#allocation3 + $0x74] sm:$0x1]  ;;  %v3645_v51 = vpop.f32.mrf.mxu2 }
 0x2a9   :  { %v4794_v54 = vld [vmem:[#allocation3 + $0x60] sm:$0x1]  ;;  %v4712_v37 = vsel %vm9899_vm15, %v4572_v53, %v4711_v9  ;;  %v4715_v42 = vsel %vm9875_vm14, %v4573_v38, %v4714_v22  ;;  %v4410_v23 = vadd.f32 %v4388_v58, %v4036_v57  ;;  %v5035_v62 = vshll.u32 %v10182_v0, 16  ;;  %v4717_v58 = vld [vmem:[#allocation3 + $0x70] sm:$0xf]  ;;  %v4390_v18 = vpop.f32.mrf.mxu0 }
 0x2aa   :  { %v4795_v40 = vsel %vm9875_vm14, 0, %v4794_v54  ;;  %4713 = vst [vmem:[#allocation3 + $0x68] sm:$0xf] %v4712_v37  ;;  %v5024_v45 = vsel %vm8456_vm9, %v5019_v7, %v5023_v5  ;;  %v5032_v10 = vor.u32 %v5031_v52, %v5028_v59  ;;  %v4855_v34 = vld [vmem:[#allocation3 + $0x64] sm:$0x1]  ;;  %v4575_v14 = vshrl.u32 %v4481_v1, 16  ;;  %v3497_v54 = vpop.f32.mrf.mxu1 }
 0x2ab   :  { %v8000_v43 = vld [vmem:[#allocation3 + $0x54] sm:$0xf0]  ;;  %4796 = vst [vmem:[#allocation3 + $0x60] sm:$0x1] %v4795_v40  ;;  %v4430_v41 = vmul.f32 %v10170_v17, %v4410_v23  ;;  %v5146_v31 = vunpack.c.l.b16 %v5010_v16  ;;  %v5147_v50 = vunpack.c.l.b16 %v5024_v45  ;;  %v4856_v36 = vsel %vm9864_vm13, 0, %v4855_v34 }
 0x2ac   :  { %4716 = vst [vmem:[#allocation3 + $0x6c] sm:$0x1] %v4715_v42  ;;  %v4578_v24 = vshll.u32 %v4481_v1, 16  ;;  %v7743_v27 = vor.u32 %v8000_v43, %v7742_v61  ;;  %v5449_v13 = vsel %vm9938_vm3, %v7776_v63, %v5448_v32  ;;  %v4577_v29 = vrot.slane %v4575_v14, 7  ;;  %v4016_v0 = vpop.f32.mrf.mxu3  ;;  %v4888_v8 = vld [vmem:[#allocation3 + $0x58] sm:$0xf] }
 0x2ad   :  { %v10207_v28 = vld [vmem:[#allocation3 + $0x5c] sm:$0x1]  ;;  %4857 = vst [vmem:[#allocation3 + $0x64] sm:$0x1] %v4856_v36  ;;  %v4450_v47 = vadd.f32 %v10187_v4, %v4430_v41  ;;  %v5159_v49 = vpack.c.b16 %v5147_v50, %v5146_v31  ;;  %v3514_v3 = vadd.f32 %v3495_v44, %v9828_v33  ;;  %v7777_v20 = vrot.slane %v5372_v2, 9 }
 0x2ae   :  { %v5452_v11 = vrot.slane %v10207_v28, 5  ;;  %7764 = vmatmul.msk.bf16.gmra.mxu2 %vm5170_vm2, %v7743_v27  ;;  %v5033_v12 = vrot.slane %v5032_v10, 4  ;;  %v5037_v48 = vrot.slane %v5035_v62, 5  ;;  %v4580_v9 = vor.u32 %v4578_v24, %v4577_v29  ;;  %v7814_v7 = vld [vmem:[#allocation3 + $0x58] sm:$0xf] }
 0x2af   :  { %v4581_v63 = vrot.slane %v4577_v29, 4  ;;  %v4466_v22 = vmax.f32 %v4450_v47, 0.0  ;;  %7719 = vmatmul.msk.bf16.gmra.mxu1 %vm5170_vm2, %v5159_v49  ;;  %v4037_v55 = vadd.f32 %v4016_v0, %v10173_v35  ;;  %v5489_v21 = vunpack.c.l.b16 %v5449_v13  ;;  %v5373_v34 = vld [vmem:[#allocation3 + $0x60] sm:$0xe]  ;;  %v4723_v41 = vld [vmem:[#allocation3 + $0x78] sm:$0xf] }
 0x2b0   :  { %v5453_v16 = vsel %vm9938_vm3, %v7777_v20, %v5452_v11  ;;  %v5040_v33 = vshrl.u32 %v4888_v8, 16  ;;  %v5043_v5 = vshll.u32 %v4888_v8, 16  ;;  %v4718_v53 = vsel %vm9899_vm15, %v4580_v9, %v4717_v58  ;;  %v4726_v31 = vld [vmem:[#allocation3 + $0x7c] sm:$0x1]  ;;  %v3647_v0 = vpop.f32.mrf.mxu2 }
 0x2b1   :  { %v4797_v25 = vld [vmem:[#allocation3 + $0x68] sm:$0x1]  ;;  %v4721_v38 = vsel %vm9875_vm14, %v4581_v63, %v4720_v26  ;;  %v4482_v56 = vpack.c.bf16 %v4466_v22, %v4466_v22  ;;  %v4411_v57 = vadd.f32 %v4390_v18, %v4037_v55  ;;  %v3141_v32 = vadd.f32 %v9852_v30, %v10177_v15  ;;  %4719 = vst [vmem:[#allocation3 + $0x70] sm:$0xf] %v4718_v53  ;;  %v4393_v50 = vpop.f32.mrf.mxu0  ;;  %v5374_v63 = vld [vmem:[#allocation3 + $0x68] sm:$0xe] }
 0x2b2   :  { %v4798_v35 = vsel %vm9875_vm14, 0, %v4797_v25  ;;  %v5490_v59 = vunpack.c.l.b16 %v5453_v16  ;;  %v8011_v52 = vld [vmem:[#allocation3 + $0x5c] sm:$0xf0]  ;;  %v5042_v44 = vrot.slane %v5040_v33, 4  ;;  %v5038_v61 = vsel %vm8456_vm9, %v5033_v12, %v5037_v48  ;;  %4722 = vst [vmem:[#allocation3 + $0x74] sm:$0x1] %v4721_v38 }
 0x2b3   :  { %4799 = vst [vmem:[#allocation3 + $0x68] sm:$0x1] %v4798_v35  ;;  %v4858_v37 = vld [vmem:[#allocation3 + $0x6c] sm:$0x1]  ;;  %v4583_v42 = vshrl.u32 %v4482_v56, 16  ;;  %v4431_v1 = vmul.f32 %v10170_v17, %v4411_v57  ;;  %v7815_v23 = vor.u32 %v8011_v52, %v7814_v7  ;;  %v5045_v2 = vrot.slane %v5043_v5, 5 }
 0x2b4   :  { %v4859_v30 = vsel %vm9864_vm13, 0, %v4858_v37  ;;  %v5501_v15 = vpack.c.b16 %v5490_v59, %v5489_v21  ;;  %v5049_v40 = vshll.u32 %v10207_v28, 16  ;;  %v3664_v45 = vadd.f32 %v3645_v51, %v3514_v3  ;;  %v4019_v36 = vpop.f32.mrf.mxu3  ;;  %v10238_v18 = vld [vmem:[#allocation3 + $0x64] sm:$0x1]  ;;  %v4889_v26 = vld [vmem:[#allocation3 + $0x60] sm:$0xf] }
 0x2b5   :  { %4860 = vst [vmem:[#allocation3 + $0x6c] sm:$0x1] %v4859_v30  ;;  %v4585_v43 = vrot.slane %v4583_v42, 7  ;;  %v4586_v10 = vshll.u32 %v4482_v56, 16  ;;  %v4451_v62 = vadd.f32 %v10187_v4, %v4431_v1  ;;  %v3515_v14 = vadd.f32 %v3497_v54, %v3141_v32  ;;  %v7746_v9 = vld [vmem:[#allocation3 + $0x60] sm:$0xf] }
 0x2b6   :  { %7836 = vmatmul.msk.bf16.gmra.mxu0 %vm5170_vm2, %v7815_v23  ;;  %7792 = vmatmul.msk.bf16.gmra.mxu3 %vm5170_vm2, %v5501_v15  ;;  %v5046_v24 = vor.u32 %v5045_v2, %v5042_v44  ;;  %v5148_v58 = vunpack.c.l.b16 %v5038_v61  ;;  %v4038_v29 = vadd.f32 %v4019_v36, %v3664_v45  ;;  %v5051_v49 = vrot.slane %v5049_v40, 5  ;;  %v4729_v7 = vld [vmem:[#allocation3 + $0x80] sm:$0xf]  ;;  %v4732_v44 = vld [vmem:[#allocation3 + $0x84] sm:$0x1] }
 0x2b7   :  { %v4588_v27 = vor.u32 %v4586_v10, %v4585_v43  ;;  %v4589_v28 = vrot.slane %v4585_v43, 4  ;;  %v4467_v13 = vmax.f32 %v4451_v62, 0.0  ;;  %v7778_v11 = vrot.slane %v5373_v34, 9 }
 0x2b8   :  { %v5047_v47 = vrot.slane %v5046_v24, 4  ;;  %v5456_v3 = vrot.slane %v10238_v18, 5  ;;  %v4800_v20 = vld [vmem:[#allocation3 + $0x70] sm:$0x1]  ;;  %v4412_v51 = vadd.f32 %v4393_v50, %v4038_v29  ;;  %v5054_v21 = vshrl.u32 %v4889_v26, 16 }
 0x2b9   :  { %v4724_v8 = vsel %vm9899_vm15, %v4588_v27, %v4723_v41  ;;  %v4727_v12 = vsel %vm9875_vm14, %v4589_v28, %v4726_v31  ;;  %v4483_v48 = vpack.c.bf16 %v4467_v13, %v4467_v13  ;;  %v4801_v22 = vsel %vm9875_vm14, 0, %v4800_v20  ;;  %v4861_v33 = vld [vmem:[#allocation3 + $0x74] sm:$0x1]  ;;  %v4395_v62 = vpop.f32.mrf.mxu0  ;;  %v5375_v27 = vld [vmem:[#allocation3 + $0x70] sm:$0xe] }
 0x2ba   :  { %4725 = vst [vmem:[#allocation3 + $0x78] sm:$0xf] %v4724_v8  ;;  %v5052_v55 = vsel %vm8456_vm9, %v5047_v47, %v5051_v49  ;;  %v8001_v16 = vld [vmem:[#allocation3 + $0x64] sm:$0xf0]  ;;  %v4432_v53 = vmul.f32 %v10170_v17, %v4412_v51  ;;  %v3665_v56 = vadd.f32 %v3647_v0, %v3515_v14  ;;  %v4862_v57 = vsel %vm9864_vm13, 0, %v4861_v33 }
 0x2bb   :  { %4802 = vst [vmem:[#allocation3 + $0x70] sm:$0x1] %v4801_v22  ;;  %v4591_v5 = vshrl.u32 %v4483_v48, 16  ;;  %v4594_v25 = vshll.u32 %v4483_v48, 16  ;;  %v5149_v38 = vunpack.c.l.b16 %v5052_v55  ;;  %v7747_v32 = vor.u32 %v8001_v16, %v7746_v9  ;;  %v4890_v30 = vld [vmem:[#allocation3 + $0x68] sm:$0xf] }
 0x2bc   :  { %4728 = vst [vmem:[#allocation3 + $0x7c] sm:$0x1] %v4727_v12  ;;  %v10252_v35 = vld [vmem:[#allocation3 + $0x6c] sm:$0x1]  ;;  %v5057_v59 = vshll.u32 %v4889_v26, 16  ;;  %v4452_v54 = vadd.f32 %v10187_v4, %v4432_v53  ;;  %v4021_v1 = vpop.f32.mrf.mxu3  ;;  %v5457_v23 = vsel %vm9938_vm3, %v7778_v11, %v5456_v3  ;;  %v7779_v61 = vrot.slane %v5374_v63, 9 }
 0x2bd   :  { %4863 = vst [vmem:[#allocation3 + $0x74] sm:$0x1] %v4862_v57  ;;  %v4593_v52 = vrot.slane %v4591_v5, 7  ;;  %v5160_v37 = vpack.c.b16 %v5149_v38, %v5148_v58  ;;  %v5460_v42 = vrot.slane %v10252_v35, 5  ;;  %v5056_v15 = vrot.slane %v5054_v21, 4 }
 0x2be   :  { %7765 = vmatmul.msk.bf16.gmra.mxu2 %vm5170_vm2, %v7747_v32  ;;  %v5059_v2 = vrot.slane %v5057_v59, 5  ;;  %v4468_v43 = vmax.f32 %v4452_v54, 0.0  ;;  %v4039_v10 = vadd.f32 %v4021_v1, %v3665_v56  ;;  %v5068_v14 = vshrl.u32 %v4890_v30, 16  ;;  %v7818_v58 = vld [vmem:[#allocation3 + $0x68] sm:$0xf] }
 0x2bf   :  { %v4596_v40 = vor.u32 %v4594_v25, %v4593_v52  ;;  %v4597_v45 = vrot.slane %v4593_v52, 4  ;;  %7720 = vmatmul.msk.bf16.gmra.mxu1 %vm5170_vm2, %v5160_v37  ;;  %v5461_v34 = vsel %vm9938_vm3, %v7779_v61, %v5460_v42  ;;  %v5491_v13 = vunpack.c.l.b16 %v5457_v23  ;;  %v4735_v48 = vld [vmem:[#allocation3 + $0x88] sm:$0xf]  ;;  %v4738_v51 = vld [vmem:[#allocation3 + $0x8c] sm:$0x1] }
 0x2c0   :  { %v4484_v36 = vpack.c.bf16 %v4468_v43, %v4468_v43  ;;  %v4413_v24 = vadd.f32 %v4395_v62, %v4039_v10  ;;  %v5492_v29 = vunpack.c.l.b16 %v5461_v34  ;;  %v5060_v47 = vor.u32 %v5059_v2, %v5056_v15  ;;  %v4741_v62 = vld [vmem:[#allocation3 + $0x90] sm:$0xf] }
 0x2c1   :  { %v4803_v41 = vld [vmem:[#allocation3 + $0x78] sm:$0x1]  ;;  %v4730_v31 = vsel %vm9899_vm15, %v4596_v40, %v4729_v7  ;;  %v4733_v50 = vsel %vm9875_vm14, %v4597_v45, %v4732_v44  ;;  %v5063_v20 = vshll.u32 %v10238_v18, 16  ;;  %v5077_v63 = vshll.u32 %v10252_v35, 16  ;;  %v5376_v42 = vld [vmem:[#allocation3 + $0x78] sm:$0xe] }
 0x2c2   :  { %v4804_v28 = vsel %vm9875_vm14, 0, %v4803_v41  ;;  %4731 = vst [vmem:[#allocation3 + $0x80] sm:$0xf] %v4730_v31  ;;  %v8012_v26 = vld [vmem:[#allocation3 + $0x6c] sm:$0xf0]  ;;  %v4599_v11 = vshrl.u32 %v4484_v36, 16  ;;  %v4433_v3 = vmul.f32 %v10170_v17, %v4413_v24  ;;  %v5502_v9 = vpack.c.b16 %v5492_v29, %v5491_v13 }
 0x2c3   :  { %4805 = vst [vmem:[#allocation3 + $0x78] sm:$0x1] %v4804_v28  ;;  %v4864_v49 = vld [vmem:[#allocation3 + $0x7c] sm:$0x1]  ;;  %v7819_v0 = vor.u32 %v8012_v26, %v7818_v58  ;;  %v4602_v12 = vshll.u32 %v4484_v36, 16  ;;  %v5070_v17 = vrot.slane %v5068_v14, 4 }
 0x2c4   :  { %v4865_v8 = vsel %vm9864_vm13, 0, %v4864_v49  ;;  %4734 = vst [vmem:[#allocation3 + $0x84] sm:$0x1] %v4733_v50  ;;  %v4601_v22 = vrot.slane %v4599_v11, 7  ;;  %v4453_v55 = vadd.f32 %v10187_v4, %v4433_v3  ;;  %v5071_v16 = vshll.u32 %v4890_v30, 16 }
 0x2c5   :  { %4866 = vst [vmem:[#allocation3 + $0x7c] sm:$0x1] %v4865_v8  ;;  %v5061_v18 = vrot.slane %v5060_v47, 4  ;;  %v10276_v21 = vld [vmem:[#allocation3 + $0x74] sm:$0x1]  ;;  %v7780_v33 = vrot.slane %v5375_v27, 9 }
 0x2c6   :  { %7837 = vmatmul.msk.bf16.gmra.mxu0 %vm5170_vm2, %v7819_v0  ;;  %7793 = vmatmul.msk.bf16.gmra.mxu3 %vm5170_vm2, %v5502_v9  ;;  %v4891_v5 = vld [vmem:[#allocation3 + $0x70] sm:$0xf]  ;;  %v4604_v25 = vor.u32 %v4602_v12, %v4601_v22  ;;  %v4605_v53 = vrot.slane %v4601_v22, 4  ;;  %v4469_v38 = vmax.f32 %v4453_v55, 0.0  ;;  %v5073_v56 = vrot.slane %v5071_v16, 5 }
 0x2c7   :  { %v5065_v57 = vrot.slane %v5063_v20, 5  ;;  %v5079_v7 = vrot.slane %v5077_v63, 5  ;;  %v5464_v32 = vrot.slane %v10276_v21, 5  ;;  %v5082_v4 = vshrl.u32 %v4891_v5, 16  ;;  %v7750_v37 = vld [vmem:[#allocation3 + $0x70] sm:$0xf] }
 0x2c8   :  { %v4736_v59 = vsel %vm9899_vm15, %v4604_v25, %v4735_v48  ;;  %v4739_v52 = vsel %vm9875_vm14, %v4605_v53, %v4738_v51  ;;  %v4485_v44 = vpack.c.bf16 %v4469_v38, %v4469_v38  ;;  %v5074_v54 = vor.u32 %v5073_v56, %v5070_v17  ;;  %v4744_v24 = vld [vmem:[#allocation3 + $0x94] sm:$0x1]  ;;  %v10296_v12 = vld [vmem:[#allocation3 + $0xc] sm:$0x1]  ;;  %v10298_v48 = vld [vmem:[#allocation3 + $0x10] sm:$0xf] }
 0x2c9   :  { %v4806_v35 = vld [vmem:[#allocation3 + $0x80] sm:$0x1]  ;;  %4737 = vst [vmem:[#allocation3 + $0x88] sm:$0xf] %v4736_v59  ;;  %v5066_v23 = vsel %vm8456_vm9, %v5061_v18, %v5065_v57  ;;  %v5085_v30 = vshll.u32 %v4891_v5, 16  ;;  %v5465_v45 = vsel %vm9938_vm3, %v7780_v33, %v5464_v32  ;;  %v5084_v43 = vrot.slane %v5082_v4, 4 }
 0x2ca   :  { %v4807_v1 = vsel %vm9875_vm14, 0, %v4806_v35  ;;  %v8002_v61 = vld [vmem:[#allocation3 + $0x74] sm:$0xf0]  ;;  %v4607_v2 = vshrl.u32 %v4485_v44, 16  ;;  %4740 = vst [vmem:[#allocation3 + $0x8c] sm:$0x1] %v4739_v52  ;;  %v5150_v27 = vunpack.c.l.b16 %v5066_v23  ;;  %v5493_v28 = vunpack.c.l.b16 %v5465_v45 }
 0x2cb   :  { %4808 = vst [vmem:[#allocation3 + $0x80] sm:$0x1] %v4807_v1  ;;  %v4867_v15 = vld [vmem:[#allocation3 + $0x84] sm:$0x1]  ;;  %v7751_v40 = vor.u32 %v8002_v61, %v7750_v37  ;;  %v5075_v34 = vrot.slane %v5074_v54, 4  ;;  %v4610_v31 = vshll.u32 %v4485_v44, 16 }
 0x2cc   :  { %v4868_v10 = vsel %vm9864_vm13, 0, %v4867_v15  ;;  %v4910_v14 = vld [vmem:[#allocation3 + $0x7c] sm:$0x1]  ;;  %v4609_v41 = vrot.slane %v4607_v2, 7  ;;  %v7781_v50 = vrot.slane %v5376_v42, 9  ;;  %v5087_v29 = vrot.slane %v5085_v30, 5 }
 0x2cd   :  { %4869 = vst [vmem:[#allocation3 + $0x84] sm:$0x1] %v4868_v10  ;;  %v5468_v36 = vrot.slane %v4910_v14, 5  ;;  %v5080_v58 = vsel %vm8456_vm9, %v5075_v34, %v5079_v7  ;;  %v4892_v13 = vld [vmem:[#allocation3 + $0x78] sm:$0xf]  ;;  %v5091_v17 = vshll.u32 %v10276_v21, 16 }
 0x2ce   :  { %7766 = vmatmul.msk.bf16.gmra.mxu2 %vm5170_vm2, %v7751_v40  ;;  %v4612_v26 = vor.u32 %v4610_v31, %v4609_v41  ;;  %v4613_v47 = vrot.slane %v4609_v41, 4  ;;  %v5151_v49 = vunpack.c.l.b16 %v5080_v58  ;;  %v5088_v0 = vor.u32 %v5087_v29, %v5084_v43  ;;  %v7822_v55 = vld [vmem:[#allocation3 + $0x78] sm:$0xf]  ;;  %v5377_v44 = vld [vmem:[#allocation3 + $0x80] sm:$0xe] }
 0x2cf   :  { %v5469_v11 = vsel %vm9938_vm3, %v7781_v50, %v5468_v36  ;;  %v5096_v20 = vshrl.u32 %v4892_v13, 16  ;;  %v5099_v8 = vshll.u32 %v4892_v13, 16  ;;  %v5105_v5 = vshll.u32 %v4910_v14, 16  ;;  %v8026_v4 = vld [vmem:[#allocation13 + $0x30] sm:$0xff]  ;;  %v8027_v37 = vld [vmem:[#allocation13 + $0x38] sm:$0xff] }
 0x2d0   :  { %v5494_v3 = vunpack.c.l.b16 %v5469_v11  ;;  %v4809_v51 = vld [vmem:[#allocation3 + $0x88] sm:$0x1]  ;;  %v4742_v9 = vsel %vm9899_vm15, %v4612_v26, %v4741_v62  ;;  %v4745_v63 = vsel %vm9875_vm14, %v4613_v47, %v4744_v24  ;;  %v5161_v22 = vpack.c.b16 %v5151_v49, %v5150_v27  ;;  %v6523_v35 = vld [vmem:[#allocation3 + $0x18] sm:$0xf]  ;;  %v5378_v23 = vld [vmem:[#allocation3 + $0x88] sm:$0xe]  ;;  %6463 = vmatpush.bf16.msra.mxu3 %v8026_v4  ;;  %6841 = vmatpush.bf16.msra.mxu0 %v8027_v37 }
 0x2d1   :  { %v4810_v16 = vsel %vm9875_vm14, 0, %v4809_v51  ;;  %4743 = vst [vmem:[#allocation3 + $0x90] sm:$0xf] %v4742_v9  ;;  %v4870_v25 = vld [vmem:[#allocation3 + $0x8c] sm:$0x1]  ;;  %v5098_v53 = vrot.slane %v5096_v20, 4 }
 0x2d2   :  { %v5503_v18 = vpack.c.b16 %v5494_v3, %v5493_v28  ;;  %v8013_v33 = vld [vmem:[#allocation3 + $0x7c] sm:$0xf0]  ;;  %4811 = vst [vmem:[#allocation3 + $0x88] sm:$0x1] %v4810_v16  ;;  %7721 = vmatmul.msk.bf16.gmra.mxu1 %vm5170_vm2, %v5161_v22  ;;  %v5101_v38 = vrot.slane %v5099_v8, 5  ;;  %v4871_v56 = vsel %vm9864_vm13, 0, %v4870_v25 }
 0x2d3   :  { %v7823_v19 = vor.u32 %v8013_v33, %v7822_v55  ;;  %4746 = vst [vmem:[#allocation3 + $0x94] sm:$0x1] %v4745_v63  ;;  %v5089_v57 = vrot.slane %v5088_v0, 4  ;;  %v6182_v21 = vrot.slane %v10296_v12, 5  ;;  %v6554_v59 = vshrl.u32 %v10298_v48, 16 }
 0x2d4   :  { %4872 = vst [vmem:[#allocation3 + $0x8c] sm:$0x1] %v4871_v56  ;;  %v5102_v7 = vor.u32 %v5101_v38, %v5098_v53  ;;  %v10312_v32 = vld [vmem:[#allocation3 + $0x84] sm:$0x1]  ;;  %v5093_v52 = vrot.slane %v5091_v17, 5  ;;  %v5107_v1 = vrot.slane %v5105_v5, 5 }
 0x2d5   :  { %v4893_v54 = vld [vmem:[#allocation3 + $0x80] sm:$0xf]  ;;  %v5472_v15 = vrot.slane %v10312_v32, 5  ;;  %v6557_v40 = vshll.u32 %v10298_v48, 16  ;;  %v10326_v14 = vld [vmem:[#allocation3 + $0x14] sm:$0x1] }
 0x2d6   :  { %7838 = vmatmul.msk.bf16.gmra.mxu0 %vm5170_vm2, %v7823_v19  ;;  %7794 = vmatmul.msk.bf16.gmra.mxu3 %vm5170_vm2, %v5503_v18  ;;  %v5103_v42 = vrot.slane %v5102_v7, 4  ;;  %v7389_v61 = vld [vmem:[%s10830_s6] sm:$0xf]  ;;  %v5094_v30 = vsel %vm8456_vm9, %v5089_v57, %v5093_v52  ;;  %v5110_v62 = vshrl.u32 %v4893_v54, 16  ;;  %v5113_v34 = vshll.u32 %v4893_v54, 16  ;;  %s8261_s6 = smov [#allocation15]  }
 0x2d7   :  { %v7439_v2 = vsel %vm2075_vm4, %v7389_v61, 0  ;;  %v7754_v10 = vld [vmem:[#allocation3 + $0x80] sm:$0xf]  ;;  %v7782_v50 = vrot.slane %v5377_v44, 9  ;;  %v7783_v36 = vrot.slane %v5378_v23, 9  ;;  %v6568_v24 = vshrl.u32 %v6523_v35, 16 }
 0x2d8   :  { %v4812_v45 = vld [vmem:[#allocation3 + $0x90] sm:$0x1]  ;;  %v5108_v43 = vsel %vm8456_vm9, %v5103_v42, %v5107_v1  ;;  %7448 = vmatpush.bf16.msra.mxu2 %v7439_v2  ;;  %v5152_v27 = vunpack.c.l.b16 %v5094_v30  ;;  %v5112_v20 = vrot.slane %v5110_v62, 4  ;;  %v5115_v8 = vrot.slane %v5113_v34, 5  ;;  %v6132_v63 = vld [vmem:[#allocation3 + $0x8] sm:$0xe] }
 0x2d9   :  { %v4813_v41 = vsel %vm9875_vm14, 0, %v4812_v45  ;;  %v8003_v31 = vld [vmem:[#allocation3 + $0x84] sm:$0xf0]  ;;  %v5153_v28 = vunpack.c.l.b16 %v5108_v43  ;;  %v5473_v49 = vsel %vm9938_vm3, %v7782_v50, %v5472_v15  ;;  %v6571_v48 = vshll.u32 %v6523_v35, 16  ;;  %v6133_v33 = vld [vmem:[#allocation3 + $0x10] sm:$0xe] }
 0x2da   :  { %4814 = vst [vmem:[#allocation3 + $0x90] sm:$0x1] %v4813_v41  ;;  %v4873_v58 = vld [vmem:[#allocation3 + $0x94] sm:$0x1]  ;;  %v7755_v13 = vor.u32 %v8003_v31, %v7754_v10  ;;  %v4894_v29 = vld [vmem:[#allocation3 + $0x88] sm:$0xf]  ;;  %v5495_v18 = vunpack.c.l.b16 %v5473_v49  ;;  %v5116_v56 = vor.u32 %v5115_v8, %v5112_v20 }
 0x2db   :  { %v4874_v26 = vsel %vm9864_vm13, 0, %v4873_v58  ;;  %v4912_v47 = vld [vmem:[#allocation3 + $0x8c] sm:$0x1]  ;;  %v5124_v11 = vshrl.u32 %v4894_v29, 16  ;;  %v5127_v3 = vshll.u32 %v4894_v29, 16  ;;  %v6186_v22 = vrot.slane %v10326_v14, 5 }
 0x2dc   :  { %4875 = vst [vmem:[#allocation3 + $0x94] sm:$0x1] %v4874_v26  ;;  %v5476_v0 = vrot.slane %v4912_v47, 5  ;;  %v6556_v55 = vrot.slane %v6554_v59, 4  ;;  %v5162_v17 = vpack.c.b16 %v5153_v28, %v5152_v27  ;;  %v6559_v5 = vrot.slane %v6557_v40, 5  ;;  %v8028_v61 = vld [vmem:[#allocation13 + $0x40] sm:$0xff] }
 0x2dd   :  { %v5126_v51 = vrot.slane %v5124_v11, 4  ;;  %v5129_v9 = vrot.slane %v5127_v3, 5  ;;  %v6570_v53 = vrot.slane %v6568_v24, 4  ;;  %v6573_v38 = vrot.slane %v6571_v48, 5  ;;  %v6522_v7 = vld [vmem:[#allocation3 + $0x14] sm:$0x1]  ;;  %7075 = vmatpush.bf16.msra.mxu1 %v8028_v61 }
 0x2de   :  { %7767 = vmatmul.msk.bf16.gmra.mxu2 %vm5170_vm2, %v7755_v13  ;;  %v5477_v16 = vsel %vm9938_vm3, %v7783_v36, %v5476_v0  ;;  %v7852_v57 = vrot.slane %v6132_v63, 9  ;;  %v7826_v35 = vld [vmem:[#allocation3 + $0x88] sm:$0xf]  ;;  %v5133_v44 = vshll.u32 %v4912_v47, 16  ;;  %v7853_v54 = vrot.slane %v6133_v33, 9  ;;  %s7526_s1 = sshll.u32 %s8261_s6, 4  ;;  %s7527_s1 = int_to_ptr.vmem [resolvable:$true] %s7526_s1 }
 0x2df   :  { %v5496_v25 = vunpack.c.l.b16 %v5477_v16  ;;  %v5130_v19 = vor.u32 %v5129_v9, %v5126_v51  ;;  %v5119_v37 = vshll.u32 %v10312_v32, 16  ;;  %v6524_v1 = vld [vmem:[#allocation3 + $0x1c] sm:$0x1]  ;;  %v6560_v23 = vor.u32 %v6559_v5, %v6556_v55  ;;  %v5754_v43 = vld [vmem:[#allocation3 + $0x8] sm:$0xf] }
 0x2e0   :  { %v6183_v42 = vsel %vm9938_vm3, %v7852_v57, %v6182_v21  ;;  %v6187_v15 = vsel %vm9938_vm3, %v7853_v54, %v6186_v22  ;;  %v6563_v2 = vshll.u32 %v6522_v7, 16  ;;  %v6574_v40 = vor.u32 %v6573_v38, %v6570_v53  ;;  %v5756_v62 = vld [vmem:[#allocation3 + $0x10] sm:$0xf]  ;;  %v6527_v47 = vld [vmem:[#allocation3 + $0x28] sm:$0xf] }
 0x2e1   :  { %v5504_v4 = vpack.c.b16 %v5496_v25, %v5495_v18  ;;  %v8014_v52 = vld [vmem:[#allocation3 + $0x8c] sm:$0xf0]  ;;  %v5131_v30 = vrot.slane %v5130_v19, 4  ;;  %v5117_v45 = vrot.slane %v5116_v56, 4  ;;  %v5135_v32 = vrot.slane %v5133_v44, 5 }
 0x2e2   :  { %7722 = vmatmul.msk.bf16.gmra.mxu1 %vm5170_vm2, %v5162_v17  ;;  %v7827_v59 = vor.u32 %v8014_v52, %v7826_v35  ;;  %v6577_v10 = vshll.u32 %v6524_v1, 16  ;;  %v5121_v21 = vrot.slane %v5119_v37, 5  ;;  %v6247_v34 = vunpack.c.l.b16 %v6183_v42  ;;  %v6525_v20 = vld [vmem:[#allocation3 + $0x20] sm:$0xf]  ;;  %v10356_v51 = vld [vmem:[#allocation3 + $0x24] sm:$0x1] }
 0x2e3   :  { %v6248_v41 = vunpack.c.l.b16 %v6187_v15  ;;  %v6561_v31 = vrot.slane %v6560_v23, 4  ;;  %v5136_v50 = vsel %vm8456_vm9, %v5131_v30, %v5135_v32  ;;  %v6565_v24 = vrot.slane %v6563_v2, 5  ;;  %v10359_v18 = vld [vmem:[#allocation3 + $0x1c] sm:$0x1]  ;;  %v6135_v33 = vld [vmem:[#allocation3 + $0x20] sm:$0xe] }
 0x2e4   :  { %v6575_v58 = vrot.slane %v6574_v40, 4  ;;  %v5787_v27 = vshrl.u32 %v5754_v43, 16  ;;  %v5122_v28 = vsel %vm8456_vm9, %v5117_v45, %v5121_v21  ;;  %v5790_v13 = vshll.u32 %v5754_v43, 16  ;;  %v6134_v35 = vld [vmem:[#allocation3 + $0x18] sm:$0xe] }
 0x2e5   :  { %v5801_v29 = vshrl.u32 %v5756_v62, 16  ;;  %v5804_v26 = vshll.u32 %v5756_v62, 16  ;;  %v6579_v49 = vrot.slane %v6577_v10, 5  ;;  %v5155_v11 = vunpack.c.l.b16 %v5136_v50  ;;  %v8018_v54 = vld [vmem:[#allocation3 + $0x14] sm:$0xf0] }
 0x2e6   :  { %7839 = vmatmul.msk.bf16.gmra.mxu0 %vm5170_vm2, %v7827_v59  ;;  %7795 = vmatmul.msk.bf16.gmra.mxu3 %vm5170_vm2, %v5504_v4  ;;  %v6263_v3 = vpack.c.b16 %v6248_v41, %v6247_v34  ;;  %v6566_v0 = vsel %vm8456_vm9, %v6561_v31, %v6565_v24  ;;  %v5154_v8 = vunpack.c.l.b16 %v5122_v28  ;;  %v6596_v9 = vshrl.u32 %v6527_v47, 16  ;;  %v7882_v23 = vld [vmem:[#allocation3 + $0x10] sm:$0xf]  ;;  %v6528_v45 = vld [vmem:[#allocation3 + $0x2c] sm:$0x1] }
 0x2e7   :  { %v6580_v48 = vsel %vm8456_vm9, %v6575_v58, %v6579_v49  ;;  %v6599_v63 = vshll.u32 %v6527_v47, 16  ;;  %v5789_v22 = vrot.slane %v5787_v27, 4  ;;  %v5792_v55 = vrot.slane %v5790_v13, 5  ;;  %v5758_v34 = vld [vmem:[#allocation3 + $0x18] sm:$0xf] }
 0x2e8   :  { %v5803_v17 = vrot.slane %v5801_v29, 4  ;;  %v5806_v16 = vrot.slane %v5804_v26, 5  ;;  %v6582_v5 = vshrl.u32 %v6525_v20, 16  ;;  %v6585_v25 = vshll.u32 %v6525_v20, 16  ;;  %v5760_v41 = vld [vmem:[#allocation3 + $0x20] sm:$0xf] }
 0x2e9   :  { %v5323_v36 = vpop.f32.mrf.mxu2  ;;  %v5163_v19 = vpack.c.b16 %v5155_v11, %v5154_v8  ;;  %v6781_v38 = vunpack.c.l.b16 %v6580_v48  ;;  %v6194_v56 = vrot.slane %v10356_v51, 5  ;;  %v6780_v57 = vunpack.c.l.b16 %v6566_v0 }
 0x2ea   :  { %v5796_v4 = vshll.u32 %v10296_v12, 16  ;;  %v6598_v52 = vrot.slane %v6596_v9, 4  ;;  %v6601_v44 = vrot.slane %v6599_v63, 5  ;;  %v5793_v59 = vor.u32 %v5792_v55, %v5789_v22  ;;  %v6526_v12 = vld [vmem:[#allocation3 + $0x24] sm:$0x1] }
 0x2eb   :  { %v5807_v37 = vor.u32 %v5806_v16, %v5803_v17  ;;  %v6190_v42 = vrot.slane %v10359_v18, 5  ;;  %v7855_v1 = vrot.slane %v6135_v33, 9  ;;  %v6584_v61 = vrot.slane %v6582_v5, 4  ;;  %v6531_v9 = vld [vmem:[#allocation3 + $0x38] sm:$0xf] }
 0x2ec   :  { %v6587_v30 = vrot.slane %v6585_v25, 5  ;;  %v6796_v15 = vpack.c.b16 %v6781_v38, %v6780_v57  ;;  %v7854_v2 = vrot.slane %v6134_v35, 9  ;;  %v7883_v43 = vor.u32 %v8018_v54, %v7882_v23  ;;  %v10382_v55 = vld [vmem:[#allocation3 + $0x24] sm:$0xf0]  ;;  %v10394_v23 = vld [vmem:[#allocation3 + $0x2c] sm:$0x1] }
 0x2ed   :  { %v6195_v40 = vsel %vm9938_vm3, %v7855_v1, %v6194_v56  ;;  %v5798_v10 = vrot.slane %v5796_v4, 5  ;;  %v5810_v62 = vshll.u32 %v10326_v14, 16  ;;  %v6602_v21 = vor.u32 %v6601_v44, %v6598_v52  ;;  %v7886_v56 = vld [vmem:[#allocation3 + $0x20] sm:$0xf] }
 0x2ee   :  { %7872 = vmatmul.msk.bf16.vlgmr.msrb.gmra.mxu2 %vm5170_vm2, %v6263_v3  ;;  %v5794_v50 = vrot.slane %v5793_v59, 4  ;;  %v5808_v24 = vrot.slane %v5807_v37, 4  ;;  %v6191_v58 = vsel %vm9938_vm3, %v7854_v2, %v6190_v42  ;;  %v6250_v27 = vunpack.c.l.b16 %v6195_v40  ;;  %v10388_v37 = vld [vmem:[#allocation3 + $0x34] sm:$0x1] }
 0x2ef   :  { %v6588_v28 = vor.u32 %v6587_v30, %v6584_v61  ;;  %v6591_v13 = vshll.u32 %v6526_v12, 16  ;;  %v6605_v29 = vshll.u32 %v6528_v45, 16  ;;  %v5815_v47 = vshrl.u32 %v5758_v34, 16  ;;  %v6136_v45 = vld [vmem:[#allocation3 + $0x28] sm:$0xe] }
 0x2f0   :  { %v5544_v53 = vpop.f32.mrf.mxu3  ;;  %v5818_v49 = vshll.u32 %v5758_v34, 16  ;;  %v5829_v11 = vshrl.u32 %v5760_v41, 16  ;;  %v6249_v3 = vunpack.c.l.b16 %v6191_v58  ;;  %v6603_v20 = vrot.slane %v6602_v21, 4  ;;  %v5762_v58 = vld [vmem:[#allocation3 + $0x28] sm:$0xf] }
 0x2f1   :  { %v10362_v7 = vpop.f32.mrf.mxu2  ;;  %v5832_v8 = vshll.u32 %v5760_v41, 16  ;;  %v5799_v48 = vsel %vm8456_vm9, %v5794_v50, %v5798_v10  ;;  %v6589_v17 = vrot.slane %v6588_v28, 4  ;;  %v6607_v16 = vrot.slane %v6605_v29, 5  ;;  %v4846_v41 = vld [vmem:[#allocation3 + $0x4c] sm:$0x1] }
 0x2f2   :  { %7723 = vmatmul.msk.bf16.gmra.mxu1 %vm5170_vm2, %v5163_v19  ;;  %v6264_v22 = vpack.c.b16 %v6250_v27, %v6249_v3  ;;  %v6593_v33 = vrot.slane %v6591_v13, 5  ;;  %v5817_v5 = vrot.slane %v5815_v47, 4  ;;  %v5820_v25 = vrot.slane %v5818_v49, 5  ;;  %v6532_v29 = vld [vmem:[#allocation3 + $0x3c] sm:$0x1] }
 0x2f3   :  { %v5831_v19 = vrot.slane %v5829_v11, 4  ;;  %v6608_v57 = vsel %vm8456_vm9, %v6603_v20, %v6607_v16  ;;  %v5834_v4 = vrot.slane %v5832_v8, 5  ;;  %v6624_v35 = vshrl.u32 %v6531_v9, 16 }
 0x2f4   :  { %v5204_v32 = vpop.f32.mrf.mxu1  ;;  %v6627_v52 = vshll.u32 %v6531_v9, 16  ;;  %v7887_v59 = vor.u32 %v10382_v55, %v7886_v56  ;;  %v6594_v42 = vsel %vm8456_vm9, %v6589_v17, %v6593_v33  ;;  %v5824_v1 = vshll.u32 %v10359_v18, 16  ;;  %v6530_v9 = vld [vmem:[#allocation3 + $0x34] sm:$0x1] }
 0x2f5   :  { %v5324_v31 = vadd.f32 %v5323_v36, %v5204_v32  ;;  %v5812_v36 = vrot.slane %v5810_v62, 5  ;;  %v5821_v12 = vor.u32 %v5820_v25, %v5817_v5  ;;  %v4785_v32 = vld [vmem:[#allocation3 + $0x48] sm:$0x1]  ;;  %v5835_v10 = vor.u32 %v5834_v4, %v5831_v19 }
 0x2f6   :  { %7928 = vmatmul.msk.bf16.vlgmr.msra.gmra.mxu0 %vm5170_vm2, %v6796_v15  ;;  %7916 = vmatmul.msk.bf16.vlgmr.msra.gmra.mxu3 %vm5170_vm2, %v7883_v43  ;;  %v6013_v15 = vunpack.c.l.b16 %v5799_v48  ;;  %v6137_v43 = vld [vmem:[#allocation3 + $0x30] sm:$0xe]  ;;  %v6202_v62 = vrot.slane %v10388_v37, 5  ;;  %v6626_v21 = vrot.slane %v6624_v35, 4  ;;  %v6629_v34 = vrot.slane %v6627_v52, 5 }
 0x2f7   :  { %v10374_v26 = vadd.f32 %v5544_v53, %v5324_v31  ;;  %v5813_v63 = vsel %vm8456_vm9, %v5808_v24, %v5812_v36  ;;  %v6529_v53 = vld [vmem:[#allocation3 + $0x30] sm:$0xf]  ;;  %v6782_v31 = vunpack.c.l.b16 %v6594_v42  ;;  %v5838_v50 = vshll.u32 %v10356_v51, 16 }
 0x2f8   :  { %v5546_v14 = vpop.f32.mrf.mxu3  ;;  %v6014_v44 = vunpack.c.l.b16 %v5813_v63  ;;  %v6610_v61 = vshrl.u32 %v6529_v53, 16  ;;  %v6613_v30 = vshll.u32 %v6529_v53, 16  ;;  %v6198_v24 = vrot.slane %v10394_v23, 5  ;;  %v5764_v36 = vld [vmem:[#allocation3 + $0x30] sm:$0xf] }
 0x2f9   :  { %v10376_v0 = vpop.f32.mrf.mxu2  ;;  %v5826_v28 = vrot.slane %v5824_v1, 5  ;;  %v7857_v13 = vrot.slane %v6137_v43, 9  ;;  %v7856_v11 = vrot.slane %v6136_v45, 9  ;;  %v4786_v3 = vsel %vm9875_vm14, 0, %v4785_v32  ;;  %v10421_v32 = vld [vmem:[#allocation3 + $0x3c] sm:$0x1] }
 0x2fa   :  { %v6029_v18 = vpack.c.b16 %v6014_v44, %v6013_v15  ;;  %v6615_v47 = vrot.slane %v6613_v30, 5  ;;  %v4847_v51 = vsel %vm9864_vm13, 0, %v4846_v41  ;;  %v5822_v20 = vrot.slane %v5821_v12, 4  ;;  %4787 = vst [vmem:[#allocation3 + $0x48] sm:$0x1] %v4786_v3 }
 0x2fb   :  { %v5836_v8 = vrot.slane %v5835_v10, 4  ;;  %v6203_v48 = vsel %vm9938_vm3, %v7857_v13, %v6202_v62  ;;  %v6630_v63 = vor.u32 %v6629_v34, %v6626_v21  ;;  %v6199_v55 = vsel %vm9938_vm3, %v7856_v11, %v6198_v24  ;;  %4848 = vst [vmem:[#allocation3 + $0x4c] sm:$0x1] %v4847_v51  ;;  %v6533_v44 = vld [vmem:[#allocation3 + $0x40] sm:$0xf] }
 0x2fc   :  { %v5206_v38 = vpop.f32.mrf.mxu1  ;;  %v6633_v17 = vshll.u32 %v6532_v29, 16  ;;  %v5843_v16 = vshrl.u32 %v5762_v58, 16  ;;  %v5846_v33 = vshll.u32 %v5762_v58, 16  ;;  %v5857_v19 = vshrl.u32 %v5764_v36, 16  ;;  %v6138_v12 = vld [vmem:[#allocation3 + $0x38] sm:$0xe] }
 0x2fd   :  { %v5326_v54 = vadd.f32 %v10362_v7, %v5206_v38  ;;  %v6783_v7 = vunpack.c.l.b16 %v6608_v57  ;;  %v5860_v53 = vshll.u32 %v5764_v36, 16  ;;  %v5840_v38 = vrot.slane %v5838_v50, 5  ;;  %v10425_v41 = vld [vmem:[#allocation3 + $0x44] sm:$0x1]  ;;  %v6139_v11 = vld [vmem:[#allocation3 + $0x40] sm:$0xe] }
 0x2fe   :  { %7873 = vmatmul.msk.bf16.gmra.mxu2 %vm5170_vm2, %v6264_v22  ;;  %v6252_v56 = vunpack.c.l.b16 %v6203_v48  ;;  %v6619_v57 = vshll.u32 %v6530_v9, 16  ;;  %v5827_v35 = vsel %vm8456_vm9, %v5822_v20, %v5826_v28  ;;  %v6631_v52 = vrot.slane %v6630_v63, 4 }
 0x2ff   :  { %v10396_v2 = vadd.f32 %v5546_v14, %v5326_v54  ;;  %v6612_v14 = vrot.slane %v6610_v61, 4  ;;  %v6797_v49 = vpack.c.b16 %v6783_v7, %v6782_v31  ;;  %v5841_v54 = vsel %vm8456_vm9, %v5836_v8, %v5840_v38 }
 0x300   :  { %v5549_v40 = vpop.f32.mrf.mxu3  ;;  %v5845_v1 = vrot.slane %v5843_v16, 4  ;;  %v6635_v30 = vrot.slane %v6633_v17, 5  ;;  %v5859_v15 = vrot.slane %v5857_v19, 4  ;;  %v5862_v7 = vrot.slane %v5860_v53, 5  ;;  %v7890_v16 = vld [vmem:[#allocation3 + $0x30] sm:$0xf] }
 0x301   :  { %v10401_v27 = vpop.f32.mrf.mxu2  ;;  %v6616_v25 = vor.u32 %v6615_v47, %v6612_v14  ;;  %v6015_v45 = vunpack.c.l.b16 %v5827_v35  ;;  %v6621_v43 = vrot.slane %v6619_v57, 5  ;;  %v6535_v10 = vld [vmem:[#allocation3 + $0x48] sm:$0xf]  ;;  %v6638_v62 = vshrl.u32 %v6533_v44, 16  ;;  %v6534_v57 = vld [vmem:[#allocation3 + $0x44] sm:$0x1] }
 0x302   :  { %7844 = vmatmul.msk.bf16.vlgmr.msrb.gmra.mxu1 %vm5170_vm2, %v6029_v18  ;;  %v6636_v34 = vsel %vm8456_vm9, %v6631_v52, %v6635_v30  ;;  %v6641_v18 = vshll.u32 %v6533_v44, 16  ;;  %v6652_v31 = vshrl.u32 %v6535_v10, 16  ;;  %v6655_v50 = vshll.u32 %v6535_v10, 16  ;;  %v6536_v35 = vld [vmem:[#allocation3 + $0x4c] sm:$0x1] }
 0x303   :  { %v6617_v61 = vrot.slane %v6616_v25, 4  ;;  %v6016_v24 = vunpack.c.l.b16 %v5841_v54  ;;  %v5852_v13 = vshll.u32 %v10394_v23, 16  ;;  %v5866_v29 = vshll.u32 %v10388_v37, 16  ;;  %v8020_v23 = vld [vmem:[#allocation3 + $0x34] sm:$0xf0] }
 0x304   :  { %v6206_v36 = vrot.slane %v10421_v32, 5  ;;  %v6785_v3 = vunpack.c.l.b16 %v6636_v34  ;;  %v7858_v51 = vrot.slane %v6138_v12, 9  ;;  %v6210_v20 = vrot.slane %v10425_v41, 5 }
 0x305   :  { %v6622_v47 = vsel %vm8456_vm9, %v6617_v61, %v6621_v43  ;;  %v6640_v8 = vrot.slane %v6638_v62, 4  ;;  %v6643_v37 = vrot.slane %v6641_v18, 5  ;;  %v6654_v9 = vrot.slane %v6652_v31, 4 }
 0x306   :  { %v5209_v22 = vpop.f32.mrf.mxu1  ;;  %7929 = vmatmul.msk.bf16.gmra.mxu0 %vm5170_vm2, %v6797_v49  ;;  %7917 = vmatmul.msk.bf16.gmra.mxu3 %vm5170_vm2, %v7887_v59  ;;  %v6251_v59 = vunpack.c.l.b16 %v6199_v55  ;;  %v5863_v49 = vor.u32 %v5862_v7, %v5859_v15  ;;  %v6030_v63 = vpack.c.b16 %v6016_v24, %v6015_v45  ;;  %v7859_v17 = vrot.slane %v6139_v11, 9 }
 0x307   :  { %v5329_v5 = vadd.f32 %v10376_v0, %v5209_v22  ;;  %v5848_v0 = vrot.slane %v5846_v33, 5  ;;  %v6784_v22 = vunpack.c.l.b16 %v6622_v47  ;;  %v7891_v25 = vor.u32 %v8020_v23, %v7890_v16 }
 0x308   :  { %v5551_v42 = vpop.f32.mrf.mxu3  ;;  %v5864_v33 = vrot.slane %v5863_v49, 4  ;;  %v5854_v38 = vrot.slane %v5852_v13, 5  ;;  %v5868_v52 = vrot.slane %v5866_v29, 5  ;;  %v6644_v44 = vor.u32 %v6643_v37, %v6640_v8 }
 0x309   :  { %v10415_v4 = vadd.f32 %v5549_v40, %v5329_v5  ;;  %v6265_v40 = vpack.c.b16 %v6252_v56, %v6251_v59  ;;  %v5333_v21 = vpop.f32.mrf.mxu2  ;;  %v5849_v28 = vor.u32 %v5848_v0, %v5845_v1  ;;  %v6207_v5 = vsel %vm9938_vm3, %v7858_v51, %v6206_v36  ;;  %v5766_v59 = vld [vmem:[#allocation3 + $0x38] sm:$0xf]  ;;  %v5768_v1 = vld [vmem:[#allocation3 + $0x40] sm:$0xf] }
 0x30a   :  { %v6798_v53 = vpack.c.b16 %v6785_v3, %v6784_v22  ;;  %v6211_v56 = vsel %vm9938_vm3, %v7859_v17, %v6210_v20  ;;  %v6253_v30 = vunpack.c.l.b16 %v6207_v5  ;;  %v5869_v12 = vsel %vm8456_vm9, %v5864_v33, %v5868_v52  ;;  %v10457_v17 = vpop.f32.mrf.mxu0 }
 0x30b   :  { %v5850_v55 = vrot.slane %v5849_v28, 4  ;;  %v6254_v45 = vunpack.c.l.b16 %v6211_v56  ;;  %v5871_v43 = vshrl.u32 %v5766_v59, 16  ;;  %v5874_v10 = vshll.u32 %v5766_v59, 16 }
 0x30c   :  { %v5885_v62 = vshrl.u32 %v5768_v1, 16  ;;  %v5888_v34 = vshll.u32 %v5768_v1, 16  ;;  %v6645_v31 = vrot.slane %v6644_v44, 4  ;;  %v6018_v13 = vunpack.c.l.b16 %v5869_v12 }
 0x30d   :  { %v5855_v61 = vsel %vm8456_vm9, %v5850_v55, %v5854_v38  ;;  %v6266_v29 = vpack.c.b16 %v6254_v45, %v6253_v30  ;;  %v5873_v47 = vrot.slane %v5871_v43, 4  ;;  %v5876_v49 = vrot.slane %v5874_v10, 5  ;;  %v6141_v38 = vld [vmem:[#allocation3 + $0x60] sm:$0xe] }
 0x30e   :  { %v5211_v58 = vpop.f32.mrf.mxu1  ;;  %7874 = vmatmul.msk.bf16.gmra.mxu2 %vm5170_vm2, %v6265_v40  ;;  %v6647_v40 = vshll.u32 %v6534_v57, 16  ;;  %v6017_v28 = vunpack.c.l.b16 %v5855_v61  ;;  %v5887_v11 = vrot.slane %v5885_v62, 4  ;;  %v5890_v36 = vrot.slane %v5888_v34, 5  ;;  %v5772_v43 = vld [vmem:[#allocation3 + $0x60] sm:$0xf] }
 0x30f   :  { %v5331_v14 = vadd.f32 %v10401_v27, %v5211_v58  ;;  %v6657_v27 = vrot.slane %v6655_v50, 5  ;;  %v6539_v58 = vld [vmem:[#allocation3 + $0x68] sm:$0xf]  ;;  %v5877_v5 = vor.u32 %v5876_v49, %v5873_v47  ;;  %v5880_v59 = vshll.u32 %v10421_v32, 16  ;;  %v6538_v32 = vld [vmem:[#allocation3 + $0x64] sm:$0x1] }
 0x310   :  { %v6680_v20 = vshrl.u32 %v6539_v58, 16  ;;  %v6683_v8 = vshll.u32 %v6539_v58, 16  ;;  %v6031_v22 = vpack.c.b16 %v6018_v13, %v6017_v28  ;;  %v5894_v1 = vshll.u32 %v10425_v41, 16  ;;  %v5770_v41 = vld [vmem:[#allocation3 + $0x58] sm:$0xf] }
 0x311   :  { %v10435_v48 = vadd.f32 %v5551_v42, %v5331_v14  ;;  %v5554_v19 = vpop.f32.mrf.mxu3  ;;  %v6658_v54 = vor.u32 %v6657_v27, %v6654_v9  ;;  %v6661_v42 = vshll.u32 %v6536_v35, 16  ;;  %v5335_v7 = vpop.f32.mrf.mxu2  ;;  %v6537_v14 = vld [vmem:[#allocation3 + $0x60] sm:$0xf]  ;;  %v10454_v9 = vld [vmem:[#allocation3 + $0x64] sm:$0x1]  ;;  %v5878_v62 = vrot.slane %v5877_v5, 4 }
 0x312   :  { %7845 = vmatmul.msk.bf16.gmra.mxu1 %vm5170_vm2, %v6030_v63  ;;  %v6666_v27 = vshrl.u32 %v6537_v14, 16  ;;  %v6669_v63 = vshll.u32 %v6537_v14, 16  ;;  %v7894_v35 = vld [vmem:[#allocation3 + $0x40] sm:$0xf]  ;;  %v6218_v52 = vrot.slane %v10454_v9, 5  ;;  %v6682_v44 = vrot.slane %v6680_v20, 4 }
 0x313   :  { %v6659_v50 = vrot.slane %v6658_v54, 4  ;;  %v6663_v24 = vrot.slane %v6661_v42, 5  ;;  %v6685_v54 = vrot.slane %v6683_v8, 5  ;;  %v8021_v42 = vld [vmem:[#allocation3 + $0x44] sm:$0xf0]  ;;  %v5902_v8 = vshll.u32 %v5770_v41, 16 }
 0x314   :  { %v6671_v61 = vrot.slane %v6669_v63, 5  ;;  %v7895_v10 = vor.u32 %v8021_v42, %v7894_v35  ;;  %v6543_v63 = vld [vmem:[#allocation3 + $0x78] sm:$0xf]  ;;  %v6541_v5 = vld [vmem:[#allocation3 + $0x70] sm:$0xf] }
 0x315   :  { %v6664_v51 = vsel %vm8456_vm9, %v6659_v50, %v6663_v24  ;;  %v5882_v50 = vrot.slane %v5880_v59, 5  ;;  %v5896_v24 = vrot.slane %v5894_v1, 5  ;;  %v10484_v42 = vld [vmem:[#allocation3 + $0x74] sm:$0x1]  ;;  %v6708_v59 = vshrl.u32 %v6543_v63, 16 }
 0x316   :  { %v5214_v0 = vpop.f32.mrf.mxu1  ;;  %7930 = vmatmul.msk.bf16.gmra.mxu0 %vm5170_vm2, %v6798_v53  ;;  %7918 = vmatmul.msk.bf16.gmra.mxu3 %vm5170_vm2, %v7891_v25  ;;  %v6787_v33 = vunpack.c.l.b16 %v6664_v51  ;;  %v5891_v25 = vor.u32 %v5890_v36, %v5887_v11  ;;  %v6140_v53 = vld [vmem:[#allocation3 + $0x58] sm:$0xe]  ;;  %v6675_v11 = vshll.u32 %v6538_v32, 16  ;;  %v5899_v36 = vshrl.u32 %v5770_v41, 16  ;;  %v6142_v41 = vld [vmem:[#allocation3 + $0x68] sm:$0xe] }
 0x317   :  { %v5334_v15 = vadd.f32 %v5333_v21, %v5214_v0  ;;  %v6649_v21 = vrot.slane %v6647_v40, 5  ;;  %v6668_v0 = vrot.slane %v6666_v27, 4  ;;  %v7860_v45 = vrot.slane %v6140_v53, 9  ;;  %v6540_v40 = vld [vmem:[#allocation3 + $0x6c] sm:$0x1] }
 0x318   :  { %v5892_v12 = vrot.slane %v5891_v25, 4  ;;  %v6689_v13 = vshll.u32 %v6540_v40, 16  ;;  %v5883_v51 = vsel %vm8456_vm9, %v5878_v62, %v5882_v50  ;;  %v5901_v35 = vrot.slane %v5899_v36, 4  ;;  %v6143_v40 = vld [vmem:[#allocation3 + $0x70] sm:$0xe] }
 0x319   :  { %v10448_v18 = vadd.f32 %v5554_v19, %v5334_v15  ;;  %v6650_v3 = vsel %vm8456_vm9, %v6645_v31, %v6649_v21  ;;  %v5556_v37 = vpop.f32.mrf.mxu3  ;;  %v10459_v19 = vld [vmem:[#allocation3 + $0x5c] sm:$0x1]  ;;  %v7861_v15 = vrot.slane %v6141_v38, 9  ;;  %v6686_v31 = vor.u32 %v6685_v54, %v6682_v44 }
 0x31a   :  { %v6786_v16 = vunpack.c.l.b16 %v6650_v3  ;;  %v6214_v30 = vrot.slane %v10459_v19, 5  ;;  %v6672_v58 = vor.u32 %v6671_v61, %v6668_v0  ;;  %v5916_v21 = vshll.u32 %v5772_v43, 16 }
 0x31b   :  { %v6219_v34 = vsel %vm9938_vm3, %v7861_v15, %v6218_v52  ;;  %v5897_v47 = vsel %vm8456_vm9, %v5892_v12, %v5896_v24  ;;  %v6687_v20 = vrot.slane %v6686_v31, 4  ;;  %v6019_v25 = vunpack.c.l.b16 %v5883_v51 }
 0x31c   :  { %v6215_v28 = vsel %vm9938_vm3, %v7860_v45, %v6214_v30  ;;  %v6256_v49 = vunpack.c.l.b16 %v6219_v34  ;;  %v6673_v27 = vrot.slane %v6672_v58, 4  ;;  %v6677_v38 = vrot.slane %v6675_v11, 5  ;;  %v10489_v45 = vld [vmem:[#allocation3 + $0x6c] sm:$0x1] }
 0x31d   :  { %v5904_v54 = vrot.slane %v5902_v8, 5  ;;  %v6711_v1 = vshll.u32 %v6543_v63, 16  ;;  %v6694_v30 = vshrl.u32 %v6541_v5, 16  ;;  %v6697_v15 = vshll.u32 %v6541_v5, 16  ;;  %v6544_v8 = vld [vmem:[#allocation3 + $0x7c] sm:$0x1] }
 0x31e   :  { %v5216_v23 = vpop.f32.mrf.mxu1  ;;  %7875 = vmatmul.msk.bf16.gmra.mxu2 %vm5170_vm2, %v6266_v29  ;;  %v5913_v29 = vshrl.u32 %v5772_v43, 16  ;;  %v6678_v61 = vsel %vm8456_vm9, %v6673_v27, %v6677_v38  ;;  %v5922_v34 = vshll.u32 %v10454_v9, 16  ;;  %v6710_v50 = vrot.slane %v6708_v59, 4  ;;  %v7898_v9 = vld [vmem:[#allocation3 + $0x60] sm:$0xf] }
 0x31f   :  { %v5336_v55 = vadd.f32 %v5335_v7, %v5216_v23  ;;  %v6799_v7 = vpack.c.b16 %v6787_v33, %v6786_v16  ;;  %v10480_v23 = vpop.f32.mrf.mxu0  ;;  %v5918_v33 = vrot.slane %v5916_v21, 5  ;;  %v6788_v32 = vunpack.c.l.b16 %v6678_v61 }
 0x320   :  { %v5338_v57 = vpop.f32.mrf.mxu2  ;;  %v5915_v16 = vrot.slane %v5913_v29, 4  ;;  %v5905_v31 = vor.u32 %v5904_v54, %v5901_v35  ;;  %v6713_v24 = vrot.slane %v6711_v1, 5  ;;  %v7863_v29 = vrot.slane %v6143_v40, 9 }
 0x321   :  { %v10461_v56 = vadd.f32 %v5556_v37, %v5336_v55  ;;  %v6255_v37 = vunpack.c.l.b16 %v6215_v28  ;;  %v6691_v55 = vrot.slane %v6689_v13, 5  ;;  %v8022_v28 = vld [vmem:[#allocation3 + $0x64] sm:$0xf0]  ;;  %v6222_v13 = vrot.slane %v10489_v45, 5 }
 0x322   :  { %7846 = vmatmul.msk.bf16.gmra.mxu1 %vm5170_vm2, %v6031_v22  ;;  %v6020_v22 = vunpack.c.l.b16 %v5897_v47  ;;  %v5919_v12 = vor.u32 %v5918_v33, %v5915_v16  ;;  %v6696_v21 = vrot.slane %v6694_v30, 4  ;;  %v5908_v47 = vshll.u32 %v10459_v19, 16  ;;  %v5774_v16 = vld [vmem:[#allocation3 + $0x68] sm:$0xf] }
 0x323   :  { %v6267_v53 = vpack.c.b16 %v6256_v49, %v6255_v37  ;;  %v6692_v44 = vsel %vm8456_vm9, %v6687_v20, %v6691_v55  ;;  %v7862_v51 = vrot.slane %v6142_v41, 9  ;;  %v7899_v27 = vor.u32 %v8022_v28, %v7898_v9 }
 0x324   :  { %v6789_v62 = vunpack.c.l.b16 %v6692_v44  ;;  %v5920_v49 = vrot.slane %v5919_v12, 4  ;;  %v5924_v63 = vrot.slane %v5922_v34, 5  ;;  %v6714_v55 = vor.u32 %v6713_v24, %v6710_v50  ;;  %v4815_v12 = vld [vmem:[#allocation3 + $0x98] sm:$0x1]  ;;  %v6545_v50 = vld [vmem:[#allocation3 + $0x80] sm:$0xf] }
 0x325   :  { %v5906_v33 = vrot.slane %v5905_v31, 4  ;;  %v6223_v5 = vsel %vm9938_vm3, %v7862_v51, %v6222_v13  ;;  %v5910_v38 = vrot.slane %v5908_v47, 5  ;;  %v6717_v44 = vshll.u32 %v6544_v8, 16  ;;  %v4876_v31 = vld [vmem:[#allocation3 + $0x9c] sm:$0x1] }
 0x326   :  { %7931 = vmatmul.msk.bf16.gmra.mxu0 %vm5170_vm2, %v6799_v7  ;;  %7919 = vmatmul.msk.bf16.gmra.mxu3 %vm5170_vm2, %v7895_v10  ;;  %v6032_v7 = vpack.c.b16 %v6020_v22, %v6019_v25  ;;  %v6800_v36 = vpack.c.b16 %v6789_v62, %v6788_v32  ;;  %v6542_v22 = vld [vmem:[#allocation3 + $0x74] sm:$0x1]  ;;  %v5925_v35 = vsel %vm8456_vm9, %v5920_v49, %v5924_v63  ;;  %v5930_v1 = vshll.u32 %v5774_v16, 16 }
 0x327   :  { %v5559_v14 = vpop.f32.mrf.mxu3  ;;  %v10499_v11 = vpop.f32.mrf.mxu0  ;;  %v6703_v59 = vshll.u32 %v6542_v22, 16  ;;  %v6257_v61 = vunpack.c.l.b16 %v6223_v5  ;;  %v6715_v30 = vrot.slane %v6714_v55, 4  ;;  %v5911_v34 = vsel %vm8456_vm9, %v5906_v33, %v5910_v38  ;;  %v10527_v22 = vld [vmem:[#allocation3 + $0x84] sm:$0x1]  ;;  %v10531_v33 = vld [vmem:[#allocation3 + $0x7c] sm:$0x1] }
 0x328   :  { %v10476_v3 = vpop.f32.mrf.mxu2  ;;  %v4877_v51 = vsel %vm9864_vm13, 0, %v4876_v31  ;;  %v6725_v46 = vshll.u32 %v6545_v50, 16  ;;  %v6021_v63 = vunpack.c.l.b16 %v5911_v34  ;;  %v6144_v38 = vld [vmem:[#allocation3 + $0x78] sm:$0xe]  ;;  %v5950_v34 = vshll.u32 %v10484_v42, 16 }
 0x329   :  { %v6705_v13 = vrot.slane %v6703_v59, 5  ;;  %4878 = vst [vmem:[#allocation3 + $0x9c] sm:$0x1] %v4877_v51  ;;  %v5780_v51 = vld [vmem:[#allocation3 + $0x80] sm:$0xf] }
 0x32c   :  { %v5219_v52 = vpop.f32.mrf.mxu1 }
 0x32d   :  { %v5339_v0 = vadd.f32 %v5338_v57, %v5219_v52  ;;  %v6226_v57 = vrot.slane %v10484_v42, 5 }
 0x32e   :  { %7876 = vmatmul.msk.bf16.gmra.mxu2 %vm5170_vm2, %v6267_v53  ;;  %v5776_v53 = vld [vmem:[#allocation3 + $0x70] sm:$0xf] }
 0x32f   :  { %v10491_v43 = vadd.f32 %v5559_v14, %v5339_v0  ;;  %v5561_v10 = vpop.f32.mrf.mxu3  ;;  %v6699_v14 = vrot.slane %v6697_v15, 5  ;;  %v6227_v20 = vsel %vm9938_vm3, %v7863_v29, %v6226_v57  ;;  %v6547_v0 = vld [vmem:[#allocation3 + $0x88] sm:$0xf]  ;;  %v5941_v15 = vshrl.u32 %v5776_v53, 16 }
 0x330   :  { %v6258_v52 = vunpack.c.l.b16 %v6227_v20  ;;  %v6022_v57 = vunpack.c.l.b16 %v5925_v35  ;;  %v6736_v24 = vshrl.u32 %v6547_v0, 16  ;;  %v6739_v28 = vshll.u32 %v6547_v0, 16  ;;  %v10521_v20 = vpop.f32.mrf.mxu0  ;;  %v6145_v35 = vld [vmem:[#allocation3 + $0x80] sm:$0xe] }
 0x331   :  { %v10495_v58 = vpop.f32.mrf.mxu2  ;;  %v6700_v25 = vor.u32 %v6699_v14, %v6696_v21  ;;  %v5932_v21 = vrot.slane %v5930_v1, 5  ;;  %v4816_v14 = vsel %vm9875_vm14, 0, %v4815_v12  ;;  %v5943_v9 = vrot.slane %v5941_v15, 4  ;;  %v6548_v1 = vld [vmem:[#allocation3 + $0x8c] sm:$0x1] }
 0x332   :  { %7847 = vmatmul.msk.bf16.gmra.mxu1 %vm5170_vm2, %v6032_v7  ;;  %v5944_v7 = vshll.u32 %v5776_v53, 16  ;;  %v6268_v41 = vpack.c.b16 %v6258_v52, %v6257_v61  ;;  %4817 = vst [vmem:[#allocation3 + $0x98] sm:$0x1] %v4816_v14  ;;  %v6738_v55 = vrot.slane %v6736_v24, 4  ;;  %v6033_v5 = vpack.c.b16 %v6022_v57, %v6021_v63  ;;  %v6549_v63 = vld [vmem:[#allocation3 + $0x90] sm:$0xf] }
 0x333   :  { %v6701_v32 = vrot.slane %v6700_v25, 4  ;;  %v6727_v61 = vrot.slane %v6725_v46, 5  ;;  %v6230_v15 = vrot.slane %v10531_v33, 5  ;;  %v7865_v57 = vrot.slane %v6145_v35, 9 }
 0x334   :  { %v5221_v37 = vpop.f32.mrf.mxu1  ;;  %v6745_v24 = vshll.u32 %v6548_v1, 16  ;;  %v6753_v1 = vshll.u32 %v6549_v63, 16 }
 0x335   :  { %v5341_v19 = vadd.f32 %v10476_v3, %v5221_v37  ;;  %v5927_v3 = vshrl.u32 %v5774_v16, 16  ;;  %v6706_v37 = vsel %vm8456_vm9, %v6701_v32, %v6705_v13  ;;  %v6741_v16 = vrot.slane %v6739_v28, 5  ;;  %v6546_v32 = vld [vmem:[#allocation3 + $0x84] sm:$0x1]  ;;  %v5778_v28 = vld [vmem:[#allocation3 + $0x78] sm:$0xf] }
 0x336   :  { %7932 = vmatmul.msk.bf16.gmra.mxu0 %vm5170_vm2, %v6800_v36  ;;  %7920 = vmatmul.msk.bf16.gmra.mxu3 %vm5170_vm2, %v7899_v27  ;;  %v5946_v36 = vrot.slane %v5944_v7, 5  ;;  %v6722_v27 = vshrl.u32 %v6545_v50, 16  ;;  %v6790_v25 = vunpack.c.l.b16 %v6706_v37  ;;  %v7864_v50 = vrot.slane %v6144_v38, 9 }
 0x337   :  { %v10511_v54 = vadd.f32 %v5561_v10, %v5341_v19  ;;  %v6719_v10 = vrot.slane %v6717_v44, 5  ;;  %v5929_v29 = vrot.slane %v5927_v3, 4  ;;  %v6234_v3 = vrot.slane %v10527_v22, 5 }
 0x338   :  { %v5947_v59 = vor.u32 %v5946_v36, %v5943_v9  ;;  %v6724_v0 = vrot.slane %v6722_v27, 4  ;;  %v6742_v7 = vor.u32 %v6741_v16, %v6738_v55  ;;  %v6231_v42 = vsel %vm9938_vm3, %v7864_v50, %v6230_v15  ;;  %v6147_v50 = vld [vmem:[#allocation3 + $0x90] sm:$0xe] }
 0x339   :  { %v5564_v40 = vpop.f32.mrf.mxu3  ;;  %v5345_v62 = vpop.f32.mrf.mxu2  ;;  %v6720_v49 = vsel %vm8456_vm9, %v6715_v30, %v6719_v10  ;;  %v5933_v53 = vor.u32 %v5932_v21, %v5929_v29  ;;  %v7902_v30 = vld [vmem:[#allocation3 + $0x70] sm:$0xf]  ;;  %v6235_v21 = vsel %vm9938_vm3, %v7865_v57, %v6234_v3  ;;  %v6747_v27 = vrot.slane %v6745_v24, 5  ;;  %v6551_v55 = vld [vmem:[#allocation3 + $0x98] sm:$0xf] }
 0x33a   :  { %v6791_v60 = vunpack.c.l.b16 %v6720_v49  ;;  %v5948_v29 = vrot.slane %v5947_v59, 4  ;;  %v6728_v14 = vor.u32 %v6727_v61, %v6724_v0  ;;  %v10546_v49 = vpop.f32.mrf.mxu0  ;;  %v6260_v37 = vunpack.c.l.b16 %v6235_v21  ;;  %v10563_v24 = vld [vmem:[#allocation3 + $0x8c] sm:$0x1] }
 0x33b   :  { %v5934_v10 = vrot.slane %v5933_v53, 4  ;;  %v5958_v46 = vshll.u32 %v5778_v28, 16  ;;  %v5972_v59 = vshll.u32 %v5780_v51, 16  ;;  %v6750_v3 = vshrl.u32 %v6549_v63, 16  ;;  %v6146_v63 = vld [vmem:[#allocation3 + $0x88] sm:$0xe] }
 0x33c   :  { %v5224_v47 = vpop.f32.mrf.mxu1  ;;  %v6801_v12 = vpack.c.b16 %v6791_v60, %v6790_v25  ;;  %v6259_v25 = vunpack.c.l.b16 %v6231_v42  ;;  %v6729_v53 = vrot.slane %v6728_v14, 4  ;;  %v6764_v0 = vshrl.u32 %v6551_v55, 16  ;;  %v7906_v42 = vld [vmem:[#allocation3 + $0x80] sm:$0xf] }
 0x33d   :  { %v5344_v8 = vadd.f32 %v10495_v58, %v5224_v47  ;;  %v8023_v58 = vld [vmem:[#allocation3 + $0x74] sm:$0xf0]  ;;  %v6743_v47 = vrot.slane %v6742_v7, 4  ;;  %v6767_v61 = vshll.u32 %v6551_v55, 16  ;;  %v5960_v7 = vrot.slane %v5958_v46, 5 }
 0x33e   :  { %7877 = vmatmul.msk.bf16.gmra.mxu2 %vm5170_vm2, %v6268_v41  ;;  %v7903_v41 = vor.u32 %v8023_v58, %v7902_v30  ;;  %v6269_v30 = vpack.c.b16 %v6260_v37, %v6259_v25  ;;  %v5964_v46 = vshll.u32 %v10531_v33, 16  ;;  %v6238_v25 = vrot.slane %v10563_v24, 5 }
 0x33f   :  { %v10529_v19 = vadd.f32 %v5564_v40, %v5344_v8  ;;  %v5936_v40 = vshll.u32 %v10489_v45, 16  ;;  %v6731_v45 = vshll.u32 %v6546_v32, 16  ;;  %v5955_v8 = vshrl.u32 %v5778_v28, 16  ;;  %v8024_v32 = vld [vmem:[#allocation3 + $0x84] sm:$0xf0] }
 0x340   :  { %v6748_v35 = vsel %vm8456_vm9, %v6743_v47, %v6747_v27  ;;  %v6752_v28 = vrot.slane %v6750_v3, 4  ;;  %v6769_v21 = vrot.slane %v6767_v61, 5  ;;  %v7907_v27 = vor.u32 %v8024_v32, %v7906_v42 }
 0x341   :  { %v5566_v52 = vpop.f32.mrf.mxu3  ;;  %v10533_v44 = vpop.f32.mrf.mxu2  ;;  %v5938_v36 = vrot.slane %v5936_v40, 5  ;;  %v6733_v38 = vrot.slane %v6731_v45, 5  ;;  %v5957_v15 = vrot.slane %v5955_v8, 4 }
 0x342   :  { %7848 = vmatmul.msk.bf16.gmra.mxu1 %vm5170_vm2, %v6033_v5 }
 0x343   :  { %v5939_v5 = vsel %vm8456_vm9, %v5934_v10, %v5938_v36  ;;  %v6734_v40 = vsel %vm8456_vm9, %v6729_v53, %v6733_v38  ;;  %v5974_v10 = vrot.slane %v5972_v59, 5  ;;  %v5961_v47 = vor.u32 %v5960_v7, %v5957_v15  ;;  %v10573_v38 = vld [vmem:[#allocation3 + $0x94] sm:$0x1] }
 0x344   :  { %v5226_v31 = vpop.f32.mrf.mxu1  ;;  %v6023_v57 = vunpack.c.l.b16 %v5939_v5  ;;  %v6792_v45 = vunpack.c.l.b16 %v6734_v40  ;;  %v7867_v53 = vrot.slane %v6147_v50, 9 }
 0x345   :  { %v5346_v13 = vadd.f32 %v5345_v62, %v5226_v31  ;;  %v5952_v62 = vrot.slane %v5950_v34, 5  ;;  %v10560_v34 = vld [vmem:[#allocation3 + $0x94] sm:$0x1]  ;;  %v6793_v31 = vunpack.c.l.b16 %v6748_v35  ;;  %v10575_v35 = vld [vmem:[#allocation3 + $0x9c] sm:$0x1]  ;;  %v5962_v33 = vrot.slane %v5961_v47, 4 }
 0x346   :  { %7933 = vmatmul.msk.bf16.gmra.mxu0 %vm5170_vm2, %v6801_v12  ;;  %7921 = vmatmul.msk.bf16.gmra.mxu3 %vm5170_vm2, %v7903_v41  ;;  %v6242_v36 = vrot.slane %v10560_v34, 5  ;;  %v6773_v3 = vshll.u32 %v10575_v35, 16 }
 0x347   :  { %v10548_v9 = vadd.f32 %v5566_v52, %v5346_v13  ;;  %v5953_v58 = vsel %vm8456_vm9, %v5948_v29, %v5952_v62  ;;  %v5969_v52 = vshrl.u32 %v5780_v51, 16  ;;  %v6755_v13 = vrot.slane %v6753_v1, 5  ;;  %v10566_v62 = vpop.f32.mrf.mxu0 }
 0x348   :  { %v6024_v12 = vunpack.c.l.b16 %v5953_v58  ;;  %v6766_v29 = vrot.slane %v6764_v0, 4  ;;  %v6802_v5 = vpack.c.b16 %v6793_v31, %v6792_v45  ;;  %v5978_v1 = vshll.u32 %v10527_v22, 16  ;;  %v5782_v31 = vld [vmem:[#allocation3 + $0x88] sm:$0xf] }
 0x349   :  { %v5569_v16 = vpop.f32.mrf.mxu3  ;;  %v10550_v60 = vpop.f32.mrf.mxu2  ;;  %v5971_v41 = vrot.slane %v5969_v52, 4  ;;  %v7866_v0 = vrot.slane %v6146_v63, 9  ;;  %v6243_v61 = vsel %vm9938_vm3, %v7867_v53, %v6242_v36  ;;  %v6775_v22 = vrot.slane %v6773_v3, 5  ;;  %v7133_v63 = vld [vmem:[#allocation2 + $0x8] sm:$0xf] }
 0x34a   :  { %v6034_v8 = vpack.c.b16 %v6024_v12, %v6023_v57  ;;  %v6770_v59 = vor.u32 %v6769_v21, %v6766_v29  ;;  %v5784_v12 = vld [vmem:[#allocation3 + $0x90] sm:$0xf]  ;;  %v6262_v40 = vunpack.c.l.b16 %v6243_v61  ;;  %v5980_v50 = vrot.slane %v5978_v1, 5  ;;  %v7136_v53 = vld [vmem:[#allocation2 + $0x14] sm:$0x1] }
 0x34b   :  { %v5975_v58 = vor.u32 %v5974_v10, %v5971_v41  ;;  %v6239_v7 = vsel %vm9938_vm3, %v7866_v0, %v6238_v25  ;;  %v5983_v45 = vshrl.u32 %v5782_v31, 16  ;;  %v5986_v47 = vshll.u32 %v5782_v31, 16 }
 0x34c   :  { %v6771_v32 = vrot.slane %v6770_v59, 4  ;;  %v6261_v29 = vunpack.c.l.b16 %v6239_v7  ;;  %v6000_v36 = vshll.u32 %v5784_v12, 16  ;;  %v7169_v59 = vshll.u32 %v7133_v63, 16 }
 0x34d   :  { %v5976_v15 = vrot.slane %v5975_v58, 4  ;;  %v7135_v58 = vld [vmem:[#allocation2 + $0x10] sm:$0xf]  ;;  %v7189_v61 = vshll.u32 %v7136_v53, 16  ;;  %v5985_v31 = vrot.slane %v5983_v45, 4 }
 0x34e   :  { %7878 = vmatmul.msk.bf16.gmra.mxu2 %vm5170_vm2, %v6269_v30  ;;  %v6759_v30 = vshll.u32 %v10573_v38, 16 }
 0x34f   :  { %v5229_v14 = vpop.f32.mrf.mxu1  ;;  %v5981_v42 = vsel %vm8456_vm9, %v5976_v15, %v5980_v50  ;;  %v7171_v15 = vrot.slane %v7169_v59, 5 }
 0x350   :  { %v5349_v51 = vadd.f32 %v10533_v44, %v5229_v14  ;;  %v6756_v44 = vor.u32 %v6755_v13, %v6752_v28  ;;  %v6761_v21 = vrot.slane %v6759_v30, 5  ;;  %v5997_v14 = vshrl.u32 %v5784_v12, 16 }
 0x351   :  { %v10569_v37 = vpop.f32.mrf.mxu2  ;;  %v5571_v55 = vpop.f32.mrf.mxu3  ;;  %v6026_v1 = vunpack.c.l.b16 %v5981_v42  ;;  %v6002_v30 = vrot.slane %v6000_v36, 5  ;;  %v7910_v42 = vld [vmem:[#allocation3 + $0x90] sm:$0xf]  ;;  %v7191_v36 = vrot.slane %v7189_v61, 5 }
 0x352   :  { %v10577_v52 = vadd.f32 %v5569_v16, %v5349_v51  ;;  %7849 = vmatmul.msk.bf16.gmra.mxu1 %vm5170_vm2, %v6034_v8  ;;  %v5966_v16 = vrot.slane %v5964_v46, 5  ;;  %v6757_v57 = vrot.slane %v6756_v44, 4  ;;  %v10596_v51 = vpop.f32.mrf.mxu0  ;;  %v7166_v44 = vshrl.u32 %v7133_v63, 16  ;;  %v8025_v63 = vld [vmem:[#allocation3 + $0x94] sm:$0xf0] }
 0x353   :  { %v5999_v0 = vrot.slane %v5997_v14, 4  ;;  %v7911_v45 = vor.u32 %v8025_v63, %v7910_v42 }
 0x354   :  { %v5967_v10 = vsel %vm8456_vm9, %v5962_v33, %v5966_v16  ;;  %v6762_v46 = vsel %vm8456_vm9, %v6757_v57, %v6761_v21  ;;  %v7180_v33 = vshrl.u32 %v7135_v58, 16  ;;  %v7168_v16 = vrot.slane %v7166_v44, 4 }
 0x355   :  { %v6025_v12 = vunpack.c.l.b16 %v5967_v10 }
 0x356   :  { %7934 = vmatmul.msk.bf16.gmra.mxu0 %vm5170_vm2, %v6802_v5  ;;  %7922 = vmatmul.msk.bf16.gmra.mxu3 %vm5170_vm2, %v7907_v27  ;;  %v6270_v27 = vpack.c.b16 %v6262_v40, %v6261_v29  ;;  %v7134_v5 = vld [vmem:[#allocation2 + $0xc] sm:$0x1]  ;;  %v7182_v7 = vrot.slane %v7180_v33, 4  ;;  %v6794_v40 = vunpack.c.l.b16 %v6762_v46  ;;  %v7172_v50 = vor.u32 %v7171_v15, %v7168_v16 }
 0x357   :  { %v5231_v41 = vpop.f32.mrf.mxu1  ;;  %v7175_v3 = vshll.u32 %v7134_v5, 16  ;;  %v6035_v21 = vpack.c.b16 %v6026_v1, %v6025_v12  ;;  %v6003_v5 = vor.u32 %v6002_v30, %v5999_v0 }
 0x358   :  { %v5351_v28 = vadd.f32 %v10550_v60, %v5231_v41  ;;  %v6776_v60 = vsel %vm8456_vm9, %v6771_v32, %v6775_v22  ;;  %v5988_v41 = vrot.slane %v5986_v47, 5 }
 0x359   :  { %v10592_v13 = vpop.f32.mrf.mxu2  ;;  %v5574_v25 = vpop.f32.mrf.mxu3  ;;  %v6795_v57 = vunpack.c.l.b16 %v6776_v60  ;;  %v6006_v60 = vshll.u32 %v10560_v34, 16  ;;  %v6004_v33 = vrot.slane %v6003_v5, 4 }
 0x35a   :  { %v10598_v8 = vadd.f32 %v5571_v55, %v5351_v28  ;;  %v7183_v55 = vshll.u32 %v7135_v58, 16  ;;  %v7177_v28 = vrot.slane %v7175_v3, 5  ;;  %v7173_v58 = vrot.slane %v7172_v50, 4  ;;  %v10612_v44 = vpop.f32.mrf.mxu0 }
 0x35b   :  { %v6803_v10 = vpack.c.b16 %v6795_v57, %v6794_v40  ;;  %v5989_v47 = vor.u32 %v5988_v41, %v5985_v31  ;;  %v5992_v3 = vshll.u32 %v10563_v24, 16  ;;  %v6008_v61 = vrot.slane %v6006_v60, 5  ;;  %v7139_v31 = vld [vmem:[#allocation2 + $0x20] sm:$0xf]  ;;  %v7140_v41 = vld [vmem:[#allocation2 + $0x24] sm:$0x1] }
 0x35c   :  { %v7185_v32 = vrot.slane %v7183_v55, 5  ;;  %v7211_v42 = vshll.u32 %v7139_v31, 16  ;;  %v7217_v63 = vshll.u32 %v7140_v41, 16 }
 0x35d   :  { %v5990_v34 = vrot.slane %v5989_v47, 4  ;;  %v5994_v15 = vrot.slane %v5992_v3, 5 }
 0x35e   :  { %7879 = vmatmul.msk.bf16.gmra.mxu2 %vm5170_vm2, %v6270_v27  ;;  %v7186_v27 = vor.u32 %v7185_v32, %v7182_v7  ;;  %v6009_v7 = vsel %vm8456_vm9, %v6004_v33, %v6008_v61  ;;  %v7137_v32 = vld [vmem:[#allocation2 + $0x18] sm:$0xf]  ;;  %v7213_v60 = vrot.slane %v7211_v42, 5  ;;  %v7219_v33 = vrot.slane %v7217_v63, 5 }
 0x35f   :  { %v5234_v22 = vpop.f32.mrf.mxu1  ;;  %v5995_v57 = vsel %vm8456_vm9, %v5990_v34, %v5994_v15  ;;  %v6028_v24 = vunpack.c.l.b16 %v6009_v7  ;;  %v7194_v50 = vshrl.u32 %v7137_v32, 16  ;;  %v8058_v34 = vld [vmem:[#allocation3 + $0x1c] sm:$0x1] }
 0x360   :  { %v5354_v29 = vadd.f32 %v10569_v37, %v5234_v22  ;;  %v7187_v46 = vrot.slane %v7186_v27, 4  ;;  %v7178_v37 = vsel %vm8456_vm9, %v7173_v58, %v7177_v28  ;;  %v7138_v22 = vld [vmem:[#allocation2 + $0x1c] sm:$0x1]  ;;  %v6953_v61 = vrot.slane %v8058_v34, 5 }
 0x361   :  { %v5358_v14 = vpop.f32.mrf.mxu2  ;;  %v7390_v1 = vunpack.c.l.b16 %v7178_v37  ;;  %v7203_v28 = vshll.u32 %v7138_v22, 16  ;;  %v7196_v5 = vrot.slane %v7194_v50, 4 }
 0x362   :  { %v10606_v53 = vadd.f32 %v5574_v25, %v5354_v29  ;;  %7850 = vmatmul.msk.bf16.gmra.mxu1 %vm5170_vm2, %v6035_v21  ;;  %v7192_v59 = vsel %vm8456_vm9, %v7187_v46, %v7191_v36  ;;  %v5576_v25 = vpop.f32.mrf.mxu3  ;;  %v7208_v29 = vshrl.u32 %v7139_v31, 16  ;;  %v6027_v21 = vunpack.c.l.b16 %v5995_v57  ;;  %v8059_v57 = vld [vmem:[#allocation3 + $0x14] sm:$0x1] }
 0x363   :  { %v7391_v0 = vunpack.c.l.b16 %v7192_v59  ;;  %v7205_v59 = vrot.slane %v7203_v28, 5 }
 0x365   :  { %v7406_v12 = vpack.c.b16 %v7391_v0, %v7390_v1  ;;  %v6900_v0 = vld [vmem:[#allocation3 + $0x18] sm:$0xe] }
 0x366   :  { %7935 = vmatmul.msk.bf16.gmra.mxu0 %vm5170_vm2, %v6803_v10  ;;  %7923 = vmatmul.msk.bf16.gmra.mxu3 %vm5170_vm2, %v7911_v45  ;;  %v7210_v10 = vrot.slane %v7208_v29, 4  ;;  %v6036_v45 = vpack.c.b16 %v6028_v24, %v6027_v21  ;;  %v6949_v24 = vrot.slane %v8059_v57, 5 }
 0x367   :  { %v5236_v55 = vpop.f32.mrf.mxu1 }
 0x368   :  { %v5356_v30 = vadd.f32 %v10592_v13, %v5236_v55  ;;  %v7197_v13 = vshll.u32 %v7137_v32, 16  ;;  %v7214_v3 = vor.u32 %v7213_v60, %v7210_v10  ;;  %v7937_v32 = vrot.slane %v6900_v0, 9 }
 0x369   :  { %v5360_v16 = vpop.f32.mrf.mxu2  ;;  %v5738_v60 = vadd.f32 %v10457_v17, %v10374_v26  ;;  %v6902_v17 = vld [vmem:[#allocation3 + $0x28] sm:$0xe] }
 0x36a   :  { %v10622_v40 = vadd.f32 %v5576_v25, %v5356_v30  ;;  %v5579_v36 = vpop.f32.mrf.mxu3  ;;  %v7199_v58 = vrot.slane %v7197_v13, 5  ;;  %v7215_v55 = vrot.slane %v7214_v3, 4  ;;  %v6954_v28 = vsel %vm9938_vm3, %v7937_v32, %v6953_v61 }
 0x36b   :  { %v7015_v63 = vunpack.c.l.b16 %v6954_v28  ;;  %v6901_v28 = vld [vmem:[#allocation3 + $0x20] sm:$0xe] }
 0x36c   :  { %v7200_v37 = vor.u32 %v7199_v58, %v7196_v5  ;;  %v7220_v15 = vsel %vm8456_vm9, %v7215_v55, %v7219_v33  ;;  %v7143_v5 = vld [vmem:[#allocation2 + $0x30] sm:$0xf]  ;;  %v7144_v58 = vld [vmem:[#allocation2 + $0x34] sm:$0x1] }
 0x36d   :  { %v7393_v22 = vunpack.c.l.b16 %v7220_v15  ;;  %v7245_v3 = vshll.u32 %v7144_v58, 16 }
 0x36e   :  { %7964 = vmatmul.msk.bf16.vlgmr.msra.gmra.mxu2 %vm2050_vm10, %v7406_v12  ;;  %v7201_v1 = vrot.slane %v7200_v37, 4 }
 0x36f   :  { %v5239_v27 = vpop.f32.mrf.mxu1 }
 0x370   :  { %v5359_v46 = vadd.f32 %v5358_v14, %v5239_v27  ;;  %v7206_v30 = vsel %vm8456_vm9, %v7201_v1, %v7205_v59  ;;  %v6899_v14 = vld [vmem:[#allocation3 + $0x10] sm:$0xe]  ;;  %v7141_v27 = vld [vmem:[#allocation2 + $0x28] sm:$0xf]  ;;  %v7239_v59 = vshll.u32 %v7143_v5, 16 }
 0x371   :  { %v6310_v47 = vpop.f32.mrf.mxu2  ;;  %v7392_v7 = vunpack.c.l.b16 %v7206_v30  ;;  %v7936_v13 = vrot.slane %v6899_v14, 9  ;;  %v7225_v10 = vshll.u32 %v7141_v27, 16 }
 0x372   :  { %v10627_v25 = vadd.f32 %v5579_v36, %v5359_v46  ;;  %7851 = vmatmul.msk.bf16.gmra.mxu1 %vm5170_vm2, %v6036_v45  ;;  %v5581_v50 = vpop.f32.mrf.mxu3  ;;  %v7142_v36 = vld [vmem:[#allocation2 + $0x2c] sm:$0x1]  ;;  %v7236_v45 = vshrl.u32 %v7143_v5, 16  ;;  %v7241_v14 = vrot.slane %v7239_v59, 5  ;;  %v7146_v59 = vld [vmem:[#allocation2 + $0x3c] sm:$0x1] }
 0x373   :  { %v7407_v29 = vpack.c.b16 %v7393_v22, %v7392_v7  ;;  %v6950_v42 = vsel %vm9938_vm3, %v7936_v13, %v6949_v24  ;;  %v7231_v46 = vshll.u32 %v7142_v36, 16  ;;  %v7227_v0 = vrot.slane %v7225_v10, 5  ;;  %v8060_v22 = vld [vmem:[#allocation3 + $0x2c] sm:$0x1] }
 0x374   :  { %v7014_v37 = vunpack.c.l.b16 %v6950_v42  ;;  %v7238_v55 = vrot.slane %v7236_v45, 4  ;;  %v7247_v24 = vrot.slane %v7245_v3, 5  ;;  %v5739_v13 = vadd.f32 %v10480_v23, %v10396_v2  ;;  %v7147_v3 = vld [vmem:[#allocation2 + $0x40] sm:$0xf] }
 0x375   :  { %v7233_v7 = vrot.slane %v7231_v46, 5  ;;  %v7939_v36 = vrot.slane %v6902_v17, 9  ;;  %v7938_v10 = vrot.slane %v6901_v28, 9 }
 0x376   :  { %v7030_v61 = vpack.c.b16 %v7015_v63, %v7014_v37  ;;  %v7242_v57 = vor.u32 %v7241_v14, %v7238_v55  ;;  %v8061_v63 = vld [vmem:[#allocation3 + $0x24] sm:$0x1]  ;;  %v7145_v37 = vld [vmem:[#allocation2 + $0x38] sm:$0xf]  ;;  %v7259_v55 = vshll.u32 %v7146_v59, 16 }
 0x377   :  { %v5241_v12 = vpop.f32.mrf.mxu1 }
 0x378   :  { %v5361_v31 = vadd.f32 %v5360_v16, %v5241_v12  ;;  %v7222_v16 = vshrl.u32 %v7141_v27, 16  ;;  %v7243_v32 = vrot.slane %v7242_v57, 4  ;;  %v6957_v27 = vrot.slane %v8061_v63, 5 }
 0x379   :  { %v6312_v41 = vpop.f32.mrf.mxu2  ;;  %v7261_v28 = vrot.slane %v7259_v55, 5 }
 0x37a   :  { %v10636_v21 = vadd.f32 %v5581_v50, %v5361_v31  ;;  %v7224_v1 = vrot.slane %v7222_v16, 4  ;;  %v6961_v31 = vrot.slane %v8060_v22, 5  ;;  %v6958_v2 = vsel %vm9938_vm3, %v7938_v10, %v6957_v27  ;;  %v8062_v27 = vld [vmem:[#allocation3 + $0x3c] sm:$0x1]  ;;  %v6903_v10 = vld [vmem:[#allocation3 + $0x30] sm:$0xe] }
 0x37b   :  { %v7016_v14 = vunpack.c.l.b16 %v6958_v2  ;;  %v8063_v2 = vld [vmem:[#allocation3 + $0x34] sm:$0x1] }
 0x37c   :  { %v7228_v15 = vor.u32 %v7227_v0, %v7224_v1  ;;  %v6962_v46 = vsel %vm9938_vm3, %v7939_v36, %v6961_v31  ;;  %v7250_v1 = vshrl.u32 %v7145_v37, 16  ;;  %v7253_v0 = vshll.u32 %v7145_v37, 16 }
 0x37d   :  { %v7017_v23 = vunpack.c.l.b16 %v6962_v46  ;;  %v6969_v36 = vrot.slane %v8062_v27, 5 }
 0x37e   :  { %7965 = vmatmul.msk.bf16.gmra.mxu2 %vm2050_vm10, %v7407_v29  ;;  %v7229_v26 = vrot.slane %v7228_v15, 4 }
 0x37f   :  { %v6076_v33 = vpop.f32.mrf.mxu1  ;;  %v7031_v22 = vpack.c.b16 %v7017_v23, %v7016_v14  ;;  %v6965_v23 = vrot.slane %v8063_v2, 5  ;;  %v7149_v14 = vld [vmem:[#allocation2 + $0x50] sm:$0xf]  ;;  %v6905_v2 = vld [vmem:[#allocation3 + $0x40] sm:$0xe] }
 0x380   :  { %v6116_v34 = vadd.f32 %v6076_v33, %v5738_v60  ;;  %v7234_v50 = vsel %vm8456_vm9, %v7229_v26, %v7233_v7  ;;  %v7148_v33 = vld [vmem:[#allocation2 + $0x44] sm:$0x1]  ;;  %v10661_v7 = vpop.f32.mrf.mxu0  ;;  %v7255_v26 = vrot.slane %v7253_v0, 5  ;;  %v7940_v0 = vrot.slane %v6903_v10, 9 }
 0x381   :  { %v6315_v30 = vpop.f32.mrf.mxu2  ;;  %v7394_v29 = vunpack.c.l.b16 %v7234_v50  ;;  %v7273_v15 = vshll.u32 %v7148_v33, 16 }
 0x382   :  { %v10643_v12 = vadd.f32 %v6310_v47, %v6116_v34  ;;  %7956 = vmatmul.msk.bf16.vlgmr.msra.gmra.mxu1 %vm5170_vm2, %v7030_v61  ;;  %v7248_v47 = vsel %vm8456_vm9, %v7243_v32, %v7247_v24  ;;  %v7264_v34 = vshrl.u32 %v7147_v3, 16  ;;  %v5740_v61 = vadd.f32 %v10499_v11, %v10415_v4 }
 0x383   :  { %v7395_v5 = vunpack.c.l.b16 %v7248_v47  ;;  %v7252_v24 = vrot.slane %v7250_v1, 4  ;;  %v7275_v11 = vrot.slane %v7273_v15, 5  ;;  %v7151_v15 = vld [vmem:[#allocation2 + $0x58] sm:$0xf] }
 0x384   :  { %v7266_v17 = vrot.slane %v7264_v34, 4 }
 0x385   :  { %v7408_v45 = vpack.c.b16 %v7395_v5, %v7394_v29 }
 0x387   :  { %v6078_v42 = vpop.f32.mrf.mxu1 }
 0x388   :  { %v6117_v58 = vadd.f32 %v6078_v42, %v5739_v13  ;;  %v7256_v13 = vor.u32 %v7255_v26, %v7252_v24  ;;  %v6904_v42 = vld [vmem:[#allocation3 + $0x38] sm:$0xe]  ;;  %v10672_v1 = vpop.f32.mrf.mxu0  ;;  %v7278_v24 = vshrl.u32 %v7149_v14, 16  ;;  %v7281_v26 = vshll.u32 %v7149_v14, 16 }
 0x389   :  { %v6317_v16 = vpop.f32.mrf.mxu2  ;;  %v7941_v37 = vrot.slane %v6904_v42, 9 }
 0x38a   :  { %v10654_v60 = vadd.f32 %v6312_v41, %v6117_v58  ;;  %v7267_v41 = vshll.u32 %v7147_v3, 16  ;;  %v7257_v29 = vrot.slane %v7256_v13, 4  ;;  %v5741_v58 = vadd.f32 %v10521_v20, %v10435_v48 }
 0x38b   :  { %v6970_v55 = vsel %vm9938_vm3, %v7941_v37, %v6969_v36  ;;  %v6966_v20 = vsel %vm9938_vm3, %v7940_v0, %v6965_v23  ;;  %v8064_v37 = vld [vmem:[#allocation3 + $0x44] sm:$0x1]  ;;  %v8065_v0 = vld [vmem:[#allocation3 + $0x4c] sm:$0x1] }
 0x38c   :  { %v7269_v50 = vrot.slane %v7267_v41, 5  ;;  %v7262_v5 = vsel %vm8456_vm9, %v7257_v29, %v7261_v28  ;;  %v7150_v41 = vld [vmem:[#allocation2 + $0x54] sm:$0x1] }
 0x38d   :  { %v7396_v46 = vunpack.c.l.b16 %v7262_v5 }
 0x38e   :  { %7966 = vmatmul.msk.bf16.gmra.mxu2 %vm2050_vm10, %v7408_v45  ;;  %v7270_v4 = vor.u32 %v7269_v50, %v7266_v17  ;;  %v7287_v17 = vshll.u32 %v7150_v41, 16  ;;  %v7018_v50 = vunpack.c.l.b16 %v6966_v20  ;;  %v7942_v41 = vrot.slane %v6905_v2, 9 }
 0x38f   :  { %v6081_v57 = vpop.f32.mrf.mxu1 }
 0x390   :  { %v6118_v32 = vadd.f32 %v6081_v57, %v5740_v61  ;;  %v7271_v63 = vrot.slane %v7270_v4, 4  ;;  %v7019_v61 = vunpack.c.l.b16 %v6970_v55  ;;  %v7152_v57 = vld [vmem:[#allocation2 + $0x5c] sm:$0x1]  ;;  %v7280_v4 = vrot.slane %v7278_v24, 4 }
 0x391   :  { %v6320_v31 = vpop.f32.mrf.mxu2  ;;  %v7301_v13 = vshll.u32 %v7152_v57, 16  ;;  %v6977_v55 = vrot.slane %v8065_v0, 5 }
 0x392   :  { %v10663_v47 = vadd.f32 %v6315_v30, %v6118_v32  ;;  %7957 = vmatmul.msk.bf16.gmra.mxu1 %vm5170_vm2, %v7031_v22  ;;  %v7276_v30 = vsel %vm8456_vm9, %v7271_v63, %v7275_v11  ;;  %v7292_v32 = vshrl.u32 %v7151_v15, 16  ;;  %v5742_v22 = vadd.f32 %v10546_v49, %v10448_v18  ;;  %v10686_v49 = vpop.f32.mrf.mxu0 }
 0x393   :  { %v7397_v59 = vunpack.c.l.b16 %v7276_v30  ;;  %v7283_v11 = vrot.slane %v7281_v26, 5  ;;  %v7032_v63 = vpack.c.b16 %v7019_v61, %v7018_v50  ;;  %v6906_v30 = vld [vmem:[#allocation3 + $0x48] sm:$0xe]  ;;  %v7303_v18 = vrot.slane %v7301_v13, 5 }
 0x394   :  { %v7294_v29 = vrot.slane %v7292_v32, 4  ;;  %v7155_v13 = vld [vmem:[#allocation2 + $0x68] sm:$0xf] }
 0x395   :  { %v7409_v34 = vpack.c.b16 %v7397_v59, %v7396_v46  ;;  %v7284_v5 = vor.u32 %v7283_v11, %v7280_v4  ;;  %v6973_v59 = vrot.slane %v8064_v37, 5  ;;  %v7156_v4 = vld [vmem:[#allocation2 + $0x6c] sm:$0x1] }
 0x397   :  { %v6083_v45 = vpop.f32.mrf.mxu1  ;;  %v6974_v26 = vsel %vm9938_vm3, %v7942_v41, %v6973_v59  ;;  %v5745_v41 = vadd.f32 %v10612_v44, %v10511_v54 }
 0x398   :  { %v6119_v3 = vadd.f32 %v6083_v45, %v5741_v58  ;;  %v7289_v58 = vrot.slane %v7287_v17, 5  ;;  %v7285_v45 = vrot.slane %v7284_v5, 4  ;;  %v7020_v50 = vunpack.c.l.b16 %v6974_v26 }
 0x399   :  { %v6322_v33 = vpop.f32.mrf.mxu2  ;;  %v7323_v5 = vshll.u32 %v7155_v13, 16 }
 0x39a   :  { %v10676_v48 = vadd.f32 %v6317_v16, %v6119_v3  ;;  %v7295_v16 = vshll.u32 %v7151_v15, 16  ;;  %v7943_v3 = vrot.slane %v6906_v30, 9 }
 0x39b   :  { %v7325_v37 = vrot.slane %v7323_v5, 5  ;;  %v7159_v5 = vld [vmem:[#allocation2 + $0x78] sm:$0xf] }
 0x39c   :  { %v7297_v36 = vrot.slane %v7295_v16, 5  ;;  %v6978_v17 = vsel %vm9938_vm3, %v7943_v3, %v6977_v55  ;;  %v7154_v16 = vld [vmem:[#allocation2 + $0x64] sm:$0x1] }
 0x39e   :  { %7967 = vmatmul.msk.bf16.gmra.mxu2 %vm2050_vm10, %v7409_v34  ;;  %v7298_v46 = vor.u32 %v7297_v36, %v7294_v29  ;;  %v7290_v34 = vsel %vm8456_vm9, %v7285_v45, %v7289_v58  ;;  %v5744_v36 = vadd.f32 %v10596_v51, %v10491_v43  ;;  %v6908_v43 = vld [vmem:[#allocation3 + $0x68] sm:$0xe] }
 0x39f   :  { %v6086_v28 = vpop.f32.mrf.mxu1  ;;  %v7398_v61 = vunpack.c.l.b16 %v7290_v34 }
 0x3a0   :  { %v6120_v42 = vadd.f32 %v6086_v28, %v5742_v22  ;;  %v7299_v23 = vrot.slane %v7298_v46, 4  ;;  %v10700_v28 = vpop.f32.mrf.mxu0 }
 0x3a1   :  { %v6325_v27 = vpop.f32.mrf.mxu2 }
 0x3a2   :  { %v10683_v10 = vadd.f32 %v6320_v31, %v6120_v42  ;;  %7958 = vmatmul.msk.bf16.gmra.mxu1 %vm5170_vm2, %v7032_v63  ;;  %v5743_v31 = vadd.f32 %v10566_v62, %v10461_v56  ;;  %v7304_v20 = vsel %vm8456_vm9, %v7299_v23, %v7303_v18  ;;  %v7021_v56 = vunpack.c.l.b16 %v6978_v17  ;;  %v7153_v62 = vld [vmem:[#allocation2 + $0x60] sm:$0xf] }
 0x3a3   :  { %v7399_v15 = vunpack.c.l.b16 %v7304_v20  ;;  %v7306_v11 = vshrl.u32 %v7153_v62, 16  ;;  %v7309_v29 = vshll.u32 %v7153_v62, 16  ;;  %v7315_v42 = vshll.u32 %v7154_v16, 16  ;;  %v8066_v20 = vld [vmem:[#allocation3 + $0x6c] sm:$0x1] }
 0x3a4   :  { %v7320_v63 = vshrl.u32 %v7155_v13, 16  ;;  %v7033_v2 = vpack.c.b16 %v7021_v56, %v7020_v50  ;;  %v7945_v56 = vrot.slane %v6908_v43, 9 }
 0x3a5   :  { %v7410_v32 = vpack.c.b16 %v7399_v15, %v7398_v61  ;;  %v7308_v30 = vrot.slane %v7306_v11, 4  ;;  %v7311_v46 = vrot.slane %v7309_v29, 5  ;;  %v7317_v3 = vrot.slane %v7315_v42, 5  ;;  %v6907_v15 = vld [vmem:[#allocation3 + $0x60] sm:$0xe] }
 0x3a6   :  { %v7322_v18 = vrot.slane %v7320_v63, 4  ;;  %v6985_v61 = vrot.slane %v8066_v20, 5  ;;  %v7157_v63 = vld [vmem:[#allocation2 + $0x70] sm:$0xf] }
 0x3a7   :  { %v6088_v14 = vpop.f32.mrf.mxu1  ;;  %v7312_v59 = vor.u32 %v7311_v46, %v7308_v30  ;;  %v7337_v30 = vshll.u32 %v7157_v63, 16 }
 0x3a8   :  { %v6121_v57 = vadd.f32 %v6088_v14, %v5743_v31  ;;  %v7326_v55 = vor.u32 %v7325_v37, %v7322_v18  ;;  %v10714_v26 = vpop.f32.mrf.mxu0  ;;  %v6986_v11 = vsel %vm9938_vm3, %v7945_v56, %v6985_v61  ;;  %v7348_v18 = vshrl.u32 %v7159_v5, 16 }
 0x3a9   :  { %v6327_v24 = vpop.f32.mrf.mxu2  ;;  %v7313_v31 = vrot.slane %v7312_v59, 4  ;;  %v7023_v42 = vunpack.c.l.b16 %v6986_v11 }
 0x3aa   :  { %v10698_v22 = vadd.f32 %v6322_v33, %v6121_v57  ;;  %v7329_v33 = vshll.u32 %v7156_v4, 16  ;;  %v7327_v51 = vrot.slane %v7326_v55, 4  ;;  %v7944_v4 = vrot.slane %v6907_v15, 9 }
 0x3ab   :  { %v7318_v14 = vsel %vm8456_vm9, %v7313_v31, %v7317_v3  ;;  %v7339_v55 = vrot.slane %v7337_v30, 5 }
 0x3ac   :  { %v7331_v34 = vrot.slane %v7329_v33, 5  ;;  %v7400_v57 = vunpack.c.l.b16 %v7318_v14  ;;  %v7160_v33 = vld [vmem:[#allocation2 + $0x7c] sm:$0x1] }
 0x3ad   :  { %v7357_v37 = vshll.u32 %v7160_v33, 16 }
 0x3ae   :  { %7968 = vmatmul.msk.bf16.gmra.mxu2 %vm2050_vm10, %v7410_v32  ;;  %v8067_v32 = vld [vmem:[#allocation3 + $0x64] sm:$0x1] }
 0x3af   :  { %v6091_v58 = vpop.f32.mrf.mxu1  ;;  %v6981_v50 = vrot.slane %v8067_v32, 5  ;;  %v8068_v32 = vld [vmem:[#allocation3 + $0x7c] sm:$0x1] }
 0x3b0   :  { %v6122_v45 = vadd.f32 %v6091_v58, %v5744_v36  ;;  %v7158_v36 = vld [vmem:[#allocation2 + $0x74] sm:$0x1]  ;;  %v7334_v58 = vshrl.u32 %v7157_v63, 16  ;;  %v10725_v61 = vpop.f32.mrf.mxu0 }
 0x3b1   :  { %v6330_v23 = vpop.f32.mrf.mxu2  ;;  %v6982_v44 = vsel %vm9938_vm3, %v7944_v4, %v6981_v50  ;;  %v7343_v46 = vshll.u32 %v7158_v36, 16  ;;  %v6993_v50 = vrot.slane %v8068_v32, 5 }
 0x3b2   :  { %v10705_v0 = vadd.f32 %v6325_v27, %v6122_v45  ;;  %7959 = vmatmul.msk.bf16.gmra.mxu1 %vm5170_vm2, %v7033_v2  ;;  %v7332_v27 = vsel %vm8456_vm9, %v7327_v51, %v7331_v34  ;;  %v5746_v45 = vadd.f32 %v10661_v7, %v10529_v19  ;;  %v7022_v2 = vunpack.c.l.b16 %v6982_v44 }
 0x3b3   :  { %v7401_v62 = vunpack.c.l.b16 %v7332_v27  ;;  %v7336_v3 = vrot.slane %v7334_v58, 4  ;;  %v7350_v34 = vrot.slane %v7348_v18, 4  ;;  %v7359_v7 = vrot.slane %v7357_v37, 5  ;;  %v7164_v37 = vld [vmem:[#allocation2 + $0x8c] sm:$0x1] }
 0x3b4   :  { %v7034_v43 = vpack.c.b16 %v7023_v42, %v7022_v2  ;;  %v7162_v2 = vld [vmem:[#allocation2 + $0x84] sm:$0x1] }
 0x3b5   :  { %v7411_v29 = vpack.c.b16 %v7401_v62, %v7400_v57  ;;  %v7340_v14 = vor.u32 %v7339_v55, %v7336_v3  ;;  %v6910_v57 = vld [vmem:[#allocation3 + $0x78] sm:$0xe]  ;;  %v5747_v62 = vadd.f32 %v10672_v1, %v10548_v9  ;;  %v7371_v55 = vshll.u32 %v7162_v2, 16 }
 0x3b6   :  { %v7947_v42 = vrot.slane %v6910_v57, 9 }
 0x3b7   :  { %v6093_v17 = vpop.f32.mrf.mxu1  ;;  %v7341_v27 = vrot.slane %v7340_v14, 4 }
 0x3b8   :  { %v6123_v16 = vadd.f32 %v6093_v17, %v5745_v41  ;;  %v7345_v41 = vrot.slane %v7343_v46, 5  ;;  %v6994_v58 = vsel %vm9938_vm3, %v7947_v42, %v6993_v50  ;;  %v10740_v9 = vpop.f32.mrf.mxu0 }
 0x3b9   :  { %v6332_v13 = vpop.f32.mrf.mxu2  ;;  %v7025_v18 = vunpack.c.l.b16 %v6994_v58 }
 0x3ba   :  { %v10718_v54 = vadd.f32 %v6327_v24, %v6123_v16  ;;  %v7351_v24 = vshll.u32 %v7159_v5, 16  ;;  %v7346_v56 = vsel %vm8456_vm9, %v7341_v27, %v7345_v41  ;;  %v6909_v16 = vld [vmem:[#allocation3 + $0x70] sm:$0xe] }
 0x3bb   :  { %v7402_v4 = vunpack.c.l.b16 %v7346_v56  ;;  %v7946_v33 = vrot.slane %v6909_v16, 9  ;;  %v7373_v56 = vrot.slane %v7371_v55, 5 }
 0x3bc   :  { %v7353_v20 = vrot.slane %v7351_v24, 5  ;;  %v7163_v24 = vld [vmem:[#allocation2 + $0x88] sm:$0xf] }
 0x3be   :  { %7969 = vmatmul.msk.bf16.gmra.mxu2 %vm2050_vm10, %v7411_v29  ;;  %v7354_v19 = vor.u32 %v7353_v20, %v7350_v34  ;;  %v8069_v29 = vld [vmem:[#allocation3 + $0x74] sm:$0x1]  ;;  %v7376_v34 = vshrl.u32 %v7163_v24, 16  ;;  %v7385_v20 = vshll.u32 %v7164_v37, 16 }
 0x3bf   :  { %v6096_v59 = vpop.f32.mrf.mxu1  ;;  %v6989_v44 = vrot.slane %v8069_v29, 5  ;;  %v8070_v29 = vld [vmem:[#allocation3 + $0x8c] sm:$0x1] }
 0x3c0   :  { %v6124_v31 = vadd.f32 %v6096_v59, %v5746_v45  ;;  %v7355_v17 = vrot.slane %v7354_v19, 4  ;;  %v7161_v45 = vld [vmem:[#allocation2 + $0x80] sm:$0xf] }
 0x3c1   :  { %v6335_v51 = vpop.f32.mrf.mxu2  ;;  %v6990_v1 = vsel %vm9938_vm3, %v7946_v33, %v6989_v44  ;;  %v7362_v59 = vshrl.u32 %v7161_v45, 16  ;;  %v7365_v3 = vshll.u32 %v7161_v45, 16  ;;  %v7001_v44 = vrot.slane %v8070_v29, 5 }
 0x3c2   :  { %v10727_v15 = vadd.f32 %v6330_v23, %v6124_v31  ;;  %7960 = vmatmul.msk.bf16.gmra.mxu1 %vm5170_vm2, %v7034_v43  ;;  %v7360_v23 = vsel %vm8456_vm9, %v7355_v17, %v7359_v7  ;;  %v7024_v31 = vunpack.c.l.b16 %v6990_v1  ;;  %v7379_v43 = vshll.u32 %v7163_v24, 16 }
 0x3c3   :  { %v7403_v63 = vunpack.c.l.b16 %v7360_v23  ;;  %v7364_v41 = vrot.slane %v7362_v59, 4  ;;  %v7367_v19 = vrot.slane %v7365_v3, 5  ;;  %v7378_v7 = vrot.slane %v7376_v34, 4 }
 0x3c4   :  { %v7035_v57 = vpack.c.b16 %v7025_v18, %v7024_v31  ;;  %v7381_v32 = vrot.slane %v7379_v43, 5  ;;  %v7387_v23 = vrot.slane %v7385_v20, 5  ;;  %v5750_v34 = vadd.f32 %v10714_v26, %v10606_v53 }
 0x3c5   :  { %v7412_v30 = vpack.c.b16 %v7403_v63, %v7402_v4  ;;  %v7368_v50 = vor.u32 %v7367_v19, %v7364_v41  ;;  %v5749_v63 = vadd.f32 %v10700_v28, %v10598_v8  ;;  %v6465_v8 = vpop.f32.mrf.mxu3  ;;  %v5751_v53 = vadd.f32 %v10725_v61, %v10622_v40 }
 0x3c6   :  { %v7382_v16 = vor.u32 %v7381_v32, %v7378_v7  ;;  %v6913_v7 = vld [vmem:[#allocation3 + $0x90] sm:$0xe] }
 0x3c7   :  { %v6098_v11 = vpop.f32.mrf.mxu1 }
 0x3c8   :  { %v6125_v36 = vadd.f32 %v6098_v11, %v5747_v62  ;;  %v7383_v4 = vrot.slane %v7382_v16, 4  ;;  %v5735_v11 = vpop.f32.mrf.mxu0 }
 0x3c9   :  { %v6337_v5 = vpop.f32.mrf.mxu2  ;;  %v5753_v39 = vadd.f32 %v5735_v11, %v10636_v21 }
 0x3ca   :  { %v10738_v46 = vadd.f32 %v6332_v13, %v6125_v36  ;;  %v5748_v13 = vadd.f32 %v10686_v49, %v10577_v52  ;;  %v7369_v52 = vrot.slane %v7368_v50, 4  ;;  %v6912_v49 = vld [vmem:[#allocation3 + $0x88] sm:$0xe]  ;;  %v6911_v36 = vld [vmem:[#allocation3 + $0x80] sm:$0xe]  ;;  %v7009_v50 = vrot.slane %v10575_v35, 5 }
 0x3cb   :  { %v7949_v18 = vrot.slane %v6912_v49, 9  ;;  %v7948_v37 = vrot.slane %v6911_v36, 9  ;;  %v5752_v35 = vadd.f32 %v10740_v9, %v10627_v25 }
 0x3cc   :  { %v7374_v42 = vsel %vm8456_vm9, %v7369_v52, %v7373_v56  ;;  %v7950_v56 = vrot.slane %v6913_v7, 9 }
 0x3cd   :  { %v7404_v33 = vunpack.c.l.b16 %v7374_v42  ;;  %v7002_v59 = vsel %vm9938_vm3, %v7949_v18, %v7001_v44  ;;  %v6505_v18 = vadd.f32 %v6465_v8, %v10643_v12 }
 0x3ce   :  { %7970 = vmatmul.msk.bf16.gmra.mxu2 %vm2050_vm10, %v7412_v30  ;;  %v8071_v30 = vld [vmem:[#allocation3 + $0x84] sm:$0x1]  ;;  %v7027_v28 = vunpack.c.l.b16 %v7002_v59 }
 0x3cf   :  { %v6101_v14 = vpop.f32.mrf.mxu1  ;;  %v6997_v1 = vrot.slane %v8071_v30, 5 }
 0x3d0   :  { %v6126_v27 = vadd.f32 %v6101_v14, %v5748_v13  ;;  %v6843_v31 = vpop.f32.mrf.mxu0 }
 0x3d1   :  { %v6340_v17 = vpop.f32.mrf.mxu2  ;;  %v6998_v6 = vsel %vm9938_vm3, %v7948_v37, %v6997_v1  ;;  %v6883_v9 = vadd.f32 %v6843_v31, %v6505_v18 }
 0x3d2   :  { %v10747_v62 = vadd.f32 %v6335_v51, %v6126_v27  ;;  %7961 = vmatmul.msk.bf16.gmra.mxu1 %vm5170_vm2, %v7035_v57  ;;  %v7388_v51 = vsel %vm8456_vm9, %v7383_v4, %v7387_v23  ;;  %v7026_v13 = vunpack.c.l.b16 %v6998_v6  ;;  %v6467_v27 = vpop.f32.mrf.mxu3  ;;  %v7005_v57 = vrot.slane %v10573_v38, 5 }
 0x3d3   :  { %v7405_v45 = vunpack.c.l.b16 %v7388_v51  ;;  %v6506_v59 = vadd.f32 %v6467_v27, %v10654_v60 }
 0x3d4   :  { %v7036_v14 = vpack.c.b16 %v7027_v28, %v7026_v13 }
 0x3d5   :  { %v7413_v3 = vpack.c.b16 %v7405_v45, %v7404_v33 }
 0x3d7   :  { %v6103_v58 = vpop.f32.mrf.mxu1 }
 0x3d8   :  { %v6127_v2 = vadd.f32 %v6103_v58, %v5749_v63  ;;  %v6845_v52 = vpop.f32.mrf.mxu0 }
 0x3d9   :  { %v6342_v24 = vpop.f32.mrf.mxu2  ;;  %v6884_v21 = vadd.f32 %v6845_v52, %v6506_v59 }
 0x3da   :  { %v10758_v55 = vadd.f32 %v6337_v5, %v6127_v2  ;;  %v6914_v5 = vld [vmem:[#allocation3 + $0x98] sm:$0xe]  ;;  %v6470_v44 = vpop.f32.mrf.mxu3 }
 0x3db   :  { %v7951_v32 = vrot.slane %v6914_v5, 9  ;;  %v6507_v12 = vadd.f32 %v6470_v44, %v10663_v47 }
 0x3dd   :  { %v7010_v49 = vsel %vm9938_vm3, %v7951_v32, %v7009_v50 }
 0x3de   :  { %7971 = vmatmul.msk.bf16.gmra.mxu2 %vm2050_vm10, %v7413_v3  ;;  %v7029_v29 = vunpack.c.l.b16 %v7010_v49 }
 0x3df   :  { %v6106_v43 = vpop.f32.mrf.mxu1 }
 0x3e0   :  { %v6128_v20 = vadd.f32 %v6106_v43, %v5750_v34  ;;  %v6848_v51 = vpop.f32.mrf.mxu0 }
 0x3e1   :  { %v6345_v41 = vpop.f32.mrf.mxu2  ;;  %v6885_v43 = vadd.f32 %v6848_v51, %v6507_v12 }
 0x3e2   :  { %v10765_v19 = vadd.f32 %v6340_v17, %v6128_v20  ;;  %7962 = vmatmul.msk.bf16.gmra.mxu1 %vm5170_vm2, %v7036_v14  ;;  %v7006_v17 = vsel %vm9938_vm3, %v7950_v56, %v7005_v57  ;;  %v6472_v1 = vpop.f32.mrf.mxu3 }
 0x3e3   :  { %v7028_v38 = vunpack.c.l.b16 %v7006_v17  ;;  %v6508_v5 = vadd.f32 %v6472_v1, %v10676_v48 }
 0x3e5   :  { %v7037_v42 = vpack.c.b16 %v7029_v29, %v7028_v38 }
 0x3e7   :  { %v6108_v26 = vpop.f32.mrf.mxu1 }
 0x3e8   :  { %v6129_v16 = vadd.f32 %v6108_v26, %v5751_v53  ;;  %v6850_v25 = vpop.f32.mrf.mxu0 }
 0x3e9   :  { %v6347_v23 = vpop.f32.mrf.mxu2  ;;  %v6886_v27 = vadd.f32 %v6850_v25, %v6508_v5 }
 0x3ea   :  { %v10776_v4 = vadd.f32 %v6342_v24, %v6129_v16  ;;  %v6475_v6 = vpop.f32.mrf.mxu3 }
 0x3eb   :  { %v6509_v47 = vadd.f32 %v6475_v6, %v10683_v10 }
 0x3ef   :  { %v6111_v40 = vpop.f32.mrf.mxu1 }
 0x3f0   :  { %v6130_v61 = vadd.f32 %v6111_v40, %v5752_v35  ;;  %v6853_v11 = vpop.f32.mrf.mxu0 }
 0x3f1   :  { %v7450_v63 = vpop.f32.mrf.mxu2  ;;  %v6887_v16 = vadd.f32 %v6853_v11, %v6509_v47 }
 0x3f2   :  { %v10780_v36 = vadd.f32 %v6345_v41, %v6130_v61  ;;  %7963 = vmatmul.msk.bf16.gmra.mxu1 %vm5170_vm2, %v7037_v42  ;;  %v6477_v31 = vpop.f32.mrf.mxu3 }
 0x3f3   :  { %v6510_v48 = vadd.f32 %v6477_v31, %v10698_v22 }
 0x3f7   :  { %v6113_v33 = vpop.f32.mrf.mxu1 }
 0x3f8   :  { %v6131_v58 = vadd.f32 %v6113_v33, %v5753_v39  ;;  %v6855_v60 = vpop.f32.mrf.mxu0 }
 0x3f9   :  { %v7452_v30 = vpop.f32.mrf.mxu2  ;;  %v6888_v35 = vadd.f32 %v6855_v60, %v6510_v48 }
 0x3fa   :  { %v10785_v45 = vadd.f32 %v6347_v23, %v6131_v58  ;;  %v6480_v57 = vpop.f32.mrf.mxu3 }
 0x3fb   :  { %v6511_v10 = vadd.f32 %v6480_v57, %v10705_v0 }
 0x3ff   :  { %v7077_v2 = vpop.f32.mrf.mxu1 }
 0x400   :  { %v7117_v24 = vadd.f32 %v7077_v2, %v6883_v9  ;;  %v6858_v56 = vpop.f32.mrf.mxu0 }
 0x401   :  { %v7455_v37 = vpop.f32.mrf.mxu2  ;;  %v6889_v51 = vadd.f32 %v6858_v56, %v6511_v10 }
 0x402   :  { %v7490_v3 = vadd.f32 %v7450_v63, %v7117_v24  ;;  %v6482_v49 = vpop.f32.mrf.mxu3 }
 0x403   :  { %v6512_v22 = vadd.f32 %v6482_v49, %v10718_v54 }
 0x404   :  { %7506 = vst.msk [vmem:[#allocation15] sm:$0xff] %vm5170_vm2, %v7490_v3 }
 0x407   :  { %v7079_v28 = vpop.f32.mrf.mxu1 }
 0x408   :  { %v7118_v34 = vadd.f32 %v7079_v28, %v6884_v21  ;;  %v6860_v29 = vpop.f32.mrf.mxu0 }
 0x409   :  { %v7457_v13 = vpop.f32.mrf.mxu2  ;;  %v6890_v25 = vadd.f32 %v6860_v29, %v6512_v22 }
 0x40a   :  { %v7491_v8 = vadd.f32 %v7452_v30, %v7118_v34  ;;  %v6485_v63 = vpop.f32.mrf.mxu3 }
 0x40b   :  { %v6513_v0 = vadd.f32 %v6485_v63, %v10727_v15 }
 0x40c   :  { %7507 = vst.msk [vmem:[#allocation15 + $0x8] sm:$0xff] %vm5170_vm2, %v7491_v8 }
 0x40f   :  { %v7082_v20 = vpop.f32.mrf.mxu1 }
 0x410   :  { %v7119_v14 = vadd.f32 %v7082_v20, %v6885_v43  ;;  %v6863_v39 = vpop.f32.mrf.mxu0 }
 0x411   :  { %v7460_v41 = vpop.f32.mrf.mxu2  ;;  %v6891_v3 = vadd.f32 %v6863_v39, %v6513_v0 }
 0x412   :  { %v7492_v7 = vadd.f32 %v7455_v37, %v7119_v14  ;;  %v6487_v18 = vpop.f32.mrf.mxu3 }
 0x413   :  { %v6514_v54 = vadd.f32 %v6487_v18, %v10738_v46 }
 0x414   :  { %7508 = vst.msk [vmem:[#allocation15 + $0x10] sm:$0xff] %vm5170_vm2, %v7492_v7 }
 0x417   :  { %v7084_v32 = vpop.f32.mrf.mxu1 }
 0x418   :  { %v7120_v50 = vadd.f32 %v7084_v32, %v6886_v27  ;;  %v6865_v24 = vpop.f32.mrf.mxu0 }
 0x419   :  { %v7462_v53 = vpop.f32.mrf.mxu2 }
 0x41a   :  { %v7493_v26 = vadd.f32 %v7457_v13, %v7120_v50  ;;  %v6490_v6 = vpop.f32.mrf.mxu3  ;;  %v6892_v13 = vadd.f32 %v6865_v24, %v6514_v54 }
 0x41b   :  { %v6515_v15 = vadd.f32 %v6490_v6, %v10747_v62 }
 0x41c   :  { %7509 = vst.msk [vmem:[#allocation15 + $0x18] sm:$0xff] %vm5170_vm2, %v7493_v26 }
 0x41f   :  { %v7087_v23 = vpop.f32.mrf.mxu1 }
 0x420   :  { %v7121_v52 = vadd.f32 %v7087_v23, %v6887_v16  ;;  %v6868_v34 = vpop.f32.mrf.mxu0 }
 0x421   :  { %v7465_v17 = vpop.f32.mrf.mxu2 }
 0x422   :  { %v7494_v38 = vadd.f32 %v7460_v41, %v7121_v52  ;;  %v6492_v43 = vpop.f32.mrf.mxu3  ;;  %v6893_v41 = vadd.f32 %v6868_v34, %v6515_v15 }
 0x423   :  { %v6516_v46 = vadd.f32 %v6492_v43, %v10758_v55 }
 0x424   :  { %7510 = vst.msk [vmem:[#allocation15 + $0x20] sm:$0xff] %vm5170_vm2, %v7494_v38 }
 0x427   :  { %v7089_v44 = vpop.f32.mrf.mxu1 }
 0x428   :  { %v7122_v40 = vadd.f32 %v7089_v44, %v6888_v35  ;;  %v6870_v14 = vpop.f32.mrf.mxu0 }
 0x429   :  { %v7467_v61 = vpop.f32.mrf.mxu2  ;;  %v6894_v32 = vadd.f32 %v6870_v14, %v6516_v46 }
 0x42a   :  { %v7495_v42 = vadd.f32 %v7462_v53, %v7122_v40  ;;  %v6495_v57 = vpop.f32.mrf.mxu3 }
 0x42b   :  { %v6517_v62 = vadd.f32 %v6495_v57, %v10765_v19 }
 0x42c   :  { %7511 = vst.msk [vmem:[#allocation15 + $0x28] sm:$0xff] %vm5170_vm2, %v7495_v42 }
 0x42f   :  { %v7092_v33 = vpop.f32.mrf.mxu1 }
 0x430   :  { %v7123_v58 = vadd.f32 %v7092_v33, %v6889_v51  ;;  %v6873_v50 = vpop.f32.mrf.mxu0 }
 0x431   :  { %v7470_v1 = vpop.f32.mrf.mxu2  ;;  %v6895_v23 = vadd.f32 %v6873_v50, %v6517_v62 }
 0x432   :  { %v7496_v30 = vadd.f32 %v7465_v17, %v7123_v58  ;;  %v6497_v16 = vpop.f32.mrf.mxu3 }
 0x433   :  { %v6518_v55 = vadd.f32 %v6497_v16, %v10776_v4 }
 0x434   :  { %7512 = vst.msk [vmem:[#allocation15 + $0x30] sm:$0xff] %vm5170_vm2, %v7496_v30 }
 0x437   :  { %v7094_v9 = vpop.f32.mrf.mxu1 }
 0x438   :  { %v7124_v2 = vadd.f32 %v7094_v9, %v6890_v25  ;;  %v6875_v49 = vpop.f32.mrf.mxu0 }
 0x439   :  { %v7472_v59 = vpop.f32.mrf.mxu2  ;;  %v6896_v29 = vadd.f32 %v6875_v49, %v6518_v55 }
 0x43a   :  { %v7497_v37 = vadd.f32 %v7467_v61, %v7124_v2  ;;  %v6500_v35 = vpop.f32.mrf.mxu3 }
 0x43b   :  { %v6519_v19 = vadd.f32 %v6500_v35, %v10780_v36 }
 0x43c   :  { %7513 = vst.msk [vmem:[#allocation15 + $0x38] sm:$0xff] %vm5170_vm2, %v7497_v37 }
 0x43f   :  { %v7097_v21 = vpop.f32.mrf.mxu1 }
 0x440   :  { %v7125_v11 = vadd.f32 %v7097_v21, %v6891_v3  ;;  %v6878_v10 = vpop.f32.mrf.mxu0 }
 0x441   :  { %v7475_v8 = vpop.f32.mrf.mxu2  ;;  %v6897_v42 = vadd.f32 %v6878_v10, %v6519_v19 }
 0x442   :  { %v7498_v28 = vadd.f32 %v7470_v1, %v7125_v11  ;;  %v6502_v33 = vpop.f32.mrf.mxu3 }
 0x443   :  { %v6520_v4 = vadd.f32 %v6502_v33, %v10785_v45 }
 0x444   :  { %7514 = vst.msk [vmem:[#allocation15 + $0x40] sm:$0xff] %vm5170_vm2, %v7498_v28 }
 0x447   :  { %v7099_v12 = vpop.f32.mrf.mxu1 }
 0x448   :  { %v7126_v31 = vadd.f32 %v7099_v12, %v6892_v13  ;;  %v6880_v22 = vpop.f32.mrf.mxu0 }
 0x449   :  { %v7477_v7 = vpop.f32.mrf.mxu2  ;;  %v6898_v30 = vadd.f32 %v6880_v22, %v6520_v4 }
 0x44a   :  { %v7499_v20 = vadd.f32 %v7472_v59, %v7126_v31 }
 0x44c   :  { %7515 = vst.msk [vmem:[#allocation15 + $0x48] sm:$0xff] %vm5170_vm2, %v7499_v20 }
 0x44f   :  { %v7102_v60 = vpop.f32.mrf.mxu1 }
 0x450   :  { %v7127_v5 = vadd.f32 %v7102_v60, %v6893_v41 }
 0x451   :  { %v7480_v56 = vpop.f32.mrf.mxu2 }
 0x452   :  { %v7500_v27 = vadd.f32 %v7475_v8, %v7127_v5 }
 0x454   :  { %7516 = vst.msk [vmem:[#allocation15 + $0x50] sm:$0xff] %vm5170_vm2, %v7500_v27 }
 0x457   :  { %v7104_v53 = vpop.f32.mrf.mxu1 }
 0x458   :  { %v7128_v47 = vadd.f32 %v7104_v53, %v6894_v32 }
 0x459   :  { %v7482_v38 = vpop.f32.mrf.mxu2 }
 0x45a   :  { %v7501_v26 = vadd.f32 %v7477_v7, %v7128_v47 }
 0x45c   :  { %7517 = vst.msk [vmem:[#allocation15 + $0x58] sm:$0xff] %vm5170_vm2, %v7501_v26 }
 0x45f   :  { %v7107_v52 = vpop.f32.mrf.mxu1 }
 0x460   :  { %v7129_v17 = vadd.f32 %v7107_v52, %v6895_v23 }
 0x461   :  { %v7485_v63 = vpop.f32.mrf.mxu2 }
 0x462   :  { %v7502_v48 = vadd.f32 %v7480_v56, %v7129_v17 }
 0x464   :  { %7518 = vst.msk [vmem:[#allocation15 + $0x60] sm:$0xff] %vm5170_vm2, %v7502_v48 }
 0x467   :  { %v7109_v44 = vpop.f32.mrf.mxu1 }
 0x468   :  { %v7130_v40 = vadd.f32 %v7109_v44, %v6896_v29 }
 0x469   :  { %v7487_v18 = vpop.f32.mrf.mxu2 }
 0x46a   :  { %v7503_v61 = vadd.f32 %v7482_v38, %v7130_v40 }
 0x46c   :  { %7519 = vst.msk [vmem:[#allocation15 + $0x68] sm:$0xff] %vm5170_vm2, %v7503_v61 }
 0x46f   :  { %v7112_v51 = vpop.f32.mrf.mxu1 }
 0x470   :  { %v7131_v39 = vadd.f32 %v7112_v51, %v6897_v42 }
 0x472   :  { %v7504_v58 = vadd.f32 %v7485_v63, %v7131_v39 }
 0x474   :  { %7520 = vst.msk [vmem:[#allocation15 + $0x70] sm:$0xff] %vm5170_vm2, %v7504_v58 }
 0x477   :  { %v7114_v1 = vpop.f32.mrf.mxu1 }
 0x478   :  { %v7132_v36 = vadd.f32 %v7114_v1, %v6898_v30 }
 0x47a   :  { %v7505_v25 = vadd.f32 %v7487_v18, %v7132_v36 }
 0x47c   :  { %7521 = vst.msk [vmem:[#allocation15 + $0x78] sm:$0xff] %vm5170_vm2, %v7505_v25 }
 0x47d   :  { %7534 = dma.vmem_to_hbm [thread:$0]  %s7527_s1, 2048, %s7529_s13, [#allocation6], %s8251_s25, %s8251_s25, %s8252_s26  }
 0x47e   :  { %8248 = dma.done.wait [#allocation6], 2048  }
 0x47f   :  { %8249 = vsyncadd [#allocation6], 4294965248 }
 0x480   :  { %7539 = vsyncpa [#allocation5], 1 }
 0x481   :  { %7540 = vsyncpa [#allocation8], 1 }
 0x482   :  { %7541 = vsyncpa [#allocation11], 1 }
 0x483   :  { %7542 = vsyncpa [#allocation14], 1 }
 0x484   :  { %7543 = vsyncpa [#allocation6], 1 }

</bundles_post_ra>
